<compile_context>
chip_gen: v7x
topology: tpu7x:2x2x1
jax: 0.10.0
libtpu: 0.0.40
codegen_flags: <defaults>
</compile_context>

<pallas_src>
import functools

import jax
import jax.numpy as jnp
from jax.experimental import pallas as pl
from jax.experimental.pallas import tpu as pltpu

C_IN = 256
C_OUT = 3


def inner_cos_kernel(xs_ref, xd_ref, ts_ref, td_ref, w_ref, b_ref,
                     ys_ref, yd_ref, part_ref, *, block_b, n_images):
    """One grid step = `block_b` images.

    Per image: 1x1 conv as a (3,256)x(256,HW) MXU matmul, +bias, tanh, and an
    L1 partial sum.  Images past the true batch size (zero-padded tail) are
    masked out of the loss; their outputs are discarded by the wrapper.
    """
    i = pl.program_id(0)
    w = w_ref[...]                          # (3, 256): resident across steps
    bias = b_ref[...].astype(jnp.float32)   # (3, 1) -> broadcasts over lanes

    def conv_tanh(x):                       # x: (256, HW)
        y = jnp.dot(w, x, preferred_element_type=jnp.float32)   # (3, HW), MXU
        return jnp.tanh(y + bias)

    acc = jnp.float32(0.0)
    for b in range(block_b):                # small static unroll (block_b <= 4)
        ys = conv_tanh(xs_ref[b])           # ST branch
        yd = conv_tanh(xd_ref[b])           # DE branch
        ys_ref[b] = ys.astype(ys_ref.dtype)
        yd_ref[b] = yd.astype(yd_ref.dtype)
        part = (jnp.sum(jnp.abs(ys - ts_ref[b].astype(jnp.float32)))
                + jnp.sum(jnp.abs(yd - td_ref[b].astype(jnp.float32))))
        valid = (i * block_b + b) < n_images           # mask padded tail image
        acc = acc + jnp.where(valid, part, jnp.float32(0.0))

    # One lane-dense (1,1,128) row per step (512 B writeback); keeps the grid
    # axis fully "parallel" (no shared accumulator, no cross-step RMW).
    part_ref[...] = jnp.full(part_ref.shape, acc, jnp.float32)


def _pick_block(n):
    """Images per grid step.  Each image is ~4.2 MB of double-buffered VMEM,
    so B=4 (~17 MiB) fits comfortably under the 40 MiB scoped-VMEM limit we
    request (safe on v5e/v6e and under v7x's 64 MiB physical VMEM).  Keep the
    grid length >= 2 so both v7x TensorCores get work."""
    if n < 2:
        return 1
    return max(1, min(4, n // 2))


@functools.partial(jax.jit, static_argnames=("act_dtype",))
def _inner_cos_fwd(feat_st, feat_de, tst, tde, w_t, b, *, act_dtype=jnp.float32):
    """feat_*: (N, 256, H, W); t*: (N, 3, H, W); w_t: (3, 256); b: (3, 1)."""
    N, C, H, W = feat_st.shape
    HW = H * W
    assert C == C_IN and HW % 128 == 0

    B = _pick_block(N)
    G = -(-N // B)            # ceil(N / B)
    N_pad = G * B

    # Pure reshapes of contiguous NCHW data -- no transposes, no concat.
    # Optional bf16 activation streaming (weights cast to match); targets,
    # accumulation and outputs stay f32.
    xs = feat_st.reshape(N, C_IN, HW).astype(act_dtype)
    xd = feat_de.reshape(N, C_IN, HW).astype(act_dtype)
    ts = tst.reshape(N, C_OUT, HW)
    td = tde.reshape(N, C_OUT, HW)
    w = w_t.astype(act_dtype)

    if N_pad != N:            # ragged batch: zero-pad, mask loss in-kernel
        pad = ((0, N_pad - N), (0, 0), (0, 0))
        xs = jnp.pad(xs, pad)
        xd = jnp.pad(xd, pad)
        ts = jnp.pad(ts, pad)
        td = jnp.pad(td, pad)

    itemsize = jnp.dtype(act_dtype).itemsize
    cost = pl.CostEstimate(
        flops=2 * 2 * N_pad * C_OUT * HW * C_IN,               # two matmuls/img
        transcendentals=2 * N_pad * C_OUT * HW,                # tanh
        bytes_accessed=(2 * N_pad * C_IN * HW * itemsize       # activations
                        + 4 * N_pad * C_OUT * HW * 4           # targets+outputs
                        + (C_OUT * C_IN) * itemsize + C_OUT * 4),
    )

    kernel = functools.partial(inner_cos_kernel, block_b=B, n_images=N)

    ys, yd, parts = pl.pallas_call(
        kernel,
        out_shape=(
            jax.ShapeDtypeStruct((N_pad, C_OUT, HW), jnp.float32),
            jax.ShapeDtypeStruct((N_pad, C_OUT, HW), jnp.float32),
            jax.ShapeDtypeStruct((G, 1, 128), jnp.float32),     # L1 partials
        ),
        grid_spec=pltpu.PrefetchScalarGridSpec(
            num_scalar_prefetch=0,
            grid=(G,),
            in_specs=[
                pl.BlockSpec((B, C_IN, HW), lambda i: (i, 0, 0)),    # ST feats
                pl.BlockSpec((B, C_IN, HW), lambda i: (i, 0, 0)),    # DE feats
                pl.BlockSpec((B, C_OUT, HW), lambda i: (i, 0, 0)),   # target ST
                pl.BlockSpec((B, C_OUT, HW), lambda i: (i, 0, 0)),   # target DE
                pl.BlockSpec((C_OUT, C_IN), lambda i: (0, 0)),       # conv weight
                pl.BlockSpec((C_OUT, 1), lambda i: (0, 0)),          # conv bias
            ],
            out_specs=[
                pl.BlockSpec((B, C_OUT, HW), lambda i: (i, 0, 0)),   # tanh ST
                pl.BlockSpec((B, C_OUT, HW), lambda i: (i, 0, 0)),   # tanh DE
                pl.BlockSpec((1, 1, 128), lambda i: (i, 0, 0)),      # L1 partials
            ],
        ),
        compiler_params=pltpu.CompilerParams(
            dimension_semantics=("parallel",),       # per-block outputs disjoint
            vmem_limit_bytes=40 * 1024 * 1024,       # B=4 needs ~17 MiB dbl-buf
        ),
        cost_estimate=cost,
    )(xs, xd, ts, td, w, b)

    ST = ys[:N].reshape(N, C_OUT, H, W)
    DE = yd[:N].reshape(N, C_OUT, H, W)
    # L1Loss(mean) on ST + L1Loss(mean) on DE: both have N*3*HW elements, so
    # the combined abs-sum divided by N*3*HW equals the sum of the two means.
    loss = jnp.sum(parts[:, 0, 0]) / jnp.float32(N * C_OUT * HW)
    return ST, DE, loss


class InnerCosPallas:
    """JAX/Pallas port of InnerCos.  Parameters created deterministically."""

    def __init__(self, key, act_dtype=jnp.float32):
        kw, kb = jax.random.split(key)
        # nn.Conv2d(256, 3, 1): weight (3, 256, 1, 1), bias (3,)
        bound = 1.0 / jnp.sqrt(jnp.float32(C_IN))
        w_oihw = jax.random.uniform(kw, (C_OUT, C_IN, 1, 1), jnp.float32, -bound, bound)
        self.w_t = w_oihw[:, :, 0, 0]                                  # (3, 256)
        self.b = jax.random.uniform(kb, (C_OUT, 1), jnp.float32, -bound, bound)
        self.act_dtype = act_dtype          # set jnp.bfloat16 for ~2x HBM saving
        self.targetst = None
        self.targetde = None
        self.loss = None
        self.ST = None
        self.DE = None
        self.output = None

    def set_target(self, targetde, targetst):
        # TODO(synk): bilinear F.interpolate to (32,32) is host-side glue; here
        # targets are assumed to already be provided at (N, 3, 32, 32).
        self.targetst = targetst
        self.targetde = targetde

    def forward(self, in_data):
        loss_co = in_data[1]
        feat_st, feat_de = loss_co[0], loss_co[1]          # (N, 256, 32, 32)
        self.ST, self.DE, self.loss = _inner_cos_fwd(
            feat_st, feat_de, self.targetst, self.targetde, self.w_t, self.b,
            act_dtype=self.act_dtype)
        self.output = in_data[0]
        return self.output


def _reference(feat_st, feat_de, tst, tde, w_t, b):
    def conv_tanh(x):
        y = jnp.einsum("oc,nchw->nohw", w_t, x) + b[:, 0][None, :, None, None]
        return jnp.tanh(y)
    ST = conv_tanh(feat_st)
    DE = conv_tanh(feat_de)
    loss = jnp.mean(jnp.abs(ST - tst)) + jnp.mean(jnp.abs(DE - tde))
    return ST, DE, loss


if __name__ == "__main__":
    key = jax.random.PRNGKey(0)
    k_mod, k1, k2, k3, k4, k5 = jax.random.split(key, 6)

    H, W = 32, 32   # conv outputs must be 32x32 to match the targets

    def run_case(n, act_dtype, atol):
        module = InnerCosPallas(k_mod, act_dtype=act_dtype)
        feat_st = jax.random.normal(k1, (n, C_IN, H, W), jnp.float32)
        feat_de = jax.random.normal(k2, (n, C_IN, H, W), jnp.float32)
        targetst = jax.random.normal(k3, (n, C_OUT, H, W), jnp.float32)
        targetde = jax.random.normal(k4, (n, C_OUT, H, W), jnp.float32)
        passthrough = jax.random.normal(k5, (n, C_OUT, H, W), jnp.float32)

        module.set_target(targetde, targetst)
        out = module.forward([passthrough, [feat_st, feat_de]])
        out = jax.block_until_ready(out)
        loss = jax.block_until_ready(module.loss)

        ST_ref, DE_ref, loss_ref = _reference(
            feat_st, feat_de, targetst, targetde, module.w_t, module.b)
        assert jnp.allclose(out, passthrough)
        assert jnp.allclose(module.ST, ST_ref, atol=atol, rtol=1e-5)
        assert jnp.allclose(module.DE, DE_ref, atol=atol, rtol=1e-5)
        assert jnp.allclose(loss, loss_ref, atol=atol, rtol=1e-5)

    run_case(8, jnp.float32, 1e-5)      # even batch: B=4, grid=2 (megacore)
    run_case(5, jnp.float32, 1e-5)      # ragged batch: B=2, grid=3, padded+masked
    run_case(8, jnp.bfloat16, 3e-2)     # bf16 activation streaming path

    print("KERNEL_OK")
</pallas_src>

<mosaic_0001>
module attributes {stable_mosaic.version = 11 : i64} {
  func.func @inner_cos_kernel(%arg0: i32, %arg1: memref<4x256x1024xf32, #tpu.memory_space<vmem>>, %arg2: memref<4x256x1024xf32, #tpu.memory_space<vmem>>, %arg3: memref<4x3x1024xf32, #tpu.memory_space<vmem>>, %arg4: memref<4x3x1024xf32, #tpu.memory_space<vmem>>, %arg5: memref<3x256xf32, #tpu.memory_space<vmem>>, %arg6: memref<3x1xf32, #tpu.memory_space<vmem>>, %arg7: memref<4x3x1024xf32, #tpu.memory_space<vmem>>, %arg8: memref<4x3x1024xf32, #tpu.memory_space<vmem>>, %arg9: memref<1x1x128xf32, #tpu.memory_space<vmem>>) attributes {dimension_semantics = [#tpu.dimension_semantics<parallel>], iteration_bounds = array<i64: 2>, scalar_prefetch = 0 : i64, scratch_operands = 0 : i64, tpu.core_type = #tpu.core_type<tc>, window_params = [{transform_indices = @transform_0, window_bounds = array<i64: 4, 256, 1024>}, {transform_indices = @transform_1, window_bounds = array<i64: 4, 256, 1024>}, {transform_indices = @transform_2, window_bounds = array<i64: 4, 3, 1024>}, {transform_indices = @transform_3, window_bounds = array<i64: 4, 3, 1024>}, {pipeline_mode = #tpu.pipeline_mode<synchronous>, transform_indices = @transform_4, window_bounds = array<i64: 3, 256>}, {pipeline_mode = #tpu.pipeline_mode<synchronous>, transform_indices = @transform_5, window_bounds = array<i64: 3, 1>}, {transform_indices = @transform_6, window_bounds = array<i64: 4, 3, 1024>}, {transform_indices = @transform_7, window_bounds = array<i64: 4, 3, 1024>}, {transform_indices = @transform_8, window_bounds = array<i64: 1, 1, 128>}]} {
    %c0 = arith.constant 0 : index
    %c0_0 = arith.constant 0 : index
    %0 = vector.load %arg5[%c0, %c0_0] : memref<3x256xf32, #tpu.memory_space<vmem>>, vector<3x256xf32>
    %c0_1 = arith.constant 0 : index
    %c0_2 = arith.constant 0 : index
    %1 = vector.load %arg6[%c0_1, %c0_2] : memref<3x1xf32, #tpu.memory_space<vmem>>, vector<3x1xf32>
    %c0_3 = arith.constant 0 : index
    %c0_4 = arith.constant 0 : index
    %c0_5 = arith.constant 0 : index
    %2 = vector.load %arg1[%c0_3, %c0_4, %c0_5] : memref<4x256x1024xf32, #tpu.memory_space<vmem>>, vector<1x256x1024xf32>
    %3 = vector.shape_cast %2 : vector<1x256x1024xf32> to vector<256x1024xf32>
    %cst = arith.constant dense<0.000000e+00> : vector<3x1024xf32>
    %4 = tpu.matmul %0, %3, %cst {dimension_numbers = #tpu.dot_dimension_numbers<[1], [0], [0], [1], [0, 0, 1, 1], [], []>} : vector<3x256xf32>, vector<256x1024xf32>, vector<3x1024xf32> -> vector<3x1024xf32>
    %5 = vector.broadcast %1 : vector<3x1xf32> to vector<3x1024xf32>
    %6 = arith.addf %4, %5 : vector<3x1024xf32>
    %7 = math.tanh %6 : vector<3x1024xf32>
    %c0_6 = arith.constant 0 : index
    %c0_7 = arith.constant 0 : index
    %c0_8 = arith.constant 0 : index
    %8 = vector.load %arg2[%c0_6, %c0_7, %c0_8] : memref<4x256x1024xf32, #tpu.memory_space<vmem>>, vector<1x256x1024xf32>
    %9 = vector.shape_cast %8 : vector<1x256x1024xf32> to vector<256x1024xf32>
    %cst_9 = arith.constant dense<0.000000e+00> : vector<3x1024xf32>
    %10 = tpu.matmul %0, %9, %cst_9 {dimension_numbers = #tpu.dot_dimension_numbers<[1], [0], [0], [1], [0, 0, 1, 1], [], []>} : vector<3x256xf32>, vector<256x1024xf32>, vector<3x1024xf32> -> vector<3x1024xf32>
    %11 = vector.broadcast %1 : vector<3x1xf32> to vector<3x1024xf32>
    %12 = arith.addf %10, %11 : vector<3x1024xf32>
    %13 = math.tanh %12 : vector<3x1024xf32>
    %c0_10 = arith.constant 0 : index
    %c0_11 = arith.constant 0 : index
    %c0_12 = arith.constant 0 : index
    %14 = vector.load %arg7[%c0_10, %c0_11, %c0_12] : memref<4x3x1024xf32, #tpu.memory_space<vmem>>, vector<1x3x1024xf32>
    %15 = vector.shape_cast %14 : vector<1x3x1024xf32> to vector<3x1024xf32>
    %16 = vector.shape_cast %7 : vector<3x1024xf32> to vector<1x3x1024xf32>
    tpu.vector_store %arg7[%c0_10, %c0_11, %c0_12], %16 {strides = array<i32>} : memref<4x3x1024xf32, #tpu.memory_space<vmem>>, vector<1x3x1024xf32>,
    %c0_13 = arith.constant 0 : index
    %c0_14 = arith.constant 0 : index
    %c0_15 = arith.constant 0 : index
    %17 = vector.load %arg8[%c0_13, %c0_14, %c0_15] : memref<4x3x1024xf32, #tpu.memory_space<vmem>>, vector<1x3x1024xf32>
    %18 = vector.shape_cast %17 : vector<1x3x1024xf32> to vector<3x1024xf32>
    %19 = vector.shape_cast %13 : vector<3x1024xf32> to vector<1x3x1024xf32>
    tpu.vector_store %arg8[%c0_13, %c0_14, %c0_15], %19 {strides = array<i32>} : memref<4x3x1024xf32, #tpu.memory_space<vmem>>, vector<1x3x1024xf32>,
    %c0_16 = arith.constant 0 : index
    %c0_17 = arith.constant 0 : index
    %c0_18 = arith.constant 0 : index
    %20 = vector.load %arg3[%c0_16, %c0_17, %c0_18] : memref<4x3x1024xf32, #tpu.memory_space<vmem>>, vector<1x3x1024xf32>
    %21 = vector.shape_cast %20 : vector<1x3x1024xf32> to vector<3x1024xf32>
    %22 = arith.subf %7, %21 : vector<3x1024xf32>
    %23 = math.absf %22 : vector<3x1024xf32>
    %24 = vector.shape_cast %23 : vector<3x1024xf32> to vector<1x3x1024xf32>
    %cst_19 = arith.constant dense<0.000000e+00> : vector<1xf32>
    %25 = vector.multi_reduction <add>, %24, %cst_19 [1, 2] : vector<1x3x1024xf32> to vector<1xf32>
    %26 = vector.shape_cast %25 : vector<1xf32> to vector<1x1x1xf32>
    %27 = vector.extract %26[0, 0, 0] : f32 from vector<1x1x1xf32>
    %c0_20 = arith.constant 0 : index
    %c0_21 = arith.constant 0 : index
    %c0_22 = arith.constant 0 : index
    %28 = vector.load %arg4[%c0_20, %c0_21, %c0_22] : memref<4x3x1024xf32, #tpu.memory_space<vmem>>, vector<1x3x1024xf32>
    %29 = vector.shape_cast %28 : vector<1x3x1024xf32> to vector<3x1024xf32>
    %30 = arith.subf %13, %29 : vector<3x1024xf32>
    %31 = math.absf %30 : vector<3x1024xf32>
    %32 = vector.shape_cast %31 : vector<3x1024xf32> to vector<1x3x1024xf32>
    %cst_23 = arith.constant dense<0.000000e+00> : vector<1xf32>
    %33 = vector.multi_reduction <add>, %32, %cst_23 [1, 2] : vector<1x3x1024xf32> to vector<1xf32>
    %34 = vector.shape_cast %33 : vector<1xf32> to vector<1x1x1xf32>
    %35 = vector.extract %34[0, 0, 0] : f32 from vector<1x1x1xf32>
    %36 = arith.addf %27, %35 : f32
    %c4_i32 = arith.constant 4 : i32
    %37 = arith.muli %arg0, %c4_i32 : i32
    %c0_i32 = arith.constant 0 : i32
    %38 = arith.addi %37, %c0_i32 : i32
    %c8_i32 = arith.constant 8 : i32
    %39 = arith.cmpi slt, %38, %c8_i32 : i32
    %cst_24 = arith.constant 0.000000e+00 : f32
    %40 = arith.select %39, %36, %cst_24 : f32
    %cst_25 = arith.constant 0.000000e+00 : f32
    %41 = arith.addf %cst_25, %40 : f32
    %c1 = arith.constant 1 : index
    %c0_26 = arith.constant 0 : index
    %c0_27 = arith.constant 0 : index
    %42 = vector.load %arg1[%c1, %c0_26, %c0_27] : memref<4x256x1024xf32, #tpu.memory_space<vmem>>, vector<1x256x1024xf32>
    %43 = vector.shape_cast %42 : vector<1x256x1024xf32> to vector<256x1024xf32>
    %cst_28 = arith.constant dense<0.000000e+00> : vector<3x1024xf32>
    %44 = tpu.matmul %0, %43, %cst_28 {dimension_numbers = #tpu.dot_dimension_numbers<[1], [0], [0], [1], [0, 0, 1, 1], [], []>} : vector<3x256xf32>, vector<256x1024xf32>, vector<3x1024xf32> -> vector<3x1024xf32>
    %45 = vector.broadcast %1 : vector<3x1xf32> to vector<3x1024xf32>
    %46 = arith.addf %44, %45 : vector<3x1024xf32>
    %47 = math.tanh %46 : vector<3x1024xf32>
    %c1_29 = arith.constant 1 : index
    %c0_30 = arith.constant 0 : index
    %c0_31 = arith.constant 0 : index
    %48 = vector.load %arg2[%c1_29, %c0_30, %c0_31] : memref<4x256x1024xf32, #tpu.memory_space<vmem>>, vector<1x256x1024xf32>
    %49 = vector.shape_cast %48 : vector<1x256x1024xf32> to vector<256x1024xf32>
    %cst_32 = arith.constant dense<0.000000e+00> : vector<3x1024xf32>
    %50 = tpu.matmul %0, %49, %cst_32 {dimension_numbers = #tpu.dot_dimension_numbers<[1], [0], [0], [1], [0, 0, 1, 1], [], []>} : vector<3x256xf32>, vector<256x1024xf32>, vector<3x1024xf32> -> vector<3x1024xf32>
    %51 = vector.broadcast %1 : vector<3x1xf32> to vector<3x1024xf32>
    %52 = arith.addf %50, %51 : vector<3x1024xf32>
    %53 = math.tanh %52 : vector<3x1024xf32>
    %c1_33 = arith.constant 1 : index
    %c0_34 = arith.constant 0 : index
    %c0_35 = arith.constant 0 : index
    %54 = vector.load %arg7[%c1_33, %c0_34, %c0_35] : memref<4x3x1024xf32, #tpu.memory_space<vmem>>, vector<1x3x1024xf32>
    %55 = vector.shape_cast %54 : vector<1x3x1024xf32> to vector<3x1024xf32>
    %56 = vector.shape_cast %47 : vector<3x1024xf32> to vector<1x3x1024xf32>
    tpu.vector_store %arg7[%c1_33, %c0_34, %c0_35], %56 {strides = array<i32>} : memref<4x3x1024xf32, #tpu.memory_space<vmem>>, vector<1x3x1024xf32>,
    %c1_36 = arith.constant 1 : index
    %c0_37 = arith.constant 0 : index
    %c0_38 = arith.constant 0 : index
    %57 = vector.load %arg8[%c1_36, %c0_37, %c0_38] : memref<4x3x1024xf32, #tpu.memory_space<vmem>>, vector<1x3x1024xf32>
    %58 = vector.shape_cast %57 : vector<1x3x1024xf32> to vector<3x1024xf32>
    %59 = vector.shape_cast %53 : vector<3x1024xf32> to vector<1x3x1024xf32>
    tpu.vector_store %arg8[%c1_36, %c0_37, %c0_38], %59 {strides = array<i32>} : memref<4x3x1024xf32, #tpu.memory_space<vmem>>, vector<1x3x1024xf32>,
    %c1_39 = arith.constant 1 : index
    %c0_40 = arith.constant 0 : index
    %c0_41 = arith.constant 0 : index
    %60 = vector.load %arg3[%c1_39, %c0_40, %c0_41] : memref<4x3x1024xf32, #tpu.memory_space<vmem>>, vector<1x3x1024xf32>
    %61 = vector.shape_cast %60 : vector<1x3x1024xf32> to vector<3x1024xf32>
    %62 = arith.subf %47, %61 : vector<3x1024xf32>
    %63 = math.absf %62 : vector<3x1024xf32>
    %64 = vector.shape_cast %63 : vector<3x1024xf32> to vector<1x3x1024xf32>
    %cst_42 = arith.constant dense<0.000000e+00> : vector<1xf32>
    %65 = vector.multi_reduction <add>, %64, %cst_42 [1, 2] : vector<1x3x1024xf32> to vector<1xf32>
    %66 = vector.shape_cast %65 : vector<1xf32> to vector<1x1x1xf32>
    %67 = vector.extract %66[0, 0, 0] : f32 from vector<1x1x1xf32>
    %c1_43 = arith.constant 1 : index
    %c0_44 = arith.constant 0 : index
    %c0_45 = arith.constant 0 : index
    %68 = vector.load %arg4[%c1_43, %c0_44, %c0_45] : memref<4x3x1024xf32, #tpu.memory_space<vmem>>, vector<1x3x1024xf32>
    %69 = vector.shape_cast %68 : vector<1x3x1024xf32> to vector<3x1024xf32>
    %70 = arith.subf %53, %69 : vector<3x1024xf32>
    %71 = math.absf %70 : vector<3x1024xf32>
    %72 = vector.shape_cast %71 : vector<3x1024xf32> to vector<1x3x1024xf32>
    %cst_46 = arith.constant dense<0.000000e+00> : vector<1xf32>
    %73 = vector.multi_reduction <add>, %72, %cst_46 [1, 2] : vector<1x3x1024xf32> to vector<1xf32>
    %74 = vector.shape_cast %73 : vector<1xf32> to vector<1x1x1xf32>
    %75 = vector.extract %74[0, 0, 0] : f32 from vector<1x1x1xf32>
    %76 = arith.addf %67, %75 : f32
    %c4_i32_47 = arith.constant 4 : i32
    %77 = arith.muli %arg0, %c4_i32_47 : i32
    %c1_i32 = arith.constant 1 : i32
    %78 = arith.addi %77, %c1_i32 : i32
    %c8_i32_48 = arith.constant 8 : i32
    %79 = arith.cmpi slt, %78, %c8_i32_48 : i32
    %cst_49 = arith.constant 0.000000e+00 : f32
    %80 = arith.select %79, %76, %cst_49 : f32
    %81 = arith.addf %41, %80 : f32
    %c2 = arith.constant 2 : index
    %c0_50 = arith.constant 0 : index
    %c0_51 = arith.constant 0 : index
    %82 = vector.load %arg1[%c2, %c0_50, %c0_51] : memref<4x256x1024xf32, #tpu.memory_space<vmem>>, vector<1x256x1024xf32>
    %83 = vector.shape_cast %82 : vector<1x256x1024xf32> to vector<256x1024xf32>
    %cst_52 = arith.constant dense<0.000000e+00> : vector<3x1024xf32>
    %84 = tpu.matmul %0, %83, %cst_52 {dimension_numbers = #tpu.dot_dimension_numbers<[1], [0], [0], [1], [0, 0, 1, 1], [], []>} : vector<3x256xf32>, vector<256x1024xf32>, vector<3x1024xf32> -> vector<3x1024xf32>
    %85 = vector.broadcast %1 : vector<3x1xf32> to vector<3x1024xf32>
    %86 = arith.addf %84, %85 : vector<3x1024xf32>
    %87 = math.tanh %86 : vector<3x1024xf32>
    %c2_53 = arith.constant 2 : index
    %c0_54 = arith.constant 0 : index
    %c0_55 = arith.constant 0 : index
    %88 = vector.load %arg2[%c2_53, %c0_54, %c0_55] : memref<4x256x1024xf32, #tpu.memory_space<vmem>>, vector<1x256x1024xf32>
    %89 = vector.shape_cast %88 : vector<1x256x1024xf32> to vector<256x1024xf32>
    %cst_56 = arith.constant dense<0.000000e+00> : vector<3x1024xf32>
    %90 = tpu.matmul %0, %89, %cst_56 {dimension_numbers = #tpu.dot_dimension_numbers<[1], [0], [0], [1], [0, 0, 1, 1], [], []>} : vector<3x256xf32>, vector<256x1024xf32>, vector<3x1024xf32> -> vector<3x1024xf32>
    %91 = vector.broadcast %1 : vector<3x1xf32> to vector<3x1024xf32>
    %92 = arith.addf %90, %91 : vector<3x1024xf32>
    %93 = math.tanh %92 : vector<3x1024xf32>
    %c2_57 = arith.constant 2 : index
    %c0_58 = arith.constant 0 : index
    %c0_59 = arith.constant 0 : index
    %94 = vector.load %arg7[%c2_57, %c0_58, %c0_59] : memref<4x3x1024xf32, #tpu.memory_space<vmem>>, vector<1x3x1024xf32>
    %95 = vector.shape_cast %94 : vector<1x3x1024xf32> to vector<3x1024xf32>
    %96 = vector.shape_cast %87 : vector<3x1024xf32> to vector<1x3x1024xf32>
    tpu.vector_store %arg7[%c2_57, %c0_58, %c0_59], %96 {strides = array<i32>} : memref<4x3x1024xf32, #tpu.memory_space<vmem>>, vector<1x3x1024xf32>,
    %c2_60 = arith.constant 2 : index
    %c0_61 = arith.constant 0 : index
    %c0_62 = arith.constant 0 : index
    %97 = vector.load %arg8[%c2_60, %c0_61, %c0_62] : memref<4x3x1024xf32, #tpu.memory_space<vmem>>, vector<1x3x1024xf32>
    %98 = vector.shape_cast %97 : vector<1x3x1024xf32> to vector<3x1024xf32>
    %99 = vector.shape_cast %93 : vector<3x1024xf32> to vector<1x3x1024xf32>
    tpu.vector_store %arg8[%c2_60, %c0_61, %c0_62], %99 {strides = array<i32>} : memref<4x3x1024xf32, #tpu.memory_space<vmem>>, vector<1x3x1024xf32>,
    %c2_63 = arith.constant 2 : index
    %c0_64 = arith.constant 0 : index
    %c0_65 = arith.constant 0 : index
    %100 = vector.load %arg3[%c2_63, %c0_64, %c0_65] : memref<4x3x1024xf32, #tpu.memory_space<vmem>>, vector<1x3x1024xf32>
    %101 = vector.shape_cast %100 : vector<1x3x1024xf32> to vector<3x1024xf32>
    %102 = arith.subf %87, %101 : vector<3x1024xf32>
    %103 = math.absf %102 : vector<3x1024xf32>
    %104 = vector.shape_cast %103 : vector<3x1024xf32> to vector<1x3x1024xf32>
    %cst_66 = arith.constant dense<0.000000e+00> : vector<1xf32>
    %105 = vector.multi_reduction <add>, %104, %cst_66 [1, 2] : vector<1x3x1024xf32> to vector<1xf32>
    %106 = vector.shape_cast %105 : vector<1xf32> to vector<1x1x1xf32>
    %107 = vector.extract %106[0, 0, 0] : f32 from vector<1x1x1xf32>
    %c2_67 = arith.constant 2 : index
    %c0_68 = arith.constant 0 : index
    %c0_69 = arith.constant 0 : index
    %108 = vector.load %arg4[%c2_67, %c0_68, %c0_69] : memref<4x3x1024xf32, #tpu.memory_space<vmem>>, vector<1x3x1024xf32>
    %109 = vector.shape_cast %108 : vector<1x3x1024xf32> to vector<3x1024xf32>
    %110 = arith.subf %93, %109 : vector<3x1024xf32>
    %111 = math.absf %110 : vector<3x1024xf32>
    %112 = vector.shape_cast %111 : vector<3x1024xf32> to vector<1x3x1024xf32>
    %cst_70 = arith.constant dense<0.000000e+00> : vector<1xf32>
    %113 = vector.multi_reduction <add>, %112, %cst_70 [1, 2] : vector<1x3x1024xf32> to vector<1xf32>
    %114 = vector.shape_cast %113 : vector<1xf32> to vector<1x1x1xf32>
    %115 = vector.extract %114[0, 0, 0] : f32 from vector<1x1x1xf32>
    %116 = arith.addf %107, %115 : f32
    %c4_i32_71 = arith.constant 4 : i32
    %117 = arith.muli %arg0, %c4_i32_71 : i32
    %c2_i32 = arith.constant 2 : i32
    %118 = arith.addi %117, %c2_i32 : i32
    %c8_i32_72 = arith.constant 8 : i32
    %119 = arith.cmpi slt, %118, %c8_i32_72 : i32
    %cst_73 = arith.constant 0.000000e+00 : f32
    %120 = arith.select %119, %116, %cst_73 : f32
    %121 = arith.addf %81, %120 : f32
    %c3 = arith.constant 3 : index
    %c0_74 = arith.constant 0 : index
    %c0_75 = arith.constant 0 : index
    %122 = vector.load %arg1[%c3, %c0_74, %c0_75] : memref<4x256x1024xf32, #tpu.memory_space<vmem>>, vector<1x256x1024xf32>
    %123 = vector.shape_cast %122 : vector<1x256x1024xf32> to vector<256x1024xf32>
    %cst_76 = arith.constant dense<0.000000e+00> : vector<3x1024xf32>
    %124 = tpu.matmul %0, %123, %cst_76 {dimension_numbers = #tpu.dot_dimension_numbers<[1], [0], [0], [1], [0, 0, 1, 1], [], []>} : vector<3x256xf32>, vector<256x1024xf32>, vector<3x1024xf32> -> vector<3x1024xf32>
    %125 = vector.broadcast %1 : vector<3x1xf32> to vector<3x1024xf32>
    %126 = arith.addf %124, %125 : vector<3x1024xf32>
    %127 = math.tanh %126 : vector<3x1024xf32>
    %c3_77 = arith.constant 3 : index
    %c0_78 = arith.constant 0 : index
    %c0_79 = arith.constant 0 : index
    %128 = vector.load %arg2[%c3_77, %c0_78, %c0_79] : memref<4x256x1024xf32, #tpu.memory_space<vmem>>, vector<1x256x1024xf32>
    %129 = vector.shape_cast %128 : vector<1x256x1024xf32> to vector<256x1024xf32>
    %cst_80 = arith.constant dense<0.000000e+00> : vector<3x1024xf32>
    %130 = tpu.matmul %0, %129, %cst_80 {dimension_numbers = #tpu.dot_dimension_numbers<[1], [0], [0], [1], [0, 0, 1, 1], [], []>} : vector<3x256xf32>, vector<256x1024xf32>, vector<3x1024xf32> -> vector<3x1024xf32>
    %131 = vector.broadcast %1 : vector<3x1xf32> to vector<3x1024xf32>
    %132 = arith.addf %130, %131 : vector<3x1024xf32>
    %133 = math.tanh %132 : vector<3x1024xf32>
    %c3_81 = arith.constant 3 : index
    %c0_82 = arith.constant 0 : index
    %c0_83 = arith.constant 0 : index
    %134 = vector.load %arg7[%c3_81, %c0_82, %c0_83] : memref<4x3x1024xf32, #tpu.memory_space<vmem>>, vector<1x3x1024xf32>
    %135 = vector.shape_cast %134 : vector<1x3x1024xf32> to vector<3x1024xf32>
    %136 = vector.shape_cast %127 : vector<3x1024xf32> to vector<1x3x1024xf32>
    tpu.vector_store %arg7[%c3_81, %c0_82, %c0_83], %136 {strides = array<i32>} : memref<4x3x1024xf32, #tpu.memory_space<vmem>>, vector<1x3x1024xf32>,
    %c3_84 = arith.constant 3 : index
    %c0_85 = arith.constant 0 : index
    %c0_86 = arith.constant 0 : index
    %137 = vector.load %arg8[%c3_84, %c0_85, %c0_86] : memref<4x3x1024xf32, #tpu.memory_space<vmem>>, vector<1x3x1024xf32>
    %138 = vector.shape_cast %137 : vector<1x3x1024xf32> to vector<3x1024xf32>
    %139 = vector.shape_cast %133 : vector<3x1024xf32> to vector<1x3x1024xf32>
    tpu.vector_store %arg8[%c3_84, %c0_85, %c0_86], %139 {strides = array<i32>} : memref<4x3x1024xf32, #tpu.memory_space<vmem>>, vector<1x3x1024xf32>,
    %c3_87 = arith.constant 3 : index
    %c0_88 = arith.constant 0 : index
    %c0_89 = arith.constant 0 : index
    %140 = vector.load %arg3[%c3_87, %c0_88, %c0_89] : memref<4x3x1024xf32, #tpu.memory_space<vmem>>, vector<1x3x1024xf32>
    %141 = vector.shape_cast %140 : vector<1x3x1024xf32> to vector<3x1024xf32>
    %142 = arith.subf %127, %141 : vector<3x1024xf32>
    %143 = math.absf %142 : vector<3x1024xf32>
    %144 = vector.shape_cast %143 : vector<3x1024xf32> to vector<1x3x1024xf32>
    %cst_90 = arith.constant dense<0.000000e+00> : vector<1xf32>
    %145 = vector.multi_reduction <add>, %144, %cst_90 [1, 2] : vector<1x3x1024xf32> to vector<1xf32>
    %146 = vector.shape_cast %145 : vector<1xf32> to vector<1x1x1xf32>
    %147 = vector.extract %146[0, 0, 0] : f32 from vector<1x1x1xf32>
    %c3_91 = arith.constant 3 : index
    %c0_92 = arith.constant 0 : index
    %c0_93 = arith.constant 0 : index
    %148 = vector.load %arg4[%c3_91, %c0_92, %c0_93] : memref<4x3x1024xf32, #tpu.memory_space<vmem>>, vector<1x3x1024xf32>
    %149 = vector.shape_cast %148 : vector<1x3x1024xf32> to vector<3x1024xf32>
    %150 = arith.subf %133, %149 : vector<3x1024xf32>
    %151 = math.absf %150 : vector<3x1024xf32>
    %152 = vector.shape_cast %151 : vector<3x1024xf32> to vector<1x3x1024xf32>
    %cst_94 = arith.constant dense<0.000000e+00> : vector<1xf32>
    %153 = vector.multi_reduction <add>, %152, %cst_94 [1, 2] : vector<1x3x1024xf32> to vector<1xf32>
    %154 = vector.shape_cast %153 : vector<1xf32> to vector<1x1x1xf32>
    %155 = vector.extract %154[0, 0, 0] : f32 from vector<1x1x1xf32>
    %156 = arith.addf %147, %155 : f32
    %c4_i32_95 = arith.constant 4 : i32
    %157 = arith.muli %arg0, %c4_i32_95 : i32
    %c3_i32 = arith.constant 3 : i32
    %158 = arith.addi %157, %c3_i32 : i32
    %c8_i32_96 = arith.constant 8 : i32
    %159 = arith.cmpi slt, %158, %c8_i32_96 : i32
    %cst_97 = arith.constant 0.000000e+00 : f32
    %160 = arith.select %159, %156, %cst_97 : f32
    %161 = arith.addf %121, %160 : f32
    %162 = vector.broadcast %161 : f32 to vector<1x1x128xf32>
    %c0_98 = arith.constant 0 : index
    %c0_99 = arith.constant 0 : index
    %c0_100 = arith.constant 0 : index
    %163 = vector.load %arg9[%c0_98, %c0_99, %c0_100] : memref<1x1x128xf32, #tpu.memory_space<vmem>>, vector<1x1x128xf32>
    tpu.vector_store %arg9[%c0_98, %c0_99, %c0_100], %162 {strides = array<i32>} : memref<1x1x128xf32, #tpu.memory_space<vmem>>, vector<1x1x128xf32>,
    return
  }
  func.func @transform_0(%arg0: i32) -> (i32, i32, i32) {
    %c0_i32 = arith.constant 0 : i32
    %c0_i32_0 = arith.constant 0 : i32
    %c0_i32_1 = arith.constant 0 : i32
    return %arg0, %c0_i32, %c0_i32_0 : i32, i32, i32
  }
  func.func @transform_1(%arg0: i32) -> (i32, i32, i32) {
    %c0_i32 = arith.constant 0 : i32
    %c0_i32_0 = arith.constant 0 : i32
    %c0_i32_1 = arith.constant 0 : i32
    return %arg0, %c0_i32, %c0_i32_0 : i32, i32, i32
  }
  func.func @transform_2(%arg0: i32) -> (i32, i32, i32) {
    %c0_i32 = arith.constant 0 : i32
    %c0_i32_0 = arith.constant 0 : i32
    %c0_i32_1 = arith.constant 0 : i32
    return %arg0, %c0_i32, %c0_i32_0 : i32, i32, i32
  }
  func.func @transform_3(%arg0: i32) -> (i32, i32, i32) {
    %c0_i32 = arith.constant 0 : i32
    %c0_i32_0 = arith.constant 0 : i32
    %c0_i32_1 = arith.constant 0 : i32
    return %arg0, %c0_i32, %c0_i32_0 : i32, i32, i32
  }
  func.func @transform_4(%arg0: i32) -> (i32, i32) {
    %c0_i32 = arith.constant 0 : i32
    %c0_i32_0 = arith.constant 0 : i32
    %c0_i32_1 = arith.constant 0 : i32
    return %c0_i32, %c0_i32_0 : i32, i32
  }
  func.func @transform_5(%arg0: i32) -> (i32, i32) {
    %c0_i32 = arith.constant 0 : i32
    %c0_i32_0 = arith.constant 0 : i32
    %c0_i32_1 = arith.constant 0 : i32
    return %c0_i32, %c0_i32_0 : i32, i32
  }
  func.func @transform_6(%arg0: i32) -> (i32, i32, i32) {
    %c0_i32 = arith.constant 0 : i32
    %c0_i32_0 = arith.constant 0 : i32
    %c0_i32_1 = arith.constant 0 : i32
    return %arg0, %c0_i32, %c0_i32_0 : i32, i32, i32
  }
  func.func @transform_7(%arg0: i32) -> (i32, i32, i32) {
    %c0_i32 = arith.constant 0 : i32
    %c0_i32_0 = arith.constant 0 : i32
    %c0_i32_1 = arith.constant 0 : i32
    return %arg0, %c0_i32, %c0_i32_0 : i32, i32, i32
  }
  func.func @transform_8(%arg0: i32) -> (i32, i32, i32) {
    %c0_i32 = arith.constant 0 : i32
    %c0_i32_0 = arith.constant 0 : i32
    %c0_i32_1 = arith.constant 0 : i32
    return %arg0, %c0_i32, %c0_i32_0 : i32, i32, i32
  }
}

</mosaic_0001>

<bundles_post_ra>
// kernel: _inner_cos_fwd.1
= control target key start
LH: loop header
LB: loop body
LE: loop exit
PB: predicated region body
PF: predicated region fallthrough
CT: control target
= control target key end

     0   :  { %s9524_s27 = smov 0   ;;  %s11967_s0 = inlined_call_operand.vmem [shape: f32[8,256,1024], index: 0, kind: input, shape index: {}]   ;;  %s11968_s1 = inlined_call_operand.vmem [shape: f32[8,256,1024], index: 1, kind: input, shape index: {}]   ;;  %s11969_s2 = inlined_call_operand.vmem [shape: f32[8,3,1024], index: 2, kind: input, shape index: {}]   ;;  %s11970_s3 = inlined_call_operand.vmem [shape: f32[8,3,1024], index: 3, kind: input, shape index: {}]   ;;  %s11971_s4 = inlined_call_operand.vmem [shape: f32[3,256], index: 4, kind: input, shape index: {}]   ;;  %s11972_s5 = inlined_call_operand.vmem [shape: f32[3,1], index: 5, kind: input, shape index: {}]   ;;  %s11973_s6 = inlined_call_operand.vmem [shape: f32[8,3,1024], index: 6, kind: output, shape index: {0}]   ;;  %s11974_s7 = inlined_call_operand.vmem [shape: f32[8,3,1024], index: 7, kind: output, shape index: {1}]   ;;  %s11975_s8 = inlined_call_operand.vmem [shape: f32[2,1,128], index: 8, kind: output, shape index: {2}]  }
   0x1 LB: > { %s9530_s28 = sadd.s32 4294967295, %s9476_s27   ;;  %p5615_p0 = scmp.ge.s32.totalorder %s9476_s27, 1  ;;  %s9476_s27 = sphi %s9524_s27, %s19_s27  }
   0x2   : > { %p305_p1 = scmp.lt.s32.totalorder %s9476_s27, 3 }
   0x4   : > { %p306_p2 = pnand %p5615_p0, %p305_p1 }
   0x5   : > { %s9535_s29 = sshll.u32 (!%p306_p2), %s9530_s28, 2  ;;  %v9540_v0 = vld [vmem:[%s11971_s4] sm:$0x77] (!%p306_p2)  ;;  %vm1591_vm0 = vcmask (!%p306_p2), 1042432   ;;  %p410_p7 = scmp.lt.s32.totalorder (!%p306_p2), %s9530_s28, 1 }
   0x6   : > { %309 = sbr.rel (%p306_p2) target bundleno = 1494 (0x5d6), region = 44  ;;  %p369_p3 = scmp.lt.s32.totalorder (!%p306_p2), %s9535_s29, 7  ;;  %v9545_v1 = vcombine.high (!%p306_p2), %v9540_v0, %v9540_v0 }
   0x7   : > { %p1674_p4 = scmp.lt.s32.totalorder (!%p306_p2), %s9535_s29, 8 }
   0x8   : > { %743 = vmatprep.mubr.f32.mxu0 (!%p306_p2), %v9545_v1  ;;  %814 = vmatprep.mubr.f32.mxu1 (!%p306_p2), %v9545_v1 }
   0xd   : > { %s9548_s10 = scalar_select %p369_p3, %s9535_s29, 7 }
   0xe   : > { %s11983_s28 = smov (!%p410_p7, %s9530_s28), 1 }
   0xf   : > { %s7221_s11 = sshll.u32 %s9548_s10, 11  ;;  %s10166_s24 = sshll.u32 %s9548_s10, 5 }
  0x10   : > { %s9558_s14 = scalar_lea.vmem %s11967_s0, %s7221_s11  ;;  %s9822_s19 = scalar_lea.vmem %s11968_s1, %s7221_s11 }
  0x11   : > { %v416_v2 = vld [vmem:[%s9558_s14 + $0x8] sm:$0xff]  ;;  %v418_v4 = vld [vmem:[%s9558_s14 + $0x18] sm:$0xff]  ;;  %v415_v7 = vld [vmem:[%s9558_s14] sm:$0xff]  ;;  %s10180_s30 = scalar_lea.vmem %s11969_s2, %s10166_s24  ;;  %s10213_s11 = scalar_lea.vmem %s11973_s6, %s10166_s24 }
  0x12   : > { %v424_v3 = vld [vmem:[%s9558_s14 + $0x48] sm:$0xff]  ;;  %v426_v6 = vld [vmem:[%s9558_s14 + $0x58] sm:$0xff]  ;;  %v423_v8 = vld [vmem:[%s9558_s14 + $0x40] sm:$0xff]  ;;  %s10488_s17 = scalar_lea.vmem %s11970_s3, %s10166_s24  ;;  %s10521_s21 = scalar_lea.vmem %s11974_s7, %s10166_s24 }
  0x13   : > { %v7227_v5 = vpack.c.bf16 %v424_v3, %v416_v2  ;;  %v7291_v9 = vpack.c.bf16 %v426_v6, %v418_v4  ;;  %v7229_v10 = vpack.c.bf16 %v423_v8, %v415_v7  ;;  %v417_v11 = vld [vmem:[%s9558_s14 + $0x10] sm:$0xff]  ;;  %v432_v13 = vld [vmem:[%s9558_s14 + $0x88] sm:$0xff]  ;;  %v434_v16 = vld [vmem:[%s9558_s14 + $0x98] sm:$0xff]  ;;  %s5450_s24 = sadd.s32 3, %s9535_s29 }
  0x14   : > { %v425_v12 = vld [vmem:[%s9558_s14 + $0x50] sm:$0xff]  ;;  %v440_v15 = vld [vmem:[%s9558_s14 + $0xc8] sm:$0xff]  ;;  %v442_v17 = vld [vmem:[%s9558_s14 + $0xd8] sm:$0xff]  ;;  %p5451_p8 = scmp.lt.s32.totalorder %s5450_s24, 8 }
  0x15   : > { %7228 = vmatprep.subr.bf16.mxu0 %v7227_v5  ;;  %v7293_v14 = vpack.c.bf16 %v425_v12, %v417_v11  ;;  %7292 = vmatprep.subr.bf16.mxu1 %v7291_v9  ;;  %v7231_v18 = vpack.c.bf16 %v440_v15, %v432_v13  ;;  %v7295_v19 = vpack.c.bf16 %v442_v17, %v434_v16  ;;  %v431_v20 = vld [vmem:[%s9558_s14 + $0x80] sm:$0xff]  ;;  %v433_v22 = vld [vmem:[%s9558_s14 + $0x90] sm:$0xff]  ;;  %v448_v25 = vld [vmem:[%s9558_s14 + $0x108] sm:$0xff] }
  0x16   : > { %7230 = vmatpush1.bf16.msra.mxu0 %v7229_v10  ;;  %v439_v21 = vld [vmem:[%s9558_s14 + $0xc0] sm:$0xff]  ;;  %v441_v24 = vld [vmem:[%s9558_s14 + $0xd0] sm:$0xff]  ;;  %v456_v26 = vld [vmem:[%s9558_s14 + $0x148] sm:$0xff] }
  0x17   : > { %7294 = vmatpush1.bf16.msra.mxu1 %v7293_v14  ;;  %v7233_v23 = vpack.c.bf16 %v439_v21, %v431_v20  ;;  %7232 = vmatprep.subr.bf16.mxu0 %v7231_v18  ;;  %v7297_v27 = vpack.c.bf16 %v441_v24, %v433_v22  ;;  %v7235_v28 = vpack.c.bf16 %v456_v26, %v448_v25  ;;  %v450_v29 = vld [vmem:[%s9558_s14 + $0x118] sm:$0xff]  ;;  %v447_v31 = vld [vmem:[%s9558_s14 + $0x100] sm:$0xff]  ;;  %v449_v34 = vld [vmem:[%s9558_s14 + $0x110] sm:$0xff]  ;;  %v9478_v24 = vmov 0  }
  0x18   : > { %7296 = vmatprep.subr.bf16.mxu1 %v7295_v19  ;;  %v458_v30 = vld [vmem:[%s9558_s14 + $0x158] sm:$0xff]  ;;  %v455_v33 = vld [vmem:[%s9558_s14 + $0x140] sm:$0xff]  ;;  %v457_v35 = vld [vmem:[%s9558_s14 + $0x150] sm:$0xff]  ;;  %9300 = vset.pattern.permute.xlu0 %v9478_v24 }
  0x19   : > { %v7299_v32 = vpack.c.bf16 %v458_v30, %v450_v29  ;;  %v7237_v36 = vpack.c.bf16 %v455_v33, %v447_v31  ;;  %v464_v37 = vld [vmem:[%s9558_s14 + $0x188] sm:$0xff]  ;;  %v466_v39 = vld [vmem:[%s9558_s14 + $0x198] sm:$0xff]  ;;  %v7301_v40 = vpack.c.bf16 %v457_v35, %v449_v34  ;;  %v463_v43 = vld [vmem:[%s9558_s14 + $0x180] sm:$0xff] }
  0x1a   : > { %7234 = vmatpush1.bf16.msra.mxu0 %v7233_v23  ;;  %v472_v38 = vld [vmem:[%s9558_s14 + $0x1c8] sm:$0xff]  ;;  %v474_v42 = vld [vmem:[%s9558_s14 + $0x1d8] sm:$0xff]  ;;  %v471_v44 = vld [vmem:[%s9558_s14 + $0x1c0] sm:$0xff] }
  0x1b   : > { %7298 = vmatpush1.bf16.msra.mxu1 %v7297_v27  ;;  %7236 = vmatprep.subr.bf16.mxu0 %v7235_v28  ;;  %v7239_v41 = vpack.c.bf16 %v472_v38, %v464_v37  ;;  %v7303_v45 = vpack.c.bf16 %v474_v42, %v466_v39  ;;  %v465_v46 = vld [vmem:[%s9558_s14 + $0x190] sm:$0xff]  ;;  %v480_v48 = vld [vmem:[%s9558_s14 + $0x208] sm:$0xff]  ;;  %v482_v50 = vld [vmem:[%s9558_s14 + $0x218] sm:$0xff]  ;;  %v7241_v52 = vpack.c.bf16 %v471_v44, %v463_v43 }
  0x1c   : > { %7300 = vmatprep.subr.bf16.mxu1 %v7299_v32  ;;  %v473_v47 = vld [vmem:[%s9558_s14 + $0x1d0] sm:$0xff]  ;;  %v488_v49 = vld [vmem:[%s9558_s14 + $0x248] sm:$0xff]  ;;  %v490_v51 = vld [vmem:[%s9558_s14 + $0x258] sm:$0xff] }
  0x1d   : > { %v7305_v53 = vpack.c.bf16 %v473_v47, %v465_v46  ;;  %v7243_v54 = vpack.c.bf16 %v488_v49, %v480_v48  ;;  %v479_v55 = vld [vmem:[%s9558_s14 + $0x200] sm:$0xff]  ;;  %v481_v57 = vld [vmem:[%s9558_s14 + $0x210] sm:$0xff]  ;;  %v7307_v58 = vpack.c.bf16 %v490_v51, %v482_v50  ;;  %v496_v60 = vld [vmem:[%s9558_s14 + $0x288] sm:$0xff] }
  0x1e   : > { %7238 = vmatpush1.bf16.msra.mxu0 %v7237_v36  ;;  %v487_v56 = vld [vmem:[%s9558_s14 + $0x240] sm:$0xff]  ;;  %v489_v59 = vld [vmem:[%s9558_s14 + $0x250] sm:$0xff]  ;;  %v504_v61 = vld [vmem:[%s9558_s14 + $0x2c8] sm:$0xff] }
  0x1f   : > { %7302 = vmatpush1.bf16.msra.mxu1 %v7301_v40  ;;  %7240 = vmatprep.subr.bf16.mxu0 %v7239_v41  ;;  %v498_v62 = vld [vmem:[%s9558_s14 + $0x298] sm:$0xff]  ;;  %v7245_v2 = vpack.c.bf16 %v487_v56, %v479_v55  ;;  %v7309_v3 = vpack.c.bf16 %v489_v59, %v481_v57  ;;  %v7247_v4 = vpack.c.bf16 %v504_v61, %v496_v60  ;;  %v495_v5 = vld [vmem:[%s9558_s14 + $0x280] sm:$0xff]  ;;  %v497_v7 = vld [vmem:[%s9558_s14 + $0x290] sm:$0xff] }
  0x20   : > { %7304 = vmatprep.subr.bf16.mxu1 %v7303_v45  ;;  %v506_v63 = vld [vmem:[%s9558_s14 + $0x2d8] sm:$0xff]  ;;  %v503_v6 = vld [vmem:[%s9558_s14 + $0x2c0] sm:$0xff]  ;;  %v505_v9 = vld [vmem:[%s9558_s14 + $0x2d0] sm:$0xff] }
  0x21   : > { %v7311_v8 = vpack.c.bf16 %v506_v63, %v498_v62  ;;  %v512_v10 = vld [vmem:[%s9558_s14 + $0x308] sm:$0xff]  ;;  %v514_v12 = vld [vmem:[%s9558_s14 + $0x318] sm:$0xff]  ;;  %v7249_v14 = vpack.c.bf16 %v503_v6, %v495_v5  ;;  %v7313_v15 = vpack.c.bf16 %v505_v9, %v497_v7  ;;  %v511_v17 = vld [vmem:[%s9558_s14 + $0x300] sm:$0xff] }
  0x22   : > { %7242 = vmatpush1.bf16.msra.mxu0 %v7241_v52  ;;  %v520_v11 = vld [vmem:[%s9558_s14 + $0x348] sm:$0xff]  ;;  %v522_v13 = vld [vmem:[%s9558_s14 + $0x358] sm:$0xff]  ;;  %v519_v18 = vld [vmem:[%s9558_s14 + $0x340] sm:$0xff] }
  0x23   : > { %7306 = vmatpush1.bf16.msra.mxu1 %v7305_v53  ;;  %7244 = vmatprep.subr.bf16.mxu0 %v7243_v54  ;;  %v7251_v16 = vpack.c.bf16 %v520_v11, %v512_v10  ;;  %v513_v19 = vld [vmem:[%s9558_s14 + $0x310] sm:$0xff]  ;;  %v7315_v20 = vpack.c.bf16 %v522_v13, %v514_v12  ;;  %v528_v22 = vld [vmem:[%s9558_s14 + $0x388] sm:$0xff]  ;;  %v530_v25 = vld [vmem:[%s9558_s14 + $0x398] sm:$0xff]  ;;  %v7253_v27 = vpack.c.bf16 %v519_v18, %v511_v17 }
  0x24   : > { %7308 = vmatprep.subr.bf16.mxu1 %v7307_v58  ;;  %v521_v21 = vld [vmem:[%s9558_s14 + $0x350] sm:$0xff]  ;;  %v536_v23 = vld [vmem:[%s9558_s14 + $0x3c8] sm:$0xff]  ;;  %v538_v26 = vld [vmem:[%s9558_s14 + $0x3d8] sm:$0xff] }
  0x25   : > { %v7317_v28 = vpack.c.bf16 %v521_v21, %v513_v19  ;;  %v7255_v29 = vpack.c.bf16 %v536_v23, %v528_v22  ;;  %v527_v30 = vld [vmem:[%s9558_s14 + $0x380] sm:$0xff]  ;;  %v529_v32 = vld [vmem:[%s9558_s14 + $0x390] sm:$0xff]  ;;  %v7319_v33 = vpack.c.bf16 %v538_v26, %v530_v25  ;;  %v544_v35 = vld [vmem:[%s9558_s14 + $0x408] sm:$0xff] }
  0x26   : > { %7246 = vmatpush1.bf16.msra.mxu0 %v7245_v2  ;;  %v535_v31 = vld [vmem:[%s9558_s14 + $0x3c0] sm:$0xff]  ;;  %v537_v34 = vld [vmem:[%s9558_s14 + $0x3d0] sm:$0xff]  ;;  %v552_v36 = vld [vmem:[%s9558_s14 + $0x448] sm:$0xff] }
  0x27   : > { %7310 = vmatpush1.bf16.msra.mxu1 %v7309_v3  ;;  %7248 = vmatprep.subr.bf16.mxu0 %v7247_v4  ;;  %v546_v37 = vld [vmem:[%s9558_s14 + $0x418] sm:$0xff]  ;;  %v7257_v39 = vpack.c.bf16 %v535_v31, %v527_v30  ;;  %v7321_v40 = vpack.c.bf16 %v537_v34, %v529_v32  ;;  %v7259_v41 = vpack.c.bf16 %v552_v36, %v544_v35  ;;  %v543_v42 = vld [vmem:[%s9558_s14 + $0x400] sm:$0xff]  ;;  %v545_v44 = vld [vmem:[%s9558_s14 + $0x410] sm:$0xff] }
  0x28   : > { %7312 = vmatprep.subr.bf16.mxu1 %v7311_v8  ;;  %v554_v38 = vld [vmem:[%s9558_s14 + $0x458] sm:$0xff]  ;;  %v551_v43 = vld [vmem:[%s9558_s14 + $0x440] sm:$0xff]  ;;  %v553_v46 = vld [vmem:[%s9558_s14 + $0x450] sm:$0xff] }
  0x29   : > { %v7323_v45 = vpack.c.bf16 %v554_v38, %v546_v37  ;;  %v560_v47 = vld [vmem:[%s9558_s14 + $0x488] sm:$0xff]  ;;  %v562_v49 = vld [vmem:[%s9558_s14 + $0x498] sm:$0xff]  ;;  %v7261_v51 = vpack.c.bf16 %v551_v43, %v543_v42  ;;  %v7325_v52 = vpack.c.bf16 %v553_v46, %v545_v44  ;;  %v559_v54 = vld [vmem:[%s9558_s14 + $0x480] sm:$0xff] }
  0x2a   : > { %7250 = vmatpush1.bf16.msra.mxu0 %v7249_v14  ;;  %v568_v48 = vld [vmem:[%s9558_s14 + $0x4c8] sm:$0xff]  ;;  %v570_v50 = vld [vmem:[%s9558_s14 + $0x4d8] sm:$0xff]  ;;  %v567_v55 = vld [vmem:[%s9558_s14 + $0x4c0] sm:$0xff] }
  0x2b   : > { %7314 = vmatpush1.bf16.msra.mxu1 %v7313_v15  ;;  %7252 = vmatprep.subr.bf16.mxu0 %v7251_v16  ;;  %v7263_v53 = vpack.c.bf16 %v568_v48, %v560_v47  ;;  %v561_v56 = vld [vmem:[%s9558_s14 + $0x490] sm:$0xff]  ;;  %v7327_v57 = vpack.c.bf16 %v570_v50, %v562_v49  ;;  %v576_v59 = vld [vmem:[%s9558_s14 + $0x508] sm:$0xff]  ;;  %v578_v61 = vld [vmem:[%s9558_s14 + $0x518] sm:$0xff]  ;;  %v7265_v63 = vpack.c.bf16 %v567_v55, %v559_v54 }
  0x2c   : > { %7316 = vmatprep.subr.bf16.mxu1 %v7315_v20  ;;  %v569_v58 = vld [vmem:[%s9558_s14 + $0x4d0] sm:$0xff]  ;;  %v584_v60 = vld [vmem:[%s9558_s14 + $0x548] sm:$0xff]  ;;  %v586_v62 = vld [vmem:[%s9558_s14 + $0x558] sm:$0xff] }
  0x2d   : > { %v7329_v2 = vpack.c.bf16 %v569_v58, %v561_v56  ;;  %v7267_v3 = vpack.c.bf16 %v584_v60, %v576_v59  ;;  %v575_v4 = vld [vmem:[%s9558_s14 + $0x500] sm:$0xff]  ;;  %v577_v6 = vld [vmem:[%s9558_s14 + $0x510] sm:$0xff]  ;;  %v7331_v7 = vpack.c.bf16 %v586_v62, %v578_v61  ;;  %v592_v9 = vld [vmem:[%s9558_s14 + $0x588] sm:$0xff] }
  0x2e   : > { %7254 = vmatpush1.bf16.msra.mxu0 %v7253_v27  ;;  %v583_v5 = vld [vmem:[%s9558_s14 + $0x540] sm:$0xff]  ;;  %v585_v8 = vld [vmem:[%s9558_s14 + $0x550] sm:$0xff]  ;;  %v600_v10 = vld [vmem:[%s9558_s14 + $0x5c8] sm:$0xff] }
  0x2f   : > { %7318 = vmatpush1.bf16.msra.mxu1 %v7317_v28  ;;  %7256 = vmatprep.subr.bf16.mxu0 %v7255_v29  ;;  %v594_v11 = vld [vmem:[%s9558_s14 + $0x598] sm:$0xff]  ;;  %v7269_v13 = vpack.c.bf16 %v583_v5, %v575_v4  ;;  %v7333_v14 = vpack.c.bf16 %v585_v8, %v577_v6  ;;  %v7271_v15 = vpack.c.bf16 %v600_v10, %v592_v9  ;;  %v591_v16 = vld [vmem:[%s9558_s14 + $0x580] sm:$0xff]  ;;  %v593_v18 = vld [vmem:[%s9558_s14 + $0x590] sm:$0xff] }
  0x30   : > { %7320 = vmatprep.subr.bf16.mxu1 %v7319_v33  ;;  %v602_v12 = vld [vmem:[%s9558_s14 + $0x5d8] sm:$0xff]  ;;  %v599_v17 = vld [vmem:[%s9558_s14 + $0x5c0] sm:$0xff]  ;;  %v601_v20 = vld [vmem:[%s9558_s14 + $0x5d0] sm:$0xff] }
  0x31   : > { %v7335_v19 = vpack.c.bf16 %v602_v12, %v594_v11  ;;  %v608_v21 = vld [vmem:[%s9558_s14 + $0x608] sm:$0xff]  ;;  %v610_v23 = vld [vmem:[%s9558_s14 + $0x618] sm:$0xff]  ;;  %v7273_v25 = vpack.c.bf16 %v599_v17, %v591_v16  ;;  %v7337_v26 = vpack.c.bf16 %v601_v20, %v593_v18  ;;  %v607_v28 = vld [vmem:[%s9558_s14 + $0x600] sm:$0xff] }
  0x32   : > { %7258 = vmatpush1.bf16.msra.mxu0 %v7257_v39  ;;  %v616_v22 = vld [vmem:[%s9558_s14 + $0x648] sm:$0xff]  ;;  %v618_v24 = vld [vmem:[%s9558_s14 + $0x658] sm:$0xff]  ;;  %v615_v29 = vld [vmem:[%s9558_s14 + $0x640] sm:$0xff] }
  0x33   : > { %7322 = vmatpush1.bf16.msra.mxu1 %v7321_v40  ;;  %7260 = vmatprep.subr.bf16.mxu0 %v7259_v41  ;;  %v7275_v27 = vpack.c.bf16 %v616_v22, %v608_v21  ;;  %v609_v30 = vld [vmem:[%s9558_s14 + $0x610] sm:$0xff]  ;;  %v7339_v31 = vpack.c.bf16 %v618_v24, %v610_v23  ;;  %v624_v33 = vld [vmem:[%s9558_s14 + $0x688] sm:$0xff]  ;;  %v626_v35 = vld [vmem:[%s9558_s14 + $0x698] sm:$0xff]  ;;  %v7277_v37 = vpack.c.bf16 %v615_v29, %v607_v28 }
  0x34   : > { %7324 = vmatprep.subr.bf16.mxu1 %v7323_v45  ;;  %v617_v32 = vld [vmem:[%s9558_s14 + $0x650] sm:$0xff]  ;;  %v632_v34 = vld [vmem:[%s9558_s14 + $0x6c8] sm:$0xff]  ;;  %v634_v36 = vld [vmem:[%s9558_s14 + $0x6d8] sm:$0xff] }
  0x35   : > { %v7341_v38 = vpack.c.bf16 %v617_v32, %v609_v30  ;;  %v7279_v39 = vpack.c.bf16 %v632_v34, %v624_v33  ;;  %v623_v40 = vld [vmem:[%s9558_s14 + $0x680] sm:$0xff]  ;;  %v625_v42 = vld [vmem:[%s9558_s14 + $0x690] sm:$0xff]  ;;  %v7343_v43 = vpack.c.bf16 %v634_v36, %v626_v35  ;;  %v640_v45 = vld [vmem:[%s9558_s14 + $0x708] sm:$0xff] }
  0x36   : > { %7262 = vmatpush1.bf16.msra.mxu0 %v7261_v51  ;;  %v631_v41 = vld [vmem:[%s9558_s14 + $0x6c0] sm:$0xff]  ;;  %v633_v44 = vld [vmem:[%s9558_s14 + $0x6d0] sm:$0xff]  ;;  %v648_v46 = vld [vmem:[%s9558_s14 + $0x748] sm:$0xff] }
  0x37   : > { %7326 = vmatpush1.bf16.msra.mxu1 %v7325_v52  ;;  %7264 = vmatprep.subr.bf16.mxu0 %v7263_v53  ;;  %v642_v47 = vld [vmem:[%s9558_s14 + $0x718] sm:$0xff]  ;;  %v7281_v49 = vpack.c.bf16 %v631_v41, %v623_v40  ;;  %v7345_v50 = vpack.c.bf16 %v633_v44, %v625_v42  ;;  %v7283_v51 = vpack.c.bf16 %v648_v46, %v640_v45  ;;  %v639_v52 = vld [vmem:[%s9558_s14 + $0x700] sm:$0xff]  ;;  %v641_v54 = vld [vmem:[%s9558_s14 + $0x710] sm:$0xff] }
  0x38   : > { %7328 = vmatprep.subr.bf16.mxu1 %v7327_v57  ;;  %v650_v48 = vld [vmem:[%s9558_s14 + $0x758] sm:$0xff]  ;;  %v647_v53 = vld [vmem:[%s9558_s14 + $0x740] sm:$0xff]  ;;  %v649_v56 = vld [vmem:[%s9558_s14 + $0x750] sm:$0xff] }
  0x39   : > { %v7347_v55 = vpack.c.bf16 %v650_v48, %v642_v47  ;;  %v656_v57 = vld [vmem:[%s9558_s14 + $0x788] sm:$0xff]  ;;  %v658_v59 = vld [vmem:[%s9558_s14 + $0x798] sm:$0xff]  ;;  %v7285_v61 = vpack.c.bf16 %v647_v53, %v639_v52  ;;  %v7349_v62 = vpack.c.bf16 %v649_v56, %v641_v54  ;;  %v657_v4 = vld [vmem:[%s9558_s14 + $0x790] sm:$0xff] }
  0x3a   : > { %7266 = vmatpush1.bf16.msra.mxu0 %v7265_v63  ;;  %v664_v58 = vld [vmem:[%s9558_s14 + $0x7c8] sm:$0xff]  ;;  %v666_v60 = vld [vmem:[%s9558_s14 + $0x7d8] sm:$0xff]  ;;  %v665_v6 = vld [vmem:[%s9558_s14 + $0x7d0] sm:$0xff] }
  0x3b   : > { %7330 = vmatpush1.bf16.msra.mxu1 %v7329_v2  ;;  %7268 = vmatprep.subr.bf16.mxu0 %v7267_v3  ;;  %v7287_v63 = vpack.c.bf16 %v664_v58, %v656_v57  ;;  %v655_v2 = vld [vmem:[%s9558_s14 + $0x780] sm:$0xff]  ;;  %v7351_v5 = vpack.c.bf16 %v666_v60, %v658_v59  ;;  %v428_v8 = vld [vmem:[%s9558_s14 + $0x68] sm:$0xff]  ;;  %v422_v9 = vld [vmem:[%s9558_s14 + $0x38] sm:$0xff]  ;;  %v7353_v12 = vpack.c.bf16 %v665_v6, %v657_v4 }
  0x3c   : > { %7332 = vmatprep.subr.bf16.mxu1 %v7331_v7  ;;  %v663_v3 = vld [vmem:[%s9558_s14 + $0x7c0] sm:$0xff]  ;;  %v420_v7 = vld [vmem:[%s9558_s14 + $0x28] sm:$0xff]  ;;  %v430_v10 = vld [vmem:[%s9558_s14 + $0x78] sm:$0xff] }
  0x3d   : > { %v7289_v11 = vpack.c.bf16 %v663_v3, %v655_v2  ;;  %v421_v16 = vld [vmem:[%s9558_s14 + $0x30] sm:$0xff]  ;;  %v7419_v17 = vpack.c.bf16 %v430_v10, %v422_v9  ;;  %v444_v20 = vld [vmem:[%s9558_s14 + $0xe8] sm:$0xff]  ;;  %v438_v21 = vld [vmem:[%s9558_s14 + $0xb8] sm:$0xff] }
  0x3e   : > { %7270 = vmatpush1.bf16.msra.mxu0 %v7269_v13  ;;  %v7355_v13 = vpack.c.bf16 %v428_v8, %v420_v7  ;;  %v429_v18 = vld [vmem:[%s9558_s14 + $0x70] sm:$0xff]  ;;  %v446_v22 = vld [vmem:[%s9558_s14 + $0xf8] sm:$0xff]  ;;  %v460_v32 = vld [vmem:[%s9558_s14 + $0x168] sm:$0xff] }
  0x3f   : > { %7334 = vmatpush1.bf16.msra.mxu1 %v7333_v14  ;;  %7272 = vmatprep.subr.bf16.mxu0 %v7271_v15  ;;  %v419_v14 = vld [vmem:[%s9558_s14 + $0x20] sm:$0xff]  ;;  %v7421_v24 = vpack.c.bf16 %v429_v18, %v421_v16  ;;  %v437_v28 = vld [vmem:[%s9558_s14 + $0xb0] sm:$0xff]  ;;  %v7423_v29 = vpack.c.bf16 %v446_v22, %v438_v21  ;;  %v454_v33 = vld [vmem:[%s9558_s14 + $0x138] sm:$0xff] }
  0x40   : > { %7336 = vmatprep.subr.bf16.mxu1 %v7335_v19  ;;  %v427_v15 = vld [vmem:[%s9558_s14 + $0x60] sm:$0xff]  ;;  %v436_v19 = vld [vmem:[%s9558_s14 + $0xa8] sm:$0xff]  ;;  %v445_v30 = vld [vmem:[%s9558_s14 + $0xf0] sm:$0xff] }
  0x41   : > { %v7357_v23 = vpack.c.bf16 %v427_v15, %v419_v14  ;;  %v462_v34 = vld [vmem:[%s9558_s14 + $0x178] sm:$0xff]  ;;  %v7425_v36 = vpack.c.bf16 %v445_v30, %v437_v28  ;;  %v453_v40 = vld [vmem:[%s9558_s14 + $0x130] sm:$0xff]  ;;  %v476_v44 = vld [vmem:[%s9558_s14 + $0x1e8] sm:$0xff] }
  0x42   : > { %7274 = vmatpush1.bf16.msra.mxu0 %v7273_v25  ;;  %v7359_v25 = vpack.c.bf16 %v444_v20, %v436_v19  ;;  %v7427_v41 = vpack.c.bf16 %v462_v34, %v454_v33  ;;  %v461_v42 = vld [vmem:[%s9558_s14 + $0x170] sm:$0xff]  ;;  %v478_v45 = vld [vmem:[%s9558_s14 + $0x1f8] sm:$0xff]  ;;  %v484_v54 = vld [vmem:[%s9558_s14 + $0x228] sm:$0xff] }
  0x43   : > { %7338 = vmatpush1.bf16.msra.mxu1 %v7337_v26  ;;  %7276 = vmatprep.subr.bf16.mxu0 %v7275_v27  ;;  %v435_v26 = vld [vmem:[%s9558_s14 + $0xa0] sm:$0xff]  ;;  %v7429_v47 = vpack.c.bf16 %v461_v42, %v453_v40  ;;  %v477_v53 = vld [vmem:[%s9558_s14 + $0x1f0] sm:$0xff]  ;;  %v486_v56 = vld [vmem:[%s9558_s14 + $0x238] sm:$0xff] }
  0x44   : > { %7340 = vmatprep.subr.bf16.mxu1 %v7339_v31  ;;  %v443_v27 = vld [vmem:[%s9558_s14 + $0xe0] sm:$0xff]  ;;  %v452_v31 = vld [vmem:[%s9558_s14 + $0x128] sm:$0xff]  ;;  %v494_v57 = vld [vmem:[%s9558_s14 + $0x278] sm:$0xff] }
  0x45   : > { %v7361_v35 = vpack.c.bf16 %v443_v27, %v435_v26  ;;  %v7435_v2 = vpack.c.bf16 %v494_v57, %v486_v56  ;;  %v493_v3 = vld [vmem:[%s9558_s14 + $0x270] sm:$0xff]  ;;  %v500_v4 = vld [vmem:[%s9558_s14 + $0x2a8] sm:$0xff]  ;;  %v502_v6 = vld [vmem:[%s9558_s14 + $0x2b8] sm:$0xff] }
  0x46   : > { %7278 = vmatpush1.bf16.msra.mxu0 %v7277_v37  ;;  %v7363_v37 = vpack.c.bf16 %v460_v32, %v452_v31  ;;  %v510_v7 = vld [vmem:[%s9558_s14 + $0x2f8] sm:$0xff]  ;;  %v509_v15 = vld [vmem:[%s9558_s14 + $0x2f0] sm:$0xff]  ;;  %v516_v16 = vld [vmem:[%s9558_s14 + $0x328] sm:$0xff] }
  0x47   : > { %7342 = vmatpush1.bf16.msra.mxu1 %v7341_v38  ;;  %7280 = vmatprep.subr.bf16.mxu0 %v7279_v39  ;;  %v451_v38 = vld [vmem:[%s9558_s14 + $0x120] sm:$0xff]  ;;  %v7439_v14 = vpack.c.bf16 %v510_v7, %v502_v6  ;;  %v518_v18 = vld [vmem:[%s9558_s14 + $0x338] sm:$0xff]  ;;  %v525_v27 = vld [vmem:[%s9558_s14 + $0x370] sm:$0xff] }
  0x48   : > { %7344 = vmatprep.subr.bf16.mxu1 %v7343_v43  ;;  %v459_v39 = vld [vmem:[%s9558_s14 + $0x160] sm:$0xff]  ;;  %v468_v43 = vld [vmem:[%s9558_s14 + $0x1a8] sm:$0xff]  ;;  %v526_v19 = vld [vmem:[%s9558_s14 + $0x378] sm:$0xff] }
  0x49   : > { %v7365_v46 = vpack.c.bf16 %v459_v39, %v451_v38  ;;  %v7367_v48 = vpack.c.bf16 %v476_v44, %v468_v43  ;;  %v7443_v26 = vpack.c.bf16 %v526_v19, %v518_v18  ;;  %v532_v28 = vld [vmem:[%s9558_s14 + $0x3a8] sm:$0xff]  ;;  %v534_v30 = vld [vmem:[%s9558_s14 + $0x3b8] sm:$0xff]  ;;  %v541_v39 = vld [vmem:[%s9558_s14 + $0x3f0] sm:$0xff] }
  0x4a   : > { %7282 = vmatpush1.bf16.msra.mxu0 %v7281_v49  ;;  %v467_v49 = vld [vmem:[%s9558_s14 + $0x1a0] sm:$0xff]  ;;  %v542_v31 = vld [vmem:[%s9558_s14 + $0x3f8] sm:$0xff]  ;;  %v548_v40 = vld [vmem:[%s9558_s14 + $0x428] sm:$0xff] }
  0x4b   : > { %7346 = vmatpush1.bf16.msra.mxu1 %v7345_v50  ;;  %7284 = vmatprep.subr.bf16.mxu0 %v7283_v51  ;;  %v475_v50 = vld [vmem:[%s9558_s14 + $0x1e0] sm:$0xff]  ;;  %v469_v51 = vld [vmem:[%s9558_s14 + $0x1b0] sm:$0xff]  ;;  %v7447_v38 = vpack.c.bf16 %v542_v31, %v534_v30  ;;  %v550_v42 = vld [vmem:[%s9558_s14 + $0x438] sm:$0xff] }
  0x4c   : > { %7348 = vmatprep.subr.bf16.mxu1 %v7347_v55  ;;  %v492_v55 = vld [vmem:[%s9558_s14 + $0x268] sm:$0xff]  ;;  %v7369_v58 = vpack.c.bf16 %v475_v50, %v467_v49  ;;  %v7433_v59 = vpack.c.bf16 %v477_v53, %v469_v51  ;;  %v558_v43 = vld [vmem:[%s9558_s14 + $0x478] sm:$0xff]  ;;  %v557_v50 = vld [vmem:[%s9558_s14 + $0x470] sm:$0xff] }
  0x4d   : > { %v7371_v60 = vpack.c.bf16 %v492_v55, %v484_v54  ;;  %v7451_v49 = vpack.c.bf16 %v558_v43, %v550_v42  ;;  %v564_v51 = vld [vmem:[%s9558_s14 + $0x4a8] sm:$0xff]  ;;  %v566_v53 = vld [vmem:[%s9558_s14 + $0x4b8] sm:$0xff]  ;;  %v414_v6 = vld [vmem:[%s11972_s5] sm:$0x7] }
  0x4e   : > { %7286 = vmatpush1.bf16.msra.mxu0 %v7285_v61  ;;  %v483_v61 = vld [vmem:[%s9558_s14 + $0x220] sm:$0xff]  ;;  %v574_v54 = vld [vmem:[%s9558_s14 + $0x4f8] sm:$0xff]  ;;  %673 = vperm.xlu0 %9300, %v414_v6  }
  0x4f   : > { %7350 = vmatpush1.bf16.msra.mxu1 %v7349_v62  ;;  %7288 = vmatprep.subr.bf16.mxu0 %v7287_v63  ;;  %v491_v62 = vld [vmem:[%s9558_s14 + $0x260] sm:$0xff]  ;;  %v485_v63 = vld [vmem:[%s9558_s14 + $0x230] sm:$0xff] }
  0x50   : > { %7352 = vmatprep.subr.bf16.mxu1 %v7351_v5  ;;  %v508_v5 = vld [vmem:[%s9558_s14 + $0x2e8] sm:$0xff]  ;;  %v7373_v8 = vpack.c.bf16 %v491_v62, %v483_v61  ;;  %v7437_v9 = vpack.c.bf16 %v493_v3, %v485_v63  ;;  %v7455_v61 = vpack.c.bf16 %v574_v54, %v566_v53  ;;  %v573_v62 = vld [vmem:[%s9558_s14 + $0x4f0] sm:$0xff]  ;;  %v582_v3 = vld [vmem:[%s9558_s14 + $0x538] sm:$0xff] }
  0x51   : > { %v7375_v10 = vpack.c.bf16 %v508_v5, %v500_v4  ;;  %v580_v63 = vld [vmem:[%s9558_s14 + $0x528] sm:$0xff]  ;;  %v590_v4 = vld [vmem:[%s9558_s14 + $0x578] sm:$0xff]  ;;  %v659_v6 = vld [vmem:[%s9558_s14 + $0x7a0] sm:$0xff] }
  0x52   : > { %7290 = vmatpush1.bf16.msra.mxu0 %v7289_v11  ;;  %v499_v11 = vld [vmem:[%s9558_s14 + $0x2a0] sm:$0xff] }
  0x53   : > { %7354 = vmatpush1.bf16.msra.mxu1 %v7353_v12  ;;  %7356 = vmatprep.subr.bf16.mxu0 %v7355_v13  ;;  %v507_v12 = vld [vmem:[%s9558_s14 + $0x2e0] sm:$0xff]  ;;  %v501_v13 = vld [vmem:[%s9558_s14 + $0x2b0] sm:$0xff] }
  0x54   : > { %7420 = vmatprep.subr.bf16.mxu1 %v7419_v17  ;;  %v524_v17 = vld [vmem:[%s9558_s14 + $0x368] sm:$0xff]  ;;  %v7377_v20 = vpack.c.bf16 %v507_v12, %v499_v11  ;;  %v7441_v21 = vpack.c.bf16 %v509_v15, %v501_v13  ;;  %v581_v11 = vld [vmem:[%s9558_s14 + $0x530] sm:$0xff]  ;;  %v7459_v12 = vpack.c.bf16 %v590_v4, %v582_v3 }
  0x55   : > { %744 = vmatmul.mubr.f32.vlgmr.msra.gmra.mrb[0].mxu0 %v9540_v0  ;;  %v7379_v22 = vpack.c.bf16 %v524_v17, %v516_v16  ;;  %v589_v13 = vld [vmem:[%s9558_s14 + $0x570] sm:$0xff]  ;;  %v604_v15 = vld [vmem:[%s9558_s14 + $0x5e8] sm:$0xff]  ;;  %v598_v16 = vld [vmem:[%s9558_s14 + $0x5b8] sm:$0xff] }
  0x56   : > { %815 = vmatmul.mubr.f32.vlgmr.msra.gmra.mrb[0].mxu1 %v9540_v0  ;;  %7358 = vmatpush1.bf16.msra.mxu0 %v7357_v23  ;;  %v470_v0 = vld [vmem:[%s9558_s14 + $0x1b8] sm:$0xff]  ;;  %v515_v23 = vld [vmem:[%s9558_s14 + $0x320] sm:$0xff]  ;;  %v7461_v19 = vpack.c.bf16 %v589_v13, %v581_v11  ;;  %v972_v11 = vld [vmem:[%s9822_s19 + $0x8] sm:$0xff] }
  0x57   : > { %7422 = vmatpush1.bf16.msra.mxu1 %v7421_v24  ;;  %7360 = vmatprep.subr.bf16.mxu0 %v7359_v25  ;;  %v7431_v52 = vpack.c.bf16 %v478_v45, %v470_v0  ;;  %v523_v24 = vld [vmem:[%s9558_s14 + $0x360] sm:$0xff]  ;;  %v517_v25 = vld [vmem:[%s9558_s14 + $0x330] sm:$0xff]  ;;  %v606_v17 = vld [vmem:[%s9558_s14 + $0x5f8] sm:$0xff] }
  0x58   : > { %7424 = vmatprep.subr.bf16.mxu1 %v7423_v29  ;;  %885 = vmatprep.mubr.f32.mxu0 %v9545_v1  ;;  %v540_v29 = vld [vmem:[%s9558_s14 + $0x3e8] sm:$0xff]  ;;  %v7381_v32 = vpack.c.bf16 %v523_v24, %v515_v23  ;;  %v7445_v33 = vpack.c.bf16 %v525_v27, %v517_v25  ;;  %v597_v23 = vld [vmem:[%s9558_s14 + $0x5b0] sm:$0xff]  ;;  %v7463_v24 = vpack.c.bf16 %v606_v17, %v598_v16  ;;  %v974_v13 = vld [vmem:[%s9822_s19 + $0x18] sm:$0xff] }
  0x59   : > { %956 = vmatprep.mubr.f32.mxu1 %v9545_v1  ;;  %v7383_v34 = vpack.c.bf16 %v540_v29, %v532_v28  ;;  %v605_v25 = vld [vmem:[%s9558_s14 + $0x5f0] sm:$0xff]  ;;  %v620_v27 = vld [vmem:[%s9558_s14 + $0x668] sm:$0xff]  ;;  %v614_v28 = vld [vmem:[%s9558_s14 + $0x638] sm:$0xff] }
  0x5a   : > { %7362 = vmatpush1.bf16.msra.mxu0 %v7361_v35  ;;  %v531_v35 = vld [vmem:[%s9558_s14 + $0x3a0] sm:$0xff]  ;;  %v622_v29 = vld [vmem:[%s9558_s14 + $0x678] sm:$0xff]  ;;  %v7465_v31 = vpack.c.bf16 %v605_v25, %v597_v23  ;;  %v988_v23 = vld [vmem:[%s9822_s19 + $0x88] sm:$0xff] }
  0x5b   : > { %7426 = vmatpush1.bf16.msra.mxu1 %v7425_v36  ;;  %7364 = vmatprep.subr.bf16.mxu0 %v7363_v37  ;;  %v539_v36 = vld [vmem:[%s9558_s14 + $0x3e0] sm:$0xff]  ;;  %v533_v37 = vld [vmem:[%s9558_s14 + $0x3b0] sm:$0xff]  ;;  %v990_v25 = vld [vmem:[%s9822_s19 + $0x98] sm:$0xff] }
  0x5c   : > { %7428 = vmatprep.subr.bf16.mxu1 %v7427_v41  ;;  %v556_v41 = vld [vmem:[%s9558_s14 + $0x468] sm:$0xff]  ;;  %v7385_v44 = vpack.c.bf16 %v539_v36, %v531_v35  ;;  %v7449_v0 = vpack.c.bf16 %v541_v39, %v533_v37  ;;  %v613_v35 = vld [vmem:[%s9558_s14 + $0x630] sm:$0xff]  ;;  %v7467_v36 = vpack.c.bf16 %v622_v29, %v614_v28 }
  0x5d   : > { %v7387_v45 = vpack.c.bf16 %v556_v41, %v548_v40  ;;  %v621_v37 = vld [vmem:[%s9558_s14 + $0x670] sm:$0xff]  ;;  %v636_v39 = vld [vmem:[%s9558_s14 + $0x6e8] sm:$0xff]  ;;  %v630_v40 = vld [vmem:[%s9558_s14 + $0x6b8] sm:$0xff] }
  0x5e   : > { %7366 = vmatpush1.bf16.msra.mxu0 %v7365_v46  ;;  %v547_v46 = vld [vmem:[%s9558_s14 + $0x420] sm:$0xff]  ;;  %v638_v41 = vld [vmem:[%s9558_s14 + $0x6f8] sm:$0xff]  ;;  %v7469_v43 = vpack.c.bf16 %v621_v37, %v613_v35  ;;  %v1004_v35 = vld [vmem:[%s9822_s19 + $0x108] sm:$0xff] }
  0x5f   : > { %7430 = vmatpush1.bf16.msra.mxu1 %v7429_v47  ;;  %7368 = vmatprep.subr.bf16.mxu0 %v7367_v48  ;;  %v555_v47 = vld [vmem:[%s9558_s14 + $0x460] sm:$0xff]  ;;  %v549_v48 = vld [vmem:[%s9558_s14 + $0x430] sm:$0xff] }
  0x60   : > { %7432 = vmatprep.subr.bf16.mxu1 %v7431_v52  ;;  %v572_v52 = vld [vmem:[%s9558_s14 + $0x4e8] sm:$0xff]  ;;  %v7389_v55 = vpack.c.bf16 %v555_v47, %v547_v46  ;;  %v7453_v56 = vpack.c.bf16 %v557_v50, %v549_v48  ;;  %v629_v46 = vld [vmem:[%s9558_s14 + $0x6b0] sm:$0xff]  ;;  %v7471_v47 = vpack.c.bf16 %v638_v41, %v630_v40  ;;  %v9851_v37 = vld [vmem:[%s11971_s4] sm:$0x77] }
  0x61   : > { %v7391_v57 = vpack.c.bf16 %v572_v52, %v564_v51  ;;  %v637_v48 = vld [vmem:[%s9558_s14 + $0x6f0] sm:$0xff]  ;;  %v652_v50 = vld [vmem:[%s9558_s14 + $0x768] sm:$0xff]  ;;  %v646_v51 = vld [vmem:[%s9558_s14 + $0x738] sm:$0xff] }
  0x62   : > { %7370 = vmatpush1.bf16.msra.mxu0 %v7369_v58  ;;  %v563_v58 = vld [vmem:[%s9558_s14 + $0x4a0] sm:$0xff]  ;;  %v654_v52 = vld [vmem:[%s9558_s14 + $0x778] sm:$0xff]  ;;  %v7473_v54 = vpack.c.bf16 %v637_v48, %v629_v46  ;;  %v1013_v46 = vld [vmem:[%s9822_s19 + $0x150] sm:$0xff] }
  0x63   : > { %7434 = vmatpush1.bf16.msra.mxu1 %v7433_v59  ;;  %7372 = vmatprep.subr.bf16.mxu0 %v7371_v60  ;;  %v571_v59 = vld [vmem:[%s9558_s14 + $0x4e0] sm:$0xff]  ;;  %v565_v60 = vld [vmem:[%s9558_s14 + $0x4b0] sm:$0xff]  ;;  %v1028_v48 = vld [vmem:[%s9822_s19 + $0x1c8] sm:$0xff] }
  0x64   : > { %7436 = vmatprep.subr.bf16.mxu1 %v7435_v2  ;;  %v588_v2 = vld [vmem:[%s9558_s14 + $0x568] sm:$0xff]  ;;  %v7393_v5 = vpack.c.bf16 %v571_v59, %v563_v58  ;;  %v7457_v7 = vpack.c.bf16 %v573_v62, %v565_v60  ;;  %v645_v58 = vld [vmem:[%s9558_s14 + $0x730] sm:$0xff]  ;;  %v7475_v59 = vpack.c.bf16 %v654_v52, %v646_v51 }
  0x65   : > { %v653_v60 = vld [vmem:[%s9558_s14 + $0x770] sm:$0xff]  ;;  %v668_v62 = vld [vmem:[%s9558_s14 + $0x7e8] sm:$0xff] }
  0x66   : > { %7374 = vmatpush1.bf16.msra.mxu0 %v7373_v8  ;;  %v7395_v8 = vpack.c.bf16 %v588_v2, %v580_v63  ;;  %v662_v63 = vld [vmem:[%s9558_s14 + $0x7b8] sm:$0xff]  ;;  %v7477_v4 = vpack.c.bf16 %v653_v60, %v645_v58  ;;  %v1029_v58 = vld [vmem:[%s9822_s19 + $0x1d0] sm:$0xff]  ;;  %v1044_v60 = vld [vmem:[%s9822_s19 + $0x248] sm:$0xff] }
  0x67   : > { %7438 = vmatpush1.bf16.msra.mxu1 %v7437_v9  ;;  %7376 = vmatprep.subr.bf16.mxu0 %v7375_v10  ;;  %v579_v9 = vld [vmem:[%s9558_s14 + $0x520] sm:$0xff]  ;;  %v670_v2 = vld [vmem:[%s9558_s14 + $0x7f8] sm:$0xff] }
  0x68   : > { %7440 = vmatprep.subr.bf16.mxu1 %v7439_v14  ;;  %v587_v10 = vld [vmem:[%s9558_s14 + $0x560] sm:$0xff]  ;;  %v596_v14 = vld [vmem:[%s9558_s14 + $0x5a8] sm:$0xff] }
  0x69   : > { %v7397_v18 = vpack.c.bf16 %v587_v10, %v579_v9  ;;  %v7479_v9 = vpack.c.bf16 %v670_v2, %v662_v63  ;;  %v669_v10 = vld [vmem:[%s9558_s14 + $0x7f0] sm:$0xff] }
  0x6a   : > { %7378 = vmatpush1.bf16.msra.mxu0 %v7377_v20  ;;  %v7399_v20 = vpack.c.bf16 %v604_v15, %v596_v14  ;;  %v982_v14 = vld [vmem:[%s9822_s19 + $0x58] sm:$0xff] }
  0x6b   : > { %7442 = vmatpush1.bf16.msra.mxu1 %v7441_v21  ;;  %7380 = vmatprep.subr.bf16.mxu0 %v7379_v22  ;;  %v595_v21 = vld [vmem:[%s9558_s14 + $0x5a0] sm:$0xff] }
  0x6c   : > { %7444 = vmatprep.subr.bf16.mxu1 %v7443_v26  ;;  %v603_v22 = vld [vmem:[%s9558_s14 + $0x5e0] sm:$0xff]  ;;  %v612_v26 = vld [vmem:[%s9558_s14 + $0x628] sm:$0xff] }
  0x6d   : > { %v7401_v30 = vpack.c.bf16 %v603_v22, %v595_v21  ;;  %v7547_v21 = vpack.c.bf16 %v982_v14, %v974_v13  ;;  %v981_v22 = vld [vmem:[%s9822_s19 + $0x50] sm:$0xff] }
  0x6e   : > { %7382 = vmatpush1.bf16.msra.mxu0 %v7381_v32  ;;  %v7403_v32 = vpack.c.bf16 %v620_v27, %v612_v26  ;;  %v998_v26 = vld [vmem:[%s9822_s19 + $0xd8] sm:$0xff] }
  0x6f   : > { %7446 = vmatpush1.bf16.msra.mxu1 %v7445_v33  ;;  %7384 = vmatprep.subr.bf16.mxu0 %v7383_v34  ;;  %v611_v33 = vld [vmem:[%s9558_s14 + $0x620] sm:$0xff] }
  0x70   : > { %7448 = vmatprep.subr.bf16.mxu1 %v7447_v38  ;;  %v619_v34 = vld [vmem:[%s9558_s14 + $0x660] sm:$0xff]  ;;  %v628_v38 = vld [vmem:[%s9558_s14 + $0x6a8] sm:$0xff] }
  0x71   : > { %v7405_v42 = vpack.c.bf16 %v619_v34, %v611_v33  ;;  %v7551_v33 = vpack.c.bf16 %v998_v26, %v990_v25  ;;  %v997_v34 = vld [vmem:[%s9822_s19 + $0xd0] sm:$0xff] }
  0x72   : > { %7386 = vmatpush1.bf16.msra.mxu0 %v7385_v44  ;;  %v7407_v44 = vpack.c.bf16 %v636_v39, %v628_v38  ;;  %v1006_v38 = vld [vmem:[%s9822_s19 + $0x118] sm:$0xff] }
  0x73   : > { %7450 = vmatpush1.bf16.msra.mxu1 %v7449_v0  ;;  %7388 = vmatprep.subr.bf16.mxu0 %v7387_v45  ;;  %v627_v0 = vld [vmem:[%s9558_s14 + $0x6a0] sm:$0xff]  ;;  %v1014_v39 = vld [vmem:[%s9822_s19 + $0x158] sm:$0xff] }
  0x74   : > { %7452 = vmatprep.subr.bf16.mxu1 %v7451_v49  ;;  %v635_v45 = vld [vmem:[%s9558_s14 + $0x6e0] sm:$0xff]  ;;  %v644_v49 = vld [vmem:[%s9558_s14 + $0x728] sm:$0xff] }
  0x75   : > { %v7409_v53 = vpack.c.bf16 %v635_v45, %v627_v0  ;;  %v1005_v0 = vld [vmem:[%s9822_s19 + $0x110] sm:$0xff]  ;;  %v7555_v45 = vpack.c.bf16 %v1014_v39, %v1006_v38 }
  0x76   : > { %7390 = vmatpush1.bf16.msra.mxu0 %v7389_v55  ;;  %v7411_v55 = vpack.c.bf16 %v652_v50, %v644_v49  ;;  %v1022_v49 = vld [vmem:[%s9822_s19 + $0x198] sm:$0xff]  ;;  %v7557_v52 = vpack.c.bf16 %v1013_v46, %v1005_v0  ;;  %v1093_v0 = vld [vmem:[%s9822_s19 + $0x3d0] sm:$0xff]  ;;  %v1108_v46 = vld [vmem:[%s9822_s19 + $0x448] sm:$0xff] }
  0x77   : > { %7454 = vmatpush1.bf16.msra.mxu1 %v7453_v56  ;;  %7392 = vmatprep.subr.bf16.mxu0 %v7391_v57  ;;  %v643_v56 = vld [vmem:[%s9558_s14 + $0x720] sm:$0xff]  ;;  %v1030_v50 = vld [vmem:[%s9822_s19 + $0x1d8] sm:$0xff] }
  0x78   : > { %7456 = vmatprep.subr.bf16.mxu1 %v7455_v61  ;;  %v651_v57 = vld [vmem:[%s9558_s14 + $0x760] sm:$0xff]  ;;  %v660_v61 = vld [vmem:[%s9558_s14 + $0x7a8] sm:$0xff] }
  0x79   : > { %v7413_v3 = vpack.c.bf16 %v651_v57, %v643_v56  ;;  %v1021_v56 = vld [vmem:[%s9822_s19 + $0x190] sm:$0xff]  ;;  %v7559_v57 = vpack.c.bf16 %v1030_v50, %v1022_v49 }
  0x7a   : > { %7394 = vmatpush1.bf16.msra.mxu0 %v7393_v5  ;;  %v7415_v5 = vpack.c.bf16 %v668_v62, %v660_v61  ;;  %v1038_v61 = vld [vmem:[%s9822_s19 + $0x218] sm:$0xff]  ;;  %v7561_v2 = vpack.c.bf16 %v1029_v58, %v1021_v56  ;;  %v1109_v56 = vld [vmem:[%s9822_s19 + $0x450] sm:$0xff]  ;;  %v1124_v58 = vld [vmem:[%s9822_s19 + $0x4c8] sm:$0xff] }
  0x7b   : > { %7458 = vmatpush1.bf16.msra.mxu1 %v7457_v7  ;;  %7396 = vmatprep.subr.bf16.mxu0 %v7395_v8  ;;  %v667_v7 = vld [vmem:[%s9558_s14 + $0x7e0] sm:$0xff]  ;;  %v661_v8 = vld [vmem:[%s9558_s14 + $0x7b0] sm:$0xff]  ;;  %v1046_v62 = vld [vmem:[%s9822_s19 + $0x258] sm:$0xff] }
  0x7c   : > { %7460 = vmatprep.subr.bf16.mxu1 %v7459_v12  ;;  %v980_v12 = vld [vmem:[%s9822_s19 + $0x48] sm:$0xff]  ;;  %v7417_v15 = vpack.c.bf16 %v667_v7, %v659_v6  ;;  %v7481_v16 = vpack.c.bf16 %v669_v10, %v661_v8  ;;  %v1037_v6 = vld [vmem:[%s9822_s19 + $0x210] sm:$0xff]  ;;  %v7563_v7 = vpack.c.bf16 %v1046_v62, %v1038_v61 }
  0x7d   : > { %v7483_v17 = vpack.c.bf16 %v980_v12, %v972_v11  ;;  %v1045_v8 = vld [vmem:[%s9822_s19 + $0x250] sm:$0xff]  ;;  %v1060_v10 = vld [vmem:[%s9822_s19 + $0x2c8] sm:$0xff]  ;;  %v1054_v11 = vld [vmem:[%s9822_s19 + $0x298] sm:$0xff] }
  0x7e   : > { %7398 = vmatpush1.bf16.msra.mxu0 %v7397_v18  ;;  %v971_v18 = vld [vmem:[%s9822_s19] sm:$0xff]  ;;  %v1062_v12 = vld [vmem:[%s9822_s19 + $0x2d8] sm:$0xff]  ;;  %v7565_v14 = vpack.c.bf16 %v1045_v8, %v1037_v6  ;;  %v1125_v6 = vld [vmem:[%s9822_s19 + $0x4d0] sm:$0xff] }
  0x7f   : > { %7462 = vmatpush1.bf16.msra.mxu1 %v7461_v19  ;;  %7400 = vmatprep.subr.bf16.mxu0 %v7399_v20  ;;  %v979_v19 = vld [vmem:[%s9822_s19 + $0x40] sm:$0xff]  ;;  %v973_v20 = vld [vmem:[%s9822_s19 + $0x10] sm:$0xff]  ;;  %v1140_v8 = vld [vmem:[%s9822_s19 + $0x548] sm:$0xff] }
  0x80   : > { %7464 = vmatprep.subr.bf16.mxu1 %v7463_v24  ;;  %v996_v24 = vld [vmem:[%s9822_s19 + $0xc8] sm:$0xff]  ;;  %v7485_v27 = vpack.c.bf16 %v979_v19, %v971_v18  ;;  %v7549_v28 = vpack.c.bf16 %v981_v22, %v973_v20  ;;  %v1053_v18 = vld [vmem:[%s9822_s19 + $0x290] sm:$0xff]  ;;  %v7567_v19 = vpack.c.bf16 %v1062_v12, %v1054_v11 }
  0x81   : > { %v7487_v29 = vpack.c.bf16 %v996_v24, %v988_v23  ;;  %v1061_v20 = vld [vmem:[%s9822_s19 + $0x2d0] sm:$0xff]  ;;  %v1076_v22 = vld [vmem:[%s9822_s19 + $0x348] sm:$0xff]  ;;  %v1070_v23 = vld [vmem:[%s9822_s19 + $0x318] sm:$0xff] }
  0x82   : > { %7402 = vmatpush1.bf16.msra.mxu0 %v7401_v30  ;;  %v987_v30 = vld [vmem:[%s9822_s19 + $0x80] sm:$0xff]  ;;  %v1078_v24 = vld [vmem:[%s9822_s19 + $0x358] sm:$0xff]  ;;  %v7569_v26 = vpack.c.bf16 %v1061_v20, %v1053_v18  ;;  %v1141_v18 = vld [vmem:[%s9822_s19 + $0x550] sm:$0xff] }
  0x83   : > { %7466 = vmatpush1.bf16.msra.mxu1 %v7465_v31  ;;  %7404 = vmatprep.subr.bf16.mxu0 %v7403_v32  ;;  %v995_v31 = vld [vmem:[%s9822_s19 + $0xc0] sm:$0xff]  ;;  %v989_v32 = vld [vmem:[%s9822_s19 + $0x90] sm:$0xff]  ;;  %v1156_v20 = vld [vmem:[%s9822_s19 + $0x5c8] sm:$0xff] }
  0x84   : > { %7468 = vmatprep.subr.bf16.mxu1 %v7467_v36  ;;  %v1012_v36 = vld [vmem:[%s9822_s19 + $0x148] sm:$0xff]  ;;  %v7489_v40 = vpack.c.bf16 %v995_v31, %v987_v30  ;;  %v7553_v41 = vpack.c.bf16 %v997_v34, %v989_v32  ;;  %v1069_v30 = vld [vmem:[%s9822_s19 + $0x310] sm:$0xff]  ;;  %v7571_v31 = vpack.c.bf16 %v1078_v24, %v1070_v23 }
  0x85   : > { %v1077_v32 = vld [vmem:[%s9822_s19 + $0x350] sm:$0xff]  ;;  %v1092_v34 = vld [vmem:[%s9822_s19 + $0x3c8] sm:$0xff] }
  0x86   : > { %7406 = vmatpush1.bf16.msra.mxu0 %v7405_v42  ;;  %v7491_v42 = vpack.c.bf16 %v1012_v36, %v1004_v35  ;;  %v1086_v35 = vld [vmem:[%s9822_s19 + $0x398] sm:$0xff]  ;;  %v7573_v39 = vpack.c.bf16 %v1077_v32, %v1069_v30  ;;  %v1157_v30 = vld [vmem:[%s9822_s19 + $0x5d0] sm:$0xff]  ;;  %v1172_v32 = vld [vmem:[%s9822_s19 + $0x648] sm:$0xff] }
  0x87   : > { %7470 = vmatpush1.bf16.msra.mxu1 %v7469_v43  ;;  %7408 = vmatprep.subr.bf16.mxu0 %v7407_v44  ;;  %v1003_v43 = vld [vmem:[%s9822_s19 + $0x100] sm:$0xff]  ;;  %v1094_v36 = vld [vmem:[%s9822_s19 + $0x3d8] sm:$0xff] }
  0x88   : > { %7472 = vmatprep.subr.bf16.mxu1 %v7471_v47  ;;  %v1011_v44 = vld [vmem:[%s9822_s19 + $0x140] sm:$0xff]  ;;  %v1020_v47 = vld [vmem:[%s9822_s19 + $0x188] sm:$0xff] }
  0x89   : > { %v7493_v51 = vpack.c.bf16 %v1011_v44, %v1003_v43  ;;  %v1085_v43 = vld [vmem:[%s9822_s19 + $0x390] sm:$0xff]  ;;  %v7575_v44 = vpack.c.bf16 %v1094_v36, %v1086_v35 }
  0x8a   : > { %7410 = vmatpush1.bf16.msra.mxu0 %v7409_v53  ;;  %v7495_v53 = vpack.c.bf16 %v1028_v48, %v1020_v47  ;;  %v1102_v47 = vld [vmem:[%s9822_s19 + $0x418] sm:$0xff]  ;;  %v7577_v50 = vpack.c.bf16 %v1093_v0, %v1085_v43  ;;  %v1173_v43 = vld [vmem:[%s9822_s19 + $0x650] sm:$0xff]  ;;  %v1188_v0 = vld [vmem:[%s9822_s19 + $0x6c8] sm:$0xff] }
  0x8b   : > { %7474 = vmatpush1.bf16.msra.mxu1 %v7473_v54  ;;  %7412 = vmatprep.subr.bf16.mxu0 %v7411_v55  ;;  %v1019_v54 = vld [vmem:[%s9822_s19 + $0x180] sm:$0xff]  ;;  %v1110_v48 = vld [vmem:[%s9822_s19 + $0x458] sm:$0xff] }
  0x8c   : > { %7476 = vmatprep.subr.bf16.mxu1 %v7475_v59  ;;  %v1027_v55 = vld [vmem:[%s9822_s19 + $0x1c0] sm:$0xff]  ;;  %v1036_v59 = vld [vmem:[%s9822_s19 + $0x208] sm:$0xff] }
  0x8d   : > { %v7497_v63 = vpack.c.bf16 %v1027_v55, %v1019_v54  ;;  %v1101_v54 = vld [vmem:[%s9822_s19 + $0x410] sm:$0xff]  ;;  %v7579_v55 = vpack.c.bf16 %v1110_v48, %v1102_v47 }
  0x8e   : > { %7414 = vmatpush1.bf16.msra.mxu0 %v7413_v3  ;;  %v7499_v3 = vpack.c.bf16 %v1044_v60, %v1036_v59  ;;  %v1118_v59 = vld [vmem:[%s9822_s19 + $0x498] sm:$0xff]  ;;  %v7581_v62 = vpack.c.bf16 %v1109_v56, %v1101_v54  ;;  %v1189_v54 = vld [vmem:[%s9822_s19 + $0x6d0] sm:$0xff]  ;;  %v1204_v56 = vld [vmem:[%s9822_s19 + $0x748] sm:$0xff] }
  0x8f   : > { %7478 = vmatpush1.bf16.msra.mxu1 %v7477_v4  ;;  %7416 = vmatprep.subr.bf16.mxu0 %v7415_v5  ;;  %v1035_v4 = vld [vmem:[%s9822_s19 + $0x200] sm:$0xff]  ;;  %v1126_v60 = vld [vmem:[%s9822_s19 + $0x4d8] sm:$0xff] }
  0x90   : > { %7480 = vmatprep.subr.bf16.mxu1 %v7479_v9  ;;  %v1043_v5 = vld [vmem:[%s9822_s19 + $0x240] sm:$0xff]  ;;  %v1052_v9 = vld [vmem:[%s9822_s19 + $0x288] sm:$0xff] }
  0x91   : > { %v7501_v13 = vpack.c.bf16 %v1043_v5, %v1035_v4  ;;  %v1117_v4 = vld [vmem:[%s9822_s19 + $0x490] sm:$0xff]  ;;  %v7583_v5 = vpack.c.bf16 %v1126_v60, %v1118_v59 }
  0x92   : > { %7418 = vmatpush1.bf16.msra.mxu0 %v7417_v15  ;;  %v7503_v15 = vpack.c.bf16 %v1060_v10, %v1052_v9  ;;  %v1134_v9 = vld [vmem:[%s9822_s19 + $0x518] sm:$0xff]  ;;  %v7585_v12 = vpack.c.bf16 %v1125_v6, %v1117_v4  ;;  %v1205_v4 = vld [vmem:[%s9822_s19 + $0x750] sm:$0xff]  ;;  %v1220_v6 = vld [vmem:[%s9822_s19 + $0x7c8] sm:$0xff] }
  0x93   : > { %7482 = vmatpush1.bf16.msra.mxu1 %v7481_v16  ;;  %7484 = vmatprep.subr.bf16.mxu0 %v7483_v17  ;;  %v1051_v16 = vld [vmem:[%s9822_s19 + $0x280] sm:$0xff]  ;;  %v1142_v10 = vld [vmem:[%s9822_s19 + $0x558] sm:$0xff] }
  0x94   : > { %7548 = vmatprep.subr.bf16.mxu1 %v7547_v21  ;;  %v1059_v17 = vld [vmem:[%s9822_s19 + $0x2c0] sm:$0xff]  ;;  %v1068_v21 = vld [vmem:[%s9822_s19 + $0x308] sm:$0xff] }
  0x95   : > { %886 = vmatmul.mubr.f32.vlgmr.msra.gmra.mrb[2].mxu0 %v9851_v37  ;;  %v7505_v25 = vpack.c.bf16 %v1059_v17, %v1051_v16  ;;  %v1133_v16 = vld [vmem:[%s9822_s19 + $0x510] sm:$0xff]  ;;  %v7587_v17 = vpack.c.bf16 %v1142_v10, %v1134_v9 }
  0x96   : > { %957 = vmatmul.mubr.f32.vlgmr.msra.gmra.mrb[2].mxu1 %v9851_v37  ;;  %7486 = vmatpush1.bf16.msra.mxu0 %v7485_v27  ;;  %v7507_v27 = vpack.c.bf16 %v1076_v22, %v1068_v21  ;;  %v1150_v21 = vld [vmem:[%s9822_s19 + $0x598] sm:$0xff]  ;;  %v7589_v24 = vpack.c.bf16 %v1141_v18, %v1133_v16  ;;  %v1221_v16 = vld [vmem:[%s9822_s19 + $0x7d0] sm:$0xff]  ;;  %v984_v18 = vld [vmem:[%s9822_s19 + $0x68] sm:$0xff] }
  0x97   : > { %7550 = vmatpush1.bf16.msra.mxu1 %v7549_v28  ;;  %7488 = vmatprep.subr.bf16.mxu0 %v7487_v29  ;;  %v1067_v28 = vld [vmem:[%s9822_s19 + $0x300] sm:$0xff]  ;;  %v1158_v22 = vld [vmem:[%s9822_s19 + $0x5d8] sm:$0xff] }
  0x98   : > { %7552 = vmatprep.subr.bf16.mxu1 %v7551_v33  ;;  %1291 = vmatprep.mubr.f32.mxu0 %v9545_v1  ;;  %v1075_v29 = vld [vmem:[%s9822_s19 + $0x340] sm:$0xff]  ;;  %v1084_v33 = vld [vmem:[%s9822_s19 + $0x388] sm:$0xff] }
  0x99   : > { %1362 = vmatprep.mubr.f32.mxu1 %v9545_v1  ;;  %v7509_v38 = vpack.c.bf16 %v1075_v29, %v1067_v28  ;;  %v1149_v28 = vld [vmem:[%s9822_s19 + $0x590] sm:$0xff]  ;;  %v7591_v29 = vpack.c.bf16 %v1158_v22, %v1150_v21 }
  0x9a   : > { %7490 = vmatpush1.bf16.msra.mxu0 %v7489_v40  ;;  %v7511_v40 = vpack.c.bf16 %v1092_v34, %v1084_v33  ;;  %v1166_v33 = vld [vmem:[%s9822_s19 + $0x618] sm:$0xff]  ;;  %v7593_v36 = vpack.c.bf16 %v1157_v30, %v1149_v28  ;;  %v985_v28 = vld [vmem:[%s9822_s19 + $0x70] sm:$0xff]  ;;  %v1000_v30 = vld [vmem:[%s9822_s19 + $0xe8] sm:$0xff] }
  0x9b   : > { %7554 = vmatpush1.bf16.msra.mxu1 %v7553_v41  ;;  %7492 = vmatprep.subr.bf16.mxu0 %v7491_v42  ;;  %v1083_v41 = vld [vmem:[%s9822_s19 + $0x380] sm:$0xff]  ;;  %v1174_v34 = vld [vmem:[%s9822_s19 + $0x658] sm:$0xff] }
  0x9c   : > { %7556 = vmatprep.subr.bf16.mxu1 %v7555_v45  ;;  %v1091_v42 = vld [vmem:[%s9822_s19 + $0x3c0] sm:$0xff]  ;;  %v1100_v45 = vld [vmem:[%s9822_s19 + $0x408] sm:$0xff] }
  0x9d   : > { %v7513_v49 = vpack.c.bf16 %v1091_v42, %v1083_v41  ;;  %v1165_v41 = vld [vmem:[%s9822_s19 + $0x610] sm:$0xff]  ;;  %v7595_v42 = vpack.c.bf16 %v1174_v34, %v1166_v33 }
  0x9e   : > { %7494 = vmatpush1.bf16.msra.mxu0 %v7493_v51  ;;  %v7515_v51 = vpack.c.bf16 %v1108_v46, %v1100_v45  ;;  %v1182_v45 = vld [vmem:[%s9822_s19 + $0x698] sm:$0xff]  ;;  %v7597_v48 = vpack.c.bf16 %v1173_v43, %v1165_v41  ;;  %v1001_v41 = vld [vmem:[%s9822_s19 + $0xf0] sm:$0xff]  ;;  %v1016_v43 = vld [vmem:[%s9822_s19 + $0x168] sm:$0xff] }
  0x9f   : > { %7558 = vmatpush1.bf16.msra.mxu1 %v7557_v52  ;;  %7496 = vmatprep.subr.bf16.mxu0 %v7495_v53  ;;  %v1099_v52 = vld [vmem:[%s9822_s19 + $0x400] sm:$0xff]  ;;  %v1190_v46 = vld [vmem:[%s9822_s19 + $0x6d8] sm:$0xff] }
  0xa0   : > { %7560 = vmatprep.subr.bf16.mxu1 %v7559_v57  ;;  %v1107_v53 = vld [vmem:[%s9822_s19 + $0x440] sm:$0xff]  ;;  %v1116_v57 = vld [vmem:[%s9822_s19 + $0x488] sm:$0xff] }
  0xa1   : > { %v7517_v61 = vpack.c.bf16 %v1107_v53, %v1099_v52  ;;  %v1181_v52 = vld [vmem:[%s9822_s19 + $0x690] sm:$0xff]  ;;  %v7599_v53 = vpack.c.bf16 %v1190_v46, %v1182_v45 }
  0xa2   : > { %7498 = vmatpush1.bf16.msra.mxu0 %v7497_v63  ;;  %v7519_v63 = vpack.c.bf16 %v1124_v58, %v1116_v57  ;;  %v1198_v57 = vld [vmem:[%s9822_s19 + $0x718] sm:$0xff]  ;;  %v7601_v60 = vpack.c.bf16 %v1189_v54, %v1181_v52  ;;  %v1017_v52 = vld [vmem:[%s9822_s19 + $0x170] sm:$0xff]  ;;  %v1032_v54 = vld [vmem:[%s9822_s19 + $0x1e8] sm:$0xff] }
  0xa3   : > { %7562 = vmatpush1.bf16.msra.mxu1 %v7561_v2  ;;  %7500 = vmatprep.subr.bf16.mxu0 %v7499_v3  ;;  %v1115_v2 = vld [vmem:[%s9822_s19 + $0x480] sm:$0xff]  ;;  %v1206_v58 = vld [vmem:[%s9822_s19 + $0x758] sm:$0xff] }
  0xa4   : > { %7564 = vmatprep.subr.bf16.mxu1 %v7563_v7  ;;  %v1123_v3 = vld [vmem:[%s9822_s19 + $0x4c0] sm:$0xff]  ;;  %v1132_v7 = vld [vmem:[%s9822_s19 + $0x508] sm:$0xff] }
  0xa5   : > { %v7521_v11 = vpack.c.bf16 %v1123_v3, %v1115_v2  ;;  %v1197_v2 = vld [vmem:[%s9822_s19 + $0x710] sm:$0xff]  ;;  %v7603_v3 = vpack.c.bf16 %v1206_v58, %v1198_v57 }
  0xa6   : > { %7502 = vmatpush1.bf16.msra.mxu0 %v7501_v13  ;;  %v7523_v13 = vpack.c.bf16 %v1140_v8, %v1132_v7  ;;  %v1214_v7 = vld [vmem:[%s9822_s19 + $0x798] sm:$0xff]  ;;  %v7605_v10 = vpack.c.bf16 %v1205_v4, %v1197_v2  ;;  %v1040_v2 = vld [vmem:[%s9822_s19 + $0x228] sm:$0xff] }
  0xa7   : > { %7566 = vmatpush1.bf16.msra.mxu1 %v7565_v14  ;;  %7504 = vmatprep.subr.bf16.mxu0 %v7503_v15  ;;  %v1131_v14 = vld [vmem:[%s9822_s19 + $0x500] sm:$0xff]  ;;  %v1222_v8 = vld [vmem:[%s9822_s19 + $0x7d8] sm:$0xff] }
  0xa8   : > { %7568 = vmatprep.subr.bf16.mxu1 %v7567_v19  ;;  %v1139_v15 = vld [vmem:[%s9822_s19 + $0x540] sm:$0xff]  ;;  %v1148_v19 = vld [vmem:[%s9822_s19 + $0x588] sm:$0xff]  ;;  %v1042_v4 = vld [vmem:[%s9822_s19 + $0x238] sm:$0xff] }
  0xa9   : > { %v7525_v23 = vpack.c.bf16 %v1139_v15, %v1131_v14  ;;  %v1213_v14 = vld [vmem:[%s9822_s19 + $0x790] sm:$0xff]  ;;  %v7607_v15 = vpack.c.bf16 %v1222_v8, %v1214_v7 }
  0xaa   : > { %7506 = vmatpush1.bf16.msra.mxu0 %v7505_v25  ;;  %v7527_v25 = vpack.c.bf16 %v1156_v20, %v1148_v19  ;;  %v978_v19 = vld [vmem:[%s9822_s19 + $0x38] sm:$0xff]  ;;  %v7609_v22 = vpack.c.bf16 %v1221_v16, %v1213_v14  ;;  %v1056_v14 = vld [vmem:[%s9822_s19 + $0x2a8] sm:$0xff] }
  0xab   : > { %7570 = vmatpush1.bf16.msra.mxu1 %v7569_v26  ;;  %7508 = vmatprep.subr.bf16.mxu0 %v7507_v27  ;;  %v1147_v26 = vld [vmem:[%s9822_s19 + $0x580] sm:$0xff]  ;;  %v986_v20 = vld [vmem:[%s9822_s19 + $0x78] sm:$0xff] }
  0xac   : > { %7572 = vmatprep.subr.bf16.mxu1 %v7571_v31  ;;  %v1155_v27 = vld [vmem:[%s9822_s19 + $0x5c0] sm:$0xff]  ;;  %v1164_v31 = vld [vmem:[%s9822_s19 + $0x608] sm:$0xff]  ;;  %v1058_v16 = vld [vmem:[%s9822_s19 + $0x2b8] sm:$0xff] }
  0xad   : > { %v7529_v35 = vpack.c.bf16 %v1155_v27, %v1147_v26  ;;  %v977_v26 = vld [vmem:[%s9822_s19 + $0x30] sm:$0xff]  ;;  %v7675_v27 = vpack.c.bf16 %v986_v20, %v978_v19 }
  0xae   : > { %7510 = vmatpush1.bf16.msra.mxu0 %v7509_v38  ;;  %v7531_v38 = vpack.c.bf16 %v1172_v32, %v1164_v31  ;;  %v994_v31 = vld [vmem:[%s9822_s19 + $0xb8] sm:$0xff]  ;;  %v7677_v34 = vpack.c.bf16 %v985_v28, %v977_v26  ;;  %v1072_v26 = vld [vmem:[%s9822_s19 + $0x328] sm:$0xff] }
  0xaf   : > { %7574 = vmatpush1.bf16.msra.mxu1 %v7573_v39  ;;  %7512 = vmatprep.subr.bf16.mxu0 %v7511_v40  ;;  %v1163_v39 = vld [vmem:[%s9822_s19 + $0x600] sm:$0xff]  ;;  %v1002_v32 = vld [vmem:[%s9822_s19 + $0xf8] sm:$0xff] }
  0xb0   : > { %7576 = vmatprep.subr.bf16.mxu1 %v7575_v44  ;;  %v1171_v40 = vld [vmem:[%s9822_s19 + $0x640] sm:$0xff]  ;;  %v1180_v44 = vld [vmem:[%s9822_s19 + $0x688] sm:$0xff]  ;;  %v1074_v28 = vld [vmem:[%s9822_s19 + $0x338] sm:$0xff] }
  0xb1   : > { %v7533_v47 = vpack.c.bf16 %v1171_v40, %v1163_v39  ;;  %v993_v39 = vld [vmem:[%s9822_s19 + $0xb0] sm:$0xff]  ;;  %v7679_v40 = vpack.c.bf16 %v1002_v32, %v994_v31 }
  0xb2   : > { %7514 = vmatpush1.bf16.msra.mxu0 %v7513_v49  ;;  %v7535_v49 = vpack.c.bf16 %v1188_v0, %v1180_v44  ;;  %v1010_v44 = vld [vmem:[%s9822_s19 + $0x138] sm:$0xff]  ;;  %v7681_v46 = vpack.c.bf16 %v1001_v41, %v993_v39  ;;  %v1088_v39 = vld [vmem:[%s9822_s19 + $0x3a8] sm:$0xff] }
  0xb3   : > { %7578 = vmatpush1.bf16.msra.mxu1 %v7577_v50  ;;  %7516 = vmatprep.subr.bf16.mxu0 %v7515_v51  ;;  %v1179_v50 = vld [vmem:[%s9822_s19 + $0x680] sm:$0xff]  ;;  %v1018_v0 = vld [vmem:[%s9822_s19 + $0x178] sm:$0xff] }
  0xb4   : > { %7580 = vmatprep.subr.bf16.mxu1 %v7579_v55  ;;  %v1187_v51 = vld [vmem:[%s9822_s19 + $0x6c0] sm:$0xff]  ;;  %v1196_v55 = vld [vmem:[%s9822_s19 + $0x708] sm:$0xff]  ;;  %v1090_v41 = vld [vmem:[%s9822_s19 + $0x3b8] sm:$0xff] }
  0xb5   : > { %v7537_v59 = vpack.c.bf16 %v1187_v51, %v1179_v50  ;;  %v1009_v50 = vld [vmem:[%s9822_s19 + $0x130] sm:$0xff]  ;;  %v7683_v51 = vpack.c.bf16 %v1018_v0, %v1010_v44 }
  0xb6   : > { %7518 = vmatpush1.bf16.msra.mxu0 %v7517_v61  ;;  %v7539_v61 = vpack.c.bf16 %v1204_v56, %v1196_v55  ;;  %v1034_v55 = vld [vmem:[%s9822_s19 + $0x1f8] sm:$0xff]  ;;  %v7685_v57 = vpack.c.bf16 %v1017_v52, %v1009_v50  ;;  %v1104_v50 = vld [vmem:[%s9822_s19 + $0x428] sm:$0xff] }
  0xb7   : > { %7582 = vmatpush1.bf16.msra.mxu1 %v7581_v62  ;;  %7520 = vmatprep.subr.bf16.mxu0 %v7519_v63  ;;  %v1195_v62 = vld [vmem:[%s9822_s19 + $0x700] sm:$0xff]  ;;  %v1106_v52 = vld [vmem:[%s9822_s19 + $0x438] sm:$0xff] }
  0xb8   : > { %7584 = vmatprep.subr.bf16.mxu1 %v7583_v5  ;;  %v1203_v63 = vld [vmem:[%s9822_s19 + $0x740] sm:$0xff]  ;;  %v1212_v5 = vld [vmem:[%s9822_s19 + $0x788] sm:$0xff] }
  0xb9   : > { %v7541_v9 = vpack.c.bf16 %v1203_v63, %v1195_v62  ;;  %v1033_v63 = vld [vmem:[%s9822_s19 + $0x1f0] sm:$0xff] }
  0xba   : > { %7522 = vmatpush1.bf16.msra.mxu0 %v7521_v11  ;;  %v7543_v11 = vpack.c.bf16 %v1220_v6, %v1212_v5  ;;  %v1050_v5 = vld [vmem:[%s9822_s19 + $0x278] sm:$0xff] }
  0xbb   : > { %7586 = vmatpush1.bf16.msra.mxu1 %v7585_v12  ;;  %7524 = vmatprep.subr.bf16.mxu0 %v7523_v13  ;;  %v1211_v12 = vld [vmem:[%s9822_s19 + $0x780] sm:$0xff] }
  0xbc   : > { %7588 = vmatprep.subr.bf16.mxu1 %v7587_v17  ;;  %v1219_v13 = vld [vmem:[%s9822_s19 + $0x7c0] sm:$0xff]  ;;  %v976_v17 = vld [vmem:[%s9822_s19 + $0x28] sm:$0xff] }
  0xbd   : > { %v7545_v21 = vpack.c.bf16 %v1219_v13, %v1211_v12  ;;  %v7691_v12 = vpack.c.bf16 %v1050_v5, %v1042_v4  ;;  %v1049_v13 = vld [vmem:[%s9822_s19 + $0x270] sm:$0xff] }
  0xbe   : > { %7526 = vmatpush1.bf16.msra.mxu0 %v7525_v23  ;;  %v7611_v23 = vpack.c.bf16 %v984_v18, %v976_v17  ;;  %v1066_v17 = vld [vmem:[%s9822_s19 + $0x2f8] sm:$0xff] }
  0xbf   : > { %7590 = vmatpush1.bf16.msra.mxu1 %v7589_v24  ;;  %7528 = vmatprep.subr.bf16.mxu0 %v7527_v25  ;;  %v975_v24 = vld [vmem:[%s9822_s19 + $0x20] sm:$0xff] }
  0xc0   : > { %7592 = vmatprep.subr.bf16.mxu1 %v7591_v29  ;;  %v983_v25 = vld [vmem:[%s9822_s19 + $0x60] sm:$0xff]  ;;  %v992_v29 = vld [vmem:[%s9822_s19 + $0xa8] sm:$0xff] }
  0xc1   : > { %v7613_v33 = vpack.c.bf16 %v983_v25, %v975_v24  ;;  %v7695_v24 = vpack.c.bf16 %v1066_v17, %v1058_v16  ;;  %v1065_v25 = vld [vmem:[%s9822_s19 + $0x2f0] sm:$0xff] }
  0xc2   : > { %7530 = vmatpush1.bf16.msra.mxu0 %v7529_v35  ;;  %v7615_v35 = vpack.c.bf16 %v1000_v30, %v992_v29  ;;  %v1082_v29 = vld [vmem:[%s9822_s19 + $0x378] sm:$0xff] }
  0xc3   : > { %7594 = vmatpush1.bf16.msra.mxu1 %v7593_v36  ;;  %7532 = vmatprep.subr.bf16.mxu0 %v7531_v38  ;;  %v991_v36 = vld [vmem:[%s9822_s19 + $0xa0] sm:$0xff] }
  0xc4   : > { %7596 = vmatprep.subr.bf16.mxu1 %v7595_v42  ;;  %v999_v38 = vld [vmem:[%s9822_s19 + $0xe0] sm:$0xff]  ;;  %v1008_v42 = vld [vmem:[%s9822_s19 + $0x128] sm:$0xff] }
  0xc5   : > { %v7617_v45 = vpack.c.bf16 %v999_v38, %v991_v36  ;;  %v7699_v36 = vpack.c.bf16 %v1082_v29, %v1074_v28  ;;  %v1081_v38 = vld [vmem:[%s9822_s19 + $0x370] sm:$0xff] }
  0xc6   : > { %7534 = vmatpush1.bf16.msra.mxu0 %v7533_v47  ;;  %v7619_v47 = vpack.c.bf16 %v1016_v43, %v1008_v42  ;;  %v1098_v42 = vld [vmem:[%s9822_s19 + $0x3f8] sm:$0xff] }
  0xc7   : > { %7598 = vmatpush1.bf16.msra.mxu1 %v7597_v48  ;;  %7536 = vmatprep.subr.bf16.mxu0 %v7535_v49  ;;  %v1007_v48 = vld [vmem:[%s9822_s19 + $0x120] sm:$0xff] }
  0xc8   : > { %7600 = vmatprep.subr.bf16.mxu1 %v7599_v53  ;;  %v1015_v49 = vld [vmem:[%s9822_s19 + $0x160] sm:$0xff]  ;;  %v1024_v53 = vld [vmem:[%s9822_s19 + $0x1a8] sm:$0xff] }
  0xc9   : > { %v7621_v56 = vpack.c.bf16 %v1015_v49, %v1007_v48  ;;  %v7623_v58 = vpack.c.bf16 %v1032_v54, %v1024_v53  ;;  %v7703_v48 = vpack.c.bf16 %v1098_v42, %v1090_v41  ;;  %v1097_v49 = vld [vmem:[%s9822_s19 + $0x3f0] sm:$0xff]  ;;  %v1114_v53 = vld [vmem:[%s9822_s19 + $0x478] sm:$0xff] }
  0xca   : > { %7538 = vmatpush1.bf16.msra.mxu0 %v7537_v59  ;;  %v1023_v59 = vld [vmem:[%s9822_s19 + $0x1a0] sm:$0xff] }
  0xcb   : > { %7602 = vmatpush1.bf16.msra.mxu1 %v7601_v60  ;;  %7540 = vmatprep.subr.bf16.mxu0 %v7539_v61  ;;  %v1031_v60 = vld [vmem:[%s9822_s19 + $0x1e0] sm:$0xff]  ;;  %v1025_v61 = vld [vmem:[%s9822_s19 + $0x1b0] sm:$0xff] }
  0xcc   : > { %7604 = vmatprep.subr.bf16.mxu1 %v7603_v3  ;;  %v1048_v3 = vld [vmem:[%s9822_s19 + $0x268] sm:$0xff]  ;;  %v7625_v6 = vpack.c.bf16 %v1031_v60, %v1023_v59  ;;  %v7689_v7 = vpack.c.bf16 %v1033_v63, %v1025_v61  ;;  %v7707_v59 = vpack.c.bf16 %v1114_v53, %v1106_v52  ;;  %v1113_v60 = vld [vmem:[%s9822_s19 + $0x470] sm:$0xff]  ;;  %v1122_v63 = vld [vmem:[%s9822_s19 + $0x4b8] sm:$0xff] }
  0xcd   : > { %v7627_v8 = vpack.c.bf16 %v1048_v3, %v1040_v2  ;;  %v1120_v61 = vld [vmem:[%s9822_s19 + $0x4a8] sm:$0xff]  ;;  %v1130_v2 = vld [vmem:[%s9822_s19 + $0x4f8] sm:$0xff] }
  0xce   : > { %7542 = vmatpush1.bf16.msra.mxu0 %v7541_v9  ;;  %v1039_v9 = vld [vmem:[%s9822_s19 + $0x220] sm:$0xff] }
  0xcf   : > { %7606 = vmatpush1.bf16.msra.mxu1 %v7605_v10  ;;  %7544 = vmatprep.subr.bf16.mxu0 %v7543_v11  ;;  %v1047_v10 = vld [vmem:[%s9822_s19 + $0x260] sm:$0xff]  ;;  %v1041_v11 = vld [vmem:[%s9822_s19 + $0x230] sm:$0xff] }
  0xd0   : > { %7608 = vmatprep.subr.bf16.mxu1 %v7607_v15  ;;  %v1064_v15 = vld [vmem:[%s9822_s19 + $0x2e8] sm:$0xff]  ;;  %v7629_v18 = vpack.c.bf16 %v1047_v10, %v1039_v9  ;;  %v7693_v19 = vpack.c.bf16 %v1049_v13, %v1041_v11  ;;  %v7711_v9 = vpack.c.bf16 %v1130_v2, %v1122_v63  ;;  %v1129_v10 = vld [vmem:[%s9822_s19 + $0x4f0] sm:$0xff]  ;;  %v1138_v13 = vld [vmem:[%s9822_s19 + $0x538] sm:$0xff] }
  0xd1   : > { %v7631_v20 = vpack.c.bf16 %v1064_v15, %v1056_v14  ;;  %v1136_v11 = vld [vmem:[%s9822_s19 + $0x528] sm:$0xff]  ;;  %v1146_v14 = vld [vmem:[%s9822_s19 + $0x578] sm:$0xff] }
  0xd2   : > { %7546 = vmatpush1.bf16.msra.mxu0 %v7545_v21  ;;  %v1055_v21 = vld [vmem:[%s9822_s19 + $0x2a0] sm:$0xff] }
  0xd3   : > { %7610 = vmatpush1.bf16.msra.mxu1 %v7609_v22  ;;  %7612 = vmatprep.subr.bf16.mxu0 %v7611_v23  ;;  %v1063_v22 = vld [vmem:[%s9822_s19 + $0x2e0] sm:$0xff]  ;;  %v1057_v23 = vld [vmem:[%s9822_s19 + $0x2b0] sm:$0xff] }
  0xd4   : > { %7676 = vmatprep.subr.bf16.mxu1 %v7675_v27  ;;  %v1080_v27 = vld [vmem:[%s9822_s19 + $0x368] sm:$0xff]  ;;  %v7633_v30 = vpack.c.bf16 %v1063_v22, %v1055_v21  ;;  %v7697_v31 = vpack.c.bf16 %v1065_v25, %v1057_v23  ;;  %v7715_v21 = vpack.c.bf16 %v1146_v14, %v1138_v13  ;;  %v1145_v22 = vld [vmem:[%s9822_s19 + $0x570] sm:$0xff]  ;;  %v1154_v25 = vld [vmem:[%s9822_s19 + $0x5b8] sm:$0xff] }
  0xd5   : > { %1292 = vmatmul.mubr.f32.vlgmr.msra.gmra.mrb[4].mxu0 %v9851_v37  ;;  %v7635_v32 = vpack.c.bf16 %v1080_v27, %v1072_v26  ;;  %v1152_v23 = vld [vmem:[%s9822_s19 + $0x5a8] sm:$0xff]  ;;  %v1162_v26 = vld [vmem:[%s9822_s19 + $0x5f8] sm:$0xff] }
  0xd6   : > { %1363 = vmatmul.mubr.f32.vlgmr.msra.gmra.mrb[4].mxu1 %v9851_v37  ;;  %7614 = vmatpush1.bf16.msra.mxu0 %v7613_v33  ;;  %v1026_v37 = vld [vmem:[%s9822_s19 + $0x1b8] sm:$0xff]  ;;  %v1071_v33 = vld [vmem:[%s9822_s19 + $0x320] sm:$0xff] }
  0xd7   : > { %7678 = vmatpush1.bf16.msra.mxu1 %v7677_v34  ;;  %7616 = vmatprep.subr.bf16.mxu0 %v7615_v35  ;;  %v7687_v62 = vpack.c.bf16 %v1034_v55, %v1026_v37  ;;  %v1079_v34 = vld [vmem:[%s9822_s19 + $0x360] sm:$0xff]  ;;  %v1073_v35 = vld [vmem:[%s9822_s19 + $0x330] sm:$0xff] }
  0xd8   : > { %7680 = vmatprep.subr.bf16.mxu1 %v7679_v40  ;;  %1433 = vmatprep.mubr.f32.mxu0 %v9545_v1  ;;  %v1096_v40 = vld [vmem:[%s9822_s19 + $0x3e8] sm:$0xff]  ;;  %v7637_v43 = vpack.c.bf16 %v1079_v34, %v1071_v33  ;;  %v7701_v44 = vpack.c.bf16 %v1081_v38, %v1073_v35  ;;  %v7719_v33 = vpack.c.bf16 %v1162_v26, %v1154_v25  ;;  %v1161_v34 = vld [vmem:[%s9822_s19 + $0x5f0] sm:$0xff]  ;;  %v1170_v38 = vld [vmem:[%s9822_s19 + $0x638] sm:$0xff] }
  0xd9   : > { %1504 = vmatprep.mubr.f32.mxu1 %v9545_v1  ;;  %v7639_v0 = vpack.c.bf16 %v1096_v40, %v1088_v39  ;;  %v1168_v35 = vld [vmem:[%s9822_s19 + $0x628] sm:$0xff]  ;;  %v1178_v39 = vld [vmem:[%s9822_s19 + $0x678] sm:$0xff] }
  0xda   : > { %7618 = vmatpush1.bf16.msra.mxu0 %v7617_v45  ;;  %v1087_v45 = vld [vmem:[%s9822_s19 + $0x3a0] sm:$0xff] }
  0xdb   : > { %7682 = vmatpush1.bf16.msra.mxu1 %v7681_v46  ;;  %7620 = vmatprep.subr.bf16.mxu0 %v7619_v47  ;;  %v1095_v46 = vld [vmem:[%s9822_s19 + $0x3e0] sm:$0xff]  ;;  %v1089_v47 = vld [vmem:[%s9822_s19 + $0x3b0] sm:$0xff] }
  0xdc   : > { %7684 = vmatprep.subr.bf16.mxu1 %v7683_v51  ;;  %v1112_v51 = vld [vmem:[%s9822_s19 + $0x468] sm:$0xff]  ;;  %v7641_v54 = vpack.c.bf16 %v1095_v46, %v1087_v45  ;;  %v7705_v37 = vpack.c.bf16 %v1097_v49, %v1089_v47  ;;  %v7723_v45 = vpack.c.bf16 %v1178_v39, %v1170_v38  ;;  %v1177_v46 = vld [vmem:[%s9822_s19 + $0x670] sm:$0xff]  ;;  %v1186_v49 = vld [vmem:[%s9822_s19 + $0x6b8] sm:$0xff] }
  0xdd   : > { %v7643_v55 = vpack.c.bf16 %v1112_v51, %v1104_v50  ;;  %v1184_v47 = vld [vmem:[%s9822_s19 + $0x6a8] sm:$0xff]  ;;  %v1194_v50 = vld [vmem:[%s9822_s19 + $0x6f8] sm:$0xff] }
  0xde   : > { %7622 = vmatpush1.bf16.msra.mxu0 %v7621_v56  ;;  %v1103_v56 = vld [vmem:[%s9822_s19 + $0x420] sm:$0xff] }
  0xdf   : > { %7686 = vmatpush1.bf16.msra.mxu1 %v7685_v57  ;;  %7624 = vmatprep.subr.bf16.mxu0 %v7623_v58  ;;  %v1111_v57 = vld [vmem:[%s9822_s19 + $0x460] sm:$0xff]  ;;  %v1105_v58 = vld [vmem:[%s9822_s19 + $0x430] sm:$0xff] }
  0xe0   : > { %7688 = vmatprep.subr.bf16.mxu1 %v7687_v62  ;;  %v1128_v62 = vld [vmem:[%s9822_s19 + $0x4e8] sm:$0xff]  ;;  %v7645_v3 = vpack.c.bf16 %v1111_v57, %v1103_v56  ;;  %v7709_v4 = vpack.c.bf16 %v1113_v60, %v1105_v58  ;;  %v7727_v56 = vpack.c.bf16 %v1194_v50, %v1186_v49  ;;  %v1193_v57 = vld [vmem:[%s9822_s19 + $0x6f0] sm:$0xff]  ;;  %v1202_v60 = vld [vmem:[%s9822_s19 + $0x738] sm:$0xff] }
  0xe1   : > { %v7647_v5 = vpack.c.bf16 %v1128_v62, %v1120_v61  ;;  %v1200_v58 = vld [vmem:[%s9822_s19 + $0x728] sm:$0xff]  ;;  %v1210_v61 = vld [vmem:[%s9822_s19 + $0x778] sm:$0xff] }
  0xe2   : > { %7626 = vmatpush1.bf16.msra.mxu0 %v7625_v6  ;;  %v1119_v6 = vld [vmem:[%s9822_s19 + $0x4a0] sm:$0xff] }
  0xe3   : > { %7690 = vmatpush1.bf16.msra.mxu1 %v7689_v7  ;;  %7628 = vmatprep.subr.bf16.mxu0 %v7627_v8  ;;  %v1127_v7 = vld [vmem:[%s9822_s19 + $0x4e0] sm:$0xff]  ;;  %v1121_v8 = vld [vmem:[%s9822_s19 + $0x4b0] sm:$0xff] }
  0xe4   : > { %7692 = vmatprep.subr.bf16.mxu1 %v7691_v12  ;;  %v1144_v12 = vld [vmem:[%s9822_s19 + $0x568] sm:$0xff]  ;;  %v7649_v15 = vpack.c.bf16 %v1127_v7, %v1119_v6  ;;  %v7713_v16 = vpack.c.bf16 %v1129_v10, %v1121_v8  ;;  %v7731_v6 = vpack.c.bf16 %v1210_v61, %v1202_v60  ;;  %v1209_v7 = vld [vmem:[%s9822_s19 + $0x770] sm:$0xff]  ;;  %v1218_v10 = vld [vmem:[%s9822_s19 + $0x7b8] sm:$0xff] }
  0xe5   : > { %v7651_v17 = vpack.c.bf16 %v1144_v12, %v1136_v11  ;;  %v1216_v8 = vld [vmem:[%s9822_s19 + $0x7a8] sm:$0xff]  ;;  %v1226_v11 = vld [vmem:[%s9822_s19 + $0x7f8] sm:$0xff] }
  0xe6   : > { %7630 = vmatpush1.bf16.msra.mxu0 %v7629_v18  ;;  %v1135_v18 = vld [vmem:[%s9822_s19 + $0x520] sm:$0xff] }
  0xe7   : > { %7694 = vmatpush1.bf16.msra.mxu1 %v7693_v19  ;;  %7632 = vmatprep.subr.bf16.mxu0 %v7631_v20  ;;  %v1143_v19 = vld [vmem:[%s9822_s19 + $0x560] sm:$0xff]  ;;  %v1137_v20 = vld [vmem:[%s9822_s19 + $0x530] sm:$0xff] }
  0xe8   : > { %7696 = vmatprep.subr.bf16.mxu1 %v7695_v24  ;;  %v1160_v24 = vld [vmem:[%s9822_s19 + $0x5e8] sm:$0xff]  ;;  %v7653_v27 = vpack.c.bf16 %v1143_v19, %v1135_v18  ;;  %v7717_v28 = vpack.c.bf16 %v1145_v22, %v1137_v20  ;;  %v7735_v18 = vpack.c.bf16 %v1226_v11, %v1218_v10  ;;  %v1225_v19 = vld [vmem:[%s9822_s19 + $0x7f0] sm:$0xff]  ;;  %v5638_v22 = vld [vmem:[%s9558_s14 + $0x818] sm:$0xff] }
  0xe9   : > { %v7655_v29 = vpack.c.bf16 %v1160_v24, %v1152_v23  ;;  %v5636_v20 = vld [vmem:[%s9558_s14 + $0x808] sm:$0xff]  ;;  %v5646_v23 = vld [vmem:[%s9558_s14 + $0x858] sm:$0xff] }
  0xea   : > { %7634 = vmatpush1.bf16.msra.mxu0 %v7633_v30  ;;  %v1151_v30 = vld [vmem:[%s9822_s19 + $0x5a0] sm:$0xff] }
  0xeb   : > { %7698 = vmatpush1.bf16.msra.mxu1 %v7697_v31  ;;  %7636 = vmatprep.subr.bf16.mxu0 %v7635_v32  ;;  %v1159_v31 = vld [vmem:[%s9822_s19 + $0x5e0] sm:$0xff]  ;;  %v1153_v32 = vld [vmem:[%s9822_s19 + $0x5b0] sm:$0xff] }
  0xec   : > { %7700 = vmatprep.subr.bf16.mxu1 %v7699_v36  ;;  %v1176_v36 = vld [vmem:[%s9822_s19 + $0x668] sm:$0xff]  ;;  %v7657_v40 = vpack.c.bf16 %v1159_v31, %v1151_v30  ;;  %v7721_v41 = vpack.c.bf16 %v1161_v34, %v1153_v32  ;;  %v7803_v30 = vpack.c.bf16 %v5646_v23, %v5638_v22  ;;  %v5645_v31 = vld [vmem:[%s9558_s14 + $0x850] sm:$0xff]  ;;  %v5654_v34 = vld [vmem:[%s9558_s14 + $0x898] sm:$0xff] }
  0xed   : > { %v7659_v42 = vpack.c.bf16 %v1176_v36, %v1168_v35  ;;  %v5652_v32 = vld [vmem:[%s9558_s14 + $0x888] sm:$0xff]  ;;  %v5662_v35 = vld [vmem:[%s9558_s14 + $0x8d8] sm:$0xff] }
  0xee   : > { %7638 = vmatpush1.bf16.msra.mxu0 %v7637_v43  ;;  %v1167_v43 = vld [vmem:[%s9822_s19 + $0x620] sm:$0xff] }
  0xef   : > { %7702 = vmatpush1.bf16.msra.mxu1 %v7701_v44  ;;  %7640 = vmatprep.subr.bf16.mxu0 %v7639_v0  ;;  %v1175_v44 = vld [vmem:[%s9822_s19 + $0x660] sm:$0xff]  ;;  %v1169_v0 = vld [vmem:[%s9822_s19 + $0x630] sm:$0xff] }
  0xf0   : > { %7704 = vmatprep.subr.bf16.mxu1 %v7703_v48  ;;  %v1192_v48 = vld [vmem:[%s9822_s19 + $0x6e8] sm:$0xff]  ;;  %v7661_v51 = vpack.c.bf16 %v1175_v44, %v1167_v43  ;;  %v7725_v52 = vpack.c.bf16 %v1177_v46, %v1169_v0  ;;  %v7807_v43 = vpack.c.bf16 %v5662_v35, %v5654_v34  ;;  %v5661_v44 = vld [vmem:[%s9558_s14 + $0x8d0] sm:$0xff]  ;;  %v10120_v46 = vld [vmem:[%s11971_s4] sm:$0x77]  ;;  %v10160_v34 = vpop.permute.xlu0 %673 }
  0xf1   : > { %v7663_v53 = vpack.c.bf16 %v1192_v48, %v1184_v47  ;;  %v5668_v0 = vld [vmem:[%s9558_s14 + $0x908] sm:$0xff]  ;;  %v5670_v47 = vld [vmem:[%s9558_s14 + $0x918] sm:$0xff] }
  0xf2   : > { %7642 = vmatpush1.bf16.msra.mxu0 %v7641_v54  ;;  %v1183_v54 = vld [vmem:[%s9822_s19 + $0x6a0] sm:$0xff]  ;;  %v5678_v48 = vld [vmem:[%s9558_s14 + $0x958] sm:$0xff] }
  0xf3   : > { %7706 = vmatpush1.bf16.msra.mxu1 %v7705_v37  ;;  %7644 = vmatprep.subr.bf16.mxu0 %v7643_v55  ;;  %v1191_v37 = vld [vmem:[%s9822_s19 + $0x6e0] sm:$0xff]  ;;  %v1185_v55 = vld [vmem:[%s9822_s19 + $0x6b0] sm:$0xff] }
  0xf4   : > { %7708 = vmatprep.subr.bf16.mxu1 %v7707_v59  ;;  %v1208_v59 = vld [vmem:[%s9822_s19 + $0x768] sm:$0xff]  ;;  %v7665_v62 = vpack.c.bf16 %v1191_v37, %v1183_v54  ;;  %v7729_v63 = vpack.c.bf16 %v1193_v57, %v1185_v55  ;;  %v5669_v54 = vld [vmem:[%s9558_s14 + $0x910] sm:$0xff]  ;;  %v7811_v37 = vpack.c.bf16 %v5678_v48, %v5670_v47 }
  0xf5   : > { %v7667_v2 = vpack.c.bf16 %v1208_v59, %v1200_v58  ;;  %v5677_v55 = vld [vmem:[%s9558_s14 + $0x950] sm:$0xff]  ;;  %v5692_v57 = vld [vmem:[%s9558_s14 + $0x9c8] sm:$0xff]  ;;  %v5686_v58 = vld [vmem:[%s9558_s14 + $0x998] sm:$0xff] }
  0xf6   : > { %7646 = vmatpush1.bf16.msra.mxu0 %v7645_v3  ;;  %v1199_v3 = vld [vmem:[%s9822_s19 + $0x720] sm:$0xff]  ;;  %v5694_v59 = vld [vmem:[%s9558_s14 + $0x9d8] sm:$0xff]  ;;  %v7813_v61 = vpack.c.bf16 %v5677_v55, %v5669_v54 }
  0xf7   : > { %7710 = vmatpush1.bf16.msra.mxu1 %v7709_v4  ;;  %7648 = vmatprep.subr.bf16.mxu0 %v7647_v5  ;;  %v1207_v4 = vld [vmem:[%s9822_s19 + $0x760] sm:$0xff]  ;;  %v1201_v5 = vld [vmem:[%s9822_s19 + $0x730] sm:$0xff] }
  0xf8   : > { %7712 = vmatprep.subr.bf16.mxu1 %v7711_v9  ;;  %v1224_v9 = vld [vmem:[%s9822_s19 + $0x7e8] sm:$0xff]  ;;  %v7669_v12 = vpack.c.bf16 %v1207_v4, %v1199_v3  ;;  %v7733_v13 = vpack.c.bf16 %v1209_v7, %v1201_v5  ;;  %v5685_v3 = vld [vmem:[%s9558_s14 + $0x990] sm:$0xff]  ;;  %v7815_v4 = vpack.c.bf16 %v5694_v59, %v5686_v58  ;;  %v5747_v58 = vld [vmem:[%s9558_s14 + $0xb80] sm:$0xff] }
  0xf9   : > { %v7671_v14 = vpack.c.bf16 %v1224_v9, %v1216_v8  ;;  %v5693_v5 = vld [vmem:[%s9558_s14 + $0x9d0] sm:$0xff]  ;;  %v5708_v7 = vld [vmem:[%s9558_s14 + $0xa48] sm:$0xff]  ;;  %v5702_v8 = vld [vmem:[%s9558_s14 + $0xa18] sm:$0xff] }
  0xfa   : > { %7650 = vmatpush1.bf16.msra.mxu0 %v7649_v15  ;;  %v1215_v15 = vld [vmem:[%s9822_s19 + $0x7a0] sm:$0xff]  ;;  %v5710_v9 = vld [vmem:[%s9558_s14 + $0xa58] sm:$0xff]  ;;  %v7817_v11 = vpack.c.bf16 %v5693_v5, %v5685_v3 }
  0xfb   : > { %7714 = vmatpush1.bf16.msra.mxu1 %v7713_v16  ;;  %7652 = vmatprep.subr.bf16.mxu0 %v7651_v17  ;;  %v1223_v16 = vld [vmem:[%s9822_s19 + $0x7e0] sm:$0xff]  ;;  %v1217_v17 = vld [vmem:[%s9822_s19 + $0x7b0] sm:$0xff]  ;;  %v5766_v3 = vld [vmem:[%s9558_s14 + $0xc18] sm:$0xff] }
  0xfc   : > { %7716 = vmatprep.subr.bf16.mxu1 %v7715_v21  ;;  %v5644_v21 = vld [vmem:[%s9558_s14 + $0x848] sm:$0xff]  ;;  %v7673_v24 = vpack.c.bf16 %v1223_v16, %v1215_v15  ;;  %v7737_v25 = vpack.c.bf16 %v1225_v19, %v1217_v17  ;;  %v5701_v15 = vld [vmem:[%s9558_s14 + $0xa10] sm:$0xff]  ;;  %v7819_v16 = vpack.c.bf16 %v5710_v9, %v5702_v8  ;;  %v5755_v59 = vld [vmem:[%s9558_s14 + $0xbc0] sm:$0xff] }
  0xfd   : > { %v7739_v26 = vpack.c.bf16 %v5644_v21, %v5636_v20  ;;  %v5709_v17 = vld [vmem:[%s9558_s14 + $0xa50] sm:$0xff]  ;;  %v5724_v19 = vld [vmem:[%s9558_s14 + $0xac8] sm:$0xff]  ;;  %v5718_v20 = vld [vmem:[%s9558_s14 + $0xa98] sm:$0xff] }
  0xfe   : > { %7654 = vmatpush1.bf16.msra.mxu0 %v7653_v27  ;;  %v5635_v27 = vld [vmem:[%s9558_s14 + $0x800] sm:$0xff]  ;;  %v5726_v21 = vld [vmem:[%s9558_s14 + $0xad8] sm:$0xff]  ;;  %v7821_v23 = vpack.c.bf16 %v5709_v17, %v5701_v15  ;;  %v5788_v15 = vld [vmem:[%s9558_s14 + $0xcc8] sm:$0xff] }
  0xff   : > { %7718 = vmatpush1.bf16.msra.mxu1 %v7717_v28  ;;  %7656 = vmatprep.subr.bf16.mxu0 %v7655_v29  ;;  %v5643_v28 = vld [vmem:[%s9558_s14 + $0x840] sm:$0xff]  ;;  %v5637_v29 = vld [vmem:[%s9558_s14 + $0x810] sm:$0xff]  ;;  %v5790_v17 = vld [vmem:[%s9558_s14 + $0xcd8] sm:$0xff] }
 0x100   : > { %7720 = vmatprep.subr.bf16.mxu1 %v7719_v33  ;;  %v5660_v33 = vld [vmem:[%s9558_s14 + $0x8c8] sm:$0xff]  ;;  %v7741_v36 = vpack.c.bf16 %v5643_v28, %v5635_v27  ;;  %v7805_v38 = vpack.c.bf16 %v5645_v31, %v5637_v29  ;;  %v5717_v27 = vld [vmem:[%s9558_s14 + $0xa90] sm:$0xff]  ;;  %v7823_v28 = vpack.c.bf16 %v5726_v21, %v5718_v20  ;;  %v1559_v5 = vld [vmem:[%s10180_s30] sm:$0x77] }
 0x101   : > { %v7743_v39 = vpack.c.bf16 %v5660_v33, %v5652_v32  ;;  %v5725_v29 = vld [vmem:[%s9558_s14 + $0xad0] sm:$0xff]  ;;  %v5740_v31 = vld [vmem:[%s9558_s14 + $0xb48] sm:$0xff]  ;;  %v5734_v32 = vld [vmem:[%s9558_s14 + $0xb18] sm:$0xff]  ;;  %v1567_v21 = vcombine.high %v1559_v5, %v1559_v5 }
 0x102   : > { %7658 = vmatpush1.bf16.msra.mxu0 %v7657_v40  ;;  %v5651_v40 = vld [vmem:[%s9558_s14 + $0x880] sm:$0xff]  ;;  %v5742_v33 = vld [vmem:[%s9558_s14 + $0xb58] sm:$0xff] }
 0x103   : > { %7722 = vmatpush1.bf16.msra.mxu1 %v7721_v41  ;;  %7660 = vmatprep.subr.bf16.mxu0 %v7659_v42  ;;  %v5659_v41 = vld [vmem:[%s9558_s14 + $0x8c0] sm:$0xff]  ;;  %v5653_v42 = vld [vmem:[%s9558_s14 + $0x890] sm:$0xff] }
 0x104   : > { %7724 = vmatprep.subr.bf16.mxu1 %v7723_v45  ;;  %v5676_v45 = vld [vmem:[%s9558_s14 + $0x948] sm:$0xff]  ;;  %v7745_v49 = vpack.c.bf16 %v5659_v41, %v5651_v40  ;;  %v7809_v50 = vpack.c.bf16 %v5661_v44, %v5653_v42  ;;  %v5739_v40 = vld [vmem:[%s9558_s14 + $0xb40] sm:$0xff]  ;;  %v5733_v41 = vld [vmem:[%s9558_s14 + $0xb10] sm:$0xff] }
 0x105   : > { %v5741_v44 = vld [vmem:[%s9558_s14 + $0xb50] sm:$0xff]  ;;  %v5763_v9 = vld [vmem:[%s9558_s14 + $0xc00] sm:$0xff] }
 0x106   : > { %7662 = vmatpush1.bf16.msra.mxu0 %v7661_v51  ;;  %v7747_v51 = vpack.c.bf16 %v5676_v45, %v5668_v0  ;;  %v5748_v0 = vld [vmem:[%s9558_s14 + $0xb88] sm:$0xff]  ;;  %v5779_v20 = vld [vmem:[%s9558_s14 + $0xc80] sm:$0xff] }
 0x107   : > { %7726 = vmatpush1.bf16.msra.mxu1 %v7725_v52  ;;  %7664 = vmatprep.subr.bf16.mxu0 %v7663_v53  ;;  %v5667_v52 = vld [vmem:[%s9558_s14 + $0x900] sm:$0xff]  ;;  %v5756_v45 = vld [vmem:[%s9558_s14 + $0xbc8] sm:$0xff] }
 0x108   : > { %7728 = vmatprep.subr.bf16.mxu1 %v7727_v56  ;;  %v5675_v53 = vld [vmem:[%s9558_s14 + $0x940] sm:$0xff]  ;;  %v5684_v56 = vld [vmem:[%s9558_s14 + $0x988] sm:$0xff] }
 0x109   : > { %v7749_v60 = vpack.c.bf16 %v5675_v53, %v5667_v52 }
 0x10a   : > { %7666 = vmatpush1.bf16.msra.mxu0 %v7665_v62  ;;  %v7751_v62 = vpack.c.bf16 %v5692_v57, %v5684_v56  ;;  %v7829_v56 = vpack.c.bf16 %v5741_v44, %v5733_v41  ;;  %v7767_v57 = vpack.c.bf16 %v5756_v45, %v5748_v0  ;;  %v5795_v44 = vld [vmem:[%s9558_s14 + $0xd00] sm:$0xff]  ;;  %v5797_v45 = vld [vmem:[%s9558_s14 + $0xd10] sm:$0xff] }
 0x10b   : > { %7730 = vmatpush1.bf16.msra.mxu1 %v7729_v63  ;;  %7668 = vmatprep.subr.bf16.mxu0 %v7667_v2  ;;  %v5683_v63 = vld [vmem:[%s9558_s14 + $0x980] sm:$0xff] }
 0x10c   : > { %7732 = vmatprep.subr.bf16.mxu1 %v7731_v6  ;;  %v5691_v2 = vld [vmem:[%s9558_s14 + $0x9c0] sm:$0xff]  ;;  %v5700_v6 = vld [vmem:[%s9558_s14 + $0xa08] sm:$0xff] }
 0x10d   : > { %v7753_v10 = vpack.c.bf16 %v5691_v2, %v5683_v63  ;;  %v5764_v63 = vld [vmem:[%s9558_s14 + $0xc08] sm:$0xff]  ;;  %v5803_v0 = vld [vmem:[%s9558_s14 + $0xd40] sm:$0xff] }
 0x10e   : > { %7670 = vmatpush1.bf16.msra.mxu0 %v7669_v12  ;;  %v7755_v12 = vpack.c.bf16 %v5708_v7, %v5700_v6  ;;  %v5772_v2 = vld [vmem:[%s9558_s14 + $0xc48] sm:$0xff]  ;;  %v7769_v6 = vpack.c.bf16 %v5755_v59, %v5747_v58  ;;  %v7781_v59 = vpack.c.bf16 %v5803_v0, %v5795_v44 }
 0x10f   : > { %7734 = vmatpush1.bf16.msra.mxu1 %v7733_v13  ;;  %7672 = vmatprep.subr.bf16.mxu0 %v7671_v14  ;;  %v5699_v13 = vld [vmem:[%s9558_s14 + $0xa00] sm:$0xff]  ;;  %v7771_v8 = vpack.c.bf16 %v5772_v2, %v5764_v63 }
 0x110   : > { %7736 = vmatprep.subr.bf16.mxu1 %v7735_v18  ;;  %v5707_v14 = vld [vmem:[%s9558_s14 + $0xa40] sm:$0xff]  ;;  %v5716_v18 = vld [vmem:[%s9558_s14 + $0xa88] sm:$0xff] }
 0x111   : > { %v7757_v22 = vpack.c.bf16 %v5707_v14, %v5699_v13  ;;  %v5773_v13 = vld [vmem:[%s9558_s14 + $0xc50] sm:$0xff]  ;;  %v5780_v14 = vld [vmem:[%s9558_s14 + $0xc88] sm:$0xff]  ;;  %v5811_v63 = vld [vmem:[%s9558_s14 + $0xd80] sm:$0xff] }
 0x112   : > { %7674 = vmatpush1.bf16.msra.mxu0 %v7673_v24  ;;  %v7759_v24 = vpack.c.bf16 %v5724_v19, %v5716_v18  ;;  %v1560_v18 = vld [vmem:[%s10180_s30 + $0x8] sm:$0x77]  ;;  %v5819_v2 = vld [vmem:[%s9558_s14 + $0xdc0] sm:$0xff] }
 0x113   : > { %7738 = vmatpush1.bf16.msra.mxu1 %v7737_v25  ;;  %7740 = vmatprep.subr.bf16.mxu0 %v7739_v26  ;;  %v5715_v25 = vld [vmem:[%s9558_s14 + $0xa80] sm:$0xff] }
 0x114   : > { %7804 = vmatprep.subr.bf16.mxu1 %v7803_v30  ;;  %v5723_v26 = vld [vmem:[%s9558_s14 + $0xac0] sm:$0xff]  ;;  %v5732_v30 = vld [vmem:[%s9558_s14 + $0xb08] sm:$0xff] }
 0x115   : > { %1434 = vmatmul.mubr.f32.vlgmr.msra.gmra.mrb[6].mxu0 %v10120_v46  ;;  %v7761_v35 = vpack.c.bf16 %v5723_v26, %v5715_v25  ;;  %v5781_v25 = vld [vmem:[%s9558_s14 + $0xc90] sm:$0xff] }
 0x116   : > { %1505 = vmatmul.mubr.f32.vlgmr.msra.gmra.mrb[6].mxu1 %v10120_v46  ;;  %7742 = vmatpush1.bf16.msra.mxu0 %v7741_v36  ;;  %v7825_v36 = vpack.c.bf16 %v5725_v29, %v5717_v27  ;;  %v5789_v26 = vld [vmem:[%s9558_s14 + $0xcd0] sm:$0xff]  ;;  %v5804_v29 = vld [vmem:[%s9558_s14 + $0xd48] sm:$0xff] }
 0x117   : > { %7806 = vmatpush1.bf16.msra.mxu1 %v7805_v38  ;;  %7744 = vmatprep.subr.bf16.mxu0 %v7743_v39  ;;  %v7763_v38 = vpack.c.bf16 %v5740_v31, %v5732_v30  ;;  %v5731_v39 = vld [vmem:[%s9558_s14 + $0xb00] sm:$0xff]  ;;  %v1568_v31 = vcombine.high %v1560_v18, %v1560_v18 }
 0x118   : > { %7808 = vmatprep.subr.bf16.mxu1 %v7807_v43  ;;  %1998 = vmatprep.mubr.f32.mxu0 %v9545_v1  ;;  %v7827_v43 = vpack.c.bf16 %v5742_v33, %v5734_v32  ;;  %v5798_v32 = vld [vmem:[%s9558_s14 + $0xd18] sm:$0xff] }
 0x119   : > { %2069 = vmatprep.mubr.f32.mxu1 %v9545_v1  ;;  %v5806_v33 = vld [vmem:[%s9558_s14 + $0xd58] sm:$0xff] }
 0x11a   : > { %7746 = vmatpush1.bf16.msra.mxu0 %v7745_v49 }
 0x11b   : > { %7810 = vmatpush1.bf16.msra.mxu1 %v7809_v50  ;;  %7748 = vmatprep.subr.bf16.mxu0 %v7747_v51  ;;  %v5750_v50 = vld [vmem:[%s9558_s14 + $0xb98] sm:$0xff] }
 0x11c   : > { %7812 = vmatprep.subr.bf16.mxu1 %v7811_v37  ;;  %v5758_v51 = vld [vmem:[%s9558_s14 + $0xbd8] sm:$0xff]  ;;  %v7765_v37 = vpack.c.bf16 %v5739_v40, %v5731_v39  ;;  %v7841_v39 = vpack.c.bf16 %v5789_v26, %v5781_v25  ;;  %v5852_v25 = vld [vmem:[%s9558_s14 + $0xec8] sm:$0xff] }
 0x11e   : > { %7750 = vmatpush1.bf16.msra.mxu0 %v7749_v60  ;;  %v5749_v60 = vld [vmem:[%s9558_s14 + $0xb90] sm:$0xff] }
 0x11f   : > { %7814 = vmatpush1.bf16.msra.mxu1 %v7813_v61  ;;  %7752 = vmatprep.subr.bf16.mxu0 %v7751_v62  ;;  %v7831_v61 = vpack.c.bf16 %v5758_v51, %v5750_v50  ;;  %v5757_v62 = vld [vmem:[%s9558_s14 + $0xbd0] sm:$0xff]  ;;  %v5812_v51 = vld [vmem:[%s9558_s14 + $0xd88] sm:$0xff] }
 0x120   : > { %7816 = vmatprep.subr.bf16.mxu1 %v7815_v4  ;;  %v5774_v4 = vld [vmem:[%s9558_s14 + $0xc58] sm:$0xff]  ;;  %v7833_v7 = vpack.c.bf16 %v5757_v62, %v5749_v60  ;;  %v5805_v50 = vld [vmem:[%s9558_s14 + $0xd50] sm:$0xff] }
 0x122   : > { %7754 = vmatpush1.bf16.msra.mxu0 %v7753_v10  ;;  %v5771_v10 = vld [vmem:[%s9558_s14 + $0xc40] sm:$0xff] }
 0x123   : > { %7818 = vmatpush1.bf16.msra.mxu1 %v7817_v11  ;;  %7756 = vmatprep.subr.bf16.mxu0 %v7755_v12  ;;  %v5765_v11 = vld [vmem:[%s9558_s14 + $0xc10] sm:$0xff]  ;;  %v7835_v12 = vpack.c.bf16 %v5774_v4, %v5766_v3  ;;  %v7773_v19 = vpack.c.bf16 %v5771_v10, %v5763_v9  ;;  %v5836_v9 = vld [vmem:[%s9558_s14 + $0xe48] sm:$0xff] }
 0x124   : > { %7820 = vmatprep.subr.bf16.mxu1 %v7819_v16  ;;  %v5782_v16 = vld [vmem:[%s9558_s14 + $0xc98] sm:$0xff]  ;;  %v5813_v3 = vld [vmem:[%s9558_s14 + $0xd90] sm:$0xff] }
 0x125   : > { %v7839_v27 = vpack.c.bf16 %v5790_v17, %v5782_v16 }
 0x126   : > { %7758 = vmatpush1.bf16.msra.mxu0 %v7757_v22  ;;  %v7837_v22 = vpack.c.bf16 %v5773_v13, %v5765_v11  ;;  %v5838_v13 = vld [vmem:[%s9558_s14 + $0xe58] sm:$0xff] }
 0x127   : > { %7822 = vmatpush1.bf16.msra.mxu1 %v7821_v23  ;;  %7760 = vmatprep.subr.bf16.mxu0 %v7759_v24  ;;  %v7775_v23 = vpack.c.bf16 %v5788_v15, %v5780_v14  ;;  %v5787_v24 = vld [vmem:[%s9558_s14 + $0xcc0] sm:$0xff]  ;;  %v7785_v15 = vpack.c.bf16 %v5819_v2, %v5811_v63  ;;  %v5648_v63 = vld [vmem:[%s9558_s14 + $0x868] sm:$0xff]  ;;  %v5642_v2 = vld [vmem:[%s9558_s14 + $0x838] sm:$0xff] }
 0x128   : > { %v745_v42 = vpop.f32.mrb[0].mxu0  ;;  %7824 = vmatprep.subr.bf16.mxu1 %v7823_v28  ;;  %v5796_v28 = vld [vmem:[%s9558_s14 + $0xd08] sm:$0xff] }
 0x129   : > { %v746_v47 = vadd.f32 %v745_v42, %v10160_v34  ;;  %v747_v48 = vpop.f32.mrb[1].mxu0  ;;  %v816_v49 = vpop.f32.mrb[0].mxu1 }
 0x12a   : > { %v748_v52 = vadd.f32 %v747_v48, %v10160_v34  ;;  %7762 = vmatpush1.bf16.msra.mxu0 %v7761_v35  ;;  %v817_v53 = vadd.f32 %v816_v49, %v10160_v34  ;;  %v818_v54 = vpop.f32.mrb[1].mxu1  ;;  %v7843_v49 = vpack.c.bf16 %v5806_v33, %v5798_v32  ;;  %v5843_v32 = vld [vmem:[%s9558_s14 + $0xe80] sm:$0xff] }
 0x12b   : > { %9334 = vtanh.f32 %v746_v47  ;;  %7826 = vmatpush1.bf16.msra.mxu1 %v7825_v36  ;;  %v819_v55 = vadd.f32 %v818_v54, %v10160_v34  ;;  %7764 = vmatprep.subr.bf16.mxu0 %v7763_v38  ;;  %v7777_v38 = vpack.c.bf16 %v5787_v24, %v5779_v20  ;;  %v5835_v20 = vld [vmem:[%s9558_s14 + $0xe40] sm:$0xff]  ;;  %v5844_v24 = vld [vmem:[%s9558_s14 + $0xe88] sm:$0xff] }
 0x12c   : > { %9336 = vtanh.f32 %v748_v52  ;;  %7828 = vmatprep.subr.bf16.mxu1 %v7827_v43  ;;  %v7779_v43 = vpack.c.bf16 %v5804_v29, %v5796_v28  ;;  %v5820_v52 = vld [vmem:[%s9558_s14 + $0xdc8] sm:$0xff]  ;;  %v5854_v28 = vld [vmem:[%s9558_s14 + $0xed8] sm:$0xff]  ;;  %v5851_v33 = vld [vmem:[%s9558_s14 + $0xec0] sm:$0xff] }
 0x12d   : > { %9338 = vtanh.f32 %v817_v53  ;;  %v7783_v62 = vpack.c.bf16 %v5820_v52, %v5812_v51  ;;  %v5876_v51 = vld [vmem:[%s9558_s14 + $0xf88] sm:$0xff] }
 0x12e   : > { %9340 = vtanh.f32 %v819_v55  ;;  %7766 = vmatpush1.bf16.msra.mxu0 %v7765_v37  ;;  %v5884_v52 = vld [vmem:[%s9558_s14 + $0xfc8] sm:$0xff] }
 0x12f   : > { %7830 = vmatpush1.bf16.msra.mxu1 %v7829_v56  ;;  %7768 = vmatprep.subr.bf16.mxu0 %v7767_v57  ;;  %v5814_v56 = vld [vmem:[%s9558_s14 + $0xd98] sm:$0xff] }
 0x130   : > { %7832 = vmatprep.subr.bf16.mxu1 %v7831_v61  ;;  %v5822_v57 = vld [vmem:[%s9558_s14 + $0xdd8] sm:$0xff]  ;;  %v7845_v61 = vpack.c.bf16 %v5805_v50, %v5797_v45  ;;  %v5859_v45 = vld [vmem:[%s9558_s14 + $0xf00] sm:$0xff]  ;;  %v5869_v50 = vld [vmem:[%s9558_s14 + $0xf50] sm:$0xff] }
 0x132   : > { %7770 = vmatpush1.bf16.msra.mxu0 %v7769_v6  ;;  %v7847_v6 = vpack.c.bf16 %v5822_v57, %v5814_v56  ;;  %v7799_v56 = vpack.c.bf16 %v5884_v52, %v5876_v51  ;;  %v5875_v57 = vld [vmem:[%s9558_s14 + $0xf80] sm:$0xff]  ;;  %v5712_v51 = vld [vmem:[%s9558_s14 + $0xa68] sm:$0xff]  ;;  %v5706_v52 = vld [vmem:[%s9558_s14 + $0xa38] sm:$0xff] }
 0x133   : > { %7834 = vmatpush1.bf16.msra.mxu1 %v7833_v7  ;;  %7772 = vmatprep.subr.bf16.mxu0 %v7771_v8  ;;  %v5821_v7 = vld [vmem:[%s9558_s14 + $0xdd0] sm:$0xff]  ;;  %v5828_v8 = vld [vmem:[%s9558_s14 + $0xe08] sm:$0xff] }
 0x134   : > { %7836 = vmatprep.subr.bf16.mxu1 %v7835_v12  ;;  %v5830_v12 = vld [vmem:[%s9558_s14 + $0xe18] sm:$0xff]  ;;  %v7849_v17 = vpack.c.bf16 %v5821_v7, %v5813_v3  ;;  %v5639_v7 = vld [vmem:[%s9558_s14 + $0x820] sm:$0xff] }
 0x135   : > { %v9335_v30 = vpop.eup %9334  ;;  %v5650_v3 = vld [vmem:[%s9558_s14 + $0x878] sm:$0xff] }
 0x136   : > { %v9337_v35 = vpop.eup %9336  ;;  %v1575_v36 = vsub.f32 %v9335_v30, %v1559_v5  ;;  %7774 = vmatpush1.bf16.msra.mxu0 %v7773_v19  ;;  %v5827_v19 = vld [vmem:[%s9558_s14 + $0xe00] sm:$0xff] }
 0x137   : > { %v9339_v40 = vpop.eup %9338  ;;  %v1527_v41 = vcombine.low %v9335_v30, %v9337_v35  ;;  %v1576_v42 = vsub.f32 %v9337_v35, %v1567_v21  ;;  %7838 = vmatpush1.bf16.msra.mxu1 %v7837_v22  ;;  %7776 = vmatprep.subr.bf16.mxu0 %v7775_v23  ;;  %v5829_v21 = vld [vmem:[%s9558_s14 + $0xe10] sm:$0xff]  ;;  %v7851_v22 = vpack.c.bf16 %v5838_v13, %v5830_v12  ;;  %v5656_v12 = vld [vmem:[%s9558_s14 + $0x8a8] sm:$0xff] }
 0x138   : > { %v9341_v47 = vpop.eup %9340  ;;  %v1577_v48 = vsub.f32 %v9339_v40, %v1560_v18  ;;  %7840 = vmatprep.subr.bf16.mxu1 %v7839_v27  ;;  %v1583_v53 = vand.u32 2147483647, %v1575_v36  ;;  %v7787_v18 = vpack.c.bf16 %v5836_v9, %v5828_v8  ;;  %v5837_v23 = vld [vmem:[%s9558_s14 + $0xe50] sm:$0xff]  ;;  %v5846_v27 = vld [vmem:[%s9558_s14 + $0xe98] sm:$0xff]  ;;  %v7789_v29 = vpack.c.bf16 %v5835_v20, %v5827_v19  ;;  %v5647_v8 = vld [vmem:[%s9558_s14 + $0x860] sm:$0xff] }
 0x139   : > { %1535 = vst [vmem:[%s10213_s11] sm:$0x77] %v1527_v41  ;;  %v1584_v54 = vand.u32 2147483647, %v1576_v42  ;;  %v1528_v37 = vcombine.low %v9339_v40, %v9341_v47  ;;  %v1578_v55 = vsub.f32 %v9341_v47, %v1568_v31  ;;  %v7853_v30 = vpack.c.bf16 %v5837_v23, %v5829_v21  ;;  %v5845_v35 = vld [vmem:[%s9558_s14 + $0xe90] sm:$0xff]  ;;  %v5868_v40 = vld [vmem:[%s9558_s14 + $0xf48] sm:$0xff]  ;;  %v5862_v41 = vld [vmem:[%s9558_s14 + $0xf18] sm:$0xff] }
 0x13a   : > { %v1585_v58 = vand.u32 2147483647, %v1577_v48  ;;  %7778 = vmatpush1.bf16.msra.mxu0 %v7777_v38  ;;  %v1592_v60 = vsel %vm1591_vm0, %v1583_v53, 0.0  ;;  %v7791_v31 = vpack.c.bf16 %v5852_v25, %v5844_v24  ;;  %v7855_v36 = vpack.c.bf16 %v5854_v28, %v5846_v27  ;;  %v5853_v38 = vld [vmem:[%s9558_s14 + $0xed0] sm:$0xff]  ;;  %v5870_v42 = vld [vmem:[%s9558_s14 + $0xf58] sm:$0xff]  ;;  %v5867_v47 = vld [vmem:[%s9558_s14 + $0xf40] sm:$0xff] }
 0x13b   : > { %1536 = vst [vmem:[%s10213_s11 + $0x8] sm:$0x77] %v1528_v37  ;;  %7842 = vmatpush1.bf16.msra.mxu1 %v7841_v39  ;;  %7780 = vmatprep.subr.bf16.mxu0 %v7779_v43  ;;  %v1586_v4 = vand.u32 2147483647, %v1578_v55  ;;  %v1593_v5 = vsel %vm1591_vm0, %v1584_v54, 0.0  ;;  %v5860_v39 = vld [vmem:[%s9558_s14 + $0xf08] sm:$0xff]  ;;  %v7793_v43 = vpack.c.bf16 %v5851_v33, %v5843_v32  ;;  %v7857_v44 = vpack.c.bf16 %v5853_v38, %v5845_v35 }
 0x13c   : > { %7844 = vmatprep.subr.bf16.mxu1 %v7843_v49  ;;  %v1594_v10 = vadd.f32 %v1593_v5, %v1592_v60  ;;  %v1595_v11 = vsel %vm1591_vm0, %v1585_v58, 0.0  ;;  %v7795_v0 = vpack.c.bf16 %v5868_v40, %v5860_v39  ;;  %v5861_v48 = vld [vmem:[%s9558_s14 + $0xf10] sm:$0xff]  ;;  %v7859_v49 = vpack.c.bf16 %v5870_v42, %v5862_v41  ;;  %v5878_v53 = vld [vmem:[%s9558_s14 + $0xf98] sm:$0xff]  ;;  %v5883_v58 = vld [vmem:[%s9558_s14 + $0xfc0] sm:$0xff] }
 0x13d   : > { %v1597_v14 = vsel %vm1591_vm0, %v1586_v4, 0.0  ;;  %v5886_v54 = vld [vmem:[%s9558_s14 + $0xfd8] sm:$0xff]  ;;  %v7797_v37 = vpack.c.bf16 %v5867_v47, %v5859_v45  ;;  %v7861_v55 = vpack.c.bf16 %v5869_v50, %v5861_v48  ;;  %v7801_v4 = vpack.c.bf16 %v5883_v58, %v5875_v57  ;;  %v5641_v9 = vld [vmem:[%s9558_s14 + $0x830] sm:$0xff]  ;;  %v5664_v13 = vld [vmem:[%s9558_s14 + $0x8e8] sm:$0xff] }
 0x13e   : > { %7782 = vmatpush1.bf16.msra.mxu0 %v7781_v59  ;;  %v1596_v16 = vadd.f32 %v1595_v11, %v1594_v10  ;;  %v5877_v59 = vld [vmem:[%s9558_s14 + $0xf90] sm:$0xff]  ;;  %v7863_v60 = vpack.c.bf16 %v5886_v54, %v5878_v53  ;;  %v7931_v10 = vpack.c.bf16 %v5650_v3, %v5642_v2  ;;  %v5655_v19 = vld [vmem:[%s9558_s14 + $0x8a0] sm:$0xff]  ;;  %v5672_v24 = vld [vmem:[%s9558_s14 + $0x928] sm:$0xff] }
 0x13f   : > { %7846 = vmatpush1.bf16.msra.mxu1 %v7845_v61  ;;  %7784 = vmatprep.subr.bf16.mxu0 %v7783_v62  ;;  %v5885_v61 = vld [vmem:[%s9558_s14 + $0xfd0] sm:$0xff]  ;;  %v5640_v62 = vld [vmem:[%s9558_s14 + $0x828] sm:$0xff]  ;;  %v5663_v20 = vld [vmem:[%s9558_s14 + $0x8e0] sm:$0xff] }
 0x140   : > { %7848 = vmatprep.subr.bf16.mxu1 %v7847_v6  ;;  %v10243_v26 = vadd.f32 %v1597_v14, %v1596_v16  ;;  %v7865_v5 = vpack.c.bf16 %v5885_v61, %v5877_v59  ;;  %v7867_v6 = vpack.c.bf16 %v5648_v63, %v5640_v62  ;;  %v5649_v11 = vld [vmem:[%s9558_s14 + $0x870] sm:$0xff]  ;;  %v5658_v14 = vld [vmem:[%s9558_s14 + $0x8b8] sm:$0xff]  ;;  %v7869_v16 = vpack.c.bf16 %v5647_v8, %v5639_v7  ;;  %v5680_v25 = vld [vmem:[%s9558_s14 + $0x968] sm:$0xff] }
 0x141   : > { %v5657_v21 = vld [vmem:[%s9558_s14 + $0x8b0] sm:$0xff]  ;;  %v5674_v27 = vld [vmem:[%s9558_s14 + $0x938] sm:$0xff]  ;;  %v5671_v32 = vld [vmem:[%s9558_s14 + $0x920] sm:$0xff] }
 0x142   : > { %7786 = vmatpush1.bf16.msra.mxu0 %v7785_v15  ;;  %v5666_v15 = vld [vmem:[%s9558_s14 + $0x8f8] sm:$0xff]  ;;  %v5665_v23 = vld [vmem:[%s9558_s14 + $0x8f0] sm:$0xff]  ;;  %v5679_v33 = vld [vmem:[%s9558_s14 + $0x960] sm:$0xff] }
 0x143   : > { %7850 = vmatpush1.bf16.msra.mxu1 %v7849_v17  ;;  %7788 = vmatprep.subr.bf16.mxu0 %v7787_v18  ;;  %v7933_v17 = vpack.c.bf16 %v5649_v11, %v5641_v9  ;;  %v7871_v18 = vpack.c.bf16 %v5664_v13, %v5656_v12  ;;  %v5682_v28 = vld [vmem:[%s9558_s14 + $0x978] sm:$0xff]  ;;  %v5673_v35 = vld [vmem:[%s9558_s14 + $0x930] sm:$0xff]  ;;  %v5688_v39 = vld [vmem:[%s9558_s14 + $0x9a8] sm:$0xff]  ;;  %v7877_v42 = vpack.c.bf16 %v5679_v33, %v5671_v32 }
 0x144   : > { %7852 = vmatprep.subr.bf16.mxu1 %v7851_v22  ;;  %v7935_v22 = vpack.c.bf16 %v5666_v15, %v5658_v14  ;;  %v5681_v38 = vld [vmem:[%s9558_s14 + $0x970] sm:$0xff]  ;;  %v5696_v40 = vld [vmem:[%s9558_s14 + $0x9e8] sm:$0xff]  ;;  %v5698_v41 = vld [vmem:[%s9558_s14 + $0x9f8] sm:$0xff] }
 0x145   : > { %v5695_v45 = vld [vmem:[%s9558_s14 + $0x9e0] sm:$0xff]  ;;  %v5689_v47 = vld [vmem:[%s9558_s14 + $0x9b0] sm:$0xff]  ;;  %v5704_v50 = vld [vmem:[%s9558_s14 + $0xa28] sm:$0xff] }
 0x146   : > { %7790 = vmatpush1.bf16.msra.mxu0 %v7789_v29  ;;  %v7873_v29 = vpack.c.bf16 %v5663_v20, %v5655_v19  ;;  %v5714_v53 = vld [vmem:[%s9558_s14 + $0xa78] sm:$0xff]  ;;  %v5711_v57 = vld [vmem:[%s9558_s14 + $0xa60] sm:$0xff]  ;;  %v5705_v58 = vld [vmem:[%s9558_s14 + $0xa30] sm:$0xff] }
 0x147   : > { %7854 = vmatpush1.bf16.msra.mxu1 %v7853_v30  ;;  %7792 = vmatprep.subr.bf16.mxu0 %v7791_v31  ;;  %v7937_v30 = vpack.c.bf16 %v5665_v23, %v5657_v21  ;;  %v7875_v31 = vpack.c.bf16 %v5680_v25, %v5672_v24  ;;  %v7947_v59 = vpack.c.bf16 %v5714_v53, %v5706_v52  ;;  %v5720_v61 = vld [vmem:[%s9558_s14 + $0xaa8] sm:$0xff]  ;;  %v5722_v63 = vld [vmem:[%s9558_s14 + $0xab8] sm:$0xff]  ;;  %v5727_v7 = vld [vmem:[%s9558_s14 + $0xae0] sm:$0xff] }
 0x148   : > { %7856 = vmatprep.subr.bf16.mxu1 %v7855_v36  ;;  %v7939_v36 = vpack.c.bf16 %v5682_v28, %v5674_v27  ;;  %v5728_v62 = vld [vmem:[%s9558_s14 + $0xae8] sm:$0xff]  ;;  %v5730_v2 = vld [vmem:[%s9558_s14 + $0xaf8] sm:$0xff]  ;;  %v5721_v8 = vld [vmem:[%s9558_s14 + $0xab0] sm:$0xff] }
 0x149   : > { %v7951_v9 = vpack.c.bf16 %v5730_v2, %v5722_v63  ;;  %v5736_v11 = vld [vmem:[%s9558_s14 + $0xb28] sm:$0xff]  ;;  %v5738_v13 = vld [vmem:[%s9558_s14 + $0xb38] sm:$0xff]  ;;  %v5743_v19 = vld [vmem:[%s9558_s14 + $0xb60] sm:$0xff] }
 0x14a   : > { %7794 = vmatpush1.bf16.msra.mxu0 %v7793_v43  ;;  %v7941_v43 = vpack.c.bf16 %v5681_v38, %v5673_v35  ;;  %v5744_v12 = vld [vmem:[%s9558_s14 + $0xb68] sm:$0xff]  ;;  %v5746_v14 = vld [vmem:[%s9558_s14 + $0xb78] sm:$0xff]  ;;  %v5737_v20 = vld [vmem:[%s9558_s14 + $0xb30] sm:$0xff] }
 0x14b   : > { %7858 = vmatpush1.bf16.msra.mxu1 %v7857_v44  ;;  %7796 = vmatprep.subr.bf16.mxu0 %v7795_v0  ;;  %v7879_v44 = vpack.c.bf16 %v5696_v40, %v5688_v39  ;;  %v5687_v0 = vld [vmem:[%s9558_s14 + $0x9a0] sm:$0xff]  ;;  %v5745_v23 = vld [vmem:[%s9558_s14 + $0xb70] sm:$0xff]  ;;  %v5752_v24 = vld [vmem:[%s9558_s14 + $0xba8] sm:$0xff] }
 0x14c   : > { %7860 = vmatprep.subr.bf16.mxu1 %v7859_v49  ;;  %v5697_v49 = vld [vmem:[%s9558_s14 + $0x9f0] sm:$0xff]  ;;  %v7881_v54 = vpack.c.bf16 %v5695_v45, %v5687_v0  ;;  %v5760_v25 = vld [vmem:[%s9558_s14 + $0xbe8] sm:$0xff]  ;;  %v7957_v39 = vpack.c.bf16 %v5745_v23, %v5737_v20  ;;  %v5775_v53 = vld [vmem:[%s9558_s14 + $0xc60] sm:$0xff] }
 0x14d   : > { %v7895_v40 = vpack.c.bf16 %v5760_v25, %v5752_v24  ;;  %v5768_v0 = vld [vmem:[%s9558_s14 + $0xc28] sm:$0xff]  ;;  %v1562_v63 = vld [vmem:[%s10180_s30 + $0x18] sm:$0x77]  ;;  %v5807_v23 = vld [vmem:[%s9558_s14 + $0xd60] sm:$0xff] }
 0x14e   : > { %7798 = vmatpush1.bf16.msra.mxu0 %v7797_v37  ;;  %v7945_v37 = vpack.c.bf16 %v5697_v49, %v5689_v47  ;;  %v5776_v45 = vld [vmem:[%s9558_s14 + $0xc68] sm:$0xff]  ;;  %v5770_v47 = vld [vmem:[%s9558_s14 + $0xc38] sm:$0xff]  ;;  %v5801_v24 = vld [vmem:[%s9558_s14 + $0xd30] sm:$0xff] }
 0x14f   : > { %7862 = vmatpush1.bf16.msra.mxu1 %v7861_v55  ;;  %7800 = vmatprep.subr.bf16.mxu0 %v7799_v56  ;;  %v7883_v55 = vpack.c.bf16 %v5712_v51, %v5704_v50  ;;  %v5703_v56 = vld [vmem:[%s9558_s14 + $0xa20] sm:$0xff]  ;;  %v7899_v52 = vpack.c.bf16 %v5776_v45, %v5768_v0  ;;  %v5809_v25 = vld [vmem:[%s9558_s14 + $0xd70] sm:$0xff] }
 0x150   : > { %7864 = vmatprep.subr.bf16.mxu1 %v7863_v60  ;;  %v5713_v60 = vld [vmem:[%s9558_s14 + $0xa70] sm:$0xff]  ;;  %v7885_v3 = vpack.c.bf16 %v5711_v57, %v5703_v56  ;;  %v5767_v50 = vld [vmem:[%s9558_s14 + $0xc20] sm:$0xff]  ;;  %v5784_v56 = vld [vmem:[%s9558_s14 + $0xca8] sm:$0xff] }
 0x151   : > { %v5792_v57 = vld [vmem:[%s9558_s14 + $0xce8] sm:$0xff]  ;;  %v5815_v0 = vld [vmem:[%s9558_s14 + $0xda0] sm:$0xff] }
 0x152   : > { %7802 = vmatpush1.bf16.msra.mxu0 %v7801_v4  ;;  %v7949_v4 = vpack.c.bf16 %v5713_v60, %v5705_v58  ;;  %v1561_v58 = vld [vmem:[%s10180_s30 + $0x10] sm:$0x77]  ;;  %v5794_v60 = vld [vmem:[%s9558_s14 + $0xcf8] sm:$0xff]  ;;  %v5823_v45 = vld [vmem:[%s9558_s14 + $0xde0] sm:$0xff] }
 0x153   : > { %7866 = vmatpush1.bf16.msra.mxu1 %v7865_v5  ;;  %7868 = vmatprep.subr.bf16.mxu0 %v7867_v6  ;;  %v7887_v5 = vpack.c.bf16 %v5728_v62, %v5720_v61  ;;  %v5719_v6 = vld [vmem:[%s9558_s14 + $0xaa0] sm:$0xff]  ;;  %v7901_v61 = vpack.c.bf16 %v5775_v53, %v5767_v50 }
 0x154   : > { %7932 = vmatprep.subr.bf16.mxu1 %v7931_v10  ;;  %v5729_v10 = vld [vmem:[%s9558_s14 + $0xaf0] sm:$0xff]  ;;  %v7889_v15 = vpack.c.bf16 %v5727_v7, %v5719_v6  ;;  %v5783_v62 = vld [vmem:[%s9558_s14 + $0xca0] sm:$0xff]  ;;  %v1569_v7 = vcombine.high %v1561_v58, %v1561_v58 }
 0x155   : > { %1999 = vmatmul.mubr.f32.vlgmr.msra.gmra.mrb[8].mxu0 %v10120_v46  ;;  %v5793_v6 = vld [vmem:[%s9558_s14 + $0xcf0] sm:$0xff] }
 0x156   : > { %2070 = vmatmul.mubr.f32.vlgmr.msra.gmra.mrb[8].mxu1 %v10120_v46  ;;  %7870 = vmatpush1.bf16.msra.mxu0 %v7869_v16  ;;  %v5690_v46 = vld [vmem:[%s9558_s14 + $0x9b8] sm:$0xff]  ;;  %v7953_v16 = vpack.c.bf16 %v5729_v10, %v5721_v8  ;;  %v5808_v10 = vld [vmem:[%s9558_s14 + $0xd68] sm:$0xff] }
 0x157   : > { %7934 = vmatpush1.bf16.msra.mxu1 %v7933_v17  ;;  %7872 = vmatprep.subr.bf16.mxu0 %v7871_v18  ;;  %v7943_v48 = vpack.c.bf16 %v5698_v41, %v5690_v46  ;;  %v7891_v17 = vpack.c.bf16 %v5744_v12, %v5736_v11  ;;  %v5735_v18 = vld [vmem:[%s9558_s14 + $0xb20] sm:$0xff]  ;;  %v5802_v12 = vld [vmem:[%s9558_s14 + $0xd38] sm:$0xff] }
 0x158   : > { %7936 = vmatprep.subr.bf16.mxu1 %v7935_v22  ;;  %2140 = vmatprep.mubr.f32.mxu0 %v9545_v1  ;;  %v7955_v22 = vpack.c.bf16 %v5746_v14, %v5738_v13  ;;  %v5751_v46 = vld [vmem:[%s9558_s14 + $0xba0] sm:$0xff]  ;;  %v5810_v13 = vld [vmem:[%s9558_s14 + $0xd78] sm:$0xff]  ;;  %v1570_v14 = vcombine.high %v1562_v63, %v1562_v63 }
 0x159   : > { %2211 = vmatprep.mubr.f32.mxu1 %v9545_v1  ;;  %v5759_v41 = vld [vmem:[%s9558_s14 + $0xbe0] sm:$0xff] }
 0x15a   : > { %7874 = vmatpush1.bf16.msra.mxu0 %v7873_v29  ;;  %v7897_v49 = vpack.c.bf16 %v5759_v41, %v5751_v46  ;;  %v7973_v41 = vpack.c.bf16 %v5809_v25, %v5801_v24  ;;  %v5863_v25 = vld [vmem:[%s9558_s14 + $0xf20] sm:$0xff] }
 0x15b   : > { %7938 = vmatpush1.bf16.msra.mxu1 %v7937_v30  ;;  %7876 = vmatprep.subr.bf16.mxu0 %v7875_v31  ;;  %v5754_v30 = vld [vmem:[%s9558_s14 + $0xbb8] sm:$0xff] }
 0x15c   : > { %7940 = vmatprep.subr.bf16.mxu1 %v7939_v36  ;;  %v5762_v31 = vld [vmem:[%s9558_s14 + $0xbf8] sm:$0xff]  ;;  %v7893_v36 = vpack.c.bf16 %v5743_v19, %v5735_v18  ;;  %v5799_v18 = vld [vmem:[%s9558_s14 + $0xd20] sm:$0xff] }
 0x15d   : > { %v7909_v46 = vpack.c.bf16 %v5807_v23, %v5799_v18  ;;  %v5864_v18 = vld [vmem:[%s9558_s14 + $0xf28] sm:$0xff] }
 0x15e   : > { %7878 = vmatpush1.bf16.msra.mxu0 %v7877_v42  ;;  %v5753_v42 = vld [vmem:[%s9558_s14 + $0xbb0] sm:$0xff] }
 0x15f   : > { %7942 = vmatpush1.bf16.msra.mxu1 %v7941_v43  ;;  %7880 = vmatprep.subr.bf16.mxu0 %v7879_v44  ;;  %v7959_v43 = vpack.c.bf16 %v5762_v31, %v5754_v30  ;;  %v5761_v44 = vld [vmem:[%s9558_s14 + $0xbf0] sm:$0xff]  ;;  %v5816_v30 = vld [vmem:[%s9558_s14 + $0xda8] sm:$0xff] }
 0x160   : > { %7944 = vmatprep.subr.bf16.mxu1 %v7943_v48  ;;  %v5778_v48 = vld [vmem:[%s9558_s14 + $0xc78] sm:$0xff]  ;;  %v7961_v51 = vpack.c.bf16 %v5761_v44, %v5753_v42  ;;  %v5824_v31 = vld [vmem:[%s9558_s14 + $0xde8] sm:$0xff] }
 0x161   : > { %v7911_v44 = vpack.c.bf16 %v5824_v31, %v5816_v30  ;;  %v5873_v30 = vld [vmem:[%s9558_s14 + $0xf70] sm:$0xff]  ;;  %v5880_v31 = vld [vmem:[%s9558_s14 + $0xfa8] sm:$0xff] }
 0x162   : > { %7882 = vmatpush1.bf16.msra.mxu0 %v7881_v54  ;;  %v5769_v54 = vld [vmem:[%s9558_s14 + $0xc30] sm:$0xff] }
 0x163   : > { %7946 = vmatpush1.bf16.msra.mxu1 %v7945_v37  ;;  %7884 = vmatprep.subr.bf16.mxu0 %v7883_v55  ;;  %v5777_v37 = vld [vmem:[%s9558_s14 + $0xc70] sm:$0xff]  ;;  %v7963_v55 = vpack.c.bf16 %v5778_v48, %v5770_v47 }
 0x164   : > { %7948 = vmatprep.subr.bf16.mxu1 %v7947_v59  ;;  %v5786_v59 = vld [vmem:[%s9558_s14 + $0xcb8] sm:$0xff]  ;;  %v7965_v2 = vpack.c.bf16 %v5777_v37, %v5769_v54  ;;  %v5832_v54 = vld [vmem:[%s9558_s14 + $0xe28] sm:$0xff] }
 0x165   : > { %v7967_v8 = vpack.c.bf16 %v5794_v60, %v5786_v59 }
 0x166   : > { %7886 = vmatpush1.bf16.msra.mxu0 %v7885_v3  ;;  %v7903_v3 = vpack.c.bf16 %v5792_v57, %v5784_v56  ;;  %v5834_v56 = vld [vmem:[%s9558_s14 + $0xe38] sm:$0xff] }
 0x167   : > { %7950 = vmatpush1.bf16.msra.mxu1 %v7949_v4  ;;  %7888 = vmatprep.subr.bf16.mxu0 %v7887_v5  ;;  %v5791_v4 = vld [vmem:[%s9558_s14 + $0xce0] sm:$0xff]  ;;  %v5785_v5 = vld [vmem:[%s9558_s14 + $0xcb0] sm:$0xff]  ;;  %v5842_v57 = vld [vmem:[%s9558_s14 + $0xe78] sm:$0xff] }
 0x168   : > { %v887_v21 = vpop.f32.mrb[2].mxu0  ;;  %7952 = vmatprep.subr.bf16.mxu1 %v7951_v9  ;;  %v5800_v9 = vld [vmem:[%s9558_s14 + $0xd28] sm:$0xff] }
 0x169   : > { %v888_v27 = vadd.f32 %v887_v21, %v10160_v34  ;;  %v889_v28 = vpop.f32.mrb[3].mxu0  ;;  %v958_v29 = vpop.f32.mrb[2].mxu1 }
 0x16a   : > { %v890_v32 = vadd.f32 %v889_v28, %v10160_v34  ;;  %7890 = vmatpush1.bf16.msra.mxu0 %v7889_v15  ;;  %v959_v33 = vadd.f32 %v958_v29, %v10160_v34  ;;  %v960_v35 = vpop.f32.mrb[3].mxu1  ;;  %v7971_v29 = vpack.c.bf16 %v5810_v13, %v5802_v12  ;;  %v5847_v13 = vld [vmem:[%s9558_s14 + $0xea0] sm:$0xff] }
 0x16b   : > { %9342 = vtanh.f32 %v888_v27  ;;  %7954 = vmatpush1.bf16.msra.mxu1 %v7953_v16  ;;  %v961_v38 = vadd.f32 %v960_v35, %v10160_v34  ;;  %7892 = vmatprep.subr.bf16.mxu0 %v7891_v17  ;;  %v7905_v16 = vpack.c.bf16 %v5791_v4, %v5783_v62  ;;  %v7969_v17 = vpack.c.bf16 %v5793_v6, %v5785_v5  ;;  %v5839_v62 = vld [vmem:[%s9558_s14 + $0xe60] sm:$0xff]  ;;  %v5841_v4 = vld [vmem:[%s9558_s14 + $0xe70] sm:$0xff]  ;;  %v5848_v5 = vld [vmem:[%s9558_s14 + $0xea8] sm:$0xff] }
 0x16c   : > { %9344 = vtanh.f32 %v890_v32  ;;  %7956 = vmatprep.subr.bf16.mxu1 %v7955_v22  ;;  %v7907_v22 = vpack.c.bf16 %v5808_v10, %v5800_v9  ;;  %v5856_v6 = vld [vmem:[%s9558_s14 + $0xee8] sm:$0xff]  ;;  %v5858_v9 = vld [vmem:[%s9558_s14 + $0xef8] sm:$0xff] }
 0x16d   : > { %9346 = vtanh.f32 %v959_v33  ;;  %v7919_v12 = vpack.c.bf16 %v5856_v6, %v5848_v5  ;;  %v5932_v5 = vld [vmem:[%s9822_s19 + $0x948] sm:$0xff]  ;;  %v10433_v6 = vld [vmem:[%s11971_s4] sm:$0x77] }
 0x16e   : > { %9348 = vtanh.f32 %v961_v38  ;;  %7894 = vmatpush1.bf16.msra.mxu0 %v7893_v36  ;;  %v5818_v36 = vld [vmem:[%s9558_s14 + $0xdb8] sm:$0xff] }
 0x16f   : > { %7958 = vmatpush1.bf16.msra.mxu1 %v7957_v39  ;;  %7896 = vmatprep.subr.bf16.mxu0 %v7895_v40  ;;  %v5826_v38 = vld [vmem:[%s9558_s14 + $0xdf8] sm:$0xff] }
 0x170   : > { %7960 = vmatprep.subr.bf16.mxu1 %v7959_v43  ;;  %v7975_v50 = vpack.c.bf16 %v5826_v38, %v5818_v36 }
 0x172   : > { %7898 = vmatpush1.bf16.msra.mxu0 %v7897_v49 }
 0x173   : > { %7962 = vmatpush1.bf16.msra.mxu1 %v7961_v51  ;;  %7900 = vmatprep.subr.bf16.mxu0 %v7899_v52  ;;  %v5817_v51 = vld [vmem:[%s9558_s14 + $0xdb0] sm:$0xff] }
 0x174   : > { %7964 = vmatprep.subr.bf16.mxu1 %v7963_v55  ;;  %v5825_v52 = vld [vmem:[%s9558_s14 + $0xdf0] sm:$0xff]  ;;  %v5840_v55 = vld [vmem:[%s9558_s14 + $0xe68] sm:$0xff] }
 0x175   : > { %v9343_v11 = vpop.eup %9342  ;;  %v7977_v59 = vpack.c.bf16 %v5825_v52, %v5817_v51  ;;  %v5891_v51 = vld [vmem:[%s9822_s19 + $0x800] sm:$0xff] }
 0x176   : > { %v9345_v15 = vpop.eup %9344  ;;  %7902 = vmatpush1.bf16.msra.mxu0 %v7901_v61  ;;  %v1579_v19 = vsub.f32 %v9343_v11, %v1561_v58  ;;  %v5831_v61 = vld [vmem:[%s9558_s14 + $0xe20] sm:$0xff] }
 0x177   : > { %v9347_v20 = vpop.eup %9346  ;;  %v1529_v21 = vcombine.low %v9343_v11, %v9345_v15  ;;  %7966 = vmatpush1.bf16.msra.mxu1 %v7965_v2  ;;  %7904 = vmatprep.subr.bf16.mxu0 %v7903_v3  ;;  %v1580_v27 = vsub.f32 %v9345_v15, %v1569_v7  ;;  %v7915_v2 = vpack.c.bf16 %v5840_v55, %v5832_v54  ;;  %v5849_v15 = vld [vmem:[%s9558_s14 + $0xeb0] sm:$0xff]  ;;  %v5899_v52 = vld [vmem:[%s9822_s19 + $0x840] sm:$0xff]  ;;  %v5908_v55 = vld [vmem:[%s9822_s19 + $0x888] sm:$0xff] }
 0x178   : > { %v9349_v28 = vpop.eup %9348  ;;  %7968 = vmatprep.subr.bf16.mxu1 %v7967_v8  ;;  %v1581_v32 = vsub.f32 %v9347_v20, %v1562_v63  ;;  %v1587_v33 = vand.u32 2147483647, %v1579_v19  ;;  %v5833_v63 = vld [vmem:[%s9558_s14 + $0xe30] sm:$0xff]  ;;  %v7979_v3 = vpack.c.bf16 %v5842_v57, %v5834_v56  ;;  %v5850_v8 = vld [vmem:[%s9558_s14 + $0xeb8] sm:$0xff]  ;;  %v7917_v10 = vpack.c.bf16 %v5839_v62, %v5831_v61  ;;  %v5872_v19 = vld [vmem:[%s9558_s14 + $0xf68] sm:$0xff] }
 0x179   : > { %1537 = vst [vmem:[%s10213_s11 + $0x10] sm:$0x77] %v1529_v21  ;;  %v1530_v35 = vcombine.low %v9347_v20, %v9349_v28  ;;  %v1582_v39 = vsub.f32 %v9349_v28, %v1570_v14  ;;  %v1588_v40 = vand.u32 2147483647, %v1580_v27  ;;  %v7981_v11 = vpack.c.bf16 %v5841_v4, %v5833_v63  ;;  %v5855_v14 = vld [vmem:[%s9558_s14 + $0xee0] sm:$0xff]  ;;  %v5866_v20 = vld [vmem:[%s9558_s14 + $0xf38] sm:$0xff] }
 0x17a   : > { %7906 = vmatpush1.bf16.msra.mxu0 %v7905_v16  ;;  %v1589_v42 = vand.u32 2147483647, %v1581_v32  ;;  %v1599_v43 = vsel %vm1591_vm0, %v1587_v33, 0.0  ;;  %v7983_v16 = vpack.c.bf16 %v5858_v9, %v5850_v8  ;;  %v5874_v21 = vld [vmem:[%s9558_s14 + $0xf78] sm:$0xff]  ;;  %v7923_v24 = vpack.c.bf16 %v5872_v19, %v5864_v18  ;;  %v5871_v27 = vld [vmem:[%s9558_s14 + $0xf60] sm:$0xff]  ;;  %v5865_v28 = vld [vmem:[%s9558_s14 + $0xf30] sm:$0xff] }
 0x17b   : > { %1538 = vst [vmem:[%s10213_s11 + $0x18] sm:$0x77] %v1530_v35  ;;  %7970 = vmatpush1.bf16.msra.mxu1 %v7969_v17  ;;  %7908 = vmatprep.subr.bf16.mxu0 %v7907_v22  ;;  %v1590_v47 = vand.u32 2147483647, %v1582_v39  ;;  %v1600_v48 = vadd.f32 %v1599_v43, %v10243_v26  ;;  %v1601_v49 = vsel %vm1591_vm0, %v1588_v40, 0.0  ;;  %v7913_v26 = vpack.c.bf16 %v5823_v45, %v5815_v0  ;;  %v5857_v17 = vld [vmem:[%s9558_s14 + $0xef0] sm:$0xff] }
 0x17c   : > { %7972 = vmatprep.subr.bf16.mxu1 %v7971_v29  ;;  %v1603_v53 = vsel %vm1591_vm0, %v1589_v42, 0.0  ;;  %v7921_v22 = vpack.c.bf16 %v5855_v14, %v5847_v13  ;;  %v7985_v23 = vpack.c.bf16 %v5857_v17, %v5849_v15  ;;  %v7987_v29 = vpack.c.bf16 %v5874_v21, %v5866_v20  ;;  %v5888_v32 = vld [vmem:[%s9558_s14 + $0xfe8] sm:$0xff]  ;;  %v5882_v33 = vld [vmem:[%s9558_s14 + $0xfb8] sm:$0xff]  ;;  %v5879_v40 = vld [vmem:[%s9558_s14 + $0xfa0] sm:$0xff] }
 0x17d   : > { %v1602_v37 = vadd.f32 %v1601_v49, %v1600_v48  ;;  %v1605_v58 = vsel %vm1591_vm0, %v1590_v47, 0.0  ;;  %v5890_v35 = vld [vmem:[%s9558_s14 + $0xff8] sm:$0xff]  ;;  %v7925_v36 = vpack.c.bf16 %v5871_v27, %v5863_v25  ;;  %v7989_v38 = vpack.c.bf16 %v5873_v30, %v5865_v28  ;;  %v5889_v43 = vld [vmem:[%s9558_s14 + $0xff0] sm:$0xff]  ;;  %v5900_v0 = vld [vmem:[%s9822_s19 + $0x848] sm:$0xff] }
 0x17e   : > { %7910 = vmatpush1.bf16.msra.mxu0 %v7909_v46  ;;  %v7927_v39 = vpack.c.bf16 %v5888_v32, %v5880_v31  ;;  %v5887_v46 = vld [vmem:[%s9558_s14 + $0xfe0] sm:$0xff]  ;;  %v7991_v42 = vpack.c.bf16 %v5890_v35, %v5882_v33  ;;  %v5894_v45 = vld [vmem:[%s9822_s19 + $0x818] sm:$0xff]  ;;  %v5916_v56 = vld [vmem:[%s9822_s19 + $0x8c8] sm:$0xff] }
 0x17f   : > { %7974 = vmatpush1.bf16.msra.mxu1 %v7973_v41  ;;  %7912 = vmatprep.subr.bf16.mxu0 %v7911_v44  ;;  %v1604_v60 = vadd.f32 %v1603_v53, %v1602_v37  ;;  %v5881_v41 = vld [vmem:[%s9558_s14 + $0xfb0] sm:$0xff]  ;;  %v5892_v44 = vld [vmem:[%s9822_s19 + $0x808] sm:$0xff]  ;;  %v5902_v47 = vld [vmem:[%s9822_s19 + $0x858] sm:$0xff]  ;;  %v7929_v48 = vpack.c.bf16 %v5887_v46, %v5879_v40 }
 0x180   : > { %7976 = vmatprep.subr.bf16.mxu1 %v7975_v50  ;;  %v7993_v49 = vpack.c.bf16 %v5889_v43, %v5881_v41  ;;  %v7995_v50 = vpack.c.bf16 %v5900_v0, %v5892_v44  ;;  %v5893_v53 = vld [vmem:[%s9822_s19 + $0x810] sm:$0xff]  ;;  %v8059_v54 = vpack.c.bf16 %v5902_v47, %v5894_v45  ;;  %v5910_v57 = vld [vmem:[%s9822_s19 + $0x898] sm:$0xff]  ;;  %v5907_v61 = vld [vmem:[%s9822_s19 + $0x880] sm:$0xff] }
 0x181   : > { %v1606_v7 = vadd.f32 %v1605_v58, %v1604_v60  ;;  %v5901_v37 = vld [vmem:[%s9822_s19 + $0x850] sm:$0xff]  ;;  %v7997_v58 = vpack.c.bf16 %v5899_v52, %v5891_v51  ;;  %v7999_v60 = vpack.c.bf16 %v5916_v56, %v5908_v55  ;;  %v5915_v62 = vld [vmem:[%s9822_s19 + $0x8c0] sm:$0xff]  ;;  %v5924_v4 = vld [vmem:[%s9822_s19 + $0x908] sm:$0xff] }
 0x182   : > { %7914 = vmatpush1.bf16.msra.mxu0 %v7913_v26  ;;  %v5918_v26 = vld [vmem:[%s9822_s19 + $0x8d8] sm:$0xff]  ;;  %v5909_v63 = vld [vmem:[%s9822_s19 + $0x890] sm:$0xff]  ;;  %v8001_v9 = vpack.c.bf16 %v5915_v62, %v5907_v61  ;;  %v5931_v13 = vld [vmem:[%s9822_s19 + $0x940] sm:$0xff] }
 0x183   : > { %7978 = vmatpush1.bf16.msra.mxu1 %v7977_v59  ;;  %1607 = vadd.xlane.f32.xlu0 %v1606_v7  ;;  %v8061_v59 = vpack.c.bf16 %v5901_v37, %v5893_v53  ;;  %v5926_v7 = vld [vmem:[%s9822_s19 + $0x918] sm:$0xff]  ;;  %v5925_v14 = vld [vmem:[%s9822_s19 + $0x910] sm:$0xff]  ;;  %v5940_v17 = vld [vmem:[%s9822_s19 + $0x988] sm:$0xff] }
 0x184   : > { %7916 = vmatprep.subr.bf16.mxu0 %v7915_v2  ;;  %7980 = vmatprep.subr.bf16.mxu1 %v7979_v3  ;;  %v8063_v2 = vpack.c.bf16 %v5918_v26, %v5910_v57  ;;  %v5917_v3 = vld [vmem:[%s9822_s19 + $0x8d0] sm:$0xff]  ;;  %v5934_v8 = vld [vmem:[%s9822_s19 + $0x958] sm:$0xff]  ;;  %v5948_v18 = vld [vmem:[%s9822_s19 + $0x9c8] sm:$0xff] }
 0x185   : > { %v8067_v15 = vpack.c.bf16 %v5934_v8, %v5926_v7  ;;  %v5942_v19 = vld [vmem:[%s9822_s19 + $0x998] sm:$0xff]  ;;  %v5947_v25 = vld [vmem:[%s9822_s19 + $0x9c0] sm:$0xff]  ;;  %v5941_v27 = vld [vmem:[%s9822_s19 + $0x990] sm:$0xff] }
 0x186   : > { %7918 = vmatpush1.bf16.msra.mxu0 %v7917_v10  ;;  %v8065_v10 = vpack.c.bf16 %v5917_v3, %v5909_v63  ;;  %v5950_v20 = vld [vmem:[%s9822_s19 + $0x9d8] sm:$0xff]  ;;  %v5956_v30 = vld [vmem:[%s9822_s19 + $0xa08] sm:$0xff]  ;;  %v5963_v40 = vld [vmem:[%s9822_s19 + $0xa40] sm:$0xff] }
 0x187   : > { %7982 = vmatpush1.bf16.msra.mxu1 %v7981_v11  ;;  %7920 = vmatprep.subr.bf16.mxu0 %v7919_v12  ;;  %v8003_v11 = vpack.c.bf16 %v5932_v5, %v5924_v4  ;;  %v5923_v12 = vld [vmem:[%s9822_s19 + $0x900] sm:$0xff]  ;;  %v8071_v28 = vpack.c.bf16 %v5950_v20, %v5942_v19  ;;  %v5964_v31 = vld [vmem:[%s9822_s19 + $0xa48] sm:$0xff]  ;;  %v5958_v32 = vld [vmem:[%s9822_s19 + $0xa18] sm:$0xff] }
 0x188   : > { %7984 = vmatprep.subr.bf16.mxu1 %v7983_v16  ;;  %v5933_v16 = vld [vmem:[%s9822_s19 + $0x950] sm:$0xff]  ;;  %v8005_v21 = vpack.c.bf16 %v5931_v13, %v5923_v12  ;;  %v5966_v33 = vld [vmem:[%s9822_s19 + $0xa58] sm:$0xff]  ;;  %v5972_v43 = vld [vmem:[%s9822_s19 + $0xa88] sm:$0xff] }
 0x189   : > { %v5957_v46 = vld [vmem:[%s9822_s19 + $0xa10] sm:$0xff]  ;;  %v8075_v41 = vpack.c.bf16 %v5966_v33, %v5958_v32  ;;  %v5980_v44 = vld [vmem:[%s9822_s19 + $0xac8] sm:$0xff]  ;;  %v5974_v0 = vld [vmem:[%s9822_s19 + $0xa98] sm:$0xff] }
 0x18a   : > { %7922 = vmatpush1.bf16.msra.mxu0 %v7921_v22  ;;  %v8069_v22 = vpack.c.bf16 %v5933_v16, %v5925_v14  ;;  %v5982_v45 = vld [vmem:[%s9822_s19 + $0xad8] sm:$0xff]  ;;  %v5979_v51 = vld [vmem:[%s9822_s19 + $0xac0] sm:$0xff]  ;;  %v5973_v52 = vld [vmem:[%s9822_s19 + $0xa90] sm:$0xff] }
 0x18b   : > { %7986 = vmatpush1.bf16.msra.mxu1 %v7985_v23  ;;  %7924 = vmatprep.subr.bf16.mxu0 %v7923_v24  ;;  %v8007_v23 = vpack.c.bf16 %v5948_v18, %v5940_v17  ;;  %v5939_v24 = vld [vmem:[%s9822_s19 + $0x980] sm:$0xff]  ;;  %v8079_v53 = vpack.c.bf16 %v5982_v45, %v5974_v0  ;;  %v5988_v37 = vld [vmem:[%s9822_s19 + $0xb08] sm:$0xff]  ;;  %v5990_v56 = vld [vmem:[%s9822_s19 + $0xb18] sm:$0xff] }
 0x18c   : > { %7988 = vmatprep.subr.bf16.mxu1 %v7987_v29  ;;  %v5949_v29 = vld [vmem:[%s9822_s19 + $0x9d0] sm:$0xff]  ;;  %v8009_v35 = vpack.c.bf16 %v5947_v25, %v5939_v24  ;;  %v5996_v55 = vld [vmem:[%s9822_s19 + $0xb48] sm:$0xff]  ;;  %v5998_v57 = vld [vmem:[%s9822_s19 + $0xb58] sm:$0xff] }
 0x18d   : > { %v5995_v61 = vld [vmem:[%s9822_s19 + $0xb40] sm:$0xff]  ;;  %v5989_v62 = vld [vmem:[%s9822_s19 + $0xb10] sm:$0xff]  ;;  %v6004_v4 = vld [vmem:[%s9822_s19 + $0xb88] sm:$0xff] }
 0x18e   : > { %7926 = vmatpush1.bf16.msra.mxu0 %v7925_v36  ;;  %v8073_v36 = vpack.c.bf16 %v5949_v29, %v5941_v27  ;;  %v5997_v3 = vld [vmem:[%s9822_s19 + $0xb50] sm:$0xff]  ;;  %v6012_v5 = vld [vmem:[%s9822_s19 + $0xbc8] sm:$0xff]  ;;  %v6003_v19 = vld [vmem:[%s9822_s19 + $0xb80] sm:$0xff] }
 0x18f   : > { %7990 = vmatpush1.bf16.msra.mxu1 %v7989_v38  ;;  %7928 = vmatprep.subr.bf16.mxu0 %v7927_v39  ;;  %v8011_v38 = vpack.c.bf16 %v5964_v31, %v5956_v30  ;;  %v5955_v39 = vld [vmem:[%s9822_s19 + $0xa00] sm:$0xff]  ;;  %v8085_v17 = vpack.c.bf16 %v5997_v3, %v5989_v62  ;;  %v8023_v18 = vpack.c.bf16 %v6012_v5, %v6004_v4  ;;  %v6020_v24 = vld [vmem:[%s9822_s19 + $0xc08] sm:$0xff]  ;;  %v6022_v27 = vld [vmem:[%s9822_s19 + $0xc18] sm:$0xff] }
 0x190   : > { %7992 = vmatprep.subr.bf16.mxu1 %v7991_v42  ;;  %v5965_v42 = vld [vmem:[%s9822_s19 + $0xa50] sm:$0xff]  ;;  %v8013_v47 = vpack.c.bf16 %v5963_v40, %v5955_v39  ;;  %v6011_v20 = vld [vmem:[%s9822_s19 + $0xbc0] sm:$0xff]  ;;  %v6028_v25 = vld [vmem:[%s9822_s19 + $0xc48] sm:$0xff] }
 0x191   : > { %v1616_v29 = vld [vmem:[%s10488_s17] sm:$0x77]  ;;  %v8025_v30 = vpack.c.bf16 %v6011_v20, %v6003_v19  ;;  %v8027_v32 = vpack.c.bf16 %v6028_v25, %v6020_v24  ;;  %v6029_v39 = vld [vmem:[%s9822_s19 + $0xc50] sm:$0xff]  ;;  %v6036_v40 = vld [vmem:[%s9822_s19 + $0xc88] sm:$0xff] }
 0x192   : > { %7930 = vmatpush1.bf16.msra.mxu0 %v7929_v48  ;;  %v8077_v48 = vpack.c.bf16 %v5965_v42, %v5957_v46  ;;  %v6019_v33 = vld [vmem:[%s9822_s19 + $0xc00] sm:$0xff]  ;;  %v6044_v46 = vld [vmem:[%s9822_s19 + $0xcc8] sm:$0xff]  ;;  %v6046_v42 = vld [vmem:[%s9822_s19 + $0xcd8] sm:$0xff]  ;;  %v1624_v45 = vcombine.high %v1616_v29, %v1616_v29 }
 0x193   : > { %7994 = vmatpush1.bf16.msra.mxu1 %v7993_v49  ;;  %7996 = vmatprep.subr.bf16.mxu0 %v7995_v50  ;;  %v8015_v49 = vpack.c.bf16 %v5980_v44, %v5972_v43  ;;  %v5971_v50 = vld [vmem:[%s9822_s19 + $0xa80] sm:$0xff]  ;;  %v1617_v43 = vld [vmem:[%s10488_s17 + $0x8] sm:$0x77]  ;;  %v6053_v5 = vld [vmem:[%s9822_s19 + $0xd10] sm:$0xff] }
 0x194   : > { %8060 = vmatprep.subr.bf16.mxu1 %v8059_v54  ;;  %v5981_v54 = vld [vmem:[%s9822_s19 + $0xad0] sm:$0xff]  ;;  %v8017_v26 = vpack.c.bf16 %v5979_v51, %v5971_v50  ;;  %v6035_v0 = vld [vmem:[%s9822_s19 + $0xc80] sm:$0xff] }
 0x195   : > { %2141 = vmatmul.mubr.f32.vlgmr.msra.gmra.mrb[10].mxu0 %v10433_v6  ;;  %v6037_v50 = vld [vmem:[%s9822_s19 + $0xc90] sm:$0xff]  ;;  %v6051_v3 = vld [vmem:[%s9822_s19 + $0xd00] sm:$0xff] }
 0x196   : > { %2212 = vmatmul.mubr.f32.vlgmr.msra.gmra.mrb[10].mxu1 %v10433_v6  ;;  %7998 = vmatpush1.bf16.msra.mxu0 %v7997_v58  ;;  %v8081_v58 = vpack.c.bf16 %v5981_v54, %v5973_v52  ;;  %v6045_v51 = vld [vmem:[%s9822_s19 + $0xcd0] sm:$0xff]  ;;  %v6060_v54 = vld [vmem:[%s9822_s19 + $0xd48] sm:$0xff]  ;;  %v6059_v4 = vld [vmem:[%s9822_s19 + $0xd40] sm:$0xff] }
 0x197   : > { %8062 = vmatpush1.bf16.msra.mxu1 %v8061_v59  ;;  %8000 = vmatprep.subr.bf16.mxu0 %v7999_v60  ;;  %v8019_v59 = vpack.c.bf16 %v5996_v55, %v5988_v37  ;;  %v5987_v60 = vld [vmem:[%s9822_s19 + $0xb00] sm:$0xff]  ;;  %v6054_v55 = vld [vmem:[%s9822_s19 + $0xd18] sm:$0xff]  ;;  %v8037_v20 = vpack.c.bf16 %v6059_v4, %v6051_v3 }
 0x198   : > { %8064 = vmatprep.subr.bf16.mxu1 %v8063_v2  ;;  %2547 = vmatprep.mubr.f32.mxu0 %v9545_v1  ;;  %v8083_v2 = vpack.c.bf16 %v5998_v57, %v5990_v56  ;;  %v6062_v56 = vld [vmem:[%s9822_s19 + $0xd58] sm:$0xff]  ;;  %v1625_v57 = vcombine.high %v1617_v43, %v1617_v43  ;;  %v6067_v24 = vld [vmem:[%s9822_s19 + $0xd80] sm:$0xff] }
 0x199   : > { %2618 = vmatprep.mubr.f32.mxu1 %v9545_v1  ;;  %v6075_v25 = vld [vmem:[%s9822_s19 + $0xdc0] sm:$0xff] }
 0x19a   : > { %8002 = vmatpush1.bf16.msra.mxu0 %v8001_v9 }
 0x19b   : > { %8066 = vmatpush1.bf16.msra.mxu1 %v8065_v10  ;;  %8004 = vmatprep.subr.bf16.mxu0 %v8003_v11  ;;  %v6006_v10 = vld [vmem:[%s9822_s19 + $0xb98] sm:$0xff] }
 0x19c   : > { %8068 = vmatprep.subr.bf16.mxu1 %v8067_v15  ;;  %v6014_v11 = vld [vmem:[%s9822_s19 + $0xbd8] sm:$0xff]  ;;  %v8021_v15 = vpack.c.bf16 %v5995_v61, %v5987_v60  ;;  %v8097_v60 = vpack.c.bf16 %v6045_v51, %v6037_v50  ;;  %v6108_v50 = vld [vmem:[%s9822_s19 + $0xec8] sm:$0xff] }
 0x19e   : > { %8006 = vmatpush1.bf16.msra.mxu0 %v8005_v21  ;;  %v6005_v21 = vld [vmem:[%s9822_s19 + $0xb90] sm:$0xff] }
 0x19f   : > { %8070 = vmatpush1.bf16.msra.mxu1 %v8069_v22  ;;  %8008 = vmatprep.subr.bf16.mxu0 %v8007_v23  ;;  %v8087_v22 = vpack.c.bf16 %v6014_v11, %v6006_v10  ;;  %v6013_v23 = vld [vmem:[%s9822_s19 + $0xbd0] sm:$0xff]  ;;  %v8099_v10 = vpack.c.bf16 %v6062_v56, %v6054_v55  ;;  %v6099_v56 = vld [vmem:[%s9822_s19 + $0xe80] sm:$0xff] }
 0x1a0   : > { %8072 = vmatprep.subr.bf16.mxu1 %v8071_v28  ;;  %v6030_v28 = vld [vmem:[%s9822_s19 + $0xc58] sm:$0xff]  ;;  %v8089_v31 = vpack.c.bf16 %v6013_v23, %v6005_v21  ;;  %v6061_v11 = vld [vmem:[%s9822_s19 + $0xd50] sm:$0xff] }
 0x1a2   : > { %8010 = vmatpush1.bf16.msra.mxu0 %v8009_v35  ;;  %v6027_v35 = vld [vmem:[%s9822_s19 + $0xc40] sm:$0xff] }
 0x1a3   : > { %8074 = vmatpush1.bf16.msra.mxu1 %v8073_v36  ;;  %8012 = vmatprep.subr.bf16.mxu0 %v8011_v38  ;;  %v6021_v36 = vld [vmem:[%s9822_s19 + $0xc10] sm:$0xff]  ;;  %v8091_v38 = vpack.c.bf16 %v6030_v28, %v6022_v27  ;;  %v8029_v44 = vpack.c.bf16 %v6027_v35, %v6019_v33  ;;  %v6092_v33 = vld [vmem:[%s9822_s19 + $0xe48] sm:$0xff] }
 0x1a4   : > { %8076 = vmatprep.subr.bf16.mxu1 %v8075_v41  ;;  %v6038_v41 = vld [vmem:[%s9822_s19 + $0xc98] sm:$0xff]  ;;  %v6069_v27 = vld [vmem:[%s9822_s19 + $0xd90] sm:$0xff] }
 0x1a5   : > { %v8095_v52 = vpack.c.bf16 %v6046_v42, %v6038_v41 }
 0x1a6   : > { %8014 = vmatpush1.bf16.msra.mxu0 %v8013_v47  ;;  %v8093_v47 = vpack.c.bf16 %v6029_v39, %v6021_v36  ;;  %v6094_v39 = vld [vmem:[%s9822_s19 + $0xe58] sm:$0xff] }
 0x1a7   : > { %8078 = vmatpush1.bf16.msra.mxu1 %v8077_v48  ;;  %8016 = vmatprep.subr.bf16.mxu0 %v8015_v49  ;;  %v8031_v48 = vpack.c.bf16 %v6044_v46, %v6036_v40  ;;  %v6043_v49 = vld [vmem:[%s9822_s19 + $0xcc0] sm:$0xff]  ;;  %v8041_v46 = vpack.c.bf16 %v6075_v25, %v6067_v24  ;;  %v5904_v24 = vld [vmem:[%s9822_s19 + $0x868] sm:$0xff]  ;;  %v5898_v25 = vld [vmem:[%s9822_s19 + $0x838] sm:$0xff] }
 0x1a8   : > { %v1293_v63 = vpop.f32.mrb[4].mxu0  ;;  %8080 = vmatprep.subr.bf16.mxu1 %v8079_v53  ;;  %v6052_v53 = vld [vmem:[%s9822_s19 + $0xd08] sm:$0xff] }
 0x1a9   : > { %v1294_v7 = vadd.f32 %v1293_v63, %v10160_v34  ;;  %v1295_v8 = vpop.f32.mrb[5].mxu0  ;;  %v1364_v9 = vpop.f32.mrb[4].mxu1 }
 0x1aa   : > { %v1296_v12 = vadd.f32 %v1295_v8, %v10160_v34  ;;  %8018 = vmatpush1.bf16.msra.mxu0 %v8017_v26  ;;  %v1365_v13 = vadd.f32 %v1364_v9, %v10160_v34  ;;  %v1366_v14 = vpop.f32.mrb[5].mxu1 }
 0x1ab   : > { %9350 = vtanh.f32 %v1294_v7  ;;  %8082 = vmatpush1.bf16.msra.mxu1 %v8081_v58  ;;  %v1367_v16 = vadd.f32 %v1366_v14, %v10160_v34  ;;  %8020 = vmatprep.subr.bf16.mxu0 %v8019_v59  ;;  %v8033_v59 = vpack.c.bf16 %v6043_v49, %v6035_v0  ;;  %v6091_v0 = vld [vmem:[%s9822_s19 + $0xe40] sm:$0xff]  ;;  %v6100_v49 = vld [vmem:[%s9822_s19 + $0xe88] sm:$0xff] }
 0x1ac   : > { %9352 = vtanh.f32 %v1296_v12  ;;  %8084 = vmatprep.subr.bf16.mxu1 %v8083_v2  ;;  %v8035_v2 = vpack.c.bf16 %v6060_v54, %v6052_v53  ;;  %v6068_v12 = vld [vmem:[%s9822_s19 + $0xd88] sm:$0xff]  ;;  %v6110_v53 = vld [vmem:[%s9822_s19 + $0xed8] sm:$0xff]  ;;  %v8047_v55 = vpack.c.bf16 %v6108_v50, %v6100_v49 }
 0x1ad   : > { %9354 = vtanh.f32 %v1365_v13  ;;  %v6076_v13 = vld [vmem:[%s9822_s19 + $0xdc8] sm:$0xff] }
 0x1ae   : > { %9356 = vtanh.f32 %v1367_v16  ;;  %8022 = vmatpush1.bf16.msra.mxu0 %v8021_v15  ;;  %v6070_v16 = vld [vmem:[%s9822_s19 + $0xd98] sm:$0xff]  ;;  %v8039_v23 = vpack.c.bf16 %v6076_v13, %v6068_v12  ;;  %v6140_v12 = vld [vmem:[%s9822_s19 + $0xfc8] sm:$0xff] }
 0x1af   : > { %8086 = vmatpush1.bf16.msra.mxu1 %v8085_v17  ;;  %8024 = vmatprep.subr.bf16.mxu0 %v8023_v18  ;;  %v6078_v17 = vld [vmem:[%s9822_s19 + $0xdd8] sm:$0xff]  ;;  %v5928_v49 = vld [vmem:[%s9822_s19 + $0x928] sm:$0xff] }
 0x1b0   : > { %8088 = vmatprep.subr.bf16.mxu1 %v8087_v22  ;;  %v8101_v22 = vpack.c.bf16 %v6061_v11, %v6053_v5  ;;  %v6115_v5 = vld [vmem:[%s9822_s19 + $0xf00] sm:$0xff]  ;;  %v6132_v11 = vld [vmem:[%s9822_s19 + $0xf88] sm:$0xff]  ;;  %v6134_v13 = vld [vmem:[%s9822_s19 + $0xf98] sm:$0xff] }
 0x1b1   : > { %v5936_v50 = vld [vmem:[%s9822_s19 + $0x968] sm:$0xff] }
 0x1b2   : > { %8026 = vmatpush1.bf16.msra.mxu0 %v8025_v30  ;;  %v8103_v30 = vpack.c.bf16 %v6078_v17, %v6070_v16  ;;  %v8055_v17 = vpack.c.bf16 %v6140_v12, %v6132_v11  ;;  %v5968_v11 = vld [vmem:[%s9822_s19 + $0xa68] sm:$0xff]  ;;  %v5962_v12 = vld [vmem:[%s9822_s19 + $0xa38] sm:$0xff] }
 0x1b3   : > { %8090 = vmatpush1.bf16.msra.mxu1 %v8089_v31  ;;  %8028 = vmatprep.subr.bf16.mxu0 %v8027_v32  ;;  %v6077_v31 = vld [vmem:[%s9822_s19 + $0xdd0] sm:$0xff]  ;;  %v6084_v32 = vld [vmem:[%s9822_s19 + $0xe08] sm:$0xff] }
 0x1b4   : > { %8092 = vmatprep.subr.bf16.mxu1 %v8091_v38  ;;  %v6086_v38 = vld [vmem:[%s9822_s19 + $0xe18] sm:$0xff]  ;;  %v8105_v42 = vpack.c.bf16 %v6077_v31, %v6069_v27  ;;  %v5895_v31 = vld [vmem:[%s9822_s19 + $0x820] sm:$0xff] }
 0x1b5   : > { %v9351_v37 = vpop.eup %9350  ;;  %v5906_v27 = vld [vmem:[%s9822_s19 + $0x878] sm:$0xff] }
 0x1b6   : > { %v9353_v26 = vpop.eup %9352  ;;  %v1632_v58 = vsub.f32 %v9351_v37, %v1616_v29  ;;  %8030 = vmatpush1.bf16.msra.mxu0 %v8029_v44  ;;  %v6083_v44 = vld [vmem:[%s9822_s19 + $0xe00] sm:$0xff] }
 0x1b7   : > { %v9355_v61 = vpop.eup %9354  ;;  %v1547_v62 = vcombine.low %v9351_v37, %v9353_v26  ;;  %v1633_v63 = vsub.f32 %v9353_v26, %v1624_v45  ;;  %8094 = vmatpush1.bf16.msra.mxu1 %v8093_v47  ;;  %8032 = vmatprep.subr.bf16.mxu0 %v8031_v48  ;;  %v6085_v45 = vld [vmem:[%s9822_s19 + $0xe10] sm:$0xff]  ;;  %v8107_v47 = vpack.c.bf16 %v6094_v39, %v6086_v38  ;;  %v5912_v38 = vld [vmem:[%s9822_s19 + $0x8a8] sm:$0xff] }
 0x1b8   : > { %v9357_v7 = vpop.eup %9356  ;;  %v1640_v8 = vand.u32 2147483647, %v1632_v58  ;;  %v1634_v9 = vsub.f32 %v9355_v61, %v1617_v43  ;;  %8096 = vmatprep.subr.bf16.mxu1 %v8095_v52  ;;  %v8043_v43 = vpack.c.bf16 %v6092_v33, %v6084_v32  ;;  %v6093_v48 = vld [vmem:[%s9822_s19 + $0xe50] sm:$0xff]  ;;  %v6102_v52 = vld [vmem:[%s9822_s19 + $0xe98] sm:$0xff]  ;;  %v8045_v54 = vpack.c.bf16 %v6091_v0, %v6083_v44  ;;  %v5903_v32 = vld [vmem:[%s9822_s19 + $0x860] sm:$0xff] }
 0x1b9   : > { %1555 = vst [vmem:[%s10521_s21] sm:$0x77] %v1547_v62  ;;  %v1641_v14 = vand.u32 2147483647, %v1633_v63  ;;  %v1548_v15 = vcombine.low %v9355_v61, %v9357_v7  ;;  %v1635_v18 = vsub.f32 %v9357_v7, %v1625_v57  ;;  %v8109_v37 = vpack.c.bf16 %v6093_v48, %v6085_v45  ;;  %v6107_v57 = vld [vmem:[%s9822_s19 + $0xec0] sm:$0xff]  ;;  %v6101_v26 = vld [vmem:[%s9822_s19 + $0xe90] sm:$0xff]  ;;  %v6124_v61 = vld [vmem:[%s9822_s19 + $0xf48] sm:$0xff] }
 0x1ba   : > { %v1642_v19 = vand.u32 2147483647, %v1634_v9  ;;  %8034 = vmatpush1.bf16.msra.mxu0 %v8033_v59  ;;  %v1648_v21 = vsel %vm1591_vm0, %v1640_v8, 0.0  ;;  %v8111_v58 = vpack.c.bf16 %v6110_v53, %v6102_v52  ;;  %v6109_v59 = vld [vmem:[%s9822_s19 + $0xed0] sm:$0xff]  ;;  %v6118_v62 = vld [vmem:[%s9822_s19 + $0xf18] sm:$0xff]  ;;  %v6123_v7 = vld [vmem:[%s9822_s19 + $0xf40] sm:$0xff] }
 0x1bb   : > { %1556 = vst [vmem:[%s10521_s21 + $0x8] sm:$0x77] %v1548_v15  ;;  %8098 = vmatpush1.bf16.msra.mxu1 %v8097_v60  ;;  %8036 = vmatprep.subr.bf16.mxu0 %v8035_v2  ;;  %v1643_v28 = vand.u32 2147483647, %v1635_v18  ;;  %v1649_v29 = vsel %vm1591_vm0, %v1641_v14, 0.0  ;;  %v6116_v60 = vld [vmem:[%s9822_s19 + $0xf08] sm:$0xff]  ;;  %v8049_v2 = vpack.c.bf16 %v6107_v57, %v6099_v56  ;;  %v8113_v3 = vpack.c.bf16 %v6109_v59, %v6101_v26 }
 0x1bc   : > { %8100 = vmatprep.subr.bf16.mxu1 %v8099_v10  ;;  %v1650_v35 = vadd.f32 %v1649_v29, %v1648_v21  ;;  %v1651_v36 = vsel %vm1591_vm0, %v1642_v19, 0.0  ;;  %v6126_v63 = vld [vmem:[%s9822_s19 + $0xf58] sm:$0xff]  ;;  %v8051_v4 = vpack.c.bf16 %v6124_v61, %v6116_v60  ;;  %v6117_v8 = vld [vmem:[%s9822_s19 + $0xf10] sm:$0xff]  ;;  %v8053_v15 = vpack.c.bf16 %v6123_v7, %v6115_v5  ;;  %v6131_v18 = vld [vmem:[%s9822_s19 + $0xf80] sm:$0xff] }
 0x1bd   : > { %v1653_v40 = vsel %vm1591_vm0, %v1643_v28, 0.0  ;;  %v8115_v9 = vpack.c.bf16 %v6126_v63, %v6118_v62  ;;  %v6125_v10 = vld [vmem:[%s9822_s19 + $0xf50] sm:$0xff]  ;;  %v6142_v14 = vld [vmem:[%s9822_s19 + $0xfd8] sm:$0xff]  ;;  %v6139_v19 = vld [vmem:[%s9822_s19 + $0xfc0] sm:$0xff] }
 0x1be   : > { %8038 = vmatpush1.bf16.msra.mxu0 %v8037_v20  ;;  %v1652_v41 = vadd.f32 %v1651_v36, %v1650_v35  ;;  %v8117_v16 = vpack.c.bf16 %v6125_v10, %v6117_v8  ;;  %v6133_v20 = vld [vmem:[%s9822_s19 + $0xf90] sm:$0xff]  ;;  %v8119_v21 = vpack.c.bf16 %v6142_v14, %v6134_v13  ;;  %v8057_v28 = vpack.c.bf16 %v6139_v19, %v6131_v18  ;;  %v5920_v39 = vld [vmem:[%s9822_s19 + $0x8e8] sm:$0xff]  ;;  %v5911_v44 = vld [vmem:[%s9822_s19 + $0x8a0] sm:$0xff] }
 0x1bf   : > { %8102 = vmatpush1.bf16.msra.mxu1 %v8101_v22  ;;  %8040 = vmatprep.subr.bf16.mxu0 %v8039_v23  ;;  %v6141_v22 = vld [vmem:[%s9822_s19 + $0xfd0] sm:$0xff]  ;;  %v5896_v23 = vld [vmem:[%s9822_s19 + $0x828] sm:$0xff]  ;;  %v8187_v35 = vpack.c.bf16 %v5906_v27, %v5898_v25  ;;  %v5919_v0 = vld [vmem:[%s9822_s19 + $0x8e0] sm:$0xff] }
 0x1c0   : > { %8104 = vmatprep.subr.bf16.mxu1 %v8103_v30  ;;  %v10551_v51 = vadd.f32 %v1653_v40, %v1652_v41  ;;  %v8121_v29 = vpack.c.bf16 %v6141_v22, %v6133_v20  ;;  %v8123_v30 = vpack.c.bf16 %v5904_v24, %v5896_v23  ;;  %v5897_v33 = vld [vmem:[%s9822_s19 + $0x830] sm:$0xff]  ;;  %v5914_v40 = vld [vmem:[%s9822_s19 + $0x8b8] sm:$0xff]  ;;  %v8125_v41 = vpack.c.bf16 %v5903_v32, %v5895_v31  ;;  %v5927_v56 = vld [vmem:[%s9822_s19 + $0x920] sm:$0xff] }
 0x1c1   : > { %v5905_v36 = vld [vmem:[%s9822_s19 + $0x870] sm:$0xff]  ;;  %v5930_v52 = vld [vmem:[%s9822_s19 + $0x938] sm:$0xff]  ;;  %v5935_v57 = vld [vmem:[%s9822_s19 + $0x960] sm:$0xff] }
 0x1c2   : > { %8042 = vmatpush1.bf16.msra.mxu0 %v8041_v46  ;;  %v5922_v46 = vld [vmem:[%s9822_s19 + $0x8f8] sm:$0xff]  ;;  %v5913_v45 = vld [vmem:[%s9822_s19 + $0x8b0] sm:$0xff]  ;;  %v5944_v60 = vld [vmem:[%s9822_s19 + $0x9a8] sm:$0xff]  ;;  %v8133_v63 = vpack.c.bf16 %v5935_v57, %v5927_v56 }
 0x1c3   : > { %8106 = vmatpush1.bf16.msra.mxu1 %v8105_v42  ;;  %8044 = vmatprep.subr.bf16.mxu0 %v8043_v43  ;;  %v8189_v42 = vpack.c.bf16 %v5905_v36, %v5897_v33  ;;  %v8127_v43 = vpack.c.bf16 %v5920_v39, %v5912_v38  ;;  %v5921_v48 = vld [vmem:[%s9822_s19 + $0x8f0] sm:$0xff]  ;;  %v5938_v53 = vld [vmem:[%s9822_s19 + $0x978] sm:$0xff]  ;;  %v5952_v61 = vld [vmem:[%s9822_s19 + $0x9e8] sm:$0xff] }
 0x1c4   : > { %8108 = vmatprep.subr.bf16.mxu1 %v8107_v47  ;;  %v8191_v47 = vpack.c.bf16 %v5922_v46, %v5914_v40  ;;  %v5929_v26 = vld [vmem:[%s9822_s19 + $0x930] sm:$0xff]  ;;  %v5954_v62 = vld [vmem:[%s9822_s19 + $0x9f8] sm:$0xff]  ;;  %v5951_v5 = vld [vmem:[%s9822_s19 + $0x9e0] sm:$0xff] }
 0x1c5   : > { %v5937_v59 = vld [vmem:[%s9822_s19 + $0x970] sm:$0xff]  ;;  %v5960_v10 = vld [vmem:[%s9822_s19 + $0xa28] sm:$0xff]  ;;  %v5970_v13 = vld [vmem:[%s9822_s19 + $0xa78] sm:$0xff] }
 0x1c6   : > { %8046 = vmatpush1.bf16.msra.mxu0 %v8045_v54  ;;  %v8129_v54 = vpack.c.bf16 %v5919_v0, %v5911_v44  ;;  %v5945_v7 = vld [vmem:[%s9822_s19 + $0x9b0] sm:$0xff]  ;;  %v5967_v18 = vld [vmem:[%s9822_s19 + $0xa60] sm:$0xff]  ;;  %v8203_v20 = vpack.c.bf16 %v5970_v13, %v5962_v12  ;;  %v5976_v22 = vld [vmem:[%s9822_s19 + $0xaa8] sm:$0xff] }
 0x1c7   : > { %8110 = vmatpush1.bf16.msra.mxu1 %v8109_v37  ;;  %8048 = vmatprep.subr.bf16.mxu0 %v8047_v55  ;;  %v8193_v37 = vpack.c.bf16 %v5921_v48, %v5913_v45  ;;  %v8131_v55 = vpack.c.bf16 %v5936_v50, %v5928_v49  ;;  %v5961_v19 = vld [vmem:[%s9822_s19 + $0xa30] sm:$0xff]  ;;  %v5984_v23 = vld [vmem:[%s9822_s19 + $0xae8] sm:$0xff]  ;;  %v5978_v24 = vld [vmem:[%s9822_s19 + $0xab8] sm:$0xff] }
 0x1c8   : > { %8112 = vmatprep.subr.bf16.mxu1 %v8111_v58  ;;  %v8195_v58 = vpack.c.bf16 %v5938_v53, %v5930_v52  ;;  %v5986_v25 = vld [vmem:[%s9822_s19 + $0xaf8] sm:$0xff]  ;;  %v5983_v31 = vld [vmem:[%s9822_s19 + $0xae0] sm:$0xff]  ;;  %v5977_v32 = vld [vmem:[%s9822_s19 + $0xab0] sm:$0xff] }
 0x1c9   : > { %v8207_v33 = vpack.c.bf16 %v5986_v25, %v5978_v24  ;;  %v5992_v36 = vld [vmem:[%s9822_s19 + $0xb28] sm:$0xff]  ;;  %v5994_v39 = vld [vmem:[%s9822_s19 + $0xb38] sm:$0xff]  ;;  %v5999_v44 = vld [vmem:[%s9822_s19 + $0xb60] sm:$0xff] }
 0x1ca   : > { %8050 = vmatpush1.bf16.msra.mxu0 %v8049_v2  ;;  %v8197_v2 = vpack.c.bf16 %v5937_v59, %v5929_v26  ;;  %v6000_v38 = vld [vmem:[%s9822_s19 + $0xb68] sm:$0xff]  ;;  %v6002_v40 = vld [vmem:[%s9822_s19 + $0xb78] sm:$0xff]  ;;  %v5993_v0 = vld [vmem:[%s9822_s19 + $0xb30] sm:$0xff] }
 0x1cb   : > { %8114 = vmatpush1.bf16.msra.mxu1 %v8113_v3  ;;  %8052 = vmatprep.subr.bf16.mxu0 %v8051_v4  ;;  %v8135_v3 = vpack.c.bf16 %v5952_v61, %v5944_v60  ;;  %v5943_v4 = vld [vmem:[%s9822_s19 + $0x9a0] sm:$0xff]  ;;  %v6001_v48 = vld [vmem:[%s9822_s19 + $0xb70] sm:$0xff]  ;;  %v6008_v49 = vld [vmem:[%s9822_s19 + $0xba8] sm:$0xff] }
 0x1cc   : > { %8116 = vmatprep.subr.bf16.mxu1 %v8115_v9  ;;  %v5953_v9 = vld [vmem:[%s9822_s19 + $0x9f0] sm:$0xff]  ;;  %v8137_v14 = vpack.c.bf16 %v5951_v5, %v5943_v4  ;;  %v6016_v50 = vld [vmem:[%s9822_s19 + $0xbe8] sm:$0xff]  ;;  %v8213_v60 = vpack.c.bf16 %v6001_v48, %v5993_v0  ;;  %v6031_v13 = vld [vmem:[%s9822_s19 + $0xc60] sm:$0xff] }
 0x1cd   : > { %v8151_v61 = vpack.c.bf16 %v6016_v50, %v6008_v49  ;;  %v6024_v4 = vld [vmem:[%s9822_s19 + $0xc28] sm:$0xff]  ;;  %v1619_v24 = vld [vmem:[%s10488_s17 + $0x18] sm:$0x77]  ;;  %v6063_v48 = vld [vmem:[%s9822_s19 + $0xd60] sm:$0xff] }
 0x1ce   : > { %8054 = vmatpush1.bf16.msra.mxu0 %v8053_v15  ;;  %v8201_v15 = vpack.c.bf16 %v5953_v9, %v5945_v7  ;;  %v6032_v5 = vld [vmem:[%s9822_s19 + $0xc68] sm:$0xff]  ;;  %v6026_v7 = vld [vmem:[%s9822_s19 + $0xc38] sm:$0xff]  ;;  %v6057_v49 = vld [vmem:[%s9822_s19 + $0xd30] sm:$0xff] }
 0x1cf   : > { %8118 = vmatpush1.bf16.msra.mxu1 %v8117_v16  ;;  %8056 = vmatprep.subr.bf16.mxu0 %v8055_v17  ;;  %v8139_v16 = vpack.c.bf16 %v5968_v11, %v5960_v10  ;;  %v5959_v17 = vld [vmem:[%s9822_s19 + $0xa20] sm:$0xff]  ;;  %v8155_v12 = vpack.c.bf16 %v6032_v5, %v6024_v4  ;;  %v6065_v50 = vld [vmem:[%s9822_s19 + $0xd70] sm:$0xff] }
 0x1d0   : > { %8120 = vmatprep.subr.bf16.mxu1 %v8119_v21  ;;  %v5969_v21 = vld [vmem:[%s9822_s19 + $0xa70] sm:$0xff]  ;;  %v8141_v27 = vpack.c.bf16 %v5967_v18, %v5959_v17  ;;  %v6023_v10 = vld [vmem:[%s9822_s19 + $0xc20] sm:$0xff]  ;;  %v6040_v17 = vld [vmem:[%s9822_s19 + $0xca8] sm:$0xff] }
 0x1d1   : > { %v6048_v18 = vld [vmem:[%s9822_s19 + $0xce8] sm:$0xff]  ;;  %v6071_v4 = vld [vmem:[%s9822_s19 + $0xda0] sm:$0xff] }
 0x1d2   : > { %8058 = vmatpush1.bf16.msra.mxu0 %v8057_v28  ;;  %v8205_v28 = vpack.c.bf16 %v5969_v21, %v5961_v19  ;;  %v1618_v19 = vld [vmem:[%s10488_s17 + $0x10] sm:$0x77]  ;;  %v6050_v21 = vld [vmem:[%s9822_s19 + $0xcf8] sm:$0xff]  ;;  %v6079_v5 = vld [vmem:[%s9822_s19 + $0xde0] sm:$0xff] }
 0x1d3   : > { %8122 = vmatpush1.bf16.msra.mxu1 %v8121_v29  ;;  %8124 = vmatprep.subr.bf16.mxu0 %v8123_v30  ;;  %v8143_v29 = vpack.c.bf16 %v5984_v23, %v5976_v22  ;;  %v5975_v30 = vld [vmem:[%s9822_s19 + $0xaa0] sm:$0xff]  ;;  %v8157_v22 = vpack.c.bf16 %v6031_v13, %v6023_v10 }
 0x1d4   : > { %8188 = vmatprep.subr.bf16.mxu1 %v8187_v35  ;;  %v5985_v35 = vld [vmem:[%s9822_s19 + $0xaf0] sm:$0xff]  ;;  %v8145_v46 = vpack.c.bf16 %v5983_v31, %v5975_v30  ;;  %v6039_v23 = vld [vmem:[%s9822_s19 + $0xca0] sm:$0xff]  ;;  %v1626_v31 = vcombine.high %v1618_v19, %v1618_v19 }
 0x1d5   : > { %2548 = vmatmul.mubr.f32.vlgmr.msra.gmra.mrb[12].mxu0 %v10433_v6  ;;  %v6049_v30 = vld [vmem:[%s9822_s19 + $0xcf0] sm:$0xff] }
 0x1d6   : > { %2619 = vmatmul.mubr.f32.vlgmr.msra.gmra.mrb[12].mxu1 %v10433_v6  ;;  %8126 = vmatpush1.bf16.msra.mxu0 %v8125_v41  ;;  %v5946_v6 = vld [vmem:[%s9822_s19 + $0x9b8] sm:$0xff]  ;;  %v8209_v41 = vpack.c.bf16 %v5985_v35, %v5977_v32  ;;  %v6064_v35 = vld [vmem:[%s9822_s19 + $0xd68] sm:$0xff] }
 0x1d7   : > { %8190 = vmatpush1.bf16.msra.mxu1 %v8189_v42  ;;  %8128 = vmatprep.subr.bf16.mxu0 %v8127_v43  ;;  %v8199_v8 = vpack.c.bf16 %v5954_v62, %v5946_v6  ;;  %v8147_v42 = vpack.c.bf16 %v6000_v38, %v5992_v36  ;;  %v5991_v43 = vld [vmem:[%s9822_s19 + $0xb20] sm:$0xff]  ;;  %v6058_v38 = vld [vmem:[%s9822_s19 + $0xd38] sm:$0xff] }
 0x1d8   : > { %8192 = vmatprep.subr.bf16.mxu1 %v8191_v47  ;;  %2689 = vmatprep.mubr.f32.mxu0 %v9545_v1  ;;  %v8211_v47 = vpack.c.bf16 %v6002_v40, %v5994_v39  ;;  %v6007_v6 = vld [vmem:[%s9822_s19 + $0xba0] sm:$0xff]  ;;  %v6066_v39 = vld [vmem:[%s9822_s19 + $0xd78] sm:$0xff]  ;;  %v1627_v40 = vcombine.high %v1619_v24, %v1619_v24 }
 0x1d9   : > { %2760 = vmatprep.mubr.f32.mxu1 %v9545_v1  ;;  %v6015_v62 = vld [vmem:[%s9822_s19 + $0xbe0] sm:$0xff] }
 0x1da   : > { %8130 = vmatpush1.bf16.msra.mxu0 %v8129_v54  ;;  %v8153_v9 = vpack.c.bf16 %v6015_v62, %v6007_v6  ;;  %v8229_v62 = vpack.c.bf16 %v6065_v50, %v6057_v49  ;;  %v6119_v50 = vld [vmem:[%s9822_s19 + $0xf20] sm:$0xff] }
 0x1db   : > { %8194 = vmatpush1.bf16.msra.mxu1 %v8193_v37  ;;  %8132 = vmatprep.subr.bf16.mxu0 %v8131_v55  ;;  %v6010_v37 = vld [vmem:[%s9822_s19 + $0xbb8] sm:$0xff] }
 0x1dc   : > { %8196 = vmatprep.subr.bf16.mxu1 %v8195_v58  ;;  %v6018_v55 = vld [vmem:[%s9822_s19 + $0xbf8] sm:$0xff]  ;;  %v8149_v58 = vpack.c.bf16 %v5999_v44, %v5991_v43  ;;  %v6055_v43 = vld [vmem:[%s9822_s19 + $0xd20] sm:$0xff] }
 0x1dd   : > { %v8165_v6 = vpack.c.bf16 %v6063_v48, %v6055_v43  ;;  %v6120_v43 = vld [vmem:[%s9822_s19 + $0xf28] sm:$0xff] }
 0x1de   : > { %8134 = vmatpush1.bf16.msra.mxu0 %v8133_v63  ;;  %v6009_v63 = vld [vmem:[%s9822_s19 + $0xbb0] sm:$0xff] }
 0x1df   : > { %8198 = vmatpush1.bf16.msra.mxu1 %v8197_v2  ;;  %8136 = vmatprep.subr.bf16.mxu0 %v8135_v3  ;;  %v8215_v2 = vpack.c.bf16 %v6018_v55, %v6010_v37  ;;  %v6017_v3 = vld [vmem:[%s9822_s19 + $0xbf0] sm:$0xff]  ;;  %v6072_v37 = vld [vmem:[%s9822_s19 + $0xda8] sm:$0xff] }
 0x1e0   : > { %8200 = vmatprep.subr.bf16.mxu1 %v8199_v8  ;;  %v6034_v8 = vld [vmem:[%s9822_s19 + $0xc78] sm:$0xff]  ;;  %v8217_v11 = vpack.c.bf16 %v6017_v3, %v6009_v63  ;;  %v6080_v55 = vld [vmem:[%s9822_s19 + $0xde8] sm:$0xff] }
 0x1e1   : > { %v8167_v3 = vpack.c.bf16 %v6080_v55, %v6072_v37  ;;  %v6129_v37 = vld [vmem:[%s9822_s19 + $0xf70] sm:$0xff]  ;;  %v6136_v55 = vld [vmem:[%s9822_s19 + $0xfa8] sm:$0xff] }
 0x1e2   : > { %8138 = vmatpush1.bf16.msra.mxu0 %v8137_v14  ;;  %v6025_v14 = vld [vmem:[%s9822_s19 + $0xc30] sm:$0xff] }
 0x1e3   : > { %8202 = vmatpush1.bf16.msra.mxu1 %v8201_v15  ;;  %8140 = vmatprep.subr.bf16.mxu0 %v8139_v16  ;;  %v6033_v15 = vld [vmem:[%s9822_s19 + $0xc70] sm:$0xff]  ;;  %v8219_v16 = vpack.c.bf16 %v6034_v8, %v6026_v7 }
 0x1e4   : > { %8204 = vmatprep.subr.bf16.mxu1 %v8203_v20  ;;  %v6042_v20 = vld [vmem:[%s9822_s19 + $0xcb8] sm:$0xff]  ;;  %v8221_v25 = vpack.c.bf16 %v6033_v15, %v6025_v14  ;;  %v6088_v14 = vld [vmem:[%s9822_s19 + $0xe28] sm:$0xff] }
 0x1e5   : > { %v8223_v32 = vpack.c.bf16 %v6050_v21, %v6042_v20 }
 0x1e6   : > { %8142 = vmatpush1.bf16.msra.mxu0 %v8141_v27  ;;  %v8159_v27 = vpack.c.bf16 %v6048_v18, %v6040_v17  ;;  %v6090_v17 = vld [vmem:[%s9822_s19 + $0xe38] sm:$0xff] }
 0x1e7   : > { %8206 = vmatpush1.bf16.msra.mxu1 %v8205_v28  ;;  %8144 = vmatprep.subr.bf16.mxu0 %v8143_v29  ;;  %v6047_v28 = vld [vmem:[%s9822_s19 + $0xce0] sm:$0xff]  ;;  %v6041_v29 = vld [vmem:[%s9822_s19 + $0xcb0] sm:$0xff]  ;;  %v6098_v18 = vld [vmem:[%s9822_s19 + $0xe78] sm:$0xff] }
 0x1e8   : > { %v1435_v45 = vpop.f32.mrb[6].mxu0  ;;  %8208 = vmatprep.subr.bf16.mxu1 %v8207_v33  ;;  %v6056_v33 = vld [vmem:[%s9822_s19 + $0xd28] sm:$0xff] }
 0x1e9   : > { %v1436_v52 = vadd.f32 %v1435_v45, %v10160_v34  ;;  %v1437_v53 = vpop.f32.mrb[7].mxu0  ;;  %v1506_v54 = vpop.f32.mrb[6].mxu1 }
 0x1ea   : > { %v1438_v56 = vadd.f32 %v1437_v53, %v10160_v34  ;;  %8146 = vmatpush1.bf16.msra.mxu0 %v8145_v46  ;;  %v1507_v57 = vadd.f32 %v1506_v54, %v10160_v34  ;;  %v1508_v26 = vpop.f32.mrb[7].mxu1  ;;  %v8227_v54 = vpack.c.bf16 %v6066_v39, %v6058_v38  ;;  %v6103_v39 = vld [vmem:[%s9822_s19 + $0xea0] sm:$0xff] }
 0x1eb   : > { %9358 = vtanh.f32 %v1436_v52  ;;  %8210 = vmatpush1.bf16.msra.mxu1 %v8209_v41  ;;  %v1509_v59 = vadd.f32 %v1508_v26, %v10160_v34  ;;  %8148 = vmatprep.subr.bf16.mxu0 %v8147_v42  ;;  %v8161_v41 = vpack.c.bf16 %v6047_v28, %v6039_v23  ;;  %v8225_v42 = vpack.c.bf16 %v6049_v30, %v6041_v29  ;;  %v6095_v23 = vld [vmem:[%s9822_s19 + $0xe60] sm:$0xff]  ;;  %v6097_v28 = vld [vmem:[%s9822_s19 + $0xe70] sm:$0xff]  ;;  %v6104_v29 = vld [vmem:[%s9822_s19 + $0xea8] sm:$0xff] }
 0x1ec   : > { %9360 = vtanh.f32 %v1438_v56  ;;  %8212 = vmatprep.subr.bf16.mxu1 %v8211_v47  ;;  %v8163_v47 = vpack.c.bf16 %v6064_v35, %v6056_v33  ;;  %v6112_v30 = vld [vmem:[%s9822_s19 + $0xee8] sm:$0xff]  ;;  %v6114_v33 = vld [vmem:[%s9822_s19 + $0xef8] sm:$0xff] }
 0x1ed   : > { %9362 = vtanh.f32 %v1507_v57  ;;  %v8175_v38 = vpack.c.bf16 %v6112_v30, %v6104_v29  ;;  %v6189_v30 = vld [vmem:[%s9558_s14 + $0x10d0] sm:$0xff] }
 0x1ee   : > { %9364 = vtanh.f32 %v1509_v59  ;;  %8150 = vmatpush1.bf16.msra.mxu0 %v8149_v58  ;;  %v6074_v58 = vld [vmem:[%s9822_s19 + $0xdb8] sm:$0xff] }
 0x1ef   : > { %8214 = vmatpush1.bf16.msra.mxu1 %v8213_v60  ;;  %8152 = vmatprep.subr.bf16.mxu0 %v8151_v61  ;;  %v6082_v59 = vld [vmem:[%s9822_s19 + $0xdf8] sm:$0xff] }
 0x1f0   : > { %8216 = vmatprep.subr.bf16.mxu1 %v8215_v2  ;;  %v8231_v10 = vpack.c.bf16 %v6082_v59, %v6074_v58 }
 0x1f2   : > { %8154 = vmatpush1.bf16.msra.mxu0 %v8153_v9 }
 0x1f3   : > { %8218 = vmatpush1.bf16.msra.mxu1 %v8217_v11  ;;  %8156 = vmatprep.subr.bf16.mxu0 %v8155_v12  ;;  %v6073_v11 = vld [vmem:[%s9822_s19 + $0xdb0] sm:$0xff] }
 0x1f4   : > { %8220 = vmatprep.subr.bf16.mxu1 %v8219_v16  ;;  %v6081_v12 = vld [vmem:[%s9822_s19 + $0xdf0] sm:$0xff]  ;;  %v6096_v16 = vld [vmem:[%s9822_s19 + $0xe68] sm:$0xff] }
 0x1f5   : > { %v9359_v36 = vpop.eup %9358  ;;  %v8233_v20 = vpack.c.bf16 %v6081_v12, %v6073_v11  ;;  %v6163_v11 = vld [vmem:[%s9558_s14 + $0x1000] sm:$0xff] }
 0x1f6   : > { %v9361_v46 = vpop.eup %9360  ;;  %8158 = vmatpush1.bf16.msra.mxu0 %v8157_v22  ;;  %v1636_v44 = vsub.f32 %v9359_v36, %v1618_v19  ;;  %v6087_v22 = vld [vmem:[%s9822_s19 + $0xe20] sm:$0xff] }
 0x1f7   : > { %v9363_v0 = vpop.eup %9362  ;;  %v1549_v45 = vcombine.low %v9359_v36, %v9361_v46  ;;  %8222 = vmatpush1.bf16.msra.mxu1 %v8221_v25  ;;  %8160 = vmatprep.subr.bf16.mxu0 %v8159_v27  ;;  %v1637_v52 = vsub.f32 %v9361_v46, %v1626_v31  ;;  %v8171_v25 = vpack.c.bf16 %v6096_v16, %v6088_v14  ;;  %v6105_v46 = vld [vmem:[%s9822_s19 + $0xeb0] sm:$0xff]  ;;  %v6171_v12 = vld [vmem:[%s9558_s14 + $0x1040] sm:$0xff] }
 0x1f8   : > { %v9365_v53 = vpop.eup %9364  ;;  %8224 = vmatprep.subr.bf16.mxu1 %v8223_v32  ;;  %v1638_v56 = vsub.f32 %v9363_v0, %v1619_v24  ;;  %v1644_v57 = vand.u32 2147483647, %v1636_v44  ;;  %v6089_v24 = vld [vmem:[%s9822_s19 + $0xe30] sm:$0xff]  ;;  %v8235_v27 = vpack.c.bf16 %v6098_v18, %v6090_v17  ;;  %v6106_v32 = vld [vmem:[%s9822_s19 + $0xeb8] sm:$0xff]  ;;  %v8173_v35 = vpack.c.bf16 %v6095_v23, %v6087_v22  ;;  %v6128_v44 = vld [vmem:[%s9822_s19 + $0xf68] sm:$0xff] }
 0x1f9   : > { %1557 = vst [vmem:[%s10521_s21 + $0x10] sm:$0x77] %v1549_v45  ;;  %v1550_v26 = vcombine.low %v9363_v0, %v9365_v53  ;;  %v1639_v60 = vsub.f32 %v9365_v53, %v1627_v40  ;;  %v1645_v61 = vand.u32 2147483647, %v1637_v52  ;;  %v8237_v36 = vpack.c.bf16 %v6097_v28, %v6089_v24  ;;  %v6111_v40 = vld [vmem:[%s9822_s19 + $0xee0] sm:$0xff]  ;;  %v6122_v0 = vld [vmem:[%s9822_s19 + $0xf38] sm:$0xff] }
 0x1fa   : > { %8162 = vmatpush1.bf16.msra.mxu0 %v8161_v41  ;;  %v1646_v63 = vand.u32 2147483647, %v1638_v56  ;;  %v1655_v2 = vsel %vm1591_vm0, %v1644_v57, 0.0  ;;  %v8239_v41 = vpack.c.bf16 %v6114_v33, %v6106_v32  ;;  %v6130_v45 = vld [vmem:[%s9822_s19 + $0xf78] sm:$0xff]  ;;  %v8179_v49 = vpack.c.bf16 %v6128_v44, %v6120_v43  ;;  %v6127_v52 = vld [vmem:[%s9822_s19 + $0xf60] sm:$0xff]  ;;  %v6121_v53 = vld [vmem:[%s9822_s19 + $0xf30] sm:$0xff] }
 0x1fb   : > { %1558 = vst [vmem:[%s10521_s21 + $0x18] sm:$0x77] %v1550_v26  ;;  %8226 = vmatpush1.bf16.msra.mxu1 %v8225_v42  ;;  %8164 = vmatprep.subr.bf16.mxu0 %v8163_v47  ;;  %v1647_v7 = vand.u32 2147483647, %v1639_v60  ;;  %v1656_v8 = vadd.f32 %v1655_v2, %v10551_v51  ;;  %v1657_v9 = vsel %vm1591_vm0, %v1645_v61, 0.0  ;;  %v8169_v51 = vpack.c.bf16 %v6079_v5, %v6071_v4  ;;  %v6113_v42 = vld [vmem:[%s9822_s19 + $0xef0] sm:$0xff] }
 0x1fc   : > { %8228 = vmatprep.subr.bf16.mxu1 %v8227_v54  ;;  %v1659_v13 = vsel %vm1591_vm0, %v1646_v63, 0.0  ;;  %v8177_v47 = vpack.c.bf16 %v6111_v40, %v6103_v39  ;;  %v8241_v48 = vpack.c.bf16 %v6113_v42, %v6105_v46  ;;  %v8243_v54 = vpack.c.bf16 %v6130_v45, %v6122_v0  ;;  %v6144_v56 = vld [vmem:[%s9822_s19 + $0xfe8] sm:$0xff]  ;;  %v6138_v57 = vld [vmem:[%s9822_s19 + $0xfb8] sm:$0xff]  ;;  %v6135_v61 = vld [vmem:[%s9822_s19 + $0xfa0] sm:$0xff] }
 0x1fd   : > { %v1658_v15 = vadd.f32 %v1657_v9, %v1656_v8  ;;  %v1661_v19 = vsel %vm1591_vm0, %v1647_v7, 0.0  ;;  %v6146_v26 = vld [vmem:[%s9822_s19 + $0xff8] sm:$0xff]  ;;  %v8181_v58 = vpack.c.bf16 %v6127_v52, %v6119_v50  ;;  %v8245_v59 = vpack.c.bf16 %v6129_v37, %v6121_v53  ;;  %v6145_v2 = vld [vmem:[%s9822_s19 + $0xff0] sm:$0xff]  ;;  %v6172_v4 = vld [vmem:[%s9558_s14 + $0x1048] sm:$0xff] }
 0x1fe   : > { %8166 = vmatpush1.bf16.msra.mxu0 %v8165_v6  ;;  %v8183_v60 = vpack.c.bf16 %v6144_v56, %v6136_v55  ;;  %v6143_v6 = vld [vmem:[%s9822_s19 + $0xfe0] sm:$0xff]  ;;  %v8247_v63 = vpack.c.bf16 %v6146_v26, %v6138_v57  ;;  %v6166_v5 = vld [vmem:[%s9558_s14 + $0x1018] sm:$0xff]  ;;  %v6173_v16 = vld [vmem:[%s9558_s14 + $0x1050] sm:$0xff] }
 0x1ff   : > { %8230 = vmatpush1.bf16.msra.mxu1 %v8229_v62  ;;  %8168 = vmatprep.subr.bf16.mxu0 %v8167_v3  ;;  %v1660_v21 = vadd.f32 %v1659_v13, %v1658_v15  ;;  %v6137_v62 = vld [vmem:[%s9822_s19 + $0xfb0] sm:$0xff]  ;;  %v6164_v3 = vld [vmem:[%s9558_s14 + $0x1008] sm:$0xff]  ;;  %v6174_v7 = vld [vmem:[%s9558_s14 + $0x1058] sm:$0xff]  ;;  %v8185_v8 = vpack.c.bf16 %v6143_v6, %v6135_v61 }
 0x200   : > { %8232 = vmatprep.subr.bf16.mxu1 %v8231_v10  ;;  %v8249_v9 = vpack.c.bf16 %v6145_v2, %v6137_v62  ;;  %v8251_v10 = vpack.c.bf16 %v6172_v4, %v6164_v3  ;;  %v6165_v13 = vld [vmem:[%s9558_s14 + $0x1010] sm:$0xff]  ;;  %v8315_v15 = vpack.c.bf16 %v6174_v7, %v6166_v5  ;;  %v6180_v17 = vld [vmem:[%s9558_s14 + $0x1088] sm:$0xff]  ;;  %v6195_v42 = vld [vmem:[%s9558_s14 + $0x1100] sm:$0xff] }
 0x201   : > { %v1662_v31 = vadd.f32 %v1661_v19, %v1660_v21  ;;  %v6188_v18 = vld [vmem:[%s9558_s14 + $0x10c8] sm:$0xff]  ;;  %v6182_v19 = vld [vmem:[%s9558_s14 + $0x1098] sm:$0xff]  ;;  %v8253_v21 = vpack.c.bf16 %v6171_v12, %v6163_v11  ;;  %v8317_v23 = vpack.c.bf16 %v6173_v16, %v6165_v13  ;;  %v6181_v28 = vld [vmem:[%s9558_s14 + $0x1090] sm:$0xff] }
 0x202   : > { %8170 = vmatpush1.bf16.msra.mxu0 %v8169_v51  ;;  %v8255_v24 = vpack.c.bf16 %v6188_v18, %v6180_v17  ;;  %v6204_v32 = vld [vmem:[%s9558_s14 + $0x1148] sm:$0xff]  ;;  %v8321_v40 = vpack.c.bf16 %v6189_v30, %v6181_v28  ;;  %v6203_v43 = vld [vmem:[%s9558_s14 + $0x1140] sm:$0xff]  ;;  %v6197_v44 = vld [vmem:[%s9558_s14 + $0x1110] sm:$0xff] }
 0x203   : > { %8234 = vmatpush1.bf16.msra.mxu1 %v8233_v20  ;;  %1663 = vadd.xlane.f32.xlu1 %v1662_v31  ;;  %v6190_v20 = vld [vmem:[%s9558_s14 + $0x10d8] sm:$0xff]  ;;  %v6196_v31 = vld [vmem:[%s9558_s14 + $0x1108] sm:$0xff]  ;;  %v6205_v45 = vld [vmem:[%s9558_s14 + $0x1150] sm:$0xff]  ;;  %v8261_v53 = vpack.c.bf16 %v6203_v43, %v6195_v42 }
 0x204   : > { %8172 = vmatprep.subr.bf16.mxu0 %v8171_v25  ;;  %8236 = vmatprep.subr.bf16.mxu1 %v8235_v27  ;;  %v6179_v25 = vld [vmem:[%s9558_s14 + $0x1080] sm:$0xff]  ;;  %v8319_v29 = vpack.c.bf16 %v6190_v20, %v6182_v19  ;;  %v6214_v50 = vld [vmem:[%s9558_s14 + $0x1198] sm:$0xff]  ;;  %v8325_v37 = vpack.c.bf16 %v6205_v45, %v6197_v44  ;;  %v6213_v26 = vld [vmem:[%s9558_s14 + $0x1190] sm:$0xff] }
 0x205   : > { %v6187_v27 = vld [vmem:[%s9558_s14 + $0x10c0] sm:$0xff]  ;;  %v6222_v52 = vld [vmem:[%s9558_s14 + $0x11d8] sm:$0xff]  ;;  %v6236_v61 = vld [vmem:[%s9558_s14 + $0x1248] sm:$0xff] }
 0x206   : > { %8174 = vmatpush1.bf16.msra.mxu0 %v8173_v35  ;;  %v10741_v35 = vld [vmem:[%s11971_s4] sm:$0x77]  ;;  %v8257_v39 = vpack.c.bf16 %v6187_v27, %v6179_v25  ;;  %v6230_v6 = vld [vmem:[%s9558_s14 + $0x1218] sm:$0xff]  ;;  %v6229_v7 = vld [vmem:[%s9558_s14 + $0x1210] sm:$0xff] }
 0x207   : > { %8238 = vmatpush1.bf16.msra.mxu1 %v8237_v36  ;;  %8176 = vmatprep.subr.bf16.mxu0 %v8175_v38  ;;  %v6198_v36 = vld [vmem:[%s9558_s14 + $0x1118] sm:$0xff]  ;;  %v6211_v56 = vld [vmem:[%s9558_s14 + $0x1180] sm:$0xff]  ;;  %v6252_v11 = vld [vmem:[%s9558_s14 + $0x12c8] sm:$0xff] }
 0x208   : > { %8240 = vmatprep.subr.bf16.mxu1 %v8239_v41  ;;  %v6206_v38 = vld [vmem:[%s9558_s14 + $0x1158] sm:$0xff]  ;;  %v8259_v41 = vpack.c.bf16 %v6204_v32, %v6196_v31  ;;  %v6219_v57 = vld [vmem:[%s9558_s14 + $0x11c0] sm:$0xff]  ;;  %v6253_v20 = vld [vmem:[%s9558_s14 + $0x12d0] sm:$0xff] }
 0x209   : > { %v8323_v0 = vpack.c.bf16 %v6206_v38, %v6198_v36  ;;  %v6238_v62 = vld [vmem:[%s9558_s14 + $0x1258] sm:$0xff]  ;;  %v6227_v4 = vld [vmem:[%s9558_s14 + $0x1200] sm:$0xff]  ;;  %v6261_v31 = vld [vmem:[%s9558_s14 + $0x1310] sm:$0xff] }
 0x20a   : > { %8178 = vmatpush1.bf16.msra.mxu0 %v8177_v47  ;;  %v6212_v47 = vld [vmem:[%s9558_s14 + $0x1188] sm:$0xff]  ;;  %v6235_v5 = vld [vmem:[%s9558_s14 + $0x1240] sm:$0xff]  ;;  %v6246_v12 = vld [vmem:[%s9558_s14 + $0x1298] sm:$0xff] }
 0x20b   : > { %8242 = vmatpush1.bf16.msra.mxu1 %v8241_v48  ;;  %8180 = vmatprep.subr.bf16.mxu0 %v8179_v49  ;;  %v6220_v48 = vld [vmem:[%s9558_s14 + $0x11c8] sm:$0xff]  ;;  %v6254_v13 = vld [vmem:[%s9558_s14 + $0x12d8] sm:$0xff]  ;;  %v6243_v17 = vld [vmem:[%s9558_s14 + $0x1280] sm:$0xff] }
 0x20c   : > { %8244 = vmatprep.subr.bf16.mxu1 %v8243_v54  ;;  %v8263_v55 = vpack.c.bf16 %v6220_v48, %v6212_v47  ;;  %v6251_v18 = vld [vmem:[%s9558_s14 + $0x12c0] sm:$0xff]  ;;  %v8335_v19 = vpack.c.bf16 %v6254_v13, %v6246_v12  ;;  %v6269_v36 = vld [vmem:[%s9558_s14 + $0x1350] sm:$0xff]  ;;  %v6276_v38 = vld [vmem:[%s9558_s14 + $0x1388] sm:$0xff] }
 0x20d   : > { %v8273_v25 = vpack.c.bf16 %v6251_v18, %v6243_v17  ;;  %v6267_v30 = vld [vmem:[%s9558_s14 + $0x1340] sm:$0xff]  ;;  %v6278_v42 = vld [vmem:[%s9558_s14 + $0x1398] sm:$0xff]  ;;  %v6309_v17 = vld [vmem:[%s9558_s14 + $0x1490] sm:$0xff] }
 0x20e   : > { %8182 = vmatpush1.bf16.msra.mxu0 %v8181_v58  ;;  %v8327_v58 = vpack.c.bf16 %v6222_v52, %v6214_v50  ;;  %v6286_v43 = vld [vmem:[%s9558_s14 + $0x13d8] sm:$0xff]  ;;  %v6275_v52 = vld [vmem:[%s9558_s14 + $0x1380] sm:$0xff]  ;;  %v6317_v18 = vld [vmem:[%s9558_s14 + $0x14d0] sm:$0xff] }
 0x20f   : > { %8246 = vmatpush1.bf16.msra.mxu1 %v8245_v59  ;;  %8184 = vmatprep.subr.bf16.mxu0 %v8183_v60  ;;  %v6221_v59 = vld [vmem:[%s9558_s14 + $0x11d0] sm:$0xff]  ;;  %v6228_v60 = vld [vmem:[%s9558_s14 + $0x1208] sm:$0xff]  ;;  %v6307_v12 = vld [vmem:[%s9558_s14 + $0x1480] sm:$0xff] }
 0x210   : > { %v1608_v14 = vpop.xlane.xlu0 %1607  ;;  %8248 = vmatprep.subr.bf16.mxu1 %v8247_v63  ;;  %v8265_v63 = vpack.c.bf16 %v6219_v57, %v6211_v56  ;;  %v8329_v2 = vpack.c.bf16 %v6221_v59, %v6213_v26  ;;  %v8267_v3 = vpack.c.bf16 %v6236_v61, %v6228_v60  ;;  %v6292_v56 = vld [vmem:[%s9558_s14 + $0x1408] sm:$0xff]  ;;  %v6294_v26 = vld [vmem:[%s9558_s14 + $0x1418] sm:$0xff]  ;;  %v6155_v59 = vld [vmem:[%s10180_s30 + $0x20] sm:$0x77] }
 0x211   : > { %v1609_v51 = vrot.slane %v1608_v14, 4  ;;  %v6300_v57 = vld [vmem:[%s9558_s14 + $0x1448] sm:$0xff]  ;;  %v2826_v13 = vcombine.high %v6155_v59, %v6155_v59 }
 0x212   : > { %8186 = vmatpush1.bf16.msra.mxu0 %v8185_v8  ;;  %v8331_v8 = vpack.c.bf16 %v6238_v62, %v6230_v6  ;;  %v8283_v6 = vpack.c.bf16 %v6300_v57, %v6292_v56  ;;  %v6291_v62 = vld [vmem:[%s9558_s14 + $0x1400] sm:$0xff] }
 0x213   : > { %v1610_v22 = vadd.f32 %v1609_v51, %v1608_v14  ;;  %8250 = vmatpush1.bf16.msra.mxu1 %v8249_v9  ;;  %8252 = vmatprep.subr.bf16.mxu0 %v8251_v10  ;;  %v6237_v9 = vld [vmem:[%s9558_s14 + $0x1250] sm:$0xff]  ;;  %v6244_v10 = vld [vmem:[%s9558_s14 + $0x1288] sm:$0xff]  ;;  %v8269_v14 = vpack.c.bf16 %v6235_v5, %v6227_v4  ;;  %v6339_v56 = vld [vmem:[%s9558_s14 + $0x1580] sm:$0xff] }
 0x214   : > { %8316 = vmatprep.subr.bf16.mxu1 %v8315_v15  ;;  %v8333_v15 = vpack.c.bf16 %v6237_v9, %v6229_v7  ;;  %v8271_v16 = vpack.c.bf16 %v6252_v11, %v6244_v10  ;;  %v6245_v51 = vld [vmem:[%s9558_s14 + $0x1290] sm:$0xff]  ;;  %v6308_v5 = vld [vmem:[%s9558_s14 + $0x1488] sm:$0xff]  ;;  %v6318_v9 = vld [vmem:[%s9558_s14 + $0x14d8] sm:$0xff] }
 0x215   : > { %v1611_v33 = vrot.slane %v1610_v22, 2  ;;  %2690 = vmatmul.mubr.f32.vlgmr.msra.gmra.mrb[14].mxu0 %v10741_v35  ;;  %v8337_v27 = vpack.c.bf16 %v6253_v20, %v6245_v51  ;;  %v6301_v4 = vld [vmem:[%s9558_s14 + $0x1450] sm:$0xff]  ;;  %v6316_v7 = vld [vmem:[%s9558_s14 + $0x14c8] sm:$0xff]  ;;  %v6347_v57 = vld [vmem:[%s9558_s14 + $0x15c0] sm:$0xff] }
 0x216   : > { %2761 = vmatmul.mubr.f32.vlgmr.msra.gmra.mrb[14].mxu1 %v10741_v35  ;;  %8254 = vmatpush1.bf16.msra.mxu0 %v8253_v21  ;;  %v6260_v21 = vld [vmem:[%s9558_s14 + $0x1308] sm:$0xff] }
 0x217   : > { %8318 = vmatpush1.bf16.msra.mxu1 %v8317_v23  ;;  %8256 = vmatprep.subr.bf16.mxu0 %v8255_v24  ;;  %v1612_v46 = vadd.f32 %v1611_v33, %v1610_v22  ;;  %v6268_v22 = vld [vmem:[%s9558_s14 + $0x1348] sm:$0xff]  ;;  %v6262_v23 = vld [vmem:[%s9558_s14 + $0x1318] sm:$0xff] }
 0x218   : > { %8320 = vmatprep.subr.bf16.mxu1 %v8319_v29  ;;  %3257 = vmatprep.mubr.f32.mxu0 %v9545_v1  ;;  %v6270_v24 = vld [vmem:[%s9558_s14 + $0x1358] sm:$0xff]  ;;  %v8275_v28 = vpack.c.bf16 %v6268_v22, %v6260_v21  ;;  %v6259_v29 = vld [vmem:[%s9558_s14 + $0x1300] sm:$0xff]  ;;  %v6156_v10 = vld [vmem:[%s10180_s30 + $0x28] sm:$0x77] }
 0x219   : > { %v1613_v49 = vrot.slane %v1612_v46, 1  ;;  %3328 = vmatprep.mubr.f32.mxu1 %v9545_v1  ;;  %v8339_v33 = vpack.c.bf16 %v6270_v24, %v6262_v23  ;;  %v8277_v47 = vpack.c.bf16 %v6267_v30, %v6259_v29  ;;  %v6332_v20 = vld [vmem:[%s9558_s14 + $0x1548] sm:$0xff]  ;;  %v2827_v22 = vcombine.high %v6156_v10, %v6156_v10  ;;  %v6326_v23 = vld [vmem:[%s9558_s14 + $0x1518] sm:$0xff] }
 0x21a   : > { %8258 = vmatpush1.bf16.msra.mxu0 %v8257_v39  ;;  %v6284_v39 = vld [vmem:[%s9558_s14 + $0x13c8] sm:$0xff]  ;;  %v6334_v24 = vld [vmem:[%s9558_s14 + $0x1558] sm:$0xff]  ;;  %v8353_v29 = vpack.c.bf16 %v6317_v18, %v6309_v17 }
 0x21b   : > { %8322 = vmatpush1.bf16.msra.mxu1 %v8321_v40  ;;  %v1614_v54 = vadd.f32 %v1613_v49, %v1612_v46  ;;  %8260 = vmatprep.subr.bf16.mxu0 %v8259_v41  ;;  %v8341_v49 = vpack.c.bf16 %v6269_v36, %v6261_v31  ;;  %v8279_v50 = vpack.c.bf16 %v6284_v39, %v6276_v38  ;;  %v6323_v36 = vld [vmem:[%s9558_s14 + $0x1500] sm:$0xff]  ;;  %v6325_v39 = vld [vmem:[%s9558_s14 + $0x1510] sm:$0xff]  ;;  %v6380_v17 = vld [vmem:[%s9558_s14 + $0x16c8] sm:$0xff] }
 0x21c   : > { %8324 = vmatprep.subr.bf16.mxu1 %v8323_v0  ;;  %v6331_v38 = vld [vmem:[%s9558_s14 + $0x1540] sm:$0xff] }
 0x21d   : > { %9275 = vpush %v1614_v54  ;;  %v6277_v54 = vld [vmem:[%s9558_s14 + $0x1390] sm:$0xff] }
 0x21e   : > { %8262 = vmatpush1.bf16.msra.mxu0 %v8261_v53  ;;  %v6283_v53 = vld [vmem:[%s9558_s14 + $0x13c0] sm:$0xff] }
 0x21f   : > { %8326 = vmatpush1.bf16.msra.mxu1 %v8325_v37  ;;  %8264 = vmatprep.subr.bf16.mxu0 %v8263_v55  ;;  %v8343_v37 = vpack.c.bf16 %v6286_v43, %v6278_v42  ;;  %v6285_v55 = vld [vmem:[%s9558_s14 + $0x13d0] sm:$0xff]  ;;  %v8281_v60 = vpack.c.bf16 %v6283_v53, %v6275_v52  ;;  %v8355_v42 = vpack.c.bf16 %v6334_v24, %v6326_v23  ;;  %v6371_v23 = vld [vmem:[%s9558_s14 + $0x1680] sm:$0xff] }
 0x220   : > { %8328 = vmatprep.subr.bf16.mxu1 %v8327_v58  ;;  %v6302_v58 = vld [vmem:[%s9558_s14 + $0x1458] sm:$0xff]  ;;  %v8345_v61 = vpack.c.bf16 %v6285_v55, %v6277_v54  ;;  %v6333_v43 = vld [vmem:[%s9558_s14 + $0x1550] sm:$0xff]  ;;  %v8293_v53 = vpack.c.bf16 %v6331_v38, %v6323_v36  ;;  %v6379_v24 = vld [vmem:[%s9558_s14 + $0x16c0] sm:$0xff] }
 0x222   : > { %8266 = vmatpush1.bf16.msra.mxu0 %v8265_v63  ;;  %v6299_v63 = vld [vmem:[%s9558_s14 + $0x1440] sm:$0xff] }
 0x223   : > { %8330 = vmatpush1.bf16.msra.mxu1 %v8329_v2  ;;  %8268 = vmatprep.subr.bf16.mxu0 %v8267_v3  ;;  %v6293_v2 = vld [vmem:[%s9558_s14 + $0x1410] sm:$0xff]  ;;  %v8347_v3 = vpack.c.bf16 %v6302_v58, %v6294_v26  ;;  %v8285_v11 = vpack.c.bf16 %v6299_v63, %v6291_v62  ;;  %v6364_v62 = vld [vmem:[%s9558_s14 + $0x1648] sm:$0xff] }
 0x224   : > { %8332 = vmatprep.subr.bf16.mxu1 %v8331_v8  ;;  %v6310_v8 = vld [vmem:[%s9558_s14 + $0x1498] sm:$0xff]  ;;  %v6341_v26 = vld [vmem:[%s9558_s14 + $0x1590] sm:$0xff] }
 0x225   : > { %v8351_v51 = vpack.c.bf16 %v6318_v9, %v6310_v8 }
 0x226   : > { %8270 = vmatpush1.bf16.msra.mxu0 %v8269_v14  ;;  %v8349_v14 = vpack.c.bf16 %v6301_v4, %v6293_v2  ;;  %v6366_v4 = vld [vmem:[%s9558_s14 + $0x1658] sm:$0xff] }
 0x227   : > { %8334 = vmatpush1.bf16.msra.mxu1 %v8333_v15  ;;  %8272 = vmatprep.subr.bf16.mxu0 %v8271_v16  ;;  %v8287_v15 = vpack.c.bf16 %v6316_v7, %v6308_v5  ;;  %v6315_v16 = vld [vmem:[%s9558_s14 + $0x14c0] sm:$0xff]  ;;  %v8297_v7 = vpack.c.bf16 %v6347_v57, %v6339_v56  ;;  %v6176_v56 = vld [vmem:[%s9558_s14 + $0x1068] sm:$0xff]  ;;  %v6170_v57 = vld [vmem:[%s9558_s14 + $0x1038] sm:$0xff] }
 0x228   : > { %v2000_v32 = vpop.f32.mrb[8].mxu0  ;;  %8336 = vmatprep.subr.bf16.mxu1 %v8335_v19  ;;  %v6324_v19 = vld [vmem:[%s9558_s14 + $0x1508] sm:$0xff] }
 0x229   : > { %v2001_v40 = vadd.f32 %v2000_v32, %v10160_v34  ;;  %v2002_v46 = vpop.f32.mrb[9].mxu0  ;;  %v2071_v41 = vpop.f32.mrb[8].mxu1 }
 0x22a   : > { %v2003_v44 = vadd.f32 %v2002_v46, %v10160_v34  ;;  %8274 = vmatpush1.bf16.msra.mxu0 %v8273_v25  ;;  %v2072_v0 = vadd.f32 %v2071_v41, %v10160_v34  ;;  %v2073_v45 = vpop.f32.mrb[9].mxu1 }
 0x22b   : > { %9366 = vtanh.f32 %v2001_v40  ;;  %8338 = vmatpush1.bf16.msra.mxu1 %v8337_v27  ;;  %v2074_v48 = vadd.f32 %v2073_v45, %v10160_v34  ;;  %8276 = vmatprep.subr.bf16.mxu0 %v8275_v28  ;;  %v8289_v28 = vpack.c.bf16 %v6315_v16, %v6307_v12  ;;  %v6363_v12 = vld [vmem:[%s9558_s14 + $0x1640] sm:$0xff]  ;;  %v6372_v16 = vld [vmem:[%s9558_s14 + $0x1688] sm:$0xff] }
 0x22c   : > { %9368 = vtanh.f32 %v2003_v44  ;;  %8340 = vmatprep.subr.bf16.mxu1 %v8339_v33  ;;  %v8291_v33 = vpack.c.bf16 %v6332_v20, %v6324_v19  ;;  %v6340_v44 = vld [vmem:[%s9558_s14 + $0x1588] sm:$0xff]  ;;  %v6382_v19 = vld [vmem:[%s9558_s14 + $0x16d8] sm:$0xff] }
 0x22d   : > { %9370 = vtanh.f32 %v2072_v0  ;;  %v6348_v0 = vld [vmem:[%s9558_s14 + $0x15c8] sm:$0xff] }
 0x22e   : > { %9372 = vtanh.f32 %v2074_v48  ;;  %8278 = vmatpush1.bf16.msra.mxu0 %v8277_v47  ;;  %v8295_v55 = vpack.c.bf16 %v6348_v0, %v6340_v44  ;;  %v6412_v44 = vld [vmem:[%s9558_s14 + $0x17c8] sm:$0xff]  ;;  %v6406_v0 = vld [vmem:[%s9558_s14 + $0x1798] sm:$0xff] }
 0x22f   : > { %8342 = vmatpush1.bf16.msra.mxu1 %v8341_v49  ;;  %8280 = vmatprep.subr.bf16.mxu0 %v8279_v50  ;;  %v6342_v49 = vld [vmem:[%s9558_s14 + $0x1598] sm:$0xff] }
 0x230   : > { %8344 = vmatprep.subr.bf16.mxu1 %v8343_v37  ;;  %v6350_v50 = vld [vmem:[%s9558_s14 + $0x15d8] sm:$0xff]  ;;  %v8357_v37 = vpack.c.bf16 %v6333_v43, %v6325_v39  ;;  %v6387_v39 = vld [vmem:[%s9558_s14 + $0x1700] sm:$0xff]  ;;  %v6404_v43 = vld [vmem:[%s9558_s14 + $0x1788] sm:$0xff] }
 0x232   : > { %8282 = vmatpush1.bf16.msra.mxu0 %v8281_v60  ;;  %v8359_v60 = vpack.c.bf16 %v6350_v50, %v6342_v49  ;;  %v8311_v49 = vpack.c.bf16 %v6412_v44, %v6404_v43  ;;  %v6403_v50 = vld [vmem:[%s9558_s14 + $0x1780] sm:$0xff]  ;;  %v6240_v43 = vld [vmem:[%s9558_s14 + $0x1268] sm:$0xff]  ;;  %v6234_v44 = vld [vmem:[%s9558_s14 + $0x1238] sm:$0xff] }
 0x233   : > { %8346 = vmatpush1.bf16.msra.mxu1 %v8345_v61  ;;  %8284 = vmatprep.subr.bf16.mxu0 %v8283_v6  ;;  %v6349_v61 = vld [vmem:[%s9558_s14 + $0x15d0] sm:$0xff]  ;;  %v6356_v6 = vld [vmem:[%s9558_s14 + $0x1608] sm:$0xff] }
 0x234   : > { %8348 = vmatprep.subr.bf16.mxu1 %v8347_v3  ;;  %v6358_v3 = vld [vmem:[%s9558_s14 + $0x1618] sm:$0xff]  ;;  %v8361_v9 = vpack.c.bf16 %v6349_v61, %v6341_v26  ;;  %v6167_v61 = vld [vmem:[%s9558_s14 + $0x1020] sm:$0xff] }
 0x235   : > { %v9367_v21 = vpop.eup %9366  ;;  %v6178_v26 = vld [vmem:[%s9558_s14 + $0x1078] sm:$0xff] }
 0x236   : > { %v9369_v25 = vpop.eup %9368  ;;  %v2834_v27 = vsub.f32 %v9367_v21, %v6155_v59  ;;  %8286 = vmatpush1.bf16.msra.mxu0 %v8285_v11  ;;  %v6355_v11 = vld [vmem:[%s9558_s14 + $0x1600] sm:$0xff] }
 0x237   : > { %v9371_v30 = vpop.eup %9370  ;;  %v2783_v31 = vcombine.low %v9367_v21, %v9369_v25  ;;  %v2835_v32 = vsub.f32 %v9369_v25, %v2826_v13  ;;  %8350 = vmatpush1.bf16.msra.mxu1 %v8349_v14  ;;  %8288 = vmatprep.subr.bf16.mxu0 %v8287_v15  ;;  %v6357_v13 = vld [vmem:[%s9558_s14 + $0x1610] sm:$0xff]  ;;  %v8363_v14 = vpack.c.bf16 %v6366_v4, %v6358_v3  ;;  %v6184_v3 = vld [vmem:[%s9558_s14 + $0x10a8] sm:$0xff] }
 0x238   : > { %v9373_v40 = vpop.eup %9372  ;;  %v2842_v46 = vand.u32 2147483647, %v2834_v27  ;;  %v2836_v41 = vsub.f32 %v9371_v30, %v6156_v10  ;;  %8352 = vmatprep.subr.bf16.mxu1 %v8351_v51  ;;  %v8299_v10 = vpack.c.bf16 %v6364_v62, %v6356_v6  ;;  %v6365_v15 = vld [vmem:[%s9558_s14 + $0x1650] sm:$0xff]  ;;  %v6374_v51 = vld [vmem:[%s9558_s14 + $0x1698] sm:$0xff]  ;;  %v8301_v20 = vpack.c.bf16 %v6363_v12, %v6355_v11  ;;  %v6175_v6 = vld [vmem:[%s9558_s14 + $0x1060] sm:$0xff] }
 0x239   : > { %6147 = vst [vmem:[%s10213_s11 + $0x20] sm:$0x77] %v2783_v31  ;;  %v2843_v45 = vand.u32 2147483647, %v2835_v32  ;;  %v2784_v47 = vcombine.low %v9371_v30, %v9373_v40  ;;  %v2837_v48 = vsub.f32 %v9373_v40, %v2827_v22  ;;  %v8365_v21 = vpack.c.bf16 %v6365_v15, %v6357_v13  ;;  %v6373_v25 = vld [vmem:[%s9558_s14 + $0x1690] sm:$0xff]  ;;  %v6396_v30 = vld [vmem:[%s9558_s14 + $0x1748] sm:$0xff] }
 0x23a   : > { %v2844_v52 = vand.u32 2147483647, %v2836_v41  ;;  %8290 = vmatpush1.bf16.msra.mxu0 %v8289_v28  ;;  %v2850_v54 = vsel %vm1591_vm0, %v2842_v46, 0.0  ;;  %v8303_v22 = vpack.c.bf16 %v6380_v17, %v6372_v16  ;;  %v8367_v27 = vpack.c.bf16 %v6382_v19, %v6374_v51  ;;  %v6381_v28 = vld [vmem:[%s9558_s14 + $0x16d0] sm:$0xff]  ;;  %v6390_v31 = vld [vmem:[%s9558_s14 + $0x1718] sm:$0xff]  ;;  %v6395_v40 = vld [vmem:[%s9558_s14 + $0x1740] sm:$0xff] }
 0x23b   : > { %6148 = vst [vmem:[%s10213_s11 + $0x28] sm:$0x77] %v2784_v47  ;;  %8354 = vmatpush1.bf16.msra.mxu1 %v8353_v29  ;;  %8292 = vmatprep.subr.bf16.mxu0 %v8291_v33  ;;  %v2845_v58 = vand.u32 2147483647, %v2837_v48  ;;  %v2851_v59 = vsel %vm1591_vm0, %v2843_v45, 0.0  ;;  %v6388_v29 = vld [vmem:[%s9558_s14 + $0x1708] sm:$0xff]  ;;  %v8305_v33 = vpack.c.bf16 %v6379_v24, %v6371_v23  ;;  %v8369_v36 = vpack.c.bf16 %v6381_v28, %v6373_v25 }
 0x23c   : > { %8356 = vmatprep.subr.bf16.mxu1 %v8355_v42  ;;  %v2852_v63 = vadd.f32 %v2851_v59, %v2850_v54  ;;  %v2853_v2 = vsel %vm1591_vm0, %v2844_v52, 0.0  ;;  %v6398_v32 = vld [vmem:[%s9558_s14 + $0x1758] sm:$0xff]  ;;  %v8307_v38 = vpack.c.bf16 %v6396_v30, %v6388_v29  ;;  %v6389_v46 = vld [vmem:[%s9558_s14 + $0x1710] sm:$0xff]  ;;  %v8309_v47 = vpack.c.bf16 %v6395_v40, %v6387_v39  ;;  %v6411_v52 = vld [vmem:[%s9558_s14 + $0x17c0] sm:$0xff] }
 0x23d   : > { %v2855_v5 = vsel %vm1591_vm0, %v2845_v58, 0.0  ;;  %v8371_v41 = vpack.c.bf16 %v6398_v32, %v6390_v31  ;;  %v6397_v42 = vld [vmem:[%s9558_s14 + $0x1750] sm:$0xff]  ;;  %v6414_v45 = vld [vmem:[%s9558_s14 + $0x17d8] sm:$0xff]  ;;  %v8313_v58 = vpack.c.bf16 %v6411_v52, %v6403_v50  ;;  %v6192_v4 = vld [vmem:[%s9558_s14 + $0x10e8] sm:$0xff] }
 0x23e   : > { %8294 = vmatpush1.bf16.msra.mxu0 %v8293_v53  ;;  %v2854_v8 = vadd.f32 %v2853_v2, %v2852_v63  ;;  %v8373_v48 = vpack.c.bf16 %v6397_v42, %v6389_v46  ;;  %v6405_v53 = vld [vmem:[%s9558_s14 + $0x1790] sm:$0xff]  ;;  %v8375_v54 = vpack.c.bf16 %v6414_v45, %v6406_v0  ;;  %v8443_v63 = vpack.c.bf16 %v6178_v26, %v6170_v57  ;;  %v6183_v11 = vld [vmem:[%s9558_s14 + $0x10a0] sm:$0xff]  ;;  %v6200_v16 = vld [vmem:[%s9558_s14 + $0x1128] sm:$0xff] }
 0x23f   : > { %8358 = vmatpush1.bf16.msra.mxu1 %v8357_v37  ;;  %8296 = vmatprep.subr.bf16.mxu0 %v8295_v55  ;;  %v6413_v37 = vld [vmem:[%s9558_s14 + $0x17d0] sm:$0xff]  ;;  %v6168_v55 = vld [vmem:[%s9558_s14 + $0x1028] sm:$0xff]  ;;  %v6191_v12 = vld [vmem:[%s9558_s14 + $0x10e0] sm:$0xff] }
 0x240   : > { %8360 = vmatprep.subr.bf16.mxu1 %v8359_v60  ;;  %v10847_v18 = vadd.f32 %v2855_v5, %v2854_v8  ;;  %v8377_v59 = vpack.c.bf16 %v6413_v37, %v6405_v53  ;;  %v8379_v60 = vpack.c.bf16 %v6176_v56, %v6168_v55  ;;  %v6169_v62 = vld [vmem:[%s9558_s14 + $0x1030] sm:$0xff]  ;;  %v6186_v5 = vld [vmem:[%s9558_s14 + $0x10b8] sm:$0xff]  ;;  %v8381_v8 = vpack.c.bf16 %v6175_v6, %v6167_v61  ;;  %v6208_v17 = vld [vmem:[%s9558_s14 + $0x1168] sm:$0xff] }
 0x241   : > { %v6177_v2 = vld [vmem:[%s9558_s14 + $0x1070] sm:$0xff]  ;;  %v6202_v51 = vld [vmem:[%s9558_s14 + $0x1138] sm:$0xff]  ;;  %v6199_v23 = vld [vmem:[%s9558_s14 + $0x1120] sm:$0xff] }
 0x242   : > { %8298 = vmatpush1.bf16.msra.mxu0 %v8297_v7  ;;  %v6194_v7 = vld [vmem:[%s9558_s14 + $0x10f8] sm:$0xff]  ;;  %v6185_v13 = vld [vmem:[%s9558_s14 + $0x10b0] sm:$0xff]  ;;  %v6207_v24 = vld [vmem:[%s9558_s14 + $0x1160] sm:$0xff] }
 0x243   : > { %8362 = vmatpush1.bf16.msra.mxu1 %v8361_v9  ;;  %8300 = vmatprep.subr.bf16.mxu0 %v8299_v10  ;;  %v8445_v9 = vpack.c.bf16 %v6177_v2, %v6169_v62  ;;  %v8383_v10 = vpack.c.bf16 %v6192_v4, %v6184_v3  ;;  %v6193_v15 = vld [vmem:[%s9558_s14 + $0x10f0] sm:$0xff]  ;;  %v6210_v19 = vld [vmem:[%s9558_s14 + $0x1178] sm:$0xff]  ;;  %v6216_v29 = vld [vmem:[%s9558_s14 + $0x11a8] sm:$0xff]  ;;  %v8389_v32 = vpack.c.bf16 %v6207_v24, %v6199_v23 }
 0x244   : > { %8364 = vmatprep.subr.bf16.mxu1 %v8363_v14  ;;  %v8447_v14 = vpack.c.bf16 %v6194_v7, %v6186_v5  ;;  %v6201_v25 = vld [vmem:[%s9558_s14 + $0x1130] sm:$0xff]  ;;  %v6224_v30 = vld [vmem:[%s9558_s14 + $0x11e8] sm:$0xff]  ;;  %v6226_v31 = vld [vmem:[%s9558_s14 + $0x11f8] sm:$0xff] }
 0x245   : > { %v6209_v28 = vld [vmem:[%s9558_s14 + $0x1170] sm:$0xff]  ;;  %v6223_v39 = vld [vmem:[%s9558_s14 + $0x11e0] sm:$0xff]  ;;  %v6232_v42 = vld [vmem:[%s9558_s14 + $0x1228] sm:$0xff] }
 0x246   : > { %8302 = vmatpush1.bf16.msra.mxu0 %v8301_v20  ;;  %v8385_v20 = vpack.c.bf16 %v6191_v12, %v6183_v11  ;;  %v6217_v40 = vld [vmem:[%s9558_s14 + $0x11b0] sm:$0xff]  ;;  %v6242_v0 = vld [vmem:[%s9558_s14 + $0x1278] sm:$0xff]  ;;  %v6239_v50 = vld [vmem:[%s9558_s14 + $0x1260] sm:$0xff] }
 0x247   : > { %8366 = vmatpush1.bf16.msra.mxu1 %v8365_v21  ;;  %8304 = vmatprep.subr.bf16.mxu0 %v8303_v22  ;;  %v8449_v21 = vpack.c.bf16 %v6193_v15, %v6185_v13  ;;  %v8387_v22 = vpack.c.bf16 %v6208_v17, %v6200_v16  ;;  %v6233_v52 = vld [vmem:[%s9558_s14 + $0x1230] sm:$0xff]  ;;  %v8459_v53 = vpack.c.bf16 %v6242_v0, %v6234_v44  ;;  %v6248_v37 = vld [vmem:[%s9558_s14 + $0x12a8] sm:$0xff]  ;;  %v6250_v56 = vld [vmem:[%s9558_s14 + $0x12b8] sm:$0xff] }
 0x248   : > { %8368 = vmatprep.subr.bf16.mxu1 %v8367_v27  ;;  %v8451_v27 = vpack.c.bf16 %v6210_v19, %v6202_v51  ;;  %v6256_v55 = vld [vmem:[%s9558_s14 + $0x12e8] sm:$0xff]  ;;  %v6258_v57 = vld [vmem:[%s9558_s14 + $0x12f8] sm:$0xff]  ;;  %v6255_v61 = vld [vmem:[%s9558_s14 + $0x12e0] sm:$0xff] }
 0x249   : > { %v6249_v6 = vld [vmem:[%s9558_s14 + $0x12b0] sm:$0xff]  ;;  %v8463_v62 = vpack.c.bf16 %v6258_v57, %v6250_v56  ;;  %v6264_v2 = vld [vmem:[%s9558_s14 + $0x1328] sm:$0xff]  ;;  %v6266_v4 = vld [vmem:[%s9558_s14 + $0x1338] sm:$0xff] }
 0x24a   : > { %8306 = vmatpush1.bf16.msra.mxu0 %v8305_v33  ;;  %v8453_v33 = vpack.c.bf16 %v6209_v28, %v6201_v25  ;;  %v6272_v3 = vld [vmem:[%s9558_s14 + $0x1368] sm:$0xff]  ;;  %v6274_v5 = vld [vmem:[%s9558_s14 + $0x1378] sm:$0xff]  ;;  %v6271_v11 = vld [vmem:[%s9558_s14 + $0x1360] sm:$0xff] }
 0x24b   : > { %8370 = vmatpush1.bf16.msra.mxu1 %v8369_v36  ;;  %8308 = vmatprep.subr.bf16.mxu0 %v8307_v38  ;;  %v8391_v36 = vpack.c.bf16 %v6224_v30, %v6216_v29  ;;  %v6215_v38 = vld [vmem:[%s9558_s14 + $0x11a0] sm:$0xff]  ;;  %v6265_v12 = vld [vmem:[%s9558_s14 + $0x1330] sm:$0xff]  ;;  %v6280_v16 = vld [vmem:[%s9558_s14 + $0x13a8] sm:$0xff] }
 0x24c   : > { %8372 = vmatprep.subr.bf16.mxu1 %v8371_v41  ;;  %v6225_v41 = vld [vmem:[%s9558_s14 + $0x11f0] sm:$0xff]  ;;  %v8393_v45 = vpack.c.bf16 %v6223_v39, %v6215_v38  ;;  %v6288_v17 = vld [vmem:[%s9558_s14 + $0x13e8] sm:$0xff]  ;;  %v6303_v0 = vld [vmem:[%s9558_s14 + $0x1460] sm:$0xff] }
 0x24d   : > { %v6273_v15 = vld [vmem:[%s9558_s14 + $0x1370] sm:$0xff]  ;;  %v8407_v30 = vpack.c.bf16 %v6288_v17, %v6280_v16  ;;  %v6296_v38 = vld [vmem:[%s9558_s14 + $0x1428] sm:$0xff]  ;;  %v6158_v56 = vld [vmem:[%s10180_s30 + $0x38] sm:$0x77] }
 0x24e   : > { %8310 = vmatpush1.bf16.msra.mxu0 %v8309_v47  ;;  %v8457_v47 = vpack.c.bf16 %v6225_v41, %v6217_v40  ;;  %v8469_v29 = vpack.c.bf16 %v6273_v15, %v6265_v12  ;;  %v6304_v39 = vld [vmem:[%s9558_s14 + $0x1468] sm:$0xff]  ;;  %v6298_v40 = vld [vmem:[%s9558_s14 + $0x1438] sm:$0xff]  ;;  %v6335_v15 = vld [vmem:[%s9558_s14 + $0x1560] sm:$0xff] }
 0x24f   : > { %8374 = vmatpush1.bf16.msra.mxu1 %v8373_v48  ;;  %8312 = vmatprep.subr.bf16.mxu0 %v8311_v49  ;;  %v8395_v48 = vpack.c.bf16 %v6240_v43, %v6232_v42  ;;  %v6231_v49 = vld [vmem:[%s9558_s14 + $0x1220] sm:$0xff]  ;;  %v8411_v44 = vpack.c.bf16 %v6304_v39, %v6296_v38  ;;  %v6329_v16 = vld [vmem:[%s9558_s14 + $0x1530] sm:$0xff] }
 0x250   : > { %8376 = vmatprep.subr.bf16.mxu1 %v8375_v54  ;;  %v6241_v54 = vld [vmem:[%s9558_s14 + $0x1270] sm:$0xff]  ;;  %v8397_v26 = vpack.c.bf16 %v6239_v50, %v6231_v49  ;;  %v6295_v42 = vld [vmem:[%s9558_s14 + $0x1420] sm:$0xff]  ;;  %v6312_v49 = vld [vmem:[%s9558_s14 + $0x14a8] sm:$0xff] }
 0x251   : > { %v6320_v50 = vld [vmem:[%s9558_s14 + $0x14e8] sm:$0xff]  ;;  %v6337_v17 = vld [vmem:[%s9558_s14 + $0x1570] sm:$0xff]  ;;  %v6343_v38 = vld [vmem:[%s9558_s14 + $0x15a0] sm:$0xff] }
 0x252   : > { %8314 = vmatpush1.bf16.msra.mxu0 %v8313_v58  ;;  %v8461_v58 = vpack.c.bf16 %v6241_v54, %v6233_v52  ;;  %v6157_v52 = vld [vmem:[%s10180_s30 + $0x30] sm:$0x77]  ;;  %v6322_v54 = vld [vmem:[%s9558_s14 + $0x14f8] sm:$0xff]  ;;  %v6351_v39 = vld [vmem:[%s9558_s14 + $0x15e0] sm:$0xff] }
 0x253   : > { %8378 = vmatpush1.bf16.msra.mxu1 %v8377_v59  ;;  %8380 = vmatprep.subr.bf16.mxu0 %v8379_v60  ;;  %v8399_v59 = vpack.c.bf16 %v6256_v55, %v6248_v37  ;;  %v6247_v60 = vld [vmem:[%s9558_s14 + $0x12a0] sm:$0xff]  ;;  %v8413_v37 = vpack.c.bf16 %v6303_v0, %v6295_v42 }
 0x254   : > { %8444 = vmatprep.subr.bf16.mxu1 %v8443_v63  ;;  %v6257_v63 = vld [vmem:[%s9558_s14 + $0x12f0] sm:$0xff]  ;;  %v8401_v7 = vpack.c.bf16 %v6255_v61, %v6247_v60  ;;  %v6311_v55 = vld [vmem:[%s9558_s14 + $0x14a0] sm:$0xff]  ;;  %v2828_v61 = vcombine.high %v6157_v52, %v6157_v52 }
 0x255   : > { %3258 = vmatmul.mubr.f32.vlgmr.msra.gmra.mrb[16].mxu0 %v10741_v35  ;;  %v6321_v60 = vld [vmem:[%s9558_s14 + $0x14f0] sm:$0xff] }
 0x256   : > { %3329 = vmatmul.mubr.f32.vlgmr.msra.gmra.mrb[16].mxu1 %v10741_v35  ;;  %8382 = vmatpush1.bf16.msra.mxu0 %v8381_v8  ;;  %v6218_v35 = vld [vmem:[%s9558_s14 + $0x11b8] sm:$0xff]  ;;  %v8465_v8 = vpack.c.bf16 %v6257_v63, %v6249_v6  ;;  %v6336_v63 = vld [vmem:[%s9558_s14 + $0x1568] sm:$0xff] }
 0x257   : > { %8446 = vmatpush1.bf16.msra.mxu1 %v8445_v9  ;;  %8384 = vmatprep.subr.bf16.mxu0 %v8383_v10  ;;  %v8455_v46 = vpack.c.bf16 %v6226_v31, %v6218_v35  ;;  %v8403_v9 = vpack.c.bf16 %v6272_v3, %v6264_v2  ;;  %v6263_v10 = vld [vmem:[%s9558_s14 + $0x1320] sm:$0xff]  ;;  %v6330_v3 = vld [vmem:[%s9558_s14 + $0x1538] sm:$0xff] }
 0x258   : > { %8448 = vmatprep.subr.bf16.mxu1 %v8447_v14  ;;  %3399 = vmatprep.mubr.f32.mxu0 %v9545_v1  ;;  %v8467_v14 = vpack.c.bf16 %v6274_v5, %v6266_v4  ;;  %v6279_v35 = vld [vmem:[%s9558_s14 + $0x13a0] sm:$0xff]  ;;  %v6338_v4 = vld [vmem:[%s9558_s14 + $0x1578] sm:$0xff]  ;;  %v2829_v5 = vcombine.high %v6158_v56, %v6158_v56 }
 0x259   : > { %3470 = vmatprep.mubr.f32.mxu1 %v9545_v1  ;;  %v6287_v31 = vld [vmem:[%s9558_s14 + $0x13e0] sm:$0xff] }
 0x25a   : > { %8386 = vmatpush1.bf16.msra.mxu0 %v8385_v20  ;;  %v8409_v41 = vpack.c.bf16 %v6287_v31, %v6279_v35  ;;  %v8485_v31 = vpack.c.bf16 %v6337_v17, %v6329_v16  ;;  %v6391_v17 = vld [vmem:[%s9558_s14 + $0x1720] sm:$0xff] }
 0x25b   : > { %8450 = vmatpush1.bf16.msra.mxu1 %v8449_v21  ;;  %8388 = vmatprep.subr.bf16.mxu0 %v8387_v22  ;;  %v6282_v21 = vld [vmem:[%s9558_s14 + $0x13b8] sm:$0xff] }
 0x25c   : > { %8452 = vmatprep.subr.bf16.mxu1 %v8451_v27  ;;  %v6290_v22 = vld [vmem:[%s9558_s14 + $0x13f8] sm:$0xff]  ;;  %v8405_v27 = vpack.c.bf16 %v6271_v11, %v6263_v10  ;;  %v6327_v10 = vld [vmem:[%s9558_s14 + $0x1520] sm:$0xff] }
 0x25d   : > { %v8421_v35 = vpack.c.bf16 %v6335_v15, %v6327_v10  ;;  %v6392_v10 = vld [vmem:[%s9558_s14 + $0x1728] sm:$0xff] }
 0x25e   : > { %8390 = vmatpush1.bf16.msra.mxu0 %v8389_v32  ;;  %v6281_v32 = vld [vmem:[%s9558_s14 + $0x13b0] sm:$0xff] }
 0x25f   : > { %8454 = vmatpush1.bf16.msra.mxu1 %v8453_v33  ;;  %8392 = vmatprep.subr.bf16.mxu0 %v8391_v36  ;;  %v8471_v33 = vpack.c.bf16 %v6290_v22, %v6282_v21  ;;  %v6289_v36 = vld [vmem:[%s9558_s14 + $0x13f0] sm:$0xff]  ;;  %v6344_v21 = vld [vmem:[%s9558_s14 + $0x15a8] sm:$0xff] }
 0x260   : > { %8456 = vmatprep.subr.bf16.mxu1 %v8455_v46  ;;  %v6306_v46 = vld [vmem:[%s9558_s14 + $0x1478] sm:$0xff]  ;;  %v8473_v43 = vpack.c.bf16 %v6289_v36, %v6281_v32  ;;  %v6352_v22 = vld [vmem:[%s9558_s14 + $0x15e8] sm:$0xff] }
 0x261   : > { %v8423_v36 = vpack.c.bf16 %v6352_v22, %v6344_v21  ;;  %v6401_v21 = vld [vmem:[%s9558_s14 + $0x1770] sm:$0xff]  ;;  %v6408_v22 = vld [vmem:[%s9558_s14 + $0x17a8] sm:$0xff] }
 0x262   : > { %8394 = vmatpush1.bf16.msra.mxu0 %v8393_v45  ;;  %v6297_v45 = vld [vmem:[%s9558_s14 + $0x1430] sm:$0xff] }
 0x263   : > { %8458 = vmatpush1.bf16.msra.mxu1 %v8457_v47  ;;  %8396 = vmatprep.subr.bf16.mxu0 %v8395_v48  ;;  %v6305_v47 = vld [vmem:[%s9558_s14 + $0x1470] sm:$0xff]  ;;  %v8475_v48 = vpack.c.bf16 %v6306_v46, %v6298_v40 }
 0x264   : > { %8460 = vmatprep.subr.bf16.mxu1 %v8459_v53  ;;  %v6314_v53 = vld [vmem:[%s9558_s14 + $0x14b8] sm:$0xff]  ;;  %v8477_v57 = vpack.c.bf16 %v6305_v47, %v6297_v45  ;;  %v6360_v45 = vld [vmem:[%s9558_s14 + $0x1628] sm:$0xff] }
 0x265   : > { %v8479_v6 = vpack.c.bf16 %v6322_v54, %v6314_v53 }
 0x266   : > { %8398 = vmatpush1.bf16.msra.mxu0 %v8397_v26  ;;  %v8415_v26 = vpack.c.bf16 %v6320_v50, %v6312_v49  ;;  %v6362_v49 = vld [vmem:[%s9558_s14 + $0x1638] sm:$0xff] }
 0x267   : > { %8462 = vmatpush1.bf16.msra.mxu1 %v8461_v58  ;;  %8400 = vmatprep.subr.bf16.mxu0 %v8399_v59  ;;  %v6319_v58 = vld [vmem:[%s9558_s14 + $0x14e0] sm:$0xff]  ;;  %v6313_v59 = vld [vmem:[%s9558_s14 + $0x14b0] sm:$0xff]  ;;  %v6370_v50 = vld [vmem:[%s9558_s14 + $0x1678] sm:$0xff] }
 0x268   : > { %v2142_v13 = vpop.f32.mrb[10].mxu0  ;;  %8464 = vmatprep.subr.bf16.mxu1 %v8463_v62  ;;  %v6328_v62 = vld [vmem:[%s9558_s14 + $0x1528] sm:$0xff] }
 0x269   : > { %v2143_v51 = vadd.f32 %v2142_v13, %v10160_v34  ;;  %v2144_v19 = vpop.f32.mrb[11].mxu0  ;;  %v2213_v20 = vpop.f32.mrb[10].mxu1 }
 0x26a   : > { %v2145_v23 = vadd.f32 %v2144_v19, %v10160_v34  ;;  %8402 = vmatpush1.bf16.msra.mxu0 %v8401_v7  ;;  %v2214_v24 = vadd.f32 %v2213_v20, %v10160_v34  ;;  %v2215_v25 = vpop.f32.mrb[11].mxu1  ;;  %v8483_v20 = vpack.c.bf16 %v6338_v4, %v6330_v3  ;;  %v6375_v4 = vld [vmem:[%s9558_s14 + $0x16a0] sm:$0xff] }
 0x26b   : > { %9374 = vtanh.f32 %v2143_v51  ;;  %8466 = vmatpush1.bf16.msra.mxu1 %v8465_v8  ;;  %v2216_v28 = vadd.f32 %v2215_v25, %v10160_v34  ;;  %8404 = vmatprep.subr.bf16.mxu0 %v8403_v9  ;;  %v8417_v8 = vpack.c.bf16 %v6319_v58, %v6311_v55  ;;  %v8481_v9 = vpack.c.bf16 %v6321_v60, %v6313_v59  ;;  %v6367_v55 = vld [vmem:[%s9558_s14 + $0x1660] sm:$0xff]  ;;  %v6369_v58 = vld [vmem:[%s9558_s14 + $0x1670] sm:$0xff]  ;;  %v6376_v59 = vld [vmem:[%s9558_s14 + $0x16a8] sm:$0xff] }
 0x26c   : > { %9376 = vtanh.f32 %v2145_v23  ;;  %8468 = vmatprep.subr.bf16.mxu1 %v8467_v14  ;;  %v8419_v14 = vpack.c.bf16 %v6336_v63, %v6328_v62  ;;  %v6384_v60 = vld [vmem:[%s9558_s14 + $0x16e8] sm:$0xff]  ;;  %v6386_v62 = vld [vmem:[%s9558_s14 + $0x16f8] sm:$0xff] }
 0x26d   : > { %9378 = vtanh.f32 %v2214_v24  ;;  %v8431_v3 = vpack.c.bf16 %v6384_v60, %v6376_v59  ;;  %v6445_v60 = vld [vmem:[%s9822_s19 + $0x10d0] sm:$0xff] }
 0x26e   : > { %9380 = vtanh.f32 %v2216_v28  ;;  %8406 = vmatpush1.bf16.msra.mxu0 %v8405_v27  ;;  %v6346_v27 = vld [vmem:[%s9558_s14 + $0x15b8] sm:$0xff] }
 0x26f   : > { %8470 = vmatpush1.bf16.msra.mxu1 %v8469_v29  ;;  %8408 = vmatprep.subr.bf16.mxu0 %v8407_v30  ;;  %v6354_v28 = vld [vmem:[%s9558_s14 + $0x15f8] sm:$0xff] }
 0x270   : > { %8472 = vmatprep.subr.bf16.mxu1 %v8471_v33  ;;  %v8487_v42 = vpack.c.bf16 %v6354_v28, %v6346_v27 }
 0x272   : > { %8410 = vmatpush1.bf16.msra.mxu0 %v8409_v41 }
 0x273   : > { %8474 = vmatpush1.bf16.msra.mxu1 %v8473_v43  ;;  %8412 = vmatprep.subr.bf16.mxu0 %v8411_v44  ;;  %v6345_v43 = vld [vmem:[%s9558_s14 + $0x15b0] sm:$0xff] }
 0x274   : > { %8476 = vmatprep.subr.bf16.mxu1 %v8475_v48  ;;  %v6353_v44 = vld [vmem:[%s9558_s14 + $0x15f0] sm:$0xff]  ;;  %v6368_v48 = vld [vmem:[%s9558_s14 + $0x1668] sm:$0xff] }
 0x275   : > { %v9375_v2 = vpop.eup %9374  ;;  %v8489_v53 = vpack.c.bf16 %v6353_v44, %v6345_v43  ;;  %v6419_v43 = vld [vmem:[%s9822_s19 + $0x1000] sm:$0xff] }
 0x276   : > { %v9377_v7 = vpop.eup %9376  ;;  %8414 = vmatpush1.bf16.msra.mxu0 %v8413_v37  ;;  %v2838_v11 = vsub.f32 %v9375_v2, %v6157_v52  ;;  %v6359_v37 = vld [vmem:[%s9558_s14 + $0x1620] sm:$0xff] }
 0x277   : > { %v9379_v12 = vpop.eup %9378  ;;  %v2785_v13 = vcombine.low %v9375_v2, %v9377_v7  ;;  %8478 = vmatpush1.bf16.msra.mxu1 %v8477_v57  ;;  %8416 = vmatprep.subr.bf16.mxu0 %v8415_v26  ;;  %v2839_v51 = vsub.f32 %v9377_v7, %v2828_v61  ;;  %v8427_v57 = vpack.c.bf16 %v6368_v48, %v6360_v45  ;;  %v6377_v7 = vld [vmem:[%s9558_s14 + $0x16b0] sm:$0xff]  ;;  %v6427_v44 = vld [vmem:[%s9822_s19 + $0x1040] sm:$0xff] }
 0x278   : > { %v9381_v19 = vpop.eup %9380  ;;  %8480 = vmatprep.subr.bf16.mxu1 %v8479_v6  ;;  %v2840_v23 = vsub.f32 %v9379_v12, %v6158_v56  ;;  %v2846_v24 = vand.u32 2147483647, %v2838_v11  ;;  %v6361_v56 = vld [vmem:[%s9558_s14 + $0x1630] sm:$0xff]  ;;  %v8491_v26 = vpack.c.bf16 %v6370_v50, %v6362_v49  ;;  %v6378_v6 = vld [vmem:[%s9558_s14 + $0x16b8] sm:$0xff]  ;;  %v8429_v63 = vpack.c.bf16 %v6367_v55, %v6359_v37  ;;  %v6400_v11 = vld [vmem:[%s9558_s14 + $0x1768] sm:$0xff] }
 0x279   : > { %6149 = vst [vmem:[%s10213_s11 + $0x30] sm:$0x77] %v2785_v13  ;;  %v2786_v25 = vcombine.low %v9379_v12, %v9381_v19  ;;  %v2841_v29 = vsub.f32 %v9381_v19, %v2829_v5  ;;  %v2847_v30 = vand.u32 2147483647, %v2839_v51  ;;  %v8493_v2 = vpack.c.bf16 %v6369_v58, %v6361_v56  ;;  %v6383_v5 = vld [vmem:[%s9558_s14 + $0x16e0] sm:$0xff]  ;;  %v6394_v12 = vld [vmem:[%s9558_s14 + $0x1738] sm:$0xff] }
 0x27a   : > { %8418 = vmatpush1.bf16.msra.mxu0 %v8417_v8  ;;  %v2848_v32 = vand.u32 2147483647, %v2840_v23  ;;  %v2857_v33 = vsel %vm1591_vm0, %v2846_v24, 0.0  ;;  %v8495_v8 = vpack.c.bf16 %v6386_v62, %v6378_v6  ;;  %v6402_v13 = vld [vmem:[%s9558_s14 + $0x1778] sm:$0xff]  ;;  %v8435_v16 = vpack.c.bf16 %v6400_v11, %v6392_v10  ;;  %v6399_v51 = vld [vmem:[%s9558_s14 + $0x1760] sm:$0xff]  ;;  %v6393_v19 = vld [vmem:[%s9558_s14 + $0x1730] sm:$0xff] }
 0x27b   : > { %6150 = vst [vmem:[%s10213_s11 + $0x38] sm:$0x77] %v2786_v25  ;;  %8482 = vmatpush1.bf16.msra.mxu1 %v8481_v9  ;;  %8420 = vmatprep.subr.bf16.mxu0 %v8419_v14  ;;  %v2849_v40 = vand.u32 2147483647, %v2841_v29  ;;  %v2858_v46 = vadd.f32 %v2857_v33, %v10847_v18  ;;  %v2859_v41 = vsel %vm1591_vm0, %v2847_v30, 0.0  ;;  %v8425_v18 = vpack.c.bf16 %v6351_v39, %v6343_v38  ;;  %v6385_v9 = vld [vmem:[%s9558_s14 + $0x16f0] sm:$0xff] }
 0x27c   : > { %8484 = vmatprep.subr.bf16.mxu1 %v8483_v20  ;;  %v2861_v0 = vsel %vm1591_vm0, %v2848_v32, 0.0  ;;  %v8433_v14 = vpack.c.bf16 %v6383_v5, %v6375_v4  ;;  %v8497_v15 = vpack.c.bf16 %v6385_v9, %v6377_v7  ;;  %v8499_v20 = vpack.c.bf16 %v6402_v13, %v6394_v12  ;;  %v6416_v23 = vld [vmem:[%s9558_s14 + $0x17e8] sm:$0xff]  ;;  %v6410_v24 = vld [vmem:[%s9558_s14 + $0x17b8] sm:$0xff]  ;;  %v6407_v30 = vld [vmem:[%s9558_s14 + $0x17a0] sm:$0xff] }
 0x27d   : > { %v2860_v47 = vadd.f32 %v2859_v41, %v2858_v46  ;;  %v2863_v52 = vsel %vm1591_vm0, %v2849_v40, 0.0  ;;  %v6418_v25 = vld [vmem:[%s9558_s14 + $0x17f8] sm:$0xff]  ;;  %v8437_v27 = vpack.c.bf16 %v6399_v51, %v6391_v17  ;;  %v8501_v28 = vpack.c.bf16 %v6401_v21, %v6393_v19  ;;  %v6417_v33 = vld [vmem:[%s9558_s14 + $0x17f0] sm:$0xff]  ;;  %v6428_v38 = vld [vmem:[%s9822_s19 + $0x1048] sm:$0xff] }
 0x27e   : > { %8422 = vmatpush1.bf16.msra.mxu0 %v8421_v35  ;;  %v8439_v29 = vpack.c.bf16 %v6416_v23, %v6408_v22  ;;  %v6415_v35 = vld [vmem:[%s9558_s14 + $0x17e0] sm:$0xff]  ;;  %v8503_v32 = vpack.c.bf16 %v6418_v25, %v6410_v24  ;;  %v6422_v39 = vld [vmem:[%s9822_s19 + $0x1018] sm:$0xff]  ;;  %v6429_v48 = vld [vmem:[%s9822_s19 + $0x1050] sm:$0xff] }
 0x27f   : > { %8486 = vmatpush1.bf16.msra.mxu1 %v8485_v31  ;;  %8424 = vmatprep.subr.bf16.mxu0 %v8423_v36  ;;  %v2862_v54 = vadd.f32 %v2861_v0, %v2860_v47  ;;  %v6409_v31 = vld [vmem:[%s9558_s14 + $0x17b0] sm:$0xff]  ;;  %v6420_v36 = vld [vmem:[%s9822_s19 + $0x1008] sm:$0xff]  ;;  %v6430_v40 = vld [vmem:[%s9822_s19 + $0x1058] sm:$0xff]  ;;  %v8441_v46 = vpack.c.bf16 %v6415_v35, %v6407_v30 }
 0x280   : > { %8488 = vmatprep.subr.bf16.mxu1 %v8487_v42  ;;  %v8505_v41 = vpack.c.bf16 %v6417_v33, %v6409_v31  ;;  %v8507_v42 = vpack.c.bf16 %v6428_v38, %v6420_v36  ;;  %v6421_v0 = vld [vmem:[%s9822_s19 + $0x1010] sm:$0xff]  ;;  %v8571_v47 = vpack.c.bf16 %v6430_v40, %v6422_v39  ;;  %v6436_v49 = vld [vmem:[%s9822_s19 + $0x1088] sm:$0xff]  ;;  %v6451_v9 = vld [vmem:[%s9822_s19 + $0x1100] sm:$0xff] }
 0x281   : > { %v2864_v61 = vadd.f32 %v2863_v52, %v2862_v54  ;;  %v6444_v50 = vld [vmem:[%s9822_s19 + $0x10c8] sm:$0xff]  ;;  %v6438_v52 = vld [vmem:[%s9822_s19 + $0x1098] sm:$0xff]  ;;  %v8509_v54 = vpack.c.bf16 %v6427_v44, %v6419_v43  ;;  %v8573_v55 = vpack.c.bf16 %v6429_v48, %v6421_v0  ;;  %v6437_v58 = vld [vmem:[%s9822_s19 + $0x1090] sm:$0xff] }
 0x282   : > { %8426 = vmatpush1.bf16.msra.mxu0 %v8425_v18  ;;  %v8511_v56 = vpack.c.bf16 %v6444_v50, %v6436_v49  ;;  %v6460_v6 = vld [vmem:[%s9822_s19 + $0x1148] sm:$0xff]  ;;  %v8577_v5 = vpack.c.bf16 %v6445_v60, %v6437_v58  ;;  %v6459_v10 = vld [vmem:[%s9822_s19 + $0x1140] sm:$0xff]  ;;  %v6453_v11 = vld [vmem:[%s9822_s19 + $0x1110] sm:$0xff] }
 0x283   : > { %8490 = vmatpush1.bf16.msra.mxu1 %v8489_v53  ;;  %2865 = vadd.xlane.f32.xlu1 %v2864_v61  ;;  %v6446_v53 = vld [vmem:[%s9822_s19 + $0x10d8] sm:$0xff]  ;;  %v6452_v61 = vld [vmem:[%s9822_s19 + $0x1108] sm:$0xff]  ;;  %v6461_v13 = vld [vmem:[%s9822_s19 + $0x1150] sm:$0xff]  ;;  %v8517_v19 = vpack.c.bf16 %v6459_v10, %v6451_v9 }
 0x284   : > { %8428 = vmatprep.subr.bf16.mxu0 %v8427_v57  ;;  %8492 = vmatprep.subr.bf16.mxu1 %v8491_v26  ;;  %v6435_v57 = vld [vmem:[%s9822_s19 + $0x1080] sm:$0xff]  ;;  %v8575_v59 = vpack.c.bf16 %v6446_v53, %v6438_v52  ;;  %v6470_v17 = vld [vmem:[%s9822_s19 + $0x1198] sm:$0xff]  ;;  %v8581_v21 = vpack.c.bf16 %v6461_v13, %v6453_v11  ;;  %v6469_v25 = vld [vmem:[%s9822_s19 + $0x1190] sm:$0xff] }
 0x285   : > { %v6443_v26 = vld [vmem:[%s9822_s19 + $0x10c0] sm:$0xff]  ;;  %v6478_v51 = vld [vmem:[%s9822_s19 + $0x11d8] sm:$0xff]  ;;  %v6492_v30 = vld [vmem:[%s9822_s19 + $0x1248] sm:$0xff] }
 0x286   : > { %8430 = vmatpush1.bf16.msra.mxu0 %v8429_v63  ;;  %v11037_v63 = vld [vmem:[%s11971_s4] sm:$0x77]  ;;  %v8513_v4 = vpack.c.bf16 %v6443_v26, %v6435_v57  ;;  %v6486_v35 = vld [vmem:[%s9822_s19 + $0x1218] sm:$0xff]  ;;  %v6485_v40 = vld [vmem:[%s9822_s19 + $0x1210] sm:$0xff] }
 0x287   : > { %8494 = vmatpush1.bf16.msra.mxu1 %v8493_v2  ;;  %8432 = vmatprep.subr.bf16.mxu0 %v8431_v3  ;;  %v6454_v2 = vld [vmem:[%s9822_s19 + $0x1118] sm:$0xff]  ;;  %v6467_v23 = vld [vmem:[%s9822_s19 + $0x1180] sm:$0xff]  ;;  %v6508_v43 = vld [vmem:[%s9822_s19 + $0x12c8] sm:$0xff] }
 0x288   : > { %8496 = vmatprep.subr.bf16.mxu1 %v8495_v8  ;;  %v6462_v3 = vld [vmem:[%s9822_s19 + $0x1158] sm:$0xff]  ;;  %v8515_v8 = vpack.c.bf16 %v6460_v6, %v6452_v61  ;;  %v6475_v24 = vld [vmem:[%s9822_s19 + $0x11c0] sm:$0xff]  ;;  %v6509_v53 = vld [vmem:[%s9822_s19 + $0x12d0] sm:$0xff] }
 0x289   : > { %v8579_v12 = vpack.c.bf16 %v6462_v3, %v6454_v2  ;;  %v6494_v31 = vld [vmem:[%s9822_s19 + $0x1258] sm:$0xff]  ;;  %v6483_v38 = vld [vmem:[%s9822_s19 + $0x1200] sm:$0xff]  ;;  %v6517_v61 = vld [vmem:[%s9822_s19 + $0x1310] sm:$0xff] }
 0x28a   : > { %8434 = vmatpush1.bf16.msra.mxu0 %v8433_v14  ;;  %v6468_v14 = vld [vmem:[%s9822_s19 + $0x1188] sm:$0xff]  ;;  %v6491_v39 = vld [vmem:[%s9822_s19 + $0x1240] sm:$0xff]  ;;  %v6502_v44 = vld [vmem:[%s9822_s19 + $0x1298] sm:$0xff] }
 0x28b   : > { %8498 = vmatpush1.bf16.msra.mxu1 %v8497_v15  ;;  %8436 = vmatprep.subr.bf16.mxu0 %v8435_v16  ;;  %v6476_v15 = vld [vmem:[%s9822_s19 + $0x11c8] sm:$0xff]  ;;  %v6510_v0 = vld [vmem:[%s9822_s19 + $0x12d8] sm:$0xff]  ;;  %v6499_v49 = vld [vmem:[%s9822_s19 + $0x1280] sm:$0xff] }
 0x28c   : > { %8500 = vmatprep.subr.bf16.mxu1 %v8499_v20  ;;  %v8519_v22 = vpack.c.bf16 %v6476_v15, %v6468_v14  ;;  %v6507_v50 = vld [vmem:[%s9822_s19 + $0x12c0] sm:$0xff]  ;;  %v8591_v52 = vpack.c.bf16 %v6510_v0, %v6502_v44  ;;  %v6525_v2 = vld [vmem:[%s9822_s19 + $0x1350] sm:$0xff]  ;;  %v6532_v3 = vld [vmem:[%s9822_s19 + $0x1388] sm:$0xff] }
 0x28d   : > { %v8529_v57 = vpack.c.bf16 %v6507_v50, %v6499_v49  ;;  %v6523_v60 = vld [vmem:[%s9822_s19 + $0x1340] sm:$0xff]  ;;  %v6534_v9 = vld [vmem:[%s9822_s19 + $0x1398] sm:$0xff]  ;;  %v6565_v49 = vld [vmem:[%s9822_s19 + $0x1490] sm:$0xff] }
 0x28e   : > { %8438 = vmatpush1.bf16.msra.mxu0 %v8437_v27  ;;  %v8583_v27 = vpack.c.bf16 %v6478_v51, %v6470_v17  ;;  %v6542_v10 = vld [vmem:[%s9822_s19 + $0x13d8] sm:$0xff]  ;;  %v6531_v51 = vld [vmem:[%s9822_s19 + $0x1380] sm:$0xff]  ;;  %v6573_v50 = vld [vmem:[%s9822_s19 + $0x14d0] sm:$0xff] }
 0x28f   : > { %8502 = vmatpush1.bf16.msra.mxu1 %v8501_v28  ;;  %8440 = vmatprep.subr.bf16.mxu0 %v8439_v29  ;;  %v6477_v28 = vld [vmem:[%s9822_s19 + $0x11d0] sm:$0xff]  ;;  %v6484_v29 = vld [vmem:[%s9822_s19 + $0x1208] sm:$0xff]  ;;  %v6563_v44 = vld [vmem:[%s9822_s19 + $0x1480] sm:$0xff] }
 0x290   : > { %v1664_v45 = vpop.xlane.xlu1 %1663  ;;  %8504 = vmatprep.subr.bf16.mxu1 %v8503_v32  ;;  %v8521_v32 = vpack.c.bf16 %v6475_v24, %v6467_v23  ;;  %v8585_v33 = vpack.c.bf16 %v6477_v28, %v6469_v25  ;;  %v8523_v36 = vpack.c.bf16 %v6492_v30, %v6484_v29  ;;  %v6548_v23 = vld [vmem:[%s9822_s19 + $0x1408] sm:$0xff]  ;;  %v6550_v25 = vld [vmem:[%s9822_s19 + $0x1418] sm:$0xff]  ;;  %v6159_v28 = vld [vmem:[%s10488_s17 + $0x20] sm:$0x77] }
 0x291   : > { %v1665_v18 = vrot.slane %v1664_v45, 4  ;;  %v6556_v24 = vld [vmem:[%s9822_s19 + $0x1448] sm:$0xff]  ;;  %v2883_v0 = vcombine.high %v6159_v28, %v6159_v28 }
 0x292   : > { %8442 = vmatpush1.bf16.msra.mxu0 %v8441_v46  ;;  %v8587_v46 = vpack.c.bf16 %v6494_v31, %v6486_v35  ;;  %v8539_v35 = vpack.c.bf16 %v6556_v24, %v6548_v23  ;;  %v6547_v31 = vld [vmem:[%s9822_s19 + $0x1400] sm:$0xff] }
 0x293   : > { %v1666_v37 = vadd.f32 %v1665_v18, %v1664_v45  ;;  %8506 = vmatpush1.bf16.msra.mxu1 %v8505_v41  ;;  %8508 = vmatprep.subr.bf16.mxu0 %v8507_v42  ;;  %v6493_v41 = vld [vmem:[%s9822_s19 + $0x1250] sm:$0xff]  ;;  %v6500_v42 = vld [vmem:[%s9822_s19 + $0x1288] sm:$0xff]  ;;  %v8525_v45 = vpack.c.bf16 %v6491_v39, %v6483_v38  ;;  %v6595_v23 = vld [vmem:[%s9822_s19 + $0x1580] sm:$0xff] }
 0x294   : > { %8572 = vmatprep.subr.bf16.mxu1 %v8571_v47  ;;  %v8589_v47 = vpack.c.bf16 %v6493_v41, %v6485_v40  ;;  %v8527_v48 = vpack.c.bf16 %v6508_v43, %v6500_v42  ;;  %v6501_v18 = vld [vmem:[%s9822_s19 + $0x1290] sm:$0xff]  ;;  %v6564_v39 = vld [vmem:[%s9822_s19 + $0x1488] sm:$0xff]  ;;  %v6574_v41 = vld [vmem:[%s9822_s19 + $0x14d8] sm:$0xff] }
 0x295   : > { %v1667_v62 = vrot.slane %v1666_v37, 2  ;;  %3400 = vmatmul.mubr.f32.vlgmr.msra.gmra.mrb[18].mxu0 %v11037_v63  ;;  %v8593_v26 = vpack.c.bf16 %v6509_v53, %v6501_v18  ;;  %v6557_v38 = vld [vmem:[%s9822_s19 + $0x1450] sm:$0xff]  ;;  %v6572_v40 = vld [vmem:[%s9822_s19 + $0x14c8] sm:$0xff]  ;;  %v6603_v24 = vld [vmem:[%s9822_s19 + $0x15c0] sm:$0xff] }
 0x296   : > { %3471 = vmatmul.mubr.f32.vlgmr.msra.gmra.mrb[18].mxu1 %v11037_v63  ;;  %8510 = vmatpush1.bf16.msra.mxu0 %v8509_v54  ;;  %v6516_v54 = vld [vmem:[%s9822_s19 + $0x1308] sm:$0xff] }
 0x297   : > { %8574 = vmatpush1.bf16.msra.mxu1 %v8573_v55  ;;  %8512 = vmatprep.subr.bf16.mxu0 %v8511_v56  ;;  %v1668_v7 = vadd.f32 %v1667_v62, %v1666_v37  ;;  %v6524_v37 = vld [vmem:[%s9822_s19 + $0x1348] sm:$0xff]  ;;  %v6518_v55 = vld [vmem:[%s9822_s19 + $0x1318] sm:$0xff] }
 0x298   : > { %8576 = vmatprep.subr.bf16.mxu1 %v8575_v59  ;;  %3806 = vmatprep.mubr.f32.mxu0 %v9545_v1  ;;  %v6526_v56 = vld [vmem:[%s9822_s19 + $0x1358] sm:$0xff]  ;;  %v8531_v58 = vpack.c.bf16 %v6524_v37, %v6516_v54  ;;  %v6515_v59 = vld [vmem:[%s9822_s19 + $0x1300] sm:$0xff]  ;;  %v6160_v42 = vld [vmem:[%s10488_s17 + $0x28] sm:$0x77] }
 0x299   : > { %v1669_v16 = vrot.slane %v1668_v7, 1  ;;  %3877 = vmatprep.mubr.f32.mxu1 %v9545_v1  ;;  %v8595_v62 = vpack.c.bf16 %v6526_v56, %v6518_v55  ;;  %v8533_v14 = vpack.c.bf16 %v6523_v60, %v6515_v59  ;;  %v6588_v53 = vld [vmem:[%s9822_s19 + $0x1548] sm:$0xff]  ;;  %v2884_v37 = vcombine.high %v6160_v42, %v6160_v42  ;;  %v6582_v55 = vld [vmem:[%s9822_s19 + $0x1518] sm:$0xff] }
 0x29a   : > { %8514 = vmatpush1.bf16.msra.mxu0 %v8513_v4  ;;  %v6540_v4 = vld [vmem:[%s9822_s19 + $0x13c8] sm:$0xff]  ;;  %v6590_v56 = vld [vmem:[%s9822_s19 + $0x1558] sm:$0xff]  ;;  %v8609_v59 = vpack.c.bf16 %v6573_v50, %v6565_v49 }
 0x29b   : > { %8578 = vmatpush1.bf16.msra.mxu1 %v8577_v5  ;;  %v1670_v20 = vadd.f32 %v1669_v16, %v1668_v7  ;;  %8516 = vmatprep.subr.bf16.mxu0 %v8515_v8  ;;  %v8597_v16 = vpack.c.bf16 %v6525_v2, %v6517_v61  ;;  %v8535_v17 = vpack.c.bf16 %v6540_v4, %v6532_v3  ;;  %v6579_v2 = vld [vmem:[%s9822_s19 + $0x1500] sm:$0xff]  ;;  %v6581_v4 = vld [vmem:[%s9822_s19 + $0x1510] sm:$0xff]  ;;  %v6636_v49 = vld [vmem:[%s9822_s19 + $0x16c8] sm:$0xff] }
 0x29c   : > { %8580 = vmatprep.subr.bf16.mxu1 %v8579_v12  ;;  %v6587_v3 = vld [vmem:[%s9822_s19 + $0x1540] sm:$0xff] }
 0x29d   : > { %9277 = vpush %v1670_v20  ;;  %v6533_v20 = vld [vmem:[%s9822_s19 + $0x1390] sm:$0xff] }
 0x29e   : > { %8518 = vmatpush1.bf16.msra.mxu0 %v8517_v19  ;;  %v6539_v19 = vld [vmem:[%s9822_s19 + $0x13c0] sm:$0xff] }
 0x29f   : > { %8582 = vmatpush1.bf16.msra.mxu1 %v8581_v21  ;;  %8520 = vmatprep.subr.bf16.mxu0 %v8519_v22  ;;  %v8599_v21 = vpack.c.bf16 %v6542_v10, %v6534_v9  ;;  %v6541_v22 = vld [vmem:[%s9822_s19 + $0x13d0] sm:$0xff]  ;;  %v8537_v29 = vpack.c.bf16 %v6539_v19, %v6531_v51  ;;  %v8611_v9 = vpack.c.bf16 %v6590_v56, %v6582_v55  ;;  %v6627_v55 = vld [vmem:[%s9822_s19 + $0x1680] sm:$0xff] }
 0x2a0   : > { %8584 = vmatprep.subr.bf16.mxu1 %v8583_v27  ;;  %v6558_v27 = vld [vmem:[%s9822_s19 + $0x1458] sm:$0xff]  ;;  %v8601_v30 = vpack.c.bf16 %v6541_v22, %v6533_v20  ;;  %v6589_v10 = vld [vmem:[%s9822_s19 + $0x1550] sm:$0xff]  ;;  %v8549_v19 = vpack.c.bf16 %v6587_v3, %v6579_v2  ;;  %v6635_v56 = vld [vmem:[%s9822_s19 + $0x16c0] sm:$0xff] }
 0x2a2   : > { %8522 = vmatpush1.bf16.msra.mxu0 %v8521_v32  ;;  %v6555_v32 = vld [vmem:[%s9822_s19 + $0x1440] sm:$0xff] }
 0x2a3   : > { %8586 = vmatpush1.bf16.msra.mxu1 %v8585_v33  ;;  %8524 = vmatprep.subr.bf16.mxu0 %v8523_v36  ;;  %v6549_v33 = vld [vmem:[%s9822_s19 + $0x1410] sm:$0xff]  ;;  %v8603_v36 = vpack.c.bf16 %v6558_v27, %v6550_v25  ;;  %v8541_v43 = vpack.c.bf16 %v6555_v32, %v6547_v31  ;;  %v6620_v31 = vld [vmem:[%s9822_s19 + $0x1648] sm:$0xff] }
 0x2a4   : > { %8588 = vmatprep.subr.bf16.mxu1 %v8587_v46  ;;  %v6566_v46 = vld [vmem:[%s9822_s19 + $0x1498] sm:$0xff]  ;;  %v6597_v25 = vld [vmem:[%s9822_s19 + $0x1590] sm:$0xff] }
 0x2a5   : > { %v8607_v18 = vpack.c.bf16 %v6574_v41, %v6566_v46 }
 0x2a6   : > { %8526 = vmatpush1.bf16.msra.mxu0 %v8525_v45  ;;  %v8605_v45 = vpack.c.bf16 %v6557_v38, %v6549_v33  ;;  %v6622_v38 = vld [vmem:[%s9822_s19 + $0x1658] sm:$0xff] }
 0x2a7   : > { %8590 = vmatpush1.bf16.msra.mxu1 %v8589_v47  ;;  %8528 = vmatprep.subr.bf16.mxu0 %v8527_v48  ;;  %v8543_v47 = vpack.c.bf16 %v6572_v40, %v6564_v39  ;;  %v6571_v48 = vld [vmem:[%s9822_s19 + $0x14c0] sm:$0xff]  ;;  %v8553_v40 = vpack.c.bf16 %v6603_v24, %v6595_v23  ;;  %v6432_v23 = vld [vmem:[%s9822_s19 + $0x1068] sm:$0xff]  ;;  %v6426_v24 = vld [vmem:[%s9822_s19 + $0x1038] sm:$0xff] }
 0x2a8   : > { %v2549_v6 = vpop.f32.mrb[12].mxu0  ;;  %8592 = vmatprep.subr.bf16.mxu1 %v8591_v52  ;;  %v6580_v52 = vld [vmem:[%s9822_s19 + $0x1508] sm:$0xff] }
 0x2a9   : > { %v2550_v5 = vadd.f32 %v2549_v6, %v10160_v34  ;;  %v2551_v7 = vpop.f32.mrb[13].mxu0  ;;  %v2620_v8 = vpop.f32.mrb[12].mxu1 }
 0x2aa   : > { %v2552_v11 = vadd.f32 %v2551_v7, %v10160_v34  ;;  %8530 = vmatpush1.bf16.msra.mxu0 %v8529_v57  ;;  %v2621_v12 = vadd.f32 %v2620_v8, %v10160_v34  ;;  %v2622_v13 = vpop.f32.mrb[13].mxu1 }
 0x2ab   : > { %9382 = vtanh.f32 %v2550_v5  ;;  %8594 = vmatpush1.bf16.msra.mxu1 %v8593_v26  ;;  %v2623_v15 = vadd.f32 %v2622_v13, %v10160_v34  ;;  %8532 = vmatprep.subr.bf16.mxu0 %v8531_v58  ;;  %v8545_v58 = vpack.c.bf16 %v6571_v48, %v6563_v44  ;;  %v6619_v44 = vld [vmem:[%s9822_s19 + $0x1640] sm:$0xff]  ;;  %v6628_v48 = vld [vmem:[%s9822_s19 + $0x1688] sm:$0xff] }
 0x2ac   : > { %9384 = vtanh.f32 %v2552_v11  ;;  %8596 = vmatprep.subr.bf16.mxu1 %v8595_v62  ;;  %v8547_v62 = vpack.c.bf16 %v6588_v53, %v6580_v52  ;;  %v6596_v11 = vld [vmem:[%s9822_s19 + $0x1588] sm:$0xff]  ;;  %v6638_v52 = vld [vmem:[%s9822_s19 + $0x16d8] sm:$0xff] }
 0x2ad   : > { %9386 = vtanh.f32 %v2621_v12  ;;  %v6604_v12 = vld [vmem:[%s9822_s19 + $0x15c8] sm:$0xff] }
 0x2ae   : > { %9388 = vtanh.f32 %v2623_v15  ;;  %8534 = vmatpush1.bf16.msra.mxu0 %v8533_v14  ;;  %v8551_v22 = vpack.c.bf16 %v6604_v12, %v6596_v11  ;;  %v6668_v11 = vld [vmem:[%s9822_s19 + $0x17c8] sm:$0xff]  ;;  %v6662_v12 = vld [vmem:[%s9822_s19 + $0x1798] sm:$0xff] }
 0x2af   : > { %8598 = vmatpush1.bf16.msra.mxu1 %v8597_v16  ;;  %8536 = vmatprep.subr.bf16.mxu0 %v8535_v17  ;;  %v6598_v16 = vld [vmem:[%s9822_s19 + $0x1598] sm:$0xff] }
 0x2b0   : > { %8600 = vmatprep.subr.bf16.mxu1 %v8599_v21  ;;  %v6606_v17 = vld [vmem:[%s9822_s19 + $0x15d8] sm:$0xff]  ;;  %v8613_v21 = vpack.c.bf16 %v6589_v10, %v6581_v4  ;;  %v6643_v4 = vld [vmem:[%s9822_s19 + $0x1700] sm:$0xff]  ;;  %v6660_v10 = vld [vmem:[%s9822_s19 + $0x1788] sm:$0xff] }
 0x2b2   : > { %8538 = vmatpush1.bf16.msra.mxu0 %v8537_v29  ;;  %v8615_v29 = vpack.c.bf16 %v6606_v17, %v6598_v16  ;;  %v8567_v16 = vpack.c.bf16 %v6668_v11, %v6660_v10  ;;  %v6659_v17 = vld [vmem:[%s9822_s19 + $0x1780] sm:$0xff]  ;;  %v6496_v10 = vld [vmem:[%s9822_s19 + $0x1268] sm:$0xff]  ;;  %v6490_v11 = vld [vmem:[%s9822_s19 + $0x1238] sm:$0xff] }
 0x2b3   : > { %8602 = vmatpush1.bf16.msra.mxu1 %v8601_v30  ;;  %8540 = vmatprep.subr.bf16.mxu0 %v8539_v35  ;;  %v6605_v30 = vld [vmem:[%s9822_s19 + $0x15d0] sm:$0xff]  ;;  %v6612_v35 = vld [vmem:[%s9822_s19 + $0x1608] sm:$0xff] }
 0x2b4   : > { %8604 = vmatprep.subr.bf16.mxu1 %v8603_v36  ;;  %v6614_v36 = vld [vmem:[%s9822_s19 + $0x1618] sm:$0xff]  ;;  %v8617_v41 = vpack.c.bf16 %v6605_v30, %v6597_v25  ;;  %v6423_v30 = vld [vmem:[%s9822_s19 + $0x1020] sm:$0xff] }
 0x2b5   : > { %v9383_v54 = vpop.eup %9382  ;;  %v6434_v25 = vld [vmem:[%s9822_s19 + $0x1078] sm:$0xff] }
 0x2b6   : > { %v9385_v57 = vpop.eup %9384  ;;  %v2891_v26 = vsub.f32 %v9383_v54, %v6159_v28  ;;  %8542 = vmatpush1.bf16.msra.mxu0 %v8541_v43  ;;  %v6611_v43 = vld [vmem:[%s9822_s19 + $0x1600] sm:$0xff] }
 0x2b7   : > { %v9387_v60 = vpop.eup %9386  ;;  %v2804_v61 = vcombine.low %v9383_v54, %v9385_v57  ;;  %v2892_v6 = vsub.f32 %v9385_v57, %v2883_v0  ;;  %8606 = vmatpush1.bf16.msra.mxu1 %v8605_v45  ;;  %8544 = vmatprep.subr.bf16.mxu0 %v8543_v47  ;;  %v6613_v0 = vld [vmem:[%s9822_s19 + $0x1610] sm:$0xff]  ;;  %v8619_v45 = vpack.c.bf16 %v6622_v38, %v6614_v36  ;;  %v6440_v36 = vld [vmem:[%s9822_s19 + $0x10a8] sm:$0xff] }
 0x2b8   : > { %v9389_v5 = vpop.eup %9388  ;;  %v2899_v7 = vand.u32 2147483647, %v2891_v26  ;;  %v2893_v8 = vsub.f32 %v9387_v60, %v6160_v42  ;;  %8608 = vmatprep.subr.bf16.mxu1 %v8607_v18  ;;  %v8555_v42 = vpack.c.bf16 %v6620_v31, %v6612_v35  ;;  %v6621_v47 = vld [vmem:[%s9822_s19 + $0x1650] sm:$0xff]  ;;  %v6630_v18 = vld [vmem:[%s9822_s19 + $0x1698] sm:$0xff]  ;;  %v8557_v53 = vpack.c.bf16 %v6619_v44, %v6611_v43  ;;  %v6431_v35 = vld [vmem:[%s9822_s19 + $0x1060] sm:$0xff] }
 0x2b9   : > { %6151 = vst [vmem:[%s10521_s21 + $0x20] sm:$0x77] %v2804_v61  ;;  %v2900_v13 = vand.u32 2147483647, %v2892_v6  ;;  %v2805_v14 = vcombine.low %v9387_v60, %v9389_v5  ;;  %v2894_v15 = vsub.f32 %v9389_v5, %v2884_v37  ;;  %v8621_v54 = vpack.c.bf16 %v6621_v47, %v6613_v0  ;;  %v6629_v57 = vld [vmem:[%s9822_s19 + $0x1690] sm:$0xff]  ;;  %v6652_v60 = vld [vmem:[%s9822_s19 + $0x1748] sm:$0xff] }
 0x2ba   : > { %v2901_v51 = vand.u32 2147483647, %v2893_v8  ;;  %8546 = vmatpush1.bf16.msra.mxu0 %v8545_v58  ;;  %v2907_v20 = vsel %vm1591_vm0, %v2899_v7, 0.0  ;;  %v8559_v37 = vpack.c.bf16 %v6636_v49, %v6628_v48  ;;  %v8623_v26 = vpack.c.bf16 %v6638_v52, %v6630_v18  ;;  %v6637_v58 = vld [vmem:[%s9822_s19 + $0x16d0] sm:$0xff]  ;;  %v6646_v61 = vld [vmem:[%s9822_s19 + $0x1718] sm:$0xff]  ;;  %v6651_v5 = vld [vmem:[%s9822_s19 + $0x1740] sm:$0xff] }
 0x2bb   : > { %6152 = vst [vmem:[%s10521_s21 + $0x28] sm:$0x77] %v2805_v14  ;;  %8610 = vmatpush1.bf16.msra.mxu1 %v8609_v59  ;;  %8548 = vmatprep.subr.bf16.mxu0 %v8547_v62  ;;  %v2902_v27 = vand.u32 2147483647, %v2894_v15  ;;  %v2908_v28 = vsel %vm1591_vm0, %v2900_v13, 0.0  ;;  %v6644_v59 = vld [vmem:[%s9822_s19 + $0x1708] sm:$0xff]  ;;  %v8561_v62 = vpack.c.bf16 %v6635_v56, %v6627_v55  ;;  %v8625_v2 = vpack.c.bf16 %v6637_v58, %v6629_v57 }
 0x2bc   : > { %8612 = vmatprep.subr.bf16.mxu1 %v8611_v9  ;;  %v2909_v32 = vadd.f32 %v2908_v28, %v2907_v20  ;;  %v2910_v33 = vsel %vm1591_vm0, %v2901_v51, 0.0  ;;  %v6654_v6 = vld [vmem:[%s9822_s19 + $0x1758] sm:$0xff]  ;;  %v8563_v3 = vpack.c.bf16 %v6652_v60, %v6644_v59  ;;  %v6645_v7 = vld [vmem:[%s9822_s19 + $0x1710] sm:$0xff]  ;;  %v8565_v14 = vpack.c.bf16 %v6651_v5, %v6643_v4  ;;  %v6667_v51 = vld [vmem:[%s9822_s19 + $0x17c0] sm:$0xff] }
 0x2bd   : > { %v2912_v39 = vsel %vm1591_vm0, %v2902_v27, 0.0  ;;  %v8627_v8 = vpack.c.bf16 %v6654_v6, %v6646_v61  ;;  %v6653_v9 = vld [vmem:[%s9822_s19 + $0x1750] sm:$0xff]  ;;  %v6670_v13 = vld [vmem:[%s9822_s19 + $0x17d8] sm:$0xff]  ;;  %v8569_v27 = vpack.c.bf16 %v6667_v51, %v6659_v17  ;;  %v6448_v38 = vld [vmem:[%s9822_s19 + $0x10e8] sm:$0xff] }
 0x2be   : > { %8550 = vmatpush1.bf16.msra.mxu0 %v8549_v19  ;;  %v2911_v46 = vadd.f32 %v2910_v33, %v2909_v32  ;;  %v8629_v15 = vpack.c.bf16 %v6653_v9, %v6645_v7  ;;  %v6661_v19 = vld [vmem:[%s9822_s19 + $0x1790] sm:$0xff]  ;;  %v8631_v20 = vpack.c.bf16 %v6670_v13, %v6662_v12  ;;  %v8699_v32 = vpack.c.bf16 %v6434_v25, %v6426_v24  ;;  %v6439_v43 = vld [vmem:[%s9822_s19 + $0x10a0] sm:$0xff]  ;;  %v6456_v48 = vld [vmem:[%s9822_s19 + $0x1128] sm:$0xff] }
 0x2bf   : > { %8614 = vmatpush1.bf16.msra.mxu1 %v8613_v21  ;;  %8552 = vmatprep.subr.bf16.mxu0 %v8551_v22  ;;  %v6669_v21 = vld [vmem:[%s9822_s19 + $0x17d0] sm:$0xff]  ;;  %v6424_v22 = vld [vmem:[%s9822_s19 + $0x1028] sm:$0xff]  ;;  %v6447_v44 = vld [vmem:[%s9822_s19 + $0x10e0] sm:$0xff] }
 0x2c0   : > { %8616 = vmatprep.subr.bf16.mxu1 %v8615_v29  ;;  %v11143_v50 = vadd.f32 %v2912_v39, %v2911_v46  ;;  %v8633_v28 = vpack.c.bf16 %v6669_v21, %v6661_v19  ;;  %v8635_v29 = vpack.c.bf16 %v6432_v23, %v6424_v22  ;;  %v6425_v31 = vld [vmem:[%s9822_s19 + $0x1030] sm:$0xff]  ;;  %v6442_v39 = vld [vmem:[%s9822_s19 + $0x10b8] sm:$0xff]  ;;  %v8637_v46 = vpack.c.bf16 %v6431_v35, %v6423_v30  ;;  %v6464_v49 = vld [vmem:[%s9822_s19 + $0x1168] sm:$0xff] }
 0x2c1   : > { %v6433_v33 = vld [vmem:[%s9822_s19 + $0x1070] sm:$0xff]  ;;  %v6458_v18 = vld [vmem:[%s9822_s19 + $0x1138] sm:$0xff]  ;;  %v6455_v55 = vld [vmem:[%s9822_s19 + $0x1120] sm:$0xff] }
 0x2c2   : > { %8554 = vmatpush1.bf16.msra.mxu0 %v8553_v40  ;;  %v6450_v40 = vld [vmem:[%s9822_s19 + $0x10f8] sm:$0xff]  ;;  %v6441_v0 = vld [vmem:[%s9822_s19 + $0x10b0] sm:$0xff]  ;;  %v6463_v56 = vld [vmem:[%s9822_s19 + $0x1160] sm:$0xff] }
 0x2c3   : > { %8618 = vmatpush1.bf16.msra.mxu1 %v8617_v41  ;;  %8556 = vmatprep.subr.bf16.mxu0 %v8555_v42  ;;  %v8701_v41 = vpack.c.bf16 %v6433_v33, %v6425_v31  ;;  %v8639_v42 = vpack.c.bf16 %v6448_v38, %v6440_v36  ;;  %v6449_v47 = vld [vmem:[%s9822_s19 + $0x10f0] sm:$0xff]  ;;  %v6466_v52 = vld [vmem:[%s9822_s19 + $0x1178] sm:$0xff]  ;;  %v6472_v59 = vld [vmem:[%s9822_s19 + $0x11a8] sm:$0xff]  ;;  %v8645_v6 = vpack.c.bf16 %v6463_v56, %v6455_v55 }
 0x2c4   : > { %8620 = vmatprep.subr.bf16.mxu1 %v8619_v45  ;;  %v8703_v45 = vpack.c.bf16 %v6450_v40, %v6442_v39  ;;  %v6457_v57 = vld [vmem:[%s9822_s19 + $0x1130] sm:$0xff]  ;;  %v6480_v60 = vld [vmem:[%s9822_s19 + $0x11e8] sm:$0xff]  ;;  %v6482_v61 = vld [vmem:[%s9822_s19 + $0x11f8] sm:$0xff] }
 0x2c5   : > { %v6465_v58 = vld [vmem:[%s9822_s19 + $0x1170] sm:$0xff]  ;;  %v6479_v4 = vld [vmem:[%s9822_s19 + $0x11e0] sm:$0xff]  ;;  %v6488_v9 = vld [vmem:[%s9822_s19 + $0x1228] sm:$0xff] }
 0x2c6   : > { %8558 = vmatpush1.bf16.msra.mxu0 %v8557_v53  ;;  %v8641_v53 = vpack.c.bf16 %v6447_v44, %v6439_v43  ;;  %v6473_v5 = vld [vmem:[%s9822_s19 + $0x11b0] sm:$0xff]  ;;  %v6498_v12 = vld [vmem:[%s9822_s19 + $0x1278] sm:$0xff]  ;;  %v6495_v17 = vld [vmem:[%s9822_s19 + $0x1260] sm:$0xff] }
 0x2c7   : > { %8622 = vmatpush1.bf16.msra.mxu1 %v8621_v54  ;;  %8560 = vmatprep.subr.bf16.mxu0 %v8559_v37  ;;  %v8705_v54 = vpack.c.bf16 %v6449_v47, %v6441_v0  ;;  %v8643_v37 = vpack.c.bf16 %v6464_v49, %v6456_v48  ;;  %v6489_v51 = vld [vmem:[%s9822_s19 + $0x1230] sm:$0xff]  ;;  %v8715_v19 = vpack.c.bf16 %v6498_v12, %v6490_v11  ;;  %v6504_v21 = vld [vmem:[%s9822_s19 + $0x12a8] sm:$0xff]  ;;  %v6506_v23 = vld [vmem:[%s9822_s19 + $0x12b8] sm:$0xff] }
 0x2c8   : > { %8624 = vmatprep.subr.bf16.mxu1 %v8623_v26  ;;  %v8707_v26 = vpack.c.bf16 %v6466_v52, %v6458_v18  ;;  %v6512_v22 = vld [vmem:[%s9822_s19 + $0x12e8] sm:$0xff]  ;;  %v6514_v24 = vld [vmem:[%s9822_s19 + $0x12f8] sm:$0xff]  ;;  %v6511_v30 = vld [vmem:[%s9822_s19 + $0x12e0] sm:$0xff] }
 0x2c9   : > { %v6505_v35 = vld [vmem:[%s9822_s19 + $0x12b0] sm:$0xff]  ;;  %v8719_v31 = vpack.c.bf16 %v6514_v24, %v6506_v23  ;;  %v6520_v33 = vld [vmem:[%s9822_s19 + $0x1328] sm:$0xff]  ;;  %v6522_v38 = vld [vmem:[%s9822_s19 + $0x1338] sm:$0xff] }
 0x2ca   : > { %8562 = vmatpush1.bf16.msra.mxu0 %v8561_v62  ;;  %v8709_v62 = vpack.c.bf16 %v6465_v58, %v6457_v57  ;;  %v6528_v36 = vld [vmem:[%s9822_s19 + $0x1368] sm:$0xff]  ;;  %v6530_v39 = vld [vmem:[%s9822_s19 + $0x1378] sm:$0xff]  ;;  %v6527_v43 = vld [vmem:[%s9822_s19 + $0x1360] sm:$0xff] }
 0x2cb   : > { %8626 = vmatpush1.bf16.msra.mxu1 %v8625_v2  ;;  %8564 = vmatprep.subr.bf16.mxu0 %v8563_v3  ;;  %v8647_v2 = vpack.c.bf16 %v6480_v60, %v6472_v59  ;;  %v6471_v3 = vld [vmem:[%s9822_s19 + $0x11a0] sm:$0xff]  ;;  %v6521_v44 = vld [vmem:[%s9822_s19 + $0x1330] sm:$0xff]  ;;  %v6536_v48 = vld [vmem:[%s9822_s19 + $0x13a8] sm:$0xff] }
 0x2cc   : > { %8628 = vmatprep.subr.bf16.mxu1 %v8627_v8  ;;  %v6481_v8 = vld [vmem:[%s9822_s19 + $0x11f0] sm:$0xff]  ;;  %v8649_v13 = vpack.c.bf16 %v6479_v4, %v6471_v3  ;;  %v6544_v49 = vld [vmem:[%s9822_s19 + $0x13e8] sm:$0xff]  ;;  %v6559_v12 = vld [vmem:[%s9822_s19 + $0x1460] sm:$0xff] }
 0x2cd   : > { %v6529_v47 = vld [vmem:[%s9822_s19 + $0x1370] sm:$0xff]  ;;  %v8663_v60 = vpack.c.bf16 %v6544_v49, %v6536_v48  ;;  %v6552_v3 = vld [vmem:[%s9822_s19 + $0x1428] sm:$0xff]  ;;  %v6162_v23 = vld [vmem:[%s10488_s17 + $0x38] sm:$0x77] }
 0x2ce   : > { %8566 = vmatpush1.bf16.msra.mxu0 %v8565_v14  ;;  %v8713_v14 = vpack.c.bf16 %v6481_v8, %v6473_v5  ;;  %v8725_v59 = vpack.c.bf16 %v6529_v47, %v6521_v44  ;;  %v6560_v4 = vld [vmem:[%s9822_s19 + $0x1468] sm:$0xff]  ;;  %v6554_v5 = vld [vmem:[%s9822_s19 + $0x1438] sm:$0xff]  ;;  %v6591_v47 = vld [vmem:[%s9822_s19 + $0x1560] sm:$0xff] }
 0x2cf   : > { %8630 = vmatpush1.bf16.msra.mxu1 %v8629_v15  ;;  %8568 = vmatprep.subr.bf16.mxu0 %v8567_v16  ;;  %v8651_v15 = vpack.c.bf16 %v6496_v10, %v6488_v9  ;;  %v6487_v16 = vld [vmem:[%s9822_s19 + $0x1220] sm:$0xff]  ;;  %v8667_v11 = vpack.c.bf16 %v6560_v4, %v6552_v3  ;;  %v6585_v48 = vld [vmem:[%s9822_s19 + $0x1530] sm:$0xff] }
 0x2d0   : > { %8632 = vmatprep.subr.bf16.mxu1 %v8631_v20  ;;  %v6497_v20 = vld [vmem:[%s9822_s19 + $0x1270] sm:$0xff]  ;;  %v8653_v25 = vpack.c.bf16 %v6495_v17, %v6487_v16  ;;  %v6551_v9 = vld [vmem:[%s9822_s19 + $0x1420] sm:$0xff]  ;;  %v6568_v16 = vld [vmem:[%s9822_s19 + $0x14a8] sm:$0xff] }
 0x2d1   : > { %v6576_v17 = vld [vmem:[%s9822_s19 + $0x14e8] sm:$0xff]  ;;  %v6593_v49 = vld [vmem:[%s9822_s19 + $0x1570] sm:$0xff]  ;;  %v6599_v3 = vld [vmem:[%s9822_s19 + $0x15a0] sm:$0xff] }
 0x2d2   : > { %8570 = vmatpush1.bf16.msra.mxu0 %v8569_v27  ;;  %v8717_v27 = vpack.c.bf16 %v6497_v20, %v6489_v51  ;;  %v6161_v51 = vld [vmem:[%s10488_s17 + $0x30] sm:$0x77]  ;;  %v6578_v20 = vld [vmem:[%s9822_s19 + $0x14f8] sm:$0xff]  ;;  %v6607_v4 = vld [vmem:[%s9822_s19 + $0x15e0] sm:$0xff] }
 0x2d3   : > { %8634 = vmatpush1.bf16.msra.mxu1 %v8633_v28  ;;  %8636 = vmatprep.subr.bf16.mxu0 %v8635_v29  ;;  %v8655_v28 = vpack.c.bf16 %v6512_v22, %v6504_v21  ;;  %v6503_v29 = vld [vmem:[%s9822_s19 + $0x12a0] sm:$0xff]  ;;  %v8669_v21 = vpack.c.bf16 %v6559_v12, %v6551_v9 }
 0x2d4   : > { %8700 = vmatprep.subr.bf16.mxu1 %v8699_v32  ;;  %v6513_v32 = vld [vmem:[%s9822_s19 + $0x12f0] sm:$0xff]  ;;  %v8657_v40 = vpack.c.bf16 %v6511_v30, %v6503_v29  ;;  %v6567_v22 = vld [vmem:[%s9822_s19 + $0x14a0] sm:$0xff]  ;;  %v2885_v30 = vcombine.high %v6161_v51, %v6161_v51 }
 0x2d5   : > { %3807 = vmatmul.mubr.f32.vlgmr.msra.gmra.mrb[20].mxu0 %v11037_v63  ;;  %v6577_v29 = vld [vmem:[%s9822_s19 + $0x14f0] sm:$0xff] }
 0x2d6   : > { %3878 = vmatmul.mubr.f32.vlgmr.msra.gmra.mrb[20].mxu1 %v11037_v63  ;;  %8638 = vmatpush1.bf16.msra.mxu0 %v8637_v46  ;;  %v6474_v63 = vld [vmem:[%s9822_s19 + $0x11b8] sm:$0xff]  ;;  %v8721_v46 = vpack.c.bf16 %v6513_v32, %v6505_v35  ;;  %v6592_v32 = vld [vmem:[%s9822_s19 + $0x1568] sm:$0xff] }
 0x2d7   : > { %8702 = vmatpush1.bf16.msra.mxu1 %v8701_v41  ;;  %8640 = vmatprep.subr.bf16.mxu0 %v8639_v42  ;;  %v8711_v7 = vpack.c.bf16 %v6482_v61, %v6474_v63  ;;  %v8659_v41 = vpack.c.bf16 %v6528_v36, %v6520_v33  ;;  %v6519_v42 = vld [vmem:[%s9822_s19 + $0x1320] sm:$0xff]  ;;  %v6586_v36 = vld [vmem:[%s9822_s19 + $0x1538] sm:$0xff] }
 0x2d8   : > { %8704 = vmatprep.subr.bf16.mxu1 %v8703_v45  ;;  %3948 = vmatprep.mubr.f32.mxu0 %v9545_v1  ;;  %v8723_v45 = vpack.c.bf16 %v6530_v39, %v6522_v38  ;;  %v6535_v63 = vld [vmem:[%s9822_s19 + $0x13a0] sm:$0xff]  ;;  %v6594_v38 = vld [vmem:[%s9822_s19 + $0x1578] sm:$0xff]  ;;  %v2886_v39 = vcombine.high %v6162_v23, %v6162_v23 }
 0x2d9   : > { %4019 = vmatprep.mubr.f32.mxu1 %v9545_v1  ;;  %v6543_v61 = vld [vmem:[%s9822_s19 + $0x13e0] sm:$0xff] }
 0x2da   : > { %8642 = vmatpush1.bf16.msra.mxu0 %v8641_v53  ;;  %v8665_v8 = vpack.c.bf16 %v6543_v61, %v6535_v63  ;;  %v8741_v61 = vpack.c.bf16 %v6593_v49, %v6585_v48  ;;  %v6647_v49 = vld [vmem:[%s9822_s19 + $0x1720] sm:$0xff] }
 0x2db   : > { %8706 = vmatpush1.bf16.msra.mxu1 %v8705_v54  ;;  %8644 = vmatprep.subr.bf16.mxu0 %v8643_v37  ;;  %v6538_v54 = vld [vmem:[%s9822_s19 + $0x13b8] sm:$0xff] }
 0x2dc   : > { %8708 = vmatprep.subr.bf16.mxu1 %v8707_v26  ;;  %v6546_v37 = vld [vmem:[%s9822_s19 + $0x13f8] sm:$0xff]  ;;  %v8661_v26 = vpack.c.bf16 %v6527_v43, %v6519_v42  ;;  %v6583_v42 = vld [vmem:[%s9822_s19 + $0x1520] sm:$0xff] }
 0x2dd   : > { %v8677_v63 = vpack.c.bf16 %v6591_v47, %v6583_v42  ;;  %v6648_v42 = vld [vmem:[%s9822_s19 + $0x1728] sm:$0xff] }
 0x2de   : > { %8646 = vmatpush1.bf16.msra.mxu0 %v8645_v6  ;;  %v6537_v6 = vld [vmem:[%s9822_s19 + $0x13b0] sm:$0xff] }
 0x2df   : > { %8710 = vmatpush1.bf16.msra.mxu1 %v8709_v62  ;;  %8648 = vmatprep.subr.bf16.mxu0 %v8647_v2  ;;  %v8727_v62 = vpack.c.bf16 %v6546_v37, %v6538_v54  ;;  %v6545_v2 = vld [vmem:[%s9822_s19 + $0x13f0] sm:$0xff]  ;;  %v6600_v54 = vld [vmem:[%s9822_s19 + $0x15a8] sm:$0xff] }
 0x2e0   : > { %8712 = vmatprep.subr.bf16.mxu1 %v8711_v7  ;;  %v6562_v7 = vld [vmem:[%s9822_s19 + $0x1478] sm:$0xff]  ;;  %v8729_v10 = vpack.c.bf16 %v6545_v2, %v6537_v6  ;;  %v6608_v37 = vld [vmem:[%s9822_s19 + $0x15e8] sm:$0xff] }
 0x2e1   : > { %v8679_v2 = vpack.c.bf16 %v6608_v37, %v6600_v54  ;;  %v6657_v54 = vld [vmem:[%s9822_s19 + $0x1770] sm:$0xff]  ;;  %v6664_v37 = vld [vmem:[%s9822_s19 + $0x17a8] sm:$0xff] }
 0x2e2   : > { %8650 = vmatpush1.bf16.msra.mxu0 %v8649_v13  ;;  %v6553_v13 = vld [vmem:[%s9822_s19 + $0x1430] sm:$0xff] }
 0x2e3   : > { %8714 = vmatpush1.bf16.msra.mxu1 %v8713_v14  ;;  %8652 = vmatprep.subr.bf16.mxu0 %v8651_v15  ;;  %v6561_v14 = vld [vmem:[%s9822_s19 + $0x1470] sm:$0xff]  ;;  %v8731_v15 = vpack.c.bf16 %v6562_v7, %v6554_v5 }
 0x2e4   : > { %8716 = vmatprep.subr.bf16.mxu1 %v8715_v19  ;;  %v6570_v19 = vld [vmem:[%s9822_s19 + $0x14b8] sm:$0xff]  ;;  %v8733_v24 = vpack.c.bf16 %v6561_v14, %v6553_v13  ;;  %v6616_v13 = vld [vmem:[%s9822_s19 + $0x1628] sm:$0xff] }
 0x2e5   : > { %v8735_v35 = vpack.c.bf16 %v6578_v20, %v6570_v19 }
 0x2e6   : > { %8654 = vmatpush1.bf16.msra.mxu0 %v8653_v25  ;;  %v8671_v25 = vpack.c.bf16 %v6576_v17, %v6568_v16  ;;  %v6618_v16 = vld [vmem:[%s9822_s19 + $0x1638] sm:$0xff] }
 0x2e7   : > { %8718 = vmatpush1.bf16.msra.mxu1 %v8717_v27  ;;  %8656 = vmatprep.subr.bf16.mxu0 %v8655_v28  ;;  %v6575_v27 = vld [vmem:[%s9822_s19 + $0x14e0] sm:$0xff]  ;;  %v6569_v28 = vld [vmem:[%s9822_s19 + $0x14b0] sm:$0xff]  ;;  %v6626_v17 = vld [vmem:[%s9822_s19 + $0x1678] sm:$0xff] }
 0x2e8   : > { %v2691_v0 = vpop.f32.mrb[14].mxu0  ;;  %8720 = vmatprep.subr.bf16.mxu1 %v8719_v31  ;;  %v6584_v31 = vld [vmem:[%s9822_s19 + $0x1528] sm:$0xff] }
 0x2e9   : > { %v2692_v18 = vadd.f32 %v2691_v0, %v10160_v34  ;;  %v2693_v52 = vpop.f32.mrb[15].mxu0  ;;  %v2762_v53 = vpop.f32.mrb[14].mxu1 }
 0x2ea   : > { %v2694_v55 = vadd.f32 %v2693_v52, %v10160_v34  ;;  %8658 = vmatpush1.bf16.msra.mxu0 %v8657_v40  ;;  %v2763_v56 = vadd.f32 %v2762_v53, %v10160_v34  ;;  %v2764_v57 = vpop.f32.mrb[15].mxu1  ;;  %v8739_v53 = vpack.c.bf16 %v6594_v38, %v6586_v36  ;;  %v6631_v38 = vld [vmem:[%s9822_s19 + $0x16a0] sm:$0xff] }
 0x2eb   : > { %9390 = vtanh.f32 %v2692_v18  ;;  %8722 = vmatpush1.bf16.msra.mxu1 %v8721_v46  ;;  %v2765_v58 = vadd.f32 %v2764_v57, %v10160_v34  ;;  %8660 = vmatprep.subr.bf16.mxu0 %v8659_v41  ;;  %v8673_v46 = vpack.c.bf16 %v6575_v27, %v6567_v22  ;;  %v8737_v41 = vpack.c.bf16 %v6577_v29, %v6569_v28  ;;  %v6623_v22 = vld [vmem:[%s9822_s19 + $0x1660] sm:$0xff]  ;;  %v6625_v27 = vld [vmem:[%s9822_s19 + $0x1670] sm:$0xff]  ;;  %v6632_v28 = vld [vmem:[%s9822_s19 + $0x16a8] sm:$0xff] }
 0x2ec   : > { %9392 = vtanh.f32 %v2694_v55  ;;  %8724 = vmatprep.subr.bf16.mxu1 %v8723_v45  ;;  %v8675_v45 = vpack.c.bf16 %v6592_v32, %v6584_v31  ;;  %v6640_v29 = vld [vmem:[%s9822_s19 + $0x16e8] sm:$0xff]  ;;  %v6642_v31 = vld [vmem:[%s9822_s19 + $0x16f8] sm:$0xff] }
 0x2ed   : > { %9394 = vtanh.f32 %v2763_v56  ;;  %v8687_v36 = vpack.c.bf16 %v6640_v29, %v6632_v28  ;;  %v6717_v29 = vld [vmem:[%s9558_s14 + $0x18d0] sm:$0xff] }
 0x2ee   : > { %9396 = vtanh.f32 %v2765_v58  ;;  %8662 = vmatpush1.bf16.msra.mxu0 %v8661_v26  ;;  %v6602_v26 = vld [vmem:[%s9822_s19 + $0x15b8] sm:$0xff] }
 0x2ef   : > { %8726 = vmatpush1.bf16.msra.mxu1 %v8725_v59  ;;  %8664 = vmatprep.subr.bf16.mxu0 %v8663_v60  ;;  %v6610_v58 = vld [vmem:[%s9822_s19 + $0x15f8] sm:$0xff] }
 0x2f0   : > { %8728 = vmatprep.subr.bf16.mxu1 %v8727_v62  ;;  %v8743_v9 = vpack.c.bf16 %v6610_v58, %v6602_v26 }
 0x2f2   : > { %8666 = vmatpush1.bf16.msra.mxu0 %v8665_v8 }
 0x2f3   : > { %8730 = vmatpush1.bf16.msra.mxu1 %v8729_v10  ;;  %8668 = vmatprep.subr.bf16.mxu0 %v8667_v11  ;;  %v6601_v10 = vld [vmem:[%s9822_s19 + $0x15b0] sm:$0xff] }
 0x2f4   : > { %8732 = vmatprep.subr.bf16.mxu1 %v8731_v15  ;;  %v6609_v11 = vld [vmem:[%s9822_s19 + $0x15f0] sm:$0xff]  ;;  %v6624_v15 = vld [vmem:[%s9822_s19 + $0x1668] sm:$0xff] }
 0x2f5   : > { %v9391_v33 = vpop.eup %9390  ;;  %v8745_v19 = vpack.c.bf16 %v6609_v11, %v6601_v10  ;;  %v6691_v10 = vld [vmem:[%s9558_s14 + $0x1800] sm:$0xff] }
 0x2f6   : > { %v9393_v40 = vpop.eup %9392  ;;  %8670 = vmatpush1.bf16.msra.mxu0 %v8669_v21  ;;  %v2895_v43 = vsub.f32 %v9391_v33, %v6161_v51  ;;  %v6615_v21 = vld [vmem:[%s9822_s19 + $0x1620] sm:$0xff] }
 0x2f7   : > { %v9395_v44 = vpop.eup %9394  ;;  %v2806_v0 = vcombine.low %v9391_v33, %v9393_v40  ;;  %8734 = vmatpush1.bf16.msra.mxu1 %v8733_v24  ;;  %8672 = vmatprep.subr.bf16.mxu0 %v8671_v25  ;;  %v2896_v18 = vsub.f32 %v9393_v40, %v2885_v30  ;;  %v8683_v24 = vpack.c.bf16 %v6624_v15, %v6616_v13  ;;  %v6633_v40 = vld [vmem:[%s9822_s19 + $0x16b0] sm:$0xff]  ;;  %v6699_v11 = vld [vmem:[%s9558_s14 + $0x1840] sm:$0xff] }
 0x2f8   : > { %v9397_v52 = vpop.eup %9396  ;;  %8736 = vmatprep.subr.bf16.mxu1 %v8735_v35  ;;  %v2897_v55 = vsub.f32 %v9395_v44, %v6162_v23  ;;  %v2903_v56 = vand.u32 2147483647, %v2895_v43  ;;  %v6617_v23 = vld [vmem:[%s9822_s19 + $0x1630] sm:$0xff]  ;;  %v8747_v25 = vpack.c.bf16 %v6626_v17, %v6618_v16  ;;  %v6634_v35 = vld [vmem:[%s9822_s19 + $0x16b8] sm:$0xff]  ;;  %v8685_v32 = vpack.c.bf16 %v6623_v22, %v6615_v21  ;;  %v6656_v43 = vld [vmem:[%s9822_s19 + $0x1768] sm:$0xff] }
 0x2f9   : > { %6153 = vst [vmem:[%s10521_s21 + $0x30] sm:$0x77] %v2806_v0  ;;  %v2807_v57 = vcombine.low %v9395_v44, %v9397_v52  ;;  %v2898_v59 = vsub.f32 %v9397_v52, %v2886_v39  ;;  %v2904_v60 = vand.u32 2147483647, %v2896_v18  ;;  %v8749_v33 = vpack.c.bf16 %v6625_v27, %v6617_v23  ;;  %v6639_v39 = vld [vmem:[%s9822_s19 + $0x16e0] sm:$0xff]  ;;  %v6650_v44 = vld [vmem:[%s9822_s19 + $0x1738] sm:$0xff] }
 0x2fa   : > { %8674 = vmatpush1.bf16.msra.mxu0 %v8673_v46  ;;  %v2905_v6 = vand.u32 2147483647, %v2897_v55  ;;  %v2914_v62 = vsel %vm1591_vm0, %v2903_v56, 0.0  ;;  %v8751_v46 = vpack.c.bf16 %v6642_v31, %v6634_v35  ;;  %v6658_v0 = vld [vmem:[%s9822_s19 + $0x1778] sm:$0xff]  ;;  %v8691_v48 = vpack.c.bf16 %v6656_v43, %v6648_v42  ;;  %v6655_v18 = vld [vmem:[%s9822_s19 + $0x1760] sm:$0xff]  ;;  %v6649_v52 = vld [vmem:[%s9822_s19 + $0x1730] sm:$0xff] }
 0x2fb   : > { %6154 = vst [vmem:[%s10521_s21 + $0x38] sm:$0x77] %v2807_v57  ;;  %8738 = vmatpush1.bf16.msra.mxu1 %v8737_v41  ;;  %8676 = vmatprep.subr.bf16.mxu0 %v8675_v45  ;;  %v2906_v5 = vand.u32 2147483647, %v2898_v59  ;;  %v2915_v7 = vadd.f32 %v2914_v62, %v11143_v50  ;;  %v2916_v8 = vsel %vm1591_vm0, %v2904_v60, 0.0  ;;  %v8681_v50 = vpack.c.bf16 %v6607_v4, %v6599_v3  ;;  %v6641_v41 = vld [vmem:[%s9822_s19 + $0x16f0] sm:$0xff] }
 0x2fc   : > { %8740 = vmatprep.subr.bf16.mxu1 %v8739_v53  ;;  %v2918_v12 = vsel %vm1591_vm0, %v2905_v6, 0.0  ;;  %v8689_v45 = vpack.c.bf16 %v6639_v39, %v6631_v38  ;;  %v8753_v47 = vpack.c.bf16 %v6641_v41, %v6633_v40  ;;  %v8755_v53 = vpack.c.bf16 %v6658_v0, %v6650_v44  ;;  %v6672_v55 = vld [vmem:[%s9822_s19 + $0x17e8] sm:$0xff]  ;;  %v6666_v56 = vld [vmem:[%s9822_s19 + $0x17b8] sm:$0xff]  ;;  %v6663_v60 = vld [vmem:[%s9822_s19 + $0x17a0] sm:$0xff] }
 0x2fd   : > { %v2917_v14 = vadd.f32 %v2916_v8, %v2915_v7  ;;  %v2920_v51 = vsel %vm1591_vm0, %v2906_v5, 0.0  ;;  %v6674_v57 = vld [vmem:[%s9822_s19 + $0x17f8] sm:$0xff]  ;;  %v8693_v26 = vpack.c.bf16 %v6655_v18, %v6647_v49  ;;  %v8757_v58 = vpack.c.bf16 %v6657_v54, %v6649_v52  ;;  %v6673_v62 = vld [vmem:[%s9822_s19 + $0x17f0] sm:$0xff]  ;;  %v6700_v3 = vld [vmem:[%s9558_s14 + $0x1848] sm:$0xff] }
 0x2fe   : > { %8678 = vmatpush1.bf16.msra.mxu0 %v8677_v63  ;;  %v8695_v59 = vpack.c.bf16 %v6672_v55, %v6664_v37  ;;  %v6671_v63 = vld [vmem:[%s9822_s19 + $0x17e0] sm:$0xff]  ;;  %v8759_v6 = vpack.c.bf16 %v6674_v57, %v6666_v56  ;;  %v6694_v4 = vld [vmem:[%s9558_s14 + $0x1818] sm:$0xff]  ;;  %v6701_v15 = vld [vmem:[%s9558_s14 + $0x1850] sm:$0xff] }
 0x2ff   : > { %8742 = vmatpush1.bf16.msra.mxu1 %v8741_v61  ;;  %8680 = vmatprep.subr.bf16.mxu0 %v8679_v2  ;;  %v2919_v20 = vadd.f32 %v2918_v12, %v2917_v14  ;;  %v6665_v61 = vld [vmem:[%s9822_s19 + $0x17b0] sm:$0xff]  ;;  %v6692_v2 = vld [vmem:[%s9558_s14 + $0x1808] sm:$0xff]  ;;  %v6702_v5 = vld [vmem:[%s9558_s14 + $0x1858] sm:$0xff]  ;;  %v8697_v7 = vpack.c.bf16 %v6671_v63, %v6663_v60 }
 0x300   : > { %8744 = vmatprep.subr.bf16.mxu1 %v8743_v9  ;;  %v8761_v8 = vpack.c.bf16 %v6673_v62, %v6665_v61  ;;  %v8763_v9 = vpack.c.bf16 %v6700_v3, %v6692_v2  ;;  %v6693_v12 = vld [vmem:[%s9558_s14 + $0x1810] sm:$0xff]  ;;  %v8827_v14 = vpack.c.bf16 %v6702_v5, %v6694_v4  ;;  %v6708_v16 = vld [vmem:[%s9558_s14 + $0x1888] sm:$0xff]  ;;  %v6723_v41 = vld [vmem:[%s9558_s14 + $0x1900] sm:$0xff] }
 0x301   : > { %v2921_v30 = vadd.f32 %v2920_v51, %v2919_v20  ;;  %v6716_v17 = vld [vmem:[%s9558_s14 + $0x18c8] sm:$0xff]  ;;  %v6710_v51 = vld [vmem:[%s9558_s14 + $0x1898] sm:$0xff]  ;;  %v8765_v20 = vpack.c.bf16 %v6699_v11, %v6691_v10  ;;  %v8829_v22 = vpack.c.bf16 %v6701_v15, %v6693_v12  ;;  %v6709_v27 = vld [vmem:[%s9558_s14 + $0x1890] sm:$0xff] }
 0x302   : > { %8682 = vmatpush1.bf16.msra.mxu0 %v8681_v50  ;;  %v8767_v23 = vpack.c.bf16 %v6716_v17, %v6708_v16  ;;  %v6732_v35 = vld [vmem:[%s9558_s14 + $0x1948] sm:$0xff]  ;;  %v8833_v39 = vpack.c.bf16 %v6717_v29, %v6709_v27  ;;  %v6731_v42 = vld [vmem:[%s9558_s14 + $0x1940] sm:$0xff]  ;;  %v6725_v43 = vld [vmem:[%s9558_s14 + $0x1910] sm:$0xff] }
 0x303   : > { %8746 = vmatpush1.bf16.msra.mxu1 %v8745_v19  ;;  %2922 = vadd.xlane.f32.xlu1 %v2921_v30  ;;  %v6718_v19 = vld [vmem:[%s9558_s14 + $0x18d8] sm:$0xff]  ;;  %v6724_v30 = vld [vmem:[%s9558_s14 + $0x1908] sm:$0xff]  ;;  %v6733_v0 = vld [vmem:[%s9558_s14 + $0x1950] sm:$0xff]  ;;  %v8773_v52 = vpack.c.bf16 %v6731_v42, %v6723_v41 }
 0x304   : > { %8684 = vmatprep.subr.bf16.mxu0 %v8683_v24  ;;  %8748 = vmatprep.subr.bf16.mxu1 %v8747_v25  ;;  %v6707_v24 = vld [vmem:[%s9558_s14 + $0x1880] sm:$0xff]  ;;  %v8831_v28 = vpack.c.bf16 %v6718_v19, %v6710_v51  ;;  %v6742_v49 = vld [vmem:[%s9558_s14 + $0x1998] sm:$0xff]  ;;  %v8837_v54 = vpack.c.bf16 %v6733_v0, %v6725_v43  ;;  %v6741_v57 = vld [vmem:[%s9558_s14 + $0x1990] sm:$0xff] }
 0x305   : > { %v6715_v25 = vld [vmem:[%s9558_s14 + $0x18c0] sm:$0xff]  ;;  %v6750_v18 = vld [vmem:[%s9558_s14 + $0x19d8] sm:$0xff]  ;;  %v6764_v60 = vld [vmem:[%s9558_s14 + $0x1a48] sm:$0xff] }
 0x306   : > { %8686 = vmatpush1.bf16.msra.mxu0 %v8685_v32  ;;  %v11333_v32 = vld [vmem:[%s11971_s4] sm:$0x77]  ;;  %v8769_v38 = vpack.c.bf16 %v6715_v25, %v6707_v24  ;;  %v6758_v63 = vld [vmem:[%s9558_s14 + $0x1a18] sm:$0xff]  ;;  %v6757_v5 = vld [vmem:[%s9558_s14 + $0x1a10] sm:$0xff] }
 0x307   : > { %8750 = vmatpush1.bf16.msra.mxu1 %v8749_v33  ;;  %8688 = vmatprep.subr.bf16.mxu0 %v8687_v36  ;;  %v6726_v33 = vld [vmem:[%s9558_s14 + $0x1918] sm:$0xff]  ;;  %v6739_v55 = vld [vmem:[%s9558_s14 + $0x1980] sm:$0xff]  ;;  %v6780_v10 = vld [vmem:[%s9558_s14 + $0x1ac8] sm:$0xff] }
 0x308   : > { %8752 = vmatprep.subr.bf16.mxu1 %v8751_v46  ;;  %v6734_v36 = vld [vmem:[%s9558_s14 + $0x1958] sm:$0xff]  ;;  %v8771_v46 = vpack.c.bf16 %v6732_v35, %v6724_v30  ;;  %v6747_v56 = vld [vmem:[%s9558_s14 + $0x19c0] sm:$0xff]  ;;  %v6781_v19 = vld [vmem:[%s9558_s14 + $0x1ad0] sm:$0xff] }
 0x309   : > { %v8835_v44 = vpack.c.bf16 %v6734_v36, %v6726_v33  ;;  %v6766_v61 = vld [vmem:[%s9558_s14 + $0x1a58] sm:$0xff]  ;;  %v6755_v3 = vld [vmem:[%s9558_s14 + $0x1a00] sm:$0xff]  ;;  %v6789_v30 = vld [vmem:[%s9558_s14 + $0x1b10] sm:$0xff] }
 0x30a   : > { %8690 = vmatpush1.bf16.msra.mxu0 %v8689_v45  ;;  %v6740_v45 = vld [vmem:[%s9558_s14 + $0x1988] sm:$0xff]  ;;  %v6763_v4 = vld [vmem:[%s9558_s14 + $0x1a40] sm:$0xff]  ;;  %v6774_v11 = vld [vmem:[%s9558_s14 + $0x1a98] sm:$0xff] }
 0x30b   : > { %8754 = vmatpush1.bf16.msra.mxu1 %v8753_v47  ;;  %8692 = vmatprep.subr.bf16.mxu0 %v8691_v48  ;;  %v6748_v47 = vld [vmem:[%s9558_s14 + $0x19c8] sm:$0xff]  ;;  %v6782_v12 = vld [vmem:[%s9558_s14 + $0x1ad8] sm:$0xff]  ;;  %v6771_v16 = vld [vmem:[%s9558_s14 + $0x1a80] sm:$0xff] }
 0x30c   : > { %8756 = vmatprep.subr.bf16.mxu1 %v8755_v53  ;;  %v8775_v37 = vpack.c.bf16 %v6748_v47, %v6740_v45  ;;  %v6779_v17 = vld [vmem:[%s9558_s14 + $0x1ac0] sm:$0xff]  ;;  %v8847_v51 = vpack.c.bf16 %v6782_v12, %v6774_v11  ;;  %v6797_v33 = vld [vmem:[%s9558_s14 + $0x1b50] sm:$0xff]  ;;  %v6804_v36 = vld [vmem:[%s9558_s14 + $0x1b88] sm:$0xff] }
 0x30d   : > { %v8785_v24 = vpack.c.bf16 %v6779_v17, %v6771_v16  ;;  %v6795_v29 = vld [vmem:[%s9558_s14 + $0x1b40] sm:$0xff]  ;;  %v6806_v41 = vld [vmem:[%s9558_s14 + $0x1b98] sm:$0xff]  ;;  %v6837_v16 = vld [vmem:[%s9558_s14 + $0x1c90] sm:$0xff] }
 0x30e   : > { %8694 = vmatpush1.bf16.msra.mxu0 %v8693_v26  ;;  %v8839_v26 = vpack.c.bf16 %v6750_v18, %v6742_v49  ;;  %v6814_v42 = vld [vmem:[%s9558_s14 + $0x1bd8] sm:$0xff]  ;;  %v6803_v18 = vld [vmem:[%s9558_s14 + $0x1b80] sm:$0xff]  ;;  %v6845_v17 = vld [vmem:[%s9558_s14 + $0x1cd0] sm:$0xff] }
 0x30f   : > { %8758 = vmatpush1.bf16.msra.mxu1 %v8757_v58  ;;  %8696 = vmatprep.subr.bf16.mxu0 %v8695_v59  ;;  %v6749_v58 = vld [vmem:[%s9558_s14 + $0x19d0] sm:$0xff]  ;;  %v6756_v59 = vld [vmem:[%s9558_s14 + $0x1a08] sm:$0xff]  ;;  %v6835_v11 = vld [vmem:[%s9558_s14 + $0x1c80] sm:$0xff] }
 0x310   : > { %v2866_v13 = vpop.xlane.xlu1 %2865  ;;  %8760 = vmatprep.subr.bf16.mxu1 %v8759_v6  ;;  %v8777_v6 = vpack.c.bf16 %v6747_v56, %v6739_v55  ;;  %v8841_v62 = vpack.c.bf16 %v6749_v58, %v6741_v57  ;;  %v8779_v2 = vpack.c.bf16 %v6764_v60, %v6756_v59  ;;  %v6820_v55 = vld [vmem:[%s9558_s14 + $0x1c08] sm:$0xff]  ;;  %v6822_v57 = vld [vmem:[%s9558_s14 + $0x1c18] sm:$0xff]  ;;  %v6683_v58 = vld [vmem:[%s10180_s30 + $0x40] sm:$0x77] }
 0x311   : > { %v2867_v50 = vrot.slane %v2866_v13, 4  ;;  %v6828_v56 = vld [vmem:[%s9558_s14 + $0x1c48] sm:$0xff]  ;;  %v4085_v12 = vcombine.high %v6683_v58, %v6683_v58 }
 0x312   : > { %8698 = vmatpush1.bf16.msra.mxu0 %v8697_v7  ;;  %v8843_v7 = vpack.c.bf16 %v6766_v61, %v6758_v63  ;;  %v8795_v63 = vpack.c.bf16 %v6828_v56, %v6820_v55  ;;  %v6819_v61 = vld [vmem:[%s9558_s14 + $0x1c00] sm:$0xff] }
 0x313   : > { %v2868_v21 = vadd.f32 %v2867_v50, %v2866_v13  ;;  %8762 = vmatpush1.bf16.msra.mxu1 %v8761_v8  ;;  %8764 = vmatprep.subr.bf16.mxu0 %v8763_v9  ;;  %v6765_v8 = vld [vmem:[%s9558_s14 + $0x1a50] sm:$0xff]  ;;  %v6772_v9 = vld [vmem:[%s9558_s14 + $0x1a88] sm:$0xff]  ;;  %v8781_v13 = vpack.c.bf16 %v6763_v4, %v6755_v3  ;;  %v6867_v55 = vld [vmem:[%s9558_s14 + $0x1d80] sm:$0xff] }
 0x314   : > { %8828 = vmatprep.subr.bf16.mxu1 %v8827_v14  ;;  %v8845_v14 = vpack.c.bf16 %v6765_v8, %v6757_v5  ;;  %v8783_v15 = vpack.c.bf16 %v6780_v10, %v6772_v9  ;;  %v6773_v50 = vld [vmem:[%s9558_s14 + $0x1a90] sm:$0xff]  ;;  %v6836_v4 = vld [vmem:[%s9558_s14 + $0x1c88] sm:$0xff]  ;;  %v6846_v8 = vld [vmem:[%s9558_s14 + $0x1cd8] sm:$0xff] }
 0x315   : > { %v2869_v31 = vrot.slane %v2868_v21, 2  ;;  %3949 = vmatmul.mubr.f32.vlgmr.msra.gmra.mrb[22].mxu0 %v11333_v32  ;;  %v8849_v25 = vpack.c.bf16 %v6781_v19, %v6773_v50  ;;  %v6829_v3 = vld [vmem:[%s9558_s14 + $0x1c50] sm:$0xff]  ;;  %v6844_v5 = vld [vmem:[%s9558_s14 + $0x1cc8] sm:$0xff]  ;;  %v6875_v56 = vld [vmem:[%s9558_s14 + $0x1dc0] sm:$0xff] }
 0x316   : > { %4020 = vmatmul.mubr.f32.vlgmr.msra.gmra.mrb[22].mxu1 %v11333_v32  ;;  %8766 = vmatpush1.bf16.msra.mxu0 %v8765_v20  ;;  %v6788_v20 = vld [vmem:[%s9558_s14 + $0x1b08] sm:$0xff] }
 0x317   : > { %8830 = vmatpush1.bf16.msra.mxu1 %v8829_v22  ;;  %8768 = vmatprep.subr.bf16.mxu0 %v8767_v23  ;;  %v2870_v40 = vadd.f32 %v2869_v31, %v2868_v21  ;;  %v6796_v21 = vld [vmem:[%s9558_s14 + $0x1b48] sm:$0xff]  ;;  %v6790_v22 = vld [vmem:[%s9558_s14 + $0x1b18] sm:$0xff] }
 0x318   : > { %8832 = vmatprep.subr.bf16.mxu1 %v8831_v28  ;;  %4516 = vmatprep.mubr.f32.mxu0 %v9545_v1  ;;  %v6798_v23 = vld [vmem:[%s9558_s14 + $0x1b58] sm:$0xff]  ;;  %v8787_v27 = vpack.c.bf16 %v6796_v21, %v6788_v20  ;;  %v6787_v28 = vld [vmem:[%s9558_s14 + $0x1b00] sm:$0xff]  ;;  %v6684_v9 = vld [vmem:[%s10180_s30 + $0x48] sm:$0x77] }
 0x319   : > { %v2871_v48 = vrot.slane %v2870_v40, 1  ;;  %4587 = vmatprep.mubr.f32.mxu1 %v9545_v1  ;;  %v8851_v31 = vpack.c.bf16 %v6798_v23, %v6790_v22  ;;  %v8789_v45 = vpack.c.bf16 %v6795_v29, %v6787_v28  ;;  %v6860_v19 = vld [vmem:[%s9558_s14 + $0x1d48] sm:$0xff]  ;;  %v4086_v21 = vcombine.high %v6684_v9, %v6684_v9  ;;  %v6854_v22 = vld [vmem:[%s9558_s14 + $0x1d18] sm:$0xff] }
 0x31a   : > { %8770 = vmatpush1.bf16.msra.mxu0 %v8769_v38  ;;  %v6812_v38 = vld [vmem:[%s9558_s14 + $0x1bc8] sm:$0xff]  ;;  %v6862_v23 = vld [vmem:[%s9558_s14 + $0x1d58] sm:$0xff]  ;;  %v8865_v28 = vpack.c.bf16 %v6845_v17, %v6837_v16 }
 0x31b   : > { %8834 = vmatpush1.bf16.msra.mxu1 %v8833_v39  ;;  %v2872_v53 = vadd.f32 %v2871_v48, %v2870_v40  ;;  %8772 = vmatprep.subr.bf16.mxu0 %v8771_v46  ;;  %v8853_v48 = vpack.c.bf16 %v6797_v33, %v6789_v30  ;;  %v8791_v49 = vpack.c.bf16 %v6812_v38, %v6804_v36  ;;  %v6851_v33 = vld [vmem:[%s9558_s14 + $0x1d00] sm:$0xff]  ;;  %v6853_v38 = vld [vmem:[%s9558_s14 + $0x1d10] sm:$0xff]  ;;  %v6908_v16 = vld [vmem:[%s9558_s14 + $0x1ec8] sm:$0xff] }
 0x31c   : > { %8836 = vmatprep.subr.bf16.mxu1 %v8835_v44  ;;  %v6859_v36 = vld [vmem:[%s9558_s14 + $0x1d40] sm:$0xff] }
 0x31d   : > { %9279 = vpush %v2872_v53  ;;  %v6805_v53 = vld [vmem:[%s9558_s14 + $0x1b90] sm:$0xff] }
 0x31e   : > { %8774 = vmatpush1.bf16.msra.mxu0 %v8773_v52  ;;  %v6811_v52 = vld [vmem:[%s9558_s14 + $0x1bc0] sm:$0xff] }
 0x31f   : > { %8838 = vmatpush1.bf16.msra.mxu1 %v8837_v54  ;;  %8776 = vmatprep.subr.bf16.mxu0 %v8775_v37  ;;  %v8855_v54 = vpack.c.bf16 %v6814_v42, %v6806_v41  ;;  %v6813_v37 = vld [vmem:[%s9558_s14 + $0x1bd0] sm:$0xff]  ;;  %v8793_v59 = vpack.c.bf16 %v6811_v52, %v6803_v18  ;;  %v8867_v41 = vpack.c.bf16 %v6862_v23, %v6854_v22  ;;  %v6899_v22 = vld [vmem:[%s9558_s14 + $0x1e80] sm:$0xff] }
 0x320   : > { %8840 = vmatprep.subr.bf16.mxu1 %v8839_v26  ;;  %v6830_v26 = vld [vmem:[%s9558_s14 + $0x1c58] sm:$0xff]  ;;  %v8857_v60 = vpack.c.bf16 %v6813_v37, %v6805_v53  ;;  %v6861_v42 = vld [vmem:[%s9558_s14 + $0x1d50] sm:$0xff]  ;;  %v8805_v52 = vpack.c.bf16 %v6859_v36, %v6851_v33  ;;  %v6907_v23 = vld [vmem:[%s9558_s14 + $0x1ec0] sm:$0xff] }
 0x322   : > { %8778 = vmatpush1.bf16.msra.mxu0 %v8777_v6  ;;  %v6827_v6 = vld [vmem:[%s9558_s14 + $0x1c40] sm:$0xff] }
 0x323   : > { %8842 = vmatpush1.bf16.msra.mxu1 %v8841_v62  ;;  %8780 = vmatprep.subr.bf16.mxu0 %v8779_v2  ;;  %v6821_v62 = vld [vmem:[%s9558_s14 + $0x1c10] sm:$0xff]  ;;  %v8859_v2 = vpack.c.bf16 %v6830_v26, %v6822_v57  ;;  %v8797_v10 = vpack.c.bf16 %v6827_v6, %v6819_v61  ;;  %v6892_v61 = vld [vmem:[%s9558_s14 + $0x1e48] sm:$0xff] }
 0x324   : > { %8844 = vmatprep.subr.bf16.mxu1 %v8843_v7  ;;  %v6838_v7 = vld [vmem:[%s9558_s14 + $0x1c98] sm:$0xff]  ;;  %v6869_v57 = vld [vmem:[%s9558_s14 + $0x1d90] sm:$0xff] }
 0x325   : > { %v8863_v50 = vpack.c.bf16 %v6846_v8, %v6838_v7 }
 0x326   : > { %8782 = vmatpush1.bf16.msra.mxu0 %v8781_v13  ;;  %v8861_v13 = vpack.c.bf16 %v6829_v3, %v6821_v62  ;;  %v6894_v3 = vld [vmem:[%s9558_s14 + $0x1e58] sm:$0xff] }
 0x327   : > { %8846 = vmatpush1.bf16.msra.mxu1 %v8845_v14  ;;  %8784 = vmatprep.subr.bf16.mxu0 %v8783_v15  ;;  %v8799_v14 = vpack.c.bf16 %v6844_v5, %v6836_v4  ;;  %v6843_v15 = vld [vmem:[%s9558_s14 + $0x1cc0] sm:$0xff]  ;;  %v8809_v5 = vpack.c.bf16 %v6875_v56, %v6867_v55  ;;  %v6704_v55 = vld [vmem:[%s9558_s14 + $0x1868] sm:$0xff]  ;;  %v6698_v56 = vld [vmem:[%s9558_s14 + $0x1838] sm:$0xff] }
 0x328   : > { %v3259_v35 = vpop.f32.mrb[16].mxu0  ;;  %8848 = vmatprep.subr.bf16.mxu1 %v8847_v51  ;;  %v6852_v51 = vld [vmem:[%s9558_s14 + $0x1d08] sm:$0xff] }
 0x329   : > { %v3260_v39 = vadd.f32 %v3259_v35, %v10160_v34  ;;  %v3261_v40 = vpop.f32.mrb[17].mxu0  ;;  %v3330_v46 = vpop.f32.mrb[16].mxu1 }
 0x32a   : > { %v3262_v43 = vadd.f32 %v3261_v40, %v10160_v34  ;;  %8786 = vmatpush1.bf16.msra.mxu0 %v8785_v24  ;;  %v3331_v44 = vadd.f32 %v3330_v46, %v10160_v34  ;;  %v3332_v0 = vpop.f32.mrb[17].mxu1 }
 0x32b   : > { %9398 = vtanh.f32 %v3260_v39  ;;  %8850 = vmatpush1.bf16.msra.mxu1 %v8849_v25  ;;  %v3333_v47 = vadd.f32 %v3332_v0, %v10160_v34  ;;  %8788 = vmatprep.subr.bf16.mxu0 %v8787_v27  ;;  %v8801_v27 = vpack.c.bf16 %v6843_v15, %v6835_v11  ;;  %v6891_v11 = vld [vmem:[%s9558_s14 + $0x1e40] sm:$0xff]  ;;  %v6900_v15 = vld [vmem:[%s9558_s14 + $0x1e88] sm:$0xff] }
 0x32c   : > { %9400 = vtanh.f32 %v3262_v43  ;;  %8852 = vmatprep.subr.bf16.mxu1 %v8851_v31  ;;  %v8803_v31 = vpack.c.bf16 %v6860_v19, %v6852_v51  ;;  %v6868_v43 = vld [vmem:[%s9558_s14 + $0x1d88] sm:$0xff]  ;;  %v6910_v51 = vld [vmem:[%s9558_s14 + $0x1ed8] sm:$0xff] }
 0x32d   : > { %9402 = vtanh.f32 %v3331_v44  ;;  %v6876_v44 = vld [vmem:[%s9558_s14 + $0x1dc8] sm:$0xff] }
 0x32e   : > { %9404 = vtanh.f32 %v3333_v47  ;;  %8790 = vmatpush1.bf16.msra.mxu0 %v8789_v45  ;;  %v8807_v37 = vpack.c.bf16 %v6876_v44, %v6868_v43  ;;  %v6940_v43 = vld [vmem:[%s9558_s14 + $0x1fc8] sm:$0xff]  ;;  %v6934_v44 = vld [vmem:[%s9558_s14 + $0x1f98] sm:$0xff] }
 0x32f   : > { %8854 = vmatpush1.bf16.msra.mxu1 %v8853_v48  ;;  %8792 = vmatprep.subr.bf16.mxu0 %v8791_v49  ;;  %v6870_v48 = vld [vmem:[%s9558_s14 + $0x1d98] sm:$0xff] }
 0x330   : > { %8856 = vmatprep.subr.bf16.mxu1 %v8855_v54  ;;  %v6878_v49 = vld [vmem:[%s9558_s14 + $0x1dd8] sm:$0xff]  ;;  %v8869_v54 = vpack.c.bf16 %v6861_v42, %v6853_v38  ;;  %v6915_v38 = vld [vmem:[%s9558_s14 + $0x1f00] sm:$0xff]  ;;  %v6932_v42 = vld [vmem:[%s9558_s14 + $0x1f88] sm:$0xff] }
 0x332   : > { %8794 = vmatpush1.bf16.msra.mxu0 %v8793_v59  ;;  %v8871_v59 = vpack.c.bf16 %v6878_v49, %v6870_v48  ;;  %v8823_v48 = vpack.c.bf16 %v6940_v43, %v6932_v42  ;;  %v6931_v49 = vld [vmem:[%s9558_s14 + $0x1f80] sm:$0xff]  ;;  %v6768_v42 = vld [vmem:[%s9558_s14 + $0x1a68] sm:$0xff]  ;;  %v6762_v43 = vld [vmem:[%s9558_s14 + $0x1a38] sm:$0xff] }
 0x333   : > { %8858 = vmatpush1.bf16.msra.mxu1 %v8857_v60  ;;  %8796 = vmatprep.subr.bf16.mxu0 %v8795_v63  ;;  %v6877_v60 = vld [vmem:[%s9558_s14 + $0x1dd0] sm:$0xff]  ;;  %v6884_v63 = vld [vmem:[%s9558_s14 + $0x1e08] sm:$0xff] }
 0x334   : > { %8860 = vmatprep.subr.bf16.mxu1 %v8859_v2  ;;  %v6886_v2 = vld [vmem:[%s9558_s14 + $0x1e18] sm:$0xff]  ;;  %v8873_v8 = vpack.c.bf16 %v6877_v60, %v6869_v57  ;;  %v6695_v60 = vld [vmem:[%s9558_s14 + $0x1820] sm:$0xff] }
 0x335   : > { %v9399_v20 = vpop.eup %9398  ;;  %v6706_v57 = vld [vmem:[%s9558_s14 + $0x1878] sm:$0xff] }
 0x336   : > { %v9401_v24 = vpop.eup %9400  ;;  %v4093_v25 = vsub.f32 %v9399_v20, %v6683_v58  ;;  %8798 = vmatpush1.bf16.msra.mxu0 %v8797_v10  ;;  %v6883_v10 = vld [vmem:[%s9558_s14 + $0x1e00] sm:$0xff] }
 0x337   : > { %v9403_v29 = vpop.eup %9402  ;;  %v4042_v30 = vcombine.low %v9399_v20, %v9401_v24  ;;  %v4094_v35 = vsub.f32 %v9401_v24, %v4085_v12  ;;  %8862 = vmatpush1.bf16.msra.mxu1 %v8861_v13  ;;  %8800 = vmatprep.subr.bf16.mxu0 %v8799_v14  ;;  %v6885_v12 = vld [vmem:[%s9558_s14 + $0x1e10] sm:$0xff]  ;;  %v8875_v13 = vpack.c.bf16 %v6894_v3, %v6886_v2  ;;  %v6712_v2 = vld [vmem:[%s9558_s14 + $0x18a8] sm:$0xff] }
 0x338   : > { %v9405_v39 = vpop.eup %9404  ;;  %v4101_v40 = vand.u32 2147483647, %v4093_v25  ;;  %v4095_v46 = vsub.f32 %v9403_v29, %v6684_v9  ;;  %8864 = vmatprep.subr.bf16.mxu1 %v8863_v50  ;;  %v8811_v9 = vpack.c.bf16 %v6892_v61, %v6884_v63  ;;  %v6893_v14 = vld [vmem:[%s9558_s14 + $0x1e50] sm:$0xff]  ;;  %v6902_v50 = vld [vmem:[%s9558_s14 + $0x1e98] sm:$0xff]  ;;  %v8813_v19 = vpack.c.bf16 %v6891_v11, %v6883_v10  ;;  %v6703_v63 = vld [vmem:[%s9558_s14 + $0x1860] sm:$0xff] }
 0x339   : > { %6675 = vst [vmem:[%s10213_s11 + $0x40] sm:$0x77] %v4042_v30  ;;  %v4102_v0 = vand.u32 2147483647, %v4094_v35  ;;  %v4043_v45 = vcombine.low %v9403_v29, %v9405_v39  ;;  %v4096_v47 = vsub.f32 %v9405_v39, %v4086_v21  ;;  %v8877_v20 = vpack.c.bf16 %v6893_v14, %v6885_v12  ;;  %v6901_v24 = vld [vmem:[%s9558_s14 + $0x1e90] sm:$0xff]  ;;  %v6924_v29 = vld [vmem:[%s9558_s14 + $0x1f48] sm:$0xff] }
 0x33a   : > { %v4103_v18 = vand.u32 2147483647, %v4095_v46  ;;  %8802 = vmatpush1.bf16.msra.mxu0 %v8801_v27  ;;  %v4109_v53 = vsel %vm1591_vm0, %v4101_v40, 0.0  ;;  %v8815_v21 = vpack.c.bf16 %v6908_v16, %v6900_v15  ;;  %v8879_v25 = vpack.c.bf16 %v6910_v51, %v6902_v50  ;;  %v6909_v27 = vld [vmem:[%s9558_s14 + $0x1ed0] sm:$0xff]  ;;  %v6918_v30 = vld [vmem:[%s9558_s14 + $0x1f18] sm:$0xff]  ;;  %v6923_v39 = vld [vmem:[%s9558_s14 + $0x1f40] sm:$0xff] }
 0x33b   : > { %6676 = vst [vmem:[%s10213_s11 + $0x48] sm:$0x77] %v4043_v45  ;;  %8866 = vmatpush1.bf16.msra.mxu1 %v8865_v28  ;;  %8804 = vmatprep.subr.bf16.mxu0 %v8803_v31  ;;  %v4104_v26 = vand.u32 2147483647, %v4096_v47  ;;  %v4110_v58 = vsel %vm1591_vm0, %v4102_v0, 0.0  ;;  %v6916_v28 = vld [vmem:[%s9558_s14 + $0x1f08] sm:$0xff]  ;;  %v8817_v31 = vpack.c.bf16 %v6907_v23, %v6899_v22  ;;  %v8881_v33 = vpack.c.bf16 %v6909_v27, %v6901_v24 }
 0x33c   : > { %8868 = vmatprep.subr.bf16.mxu1 %v8867_v41  ;;  %v4111_v6 = vadd.f32 %v4110_v58, %v4109_v53  ;;  %v4112_v62 = vsel %vm1591_vm0, %v4103_v18, 0.0  ;;  %v6926_v35 = vld [vmem:[%s9558_s14 + $0x1f58] sm:$0xff]  ;;  %v8819_v36 = vpack.c.bf16 %v6924_v29, %v6916_v28  ;;  %v6917_v40 = vld [vmem:[%s9558_s14 + $0x1f10] sm:$0xff]  ;;  %v8821_v45 = vpack.c.bf16 %v6923_v39, %v6915_v38  ;;  %v6939_v18 = vld [vmem:[%s9558_s14 + $0x1fc0] sm:$0xff] }
 0x33d   : > { %v4114_v4 = vsel %vm1591_vm0, %v4104_v26, 0.0  ;;  %v8883_v46 = vpack.c.bf16 %v6926_v35, %v6918_v30  ;;  %v6925_v41 = vld [vmem:[%s9558_s14 + $0x1f50] sm:$0xff]  ;;  %v6942_v0 = vld [vmem:[%s9558_s14 + $0x1fd8] sm:$0xff]  ;;  %v8825_v26 = vpack.c.bf16 %v6939_v18, %v6931_v49  ;;  %v6720_v3 = vld [vmem:[%s9558_s14 + $0x18e8] sm:$0xff] }
 0x33e   : > { %8806 = vmatpush1.bf16.msra.mxu0 %v8805_v52  ;;  %v4113_v7 = vadd.f32 %v4112_v62, %v4111_v6  ;;  %v8885_v47 = vpack.c.bf16 %v6925_v41, %v6917_v40  ;;  %v6933_v52 = vld [vmem:[%s9558_s14 + $0x1f90] sm:$0xff]  ;;  %v8887_v53 = vpack.c.bf16 %v6942_v0, %v6934_v44  ;;  %v8955_v6 = vpack.c.bf16 %v6706_v57, %v6698_v56  ;;  %v6711_v10 = vld [vmem:[%s9558_s14 + $0x18a0] sm:$0xff]  ;;  %v6728_v15 = vld [vmem:[%s9558_s14 + $0x1928] sm:$0xff] }
 0x33f   : > { %8870 = vmatpush1.bf16.msra.mxu1 %v8869_v54  ;;  %8808 = vmatprep.subr.bf16.mxu0 %v8807_v37  ;;  %v6941_v54 = vld [vmem:[%s9558_s14 + $0x1fd0] sm:$0xff]  ;;  %v6696_v37 = vld [vmem:[%s9558_s14 + $0x1828] sm:$0xff]  ;;  %v6719_v11 = vld [vmem:[%s9558_s14 + $0x18e0] sm:$0xff] }
 0x340   : > { %8872 = vmatprep.subr.bf16.mxu1 %v8871_v59  ;;  %v11439_v17 = vadd.f32 %v4114_v4, %v4113_v7  ;;  %v8889_v58 = vpack.c.bf16 %v6941_v54, %v6933_v52  ;;  %v8891_v59 = vpack.c.bf16 %v6704_v55, %v6696_v37  ;;  %v6697_v61 = vld [vmem:[%s9558_s14 + $0x1830] sm:$0xff]  ;;  %v6714_v4 = vld [vmem:[%s9558_s14 + $0x18b8] sm:$0xff]  ;;  %v8893_v7 = vpack.c.bf16 %v6703_v63, %v6695_v60  ;;  %v6736_v16 = vld [vmem:[%s9558_s14 + $0x1968] sm:$0xff] }
 0x341   : > { %v6705_v62 = vld [vmem:[%s9558_s14 + $0x1870] sm:$0xff]  ;;  %v6730_v50 = vld [vmem:[%s9558_s14 + $0x1938] sm:$0xff]  ;;  %v6727_v22 = vld [vmem:[%s9558_s14 + $0x1920] sm:$0xff] }
 0x342   : > { %8810 = vmatpush1.bf16.msra.mxu0 %v8809_v5  ;;  %v6722_v5 = vld [vmem:[%s9558_s14 + $0x18f8] sm:$0xff]  ;;  %v6713_v12 = vld [vmem:[%s9558_s14 + $0x18b0] sm:$0xff]  ;;  %v6735_v23 = vld [vmem:[%s9558_s14 + $0x1960] sm:$0xff] }
 0x343   : > { %8874 = vmatpush1.bf16.msra.mxu1 %v8873_v8  ;;  %8812 = vmatprep.subr.bf16.mxu0 %v8811_v9  ;;  %v8957_v8 = vpack.c.bf16 %v6705_v62, %v6697_v61  ;;  %v8895_v9 = vpack.c.bf16 %v6720_v3, %v6712_v2  ;;  %v6721_v14 = vld [vmem:[%s9558_s14 + $0x18f0] sm:$0xff]  ;;  %v6738_v51 = vld [vmem:[%s9558_s14 + $0x1978] sm:$0xff]  ;;  %v6744_v28 = vld [vmem:[%s9558_s14 + $0x19a8] sm:$0xff]  ;;  %v8901_v35 = vpack.c.bf16 %v6735_v23, %v6727_v22 }
 0x344   : > { %8876 = vmatprep.subr.bf16.mxu1 %v8875_v13  ;;  %v8959_v13 = vpack.c.bf16 %v6722_v5, %v6714_v4  ;;  %v6729_v24 = vld [vmem:[%s9558_s14 + $0x1930] sm:$0xff]  ;;  %v6752_v29 = vld [vmem:[%s9558_s14 + $0x19e8] sm:$0xff]  ;;  %v6754_v30 = vld [vmem:[%s9558_s14 + $0x19f8] sm:$0xff] }
 0x345   : > { %v6737_v27 = vld [vmem:[%s9558_s14 + $0x1970] sm:$0xff]  ;;  %v6751_v38 = vld [vmem:[%s9558_s14 + $0x19e0] sm:$0xff]  ;;  %v6760_v41 = vld [vmem:[%s9558_s14 + $0x1a28] sm:$0xff] }
 0x346   : > { %8814 = vmatpush1.bf16.msra.mxu0 %v8813_v19  ;;  %v8897_v19 = vpack.c.bf16 %v6719_v11, %v6711_v10  ;;  %v6745_v39 = vld [vmem:[%s9558_s14 + $0x19b0] sm:$0xff]  ;;  %v6770_v44 = vld [vmem:[%s9558_s14 + $0x1a78] sm:$0xff]  ;;  %v6767_v49 = vld [vmem:[%s9558_s14 + $0x1a60] sm:$0xff] }
 0x347   : > { %8878 = vmatpush1.bf16.msra.mxu1 %v8877_v20  ;;  %8816 = vmatprep.subr.bf16.mxu0 %v8815_v21  ;;  %v8961_v20 = vpack.c.bf16 %v6721_v14, %v6713_v12  ;;  %v8899_v21 = vpack.c.bf16 %v6736_v16, %v6728_v15  ;;  %v6761_v18 = vld [vmem:[%s9558_s14 + $0x1a30] sm:$0xff]  ;;  %v8971_v52 = vpack.c.bf16 %v6770_v44, %v6762_v43  ;;  %v6776_v54 = vld [vmem:[%s9558_s14 + $0x1aa8] sm:$0xff]  ;;  %v6778_v55 = vld [vmem:[%s9558_s14 + $0x1ab8] sm:$0xff] }
 0x348   : > { %8880 = vmatprep.subr.bf16.mxu1 %v8879_v25  ;;  %v8963_v25 = vpack.c.bf16 %v6738_v51, %v6730_v50  ;;  %v6784_v37 = vld [vmem:[%s9558_s14 + $0x1ae8] sm:$0xff]  ;;  %v6786_v56 = vld [vmem:[%s9558_s14 + $0x1af8] sm:$0xff]  ;;  %v6783_v60 = vld [vmem:[%s9558_s14 + $0x1ae0] sm:$0xff] }
 0x349   : > { %v6777_v63 = vld [vmem:[%s9558_s14 + $0x1ab0] sm:$0xff]  ;;  %v8975_v61 = vpack.c.bf16 %v6786_v56, %v6778_v55  ;;  %v6792_v62 = vld [vmem:[%s9558_s14 + $0x1b28] sm:$0xff]  ;;  %v6794_v3 = vld [vmem:[%s9558_s14 + $0x1b38] sm:$0xff] }
 0x34a   : > { %8818 = vmatpush1.bf16.msra.mxu0 %v8817_v31  ;;  %v8965_v31 = vpack.c.bf16 %v6737_v27, %v6729_v24  ;;  %v6800_v2 = vld [vmem:[%s9558_s14 + $0x1b68] sm:$0xff]  ;;  %v6802_v4 = vld [vmem:[%s9558_s14 + $0x1b78] sm:$0xff]  ;;  %v6799_v10 = vld [vmem:[%s9558_s14 + $0x1b60] sm:$0xff] }
 0x34b   : > { %8882 = vmatpush1.bf16.msra.mxu1 %v8881_v33  ;;  %8820 = vmatprep.subr.bf16.mxu0 %v8819_v36  ;;  %v8903_v33 = vpack.c.bf16 %v6752_v29, %v6744_v28  ;;  %v6743_v36 = vld [vmem:[%s9558_s14 + $0x19a0] sm:$0xff]  ;;  %v6793_v11 = vld [vmem:[%s9558_s14 + $0x1b30] sm:$0xff]  ;;  %v6808_v15 = vld [vmem:[%s9558_s14 + $0x1ba8] sm:$0xff] }
 0x34c   : > { %8884 = vmatprep.subr.bf16.mxu1 %v8883_v46  ;;  %v6753_v46 = vld [vmem:[%s9558_s14 + $0x19f0] sm:$0xff]  ;;  %v8905_v0 = vpack.c.bf16 %v6751_v38, %v6743_v36  ;;  %v6816_v16 = vld [vmem:[%s9558_s14 + $0x1be8] sm:$0xff]  ;;  %v6831_v44 = vld [vmem:[%s9558_s14 + $0x1c60] sm:$0xff] }
 0x34d   : > { %v6801_v14 = vld [vmem:[%s9558_s14 + $0x1b70] sm:$0xff]  ;;  %v8919_v29 = vpack.c.bf16 %v6816_v16, %v6808_v15  ;;  %v6824_v36 = vld [vmem:[%s9558_s14 + $0x1c28] sm:$0xff]  ;;  %v6686_v55 = vld [vmem:[%s10180_s30 + $0x58] sm:$0x77] }
 0x34e   : > { %8822 = vmatpush1.bf16.msra.mxu0 %v8821_v45  ;;  %v8969_v45 = vpack.c.bf16 %v6753_v46, %v6745_v39  ;;  %v8981_v28 = vpack.c.bf16 %v6801_v14, %v6793_v11  ;;  %v6832_v38 = vld [vmem:[%s9558_s14 + $0x1c68] sm:$0xff]  ;;  %v6826_v39 = vld [vmem:[%s9558_s14 + $0x1c38] sm:$0xff]  ;;  %v6863_v14 = vld [vmem:[%s9558_s14 + $0x1d60] sm:$0xff] }
 0x34f   : > { %8886 = vmatpush1.bf16.msra.mxu1 %v8885_v47  ;;  %8824 = vmatprep.subr.bf16.mxu0 %v8823_v48  ;;  %v8907_v47 = vpack.c.bf16 %v6768_v42, %v6760_v41  ;;  %v6759_v48 = vld [vmem:[%s9558_s14 + $0x1a20] sm:$0xff]  ;;  %v8923_v43 = vpack.c.bf16 %v6832_v38, %v6824_v36  ;;  %v6857_v15 = vld [vmem:[%s9558_s14 + $0x1d30] sm:$0xff] }
 0x350   : > { %8888 = vmatprep.subr.bf16.mxu1 %v8887_v53  ;;  %v6769_v53 = vld [vmem:[%s9558_s14 + $0x1a70] sm:$0xff]  ;;  %v8909_v57 = vpack.c.bf16 %v6767_v49, %v6759_v48  ;;  %v6823_v41 = vld [vmem:[%s9558_s14 + $0x1c20] sm:$0xff]  ;;  %v6840_v48 = vld [vmem:[%s9558_s14 + $0x1ca8] sm:$0xff] }
 0x351   : > { %v6848_v49 = vld [vmem:[%s9558_s14 + $0x1ce8] sm:$0xff]  ;;  %v6865_v16 = vld [vmem:[%s9558_s14 + $0x1d70] sm:$0xff]  ;;  %v6871_v36 = vld [vmem:[%s9558_s14 + $0x1da0] sm:$0xff] }
 0x352   : > { %8826 = vmatpush1.bf16.msra.mxu0 %v8825_v26  ;;  %v8973_v26 = vpack.c.bf16 %v6769_v53, %v6761_v18  ;;  %v6685_v18 = vld [vmem:[%s10180_s30 + $0x50] sm:$0x77]  ;;  %v6850_v53 = vld [vmem:[%s9558_s14 + $0x1cf8] sm:$0xff]  ;;  %v6879_v38 = vld [vmem:[%s9558_s14 + $0x1de0] sm:$0xff] }
 0x353   : > { %8890 = vmatpush1.bf16.msra.mxu1 %v8889_v58  ;;  %8892 = vmatprep.subr.bf16.mxu0 %v8891_v59  ;;  %v8911_v58 = vpack.c.bf16 %v6784_v37, %v6776_v54  ;;  %v6775_v59 = vld [vmem:[%s9558_s14 + $0x1aa0] sm:$0xff]  ;;  %v8925_v54 = vpack.c.bf16 %v6831_v44, %v6823_v41 }
 0x354   : > { %8956 = vmatprep.subr.bf16.mxu1 %v8955_v6  ;;  %v6785_v6 = vld [vmem:[%s9558_s14 + $0x1af0] sm:$0xff]  ;;  %v8913_v5 = vpack.c.bf16 %v6783_v60, %v6775_v59  ;;  %v6839_v37 = vld [vmem:[%s9558_s14 + $0x1ca0] sm:$0xff]  ;;  %v4087_v60 = vcombine.high %v6685_v18, %v6685_v18 }
 0x355   : > { %4517 = vmatmul.mubr.f32.vlgmr.msra.gmra.mrb[24].mxu0 %v11333_v32  ;;  %v6849_v59 = vld [vmem:[%s9558_s14 + $0x1cf0] sm:$0xff] }
 0x356   : > { %4588 = vmatmul.mubr.f32.vlgmr.msra.gmra.mrb[24].mxu1 %v11333_v32  ;;  %8894 = vmatpush1.bf16.msra.mxu0 %v8893_v7  ;;  %v6746_v32 = vld [vmem:[%s9558_s14 + $0x19b8] sm:$0xff]  ;;  %v8977_v7 = vpack.c.bf16 %v6785_v6, %v6777_v63  ;;  %v6864_v6 = vld [vmem:[%s9558_s14 + $0x1d68] sm:$0xff] }
 0x357   : > { %8958 = vmatpush1.bf16.msra.mxu1 %v8957_v8  ;;  %8896 = vmatprep.subr.bf16.mxu0 %v8895_v9  ;;  %v8967_v40 = vpack.c.bf16 %v6754_v30, %v6746_v32  ;;  %v8915_v8 = vpack.c.bf16 %v6800_v2, %v6792_v62  ;;  %v6791_v9 = vld [vmem:[%s9558_s14 + $0x1b20] sm:$0xff]  ;;  %v6858_v2 = vld [vmem:[%s9558_s14 + $0x1d38] sm:$0xff] }
 0x358   : > { %8960 = vmatprep.subr.bf16.mxu1 %v8959_v13  ;;  %4658 = vmatprep.mubr.f32.mxu0 %v9545_v1  ;;  %v8979_v13 = vpack.c.bf16 %v6802_v4, %v6794_v3  ;;  %v6807_v32 = vld [vmem:[%s9558_s14 + $0x1ba0] sm:$0xff]  ;;  %v6866_v3 = vld [vmem:[%s9558_s14 + $0x1d78] sm:$0xff]  ;;  %v4088_v4 = vcombine.high %v6686_v55, %v6686_v55 }
 0x359   : > { %4729 = vmatprep.mubr.f32.mxu1 %v9545_v1  ;;  %v6815_v30 = vld [vmem:[%s9558_s14 + $0x1be0] sm:$0xff] }
 0x35a   : > { %8898 = vmatpush1.bf16.msra.mxu0 %v8897_v19  ;;  %v8921_v46 = vpack.c.bf16 %v6815_v30, %v6807_v32  ;;  %v8997_v30 = vpack.c.bf16 %v6865_v16, %v6857_v15  ;;  %v6919_v16 = vld [vmem:[%s9558_s14 + $0x1f20] sm:$0xff] }
 0x35b   : > { %8962 = vmatpush1.bf16.msra.mxu1 %v8961_v20  ;;  %8900 = vmatprep.subr.bf16.mxu0 %v8899_v21  ;;  %v6810_v20 = vld [vmem:[%s9558_s14 + $0x1bb8] sm:$0xff] }
 0x35c   : > { %8964 = vmatprep.subr.bf16.mxu1 %v8963_v25  ;;  %v6818_v21 = vld [vmem:[%s9558_s14 + $0x1bf8] sm:$0xff]  ;;  %v8917_v25 = vpack.c.bf16 %v6799_v10, %v6791_v9  ;;  %v6855_v9 = vld [vmem:[%s9558_s14 + $0x1d20] sm:$0xff] }
 0x35d   : > { %v8933_v32 = vpack.c.bf16 %v6863_v14, %v6855_v9  ;;  %v6920_v9 = vld [vmem:[%s9558_s14 + $0x1f28] sm:$0xff] }
 0x35e   : > { %8902 = vmatpush1.bf16.msra.mxu0 %v8901_v35  ;;  %v6809_v35 = vld [vmem:[%s9558_s14 + $0x1bb0] sm:$0xff] }
 0x35f   : > { %8966 = vmatpush1.bf16.msra.mxu1 %v8965_v31  ;;  %8904 = vmatprep.subr.bf16.mxu0 %v8903_v33  ;;  %v8983_v31 = vpack.c.bf16 %v6818_v21, %v6810_v20  ;;  %v6817_v33 = vld [vmem:[%s9558_s14 + $0x1bf0] sm:$0xff]  ;;  %v6872_v20 = vld [vmem:[%s9558_s14 + $0x1da8] sm:$0xff] }
 0x360   : > { %8968 = vmatprep.subr.bf16.mxu1 %v8967_v40  ;;  %v6834_v40 = vld [vmem:[%s9558_s14 + $0x1c78] sm:$0xff]  ;;  %v8985_v42 = vpack.c.bf16 %v6817_v33, %v6809_v35  ;;  %v6880_v21 = vld [vmem:[%s9558_s14 + $0x1de8] sm:$0xff] }
 0x361   : > { %v8935_v33 = vpack.c.bf16 %v6880_v21, %v6872_v20  ;;  %v6929_v20 = vld [vmem:[%s9558_s14 + $0x1f70] sm:$0xff]  ;;  %v6936_v21 = vld [vmem:[%s9558_s14 + $0x1fa8] sm:$0xff] }
 0x362   : > { %8906 = vmatpush1.bf16.msra.mxu0 %v8905_v0  ;;  %v6825_v0 = vld [vmem:[%s9558_s14 + $0x1c30] sm:$0xff] }
 0x363   : > { %8970 = vmatpush1.bf16.msra.mxu1 %v8969_v45  ;;  %8908 = vmatprep.subr.bf16.mxu0 %v8907_v47  ;;  %v6833_v45 = vld [vmem:[%s9558_s14 + $0x1c70] sm:$0xff]  ;;  %v8987_v47 = vpack.c.bf16 %v6834_v40, %v6826_v39 }
 0x364   : > { %8972 = vmatprep.subr.bf16.mxu1 %v8971_v52  ;;  %v6842_v52 = vld [vmem:[%s9558_s14 + $0x1cb8] sm:$0xff]  ;;  %v8989_v56 = vpack.c.bf16 %v6833_v45, %v6825_v0  ;;  %v6888_v0 = vld [vmem:[%s9558_s14 + $0x1e28] sm:$0xff] }
 0x365   : > { %v8991_v63 = vpack.c.bf16 %v6850_v53, %v6842_v52 }
 0x366   : > { %8910 = vmatpush1.bf16.msra.mxu0 %v8909_v57  ;;  %v8927_v57 = vpack.c.bf16 %v6848_v49, %v6840_v48  ;;  %v6890_v48 = vld [vmem:[%s9558_s14 + $0x1e38] sm:$0xff] }
 0x367   : > { %8974 = vmatpush1.bf16.msra.mxu1 %v8973_v26  ;;  %8912 = vmatprep.subr.bf16.mxu0 %v8911_v58  ;;  %v6847_v26 = vld [vmem:[%s9558_s14 + $0x1ce0] sm:$0xff]  ;;  %v6841_v58 = vld [vmem:[%s9558_s14 + $0x1cb0] sm:$0xff]  ;;  %v6898_v49 = vld [vmem:[%s9558_s14 + $0x1e78] sm:$0xff] }
 0x368   : > { %v3401_v12 = vpop.f32.mrb[18].mxu0  ;;  %8976 = vmatprep.subr.bf16.mxu1 %v8975_v61  ;;  %v6856_v61 = vld [vmem:[%s9558_s14 + $0x1d28] sm:$0xff] }
 0x369   : > { %v3402_v50 = vadd.f32 %v3401_v12, %v10160_v34  ;;  %v3403_v51 = vpop.f32.mrb[19].mxu0  ;;  %v3472_v19 = vpop.f32.mrb[18].mxu1 }
 0x36a   : > { %v3404_v22 = vadd.f32 %v3403_v51, %v10160_v34  ;;  %8914 = vmatpush1.bf16.msra.mxu0 %v8913_v5  ;;  %v3473_v23 = vadd.f32 %v3472_v19, %v10160_v34  ;;  %v3474_v24 = vpop.f32.mrb[19].mxu1  ;;  %v8995_v19 = vpack.c.bf16 %v6866_v3, %v6858_v2  ;;  %v6903_v3 = vld [vmem:[%s9558_s14 + $0x1ea0] sm:$0xff] }
 0x36b   : > { %9406 = vtanh.f32 %v3402_v50  ;;  %8978 = vmatpush1.bf16.msra.mxu1 %v8977_v7  ;;  %v3475_v27 = vadd.f32 %v3474_v24, %v10160_v34  ;;  %8916 = vmatprep.subr.bf16.mxu0 %v8915_v8  ;;  %v8929_v7 = vpack.c.bf16 %v6847_v26, %v6839_v37  ;;  %v8993_v8 = vpack.c.bf16 %v6849_v59, %v6841_v58  ;;  %v6895_v37 = vld [vmem:[%s9558_s14 + $0x1e60] sm:$0xff]  ;;  %v6897_v26 = vld [vmem:[%s9558_s14 + $0x1e70] sm:$0xff]  ;;  %v6904_v58 = vld [vmem:[%s9558_s14 + $0x1ea8] sm:$0xff] }
 0x36c   : > { %9408 = vtanh.f32 %v3404_v22  ;;  %8980 = vmatprep.subr.bf16.mxu1 %v8979_v13  ;;  %v8931_v13 = vpack.c.bf16 %v6864_v6, %v6856_v61  ;;  %v6912_v59 = vld [vmem:[%s9558_s14 + $0x1ee8] sm:$0xff]  ;;  %v6914_v61 = vld [vmem:[%s9558_s14 + $0x1ef8] sm:$0xff] }
 0x36d   : > { %9410 = vtanh.f32 %v3473_v23  ;;  %v8943_v2 = vpack.c.bf16 %v6912_v59, %v6904_v58  ;;  %v6973_v59 = vld [vmem:[%s9822_s19 + $0x18d0] sm:$0xff] }
 0x36e   : > { %9412 = vtanh.f32 %v3475_v27  ;;  %8918 = vmatpush1.bf16.msra.mxu0 %v8917_v25  ;;  %v6874_v25 = vld [vmem:[%s9558_s14 + $0x1db8] sm:$0xff] }
 0x36f   : > { %8982 = vmatpush1.bf16.msra.mxu1 %v8981_v28  ;;  %8920 = vmatprep.subr.bf16.mxu0 %v8919_v29  ;;  %v6882_v27 = vld [vmem:[%s9558_s14 + $0x1df8] sm:$0xff] }
 0x370   : > { %8984 = vmatprep.subr.bf16.mxu1 %v8983_v31  ;;  %v8999_v41 = vpack.c.bf16 %v6882_v27, %v6874_v25 }
 0x372   : > { %8922 = vmatpush1.bf16.msra.mxu0 %v8921_v46 }
 0x373   : > { %8986 = vmatpush1.bf16.msra.mxu1 %v8985_v42  ;;  %8924 = vmatprep.subr.bf16.mxu0 %v8923_v43  ;;  %v6873_v42 = vld [vmem:[%s9558_s14 + $0x1db0] sm:$0xff] }
 0x374   : > { %8988 = vmatprep.subr.bf16.mxu1 %v8987_v47  ;;  %v6881_v43 = vld [vmem:[%s9558_s14 + $0x1df0] sm:$0xff]  ;;  %v6896_v47 = vld [vmem:[%s9558_s14 + $0x1e68] sm:$0xff] }
 0x375   : > { %v9407_v62 = vpop.eup %9406  ;;  %v9001_v52 = vpack.c.bf16 %v6881_v43, %v6873_v42  ;;  %v6947_v42 = vld [vmem:[%s9822_s19 + $0x1800] sm:$0xff] }
 0x376   : > { %v9409_v5 = vpop.eup %9408  ;;  %8926 = vmatpush1.bf16.msra.mxu0 %v8925_v54  ;;  %v4097_v10 = vsub.f32 %v9407_v62, %v6685_v18  ;;  %v6887_v54 = vld [vmem:[%s9558_s14 + $0x1e20] sm:$0xff] }
 0x377   : > { %v9411_v11 = vpop.eup %9410  ;;  %v4044_v12 = vcombine.low %v9407_v62, %v9409_v5  ;;  %8990 = vmatpush1.bf16.msra.mxu1 %v8989_v56  ;;  %8928 = vmatprep.subr.bf16.mxu0 %v8927_v57  ;;  %v4098_v50 = vsub.f32 %v9409_v5, %v4087_v60  ;;  %v8939_v56 = vpack.c.bf16 %v6896_v47, %v6888_v0  ;;  %v6905_v5 = vld [vmem:[%s9558_s14 + $0x1eb0] sm:$0xff]  ;;  %v6955_v43 = vld [vmem:[%s9822_s19 + $0x1840] sm:$0xff] }
 0x378   : > { %v9413_v51 = vpop.eup %9412  ;;  %8992 = vmatprep.subr.bf16.mxu1 %v8991_v63  ;;  %v4099_v22 = vsub.f32 %v9411_v11, %v6686_v55  ;;  %v4105_v23 = vand.u32 2147483647, %v4097_v10  ;;  %v6889_v55 = vld [vmem:[%s9558_s14 + $0x1e30] sm:$0xff]  ;;  %v9003_v57 = vpack.c.bf16 %v6898_v49, %v6890_v48  ;;  %v6906_v63 = vld [vmem:[%s9558_s14 + $0x1eb8] sm:$0xff]  ;;  %v8941_v6 = vpack.c.bf16 %v6895_v37, %v6887_v54  ;;  %v6928_v10 = vld [vmem:[%s9558_s14 + $0x1f68] sm:$0xff] }
 0x379   : > { %6677 = vst [vmem:[%s10213_s11 + $0x50] sm:$0x77] %v4044_v12  ;;  %v4045_v24 = vcombine.low %v9411_v11, %v9413_v51  ;;  %v4100_v28 = vsub.f32 %v9413_v51, %v4088_v4  ;;  %v4106_v29 = vand.u32 2147483647, %v4098_v50  ;;  %v9005_v62 = vpack.c.bf16 %v6897_v26, %v6889_v55  ;;  %v6911_v4 = vld [vmem:[%s9558_s14 + $0x1ee0] sm:$0xff]  ;;  %v6922_v11 = vld [vmem:[%s9558_s14 + $0x1f38] sm:$0xff] }
 0x37a   : > { %8930 = vmatpush1.bf16.msra.mxu0 %v8929_v7  ;;  %v4107_v35 = vand.u32 2147483647, %v4099_v22  ;;  %v4116_v31 = vsel %vm1591_vm0, %v4105_v23, 0.0  ;;  %v9007_v7 = vpack.c.bf16 %v6914_v61, %v6906_v63  ;;  %v6930_v12 = vld [vmem:[%s9558_s14 + $0x1f78] sm:$0xff]  ;;  %v8947_v15 = vpack.c.bf16 %v6928_v10, %v6920_v9  ;;  %v6927_v50 = vld [vmem:[%s9558_s14 + $0x1f60] sm:$0xff]  ;;  %v6921_v51 = vld [vmem:[%s9558_s14 + $0x1f30] sm:$0xff] }
 0x37b   : > { %6678 = vst [vmem:[%s10213_s11 + $0x58] sm:$0x77] %v4045_v24  ;;  %8994 = vmatpush1.bf16.msra.mxu1 %v8993_v8  ;;  %8932 = vmatprep.subr.bf16.mxu0 %v8931_v13  ;;  %v4108_v39 = vand.u32 2147483647, %v4100_v28  ;;  %v4117_v40 = vadd.f32 %v4116_v31, %v11439_v17  ;;  %v4118_v46 = vsel %vm1591_vm0, %v4106_v29, 0.0  ;;  %v8937_v17 = vpack.c.bf16 %v6879_v38, %v6871_v36  ;;  %v6913_v8 = vld [vmem:[%s9558_s14 + $0x1ef0] sm:$0xff] }
 0x37c   : > { %8996 = vmatprep.subr.bf16.mxu1 %v8995_v19  ;;  %v4120_v44 = vsel %vm1591_vm0, %v4107_v35, 0.0  ;;  %v8945_v13 = vpack.c.bf16 %v6911_v4, %v6903_v3  ;;  %v9009_v14 = vpack.c.bf16 %v6913_v8, %v6905_v5  ;;  %v9011_v19 = vpack.c.bf16 %v6930_v12, %v6922_v11  ;;  %v6944_v22 = vld [vmem:[%s9558_s14 + $0x1fe8] sm:$0xff]  ;;  %v6938_v23 = vld [vmem:[%s9558_s14 + $0x1fb8] sm:$0xff]  ;;  %v6935_v29 = vld [vmem:[%s9558_s14 + $0x1fa0] sm:$0xff] }
 0x37d   : > { %v4119_v45 = vadd.f32 %v4118_v46, %v4117_v40  ;;  %v4122_v18 = vsel %vm1591_vm0, %v4108_v39, 0.0  ;;  %v6946_v24 = vld [vmem:[%s9558_s14 + $0x1ff8] sm:$0xff]  ;;  %v8949_v25 = vpack.c.bf16 %v6927_v50, %v6919_v16  ;;  %v9013_v27 = vpack.c.bf16 %v6929_v20, %v6921_v51  ;;  %v6945_v31 = vld [vmem:[%s9558_s14 + $0x1ff0] sm:$0xff]  ;;  %v6956_v36 = vld [vmem:[%s9822_s19 + $0x1848] sm:$0xff] }
 0x37e   : > { %8934 = vmatpush1.bf16.msra.mxu0 %v8933_v32  ;;  %v8951_v28 = vpack.c.bf16 %v6944_v22, %v6936_v21  ;;  %v6943_v32 = vld [vmem:[%s9558_s14 + $0x1fe0] sm:$0xff]  ;;  %v9015_v35 = vpack.c.bf16 %v6946_v24, %v6938_v23  ;;  %v6950_v38 = vld [vmem:[%s9822_s19 + $0x1818] sm:$0xff]  ;;  %v6957_v47 = vld [vmem:[%s9822_s19 + $0x1850] sm:$0xff] }
 0x37f   : > { %8998 = vmatpush1.bf16.msra.mxu1 %v8997_v30  ;;  %8936 = vmatprep.subr.bf16.mxu0 %v8935_v33  ;;  %v4121_v53 = vadd.f32 %v4120_v44, %v4119_v45  ;;  %v6937_v30 = vld [vmem:[%s9558_s14 + $0x1fb0] sm:$0xff]  ;;  %v6948_v33 = vld [vmem:[%s9822_s19 + $0x1808] sm:$0xff]  ;;  %v6958_v39 = vld [vmem:[%s9822_s19 + $0x1858] sm:$0xff]  ;;  %v8953_v40 = vpack.c.bf16 %v6943_v32, %v6935_v29 }
 0x380   : > { %9000 = vmatprep.subr.bf16.mxu1 %v8999_v41  ;;  %v9017_v46 = vpack.c.bf16 %v6945_v31, %v6937_v30  ;;  %v9019_v41 = vpack.c.bf16 %v6956_v36, %v6948_v33  ;;  %v6949_v44 = vld [vmem:[%s9822_s19 + $0x1810] sm:$0xff]  ;;  %v9083_v45 = vpack.c.bf16 %v6958_v39, %v6950_v38  ;;  %v6964_v48 = vld [vmem:[%s9822_s19 + $0x1888] sm:$0xff]  ;;  %v6979_v8 = vld [vmem:[%s9822_s19 + $0x1900] sm:$0xff] }
 0x381   : > { %v4123_v60 = vadd.f32 %v4122_v18, %v4121_v53  ;;  %v6972_v49 = vld [vmem:[%s9822_s19 + $0x18c8] sm:$0xff]  ;;  %v6966_v18 = vld [vmem:[%s9822_s19 + $0x1898] sm:$0xff]  ;;  %v9021_v53 = vpack.c.bf16 %v6955_v43, %v6947_v42  ;;  %v9085_v37 = vpack.c.bf16 %v6957_v47, %v6949_v44  ;;  %v6965_v26 = vld [vmem:[%s9822_s19 + $0x1890] sm:$0xff] }
 0x382   : > { %8938 = vmatpush1.bf16.msra.mxu0 %v8937_v17  ;;  %v9023_v55 = vpack.c.bf16 %v6972_v49, %v6964_v48  ;;  %v6988_v63 = vld [vmem:[%s9822_s19 + $0x1948] sm:$0xff]  ;;  %v9089_v4 = vpack.c.bf16 %v6973_v59, %v6965_v26  ;;  %v6987_v9 = vld [vmem:[%s9822_s19 + $0x1940] sm:$0xff]  ;;  %v6981_v10 = vld [vmem:[%s9822_s19 + $0x1910] sm:$0xff] }
 0x383   : > { %9002 = vmatpush1.bf16.msra.mxu1 %v9001_v52  ;;  %4124 = vadd.xlane.f32.xlu1 %v4123_v60  ;;  %v6974_v52 = vld [vmem:[%s9822_s19 + $0x18d8] sm:$0xff]  ;;  %v6980_v60 = vld [vmem:[%s9822_s19 + $0x1908] sm:$0xff]  ;;  %v6989_v12 = vld [vmem:[%s9822_s19 + $0x1950] sm:$0xff]  ;;  %v9029_v51 = vpack.c.bf16 %v6987_v9, %v6979_v8 }
 0x384   : > { %8940 = vmatprep.subr.bf16.mxu0 %v8939_v56  ;;  %9004 = vmatprep.subr.bf16.mxu1 %v9003_v57  ;;  %v6963_v56 = vld [vmem:[%s9822_s19 + $0x1880] sm:$0xff]  ;;  %v9087_v58 = vpack.c.bf16 %v6974_v52, %v6966_v18  ;;  %v6998_v16 = vld [vmem:[%s9822_s19 + $0x1998] sm:$0xff]  ;;  %v9093_v20 = vpack.c.bf16 %v6989_v12, %v6981_v10  ;;  %v6997_v24 = vld [vmem:[%s9822_s19 + $0x1990] sm:$0xff] }
 0x385   : > { %v6971_v57 = vld [vmem:[%s9822_s19 + $0x18c0] sm:$0xff]  ;;  %v7006_v50 = vld [vmem:[%s9822_s19 + $0x19d8] sm:$0xff]  ;;  %v7020_v29 = vld [vmem:[%s9822_s19 + $0x1a48] sm:$0xff] }
 0x386   : > { %8942 = vmatpush1.bf16.msra.mxu0 %v8941_v6  ;;  %v11629_v6 = vld [vmem:[%s11971_s4] sm:$0x77]  ;;  %v9025_v3 = vpack.c.bf16 %v6971_v57, %v6963_v56  ;;  %v7014_v32 = vld [vmem:[%s9822_s19 + $0x1a18] sm:$0xff]  ;;  %v7013_v39 = vld [vmem:[%s9822_s19 + $0x1a10] sm:$0xff] }
 0x387   : > { %9006 = vmatpush1.bf16.msra.mxu1 %v9005_v62  ;;  %8944 = vmatprep.subr.bf16.mxu0 %v8943_v2  ;;  %v6982_v62 = vld [vmem:[%s9822_s19 + $0x1918] sm:$0xff]  ;;  %v6995_v22 = vld [vmem:[%s9822_s19 + $0x1980] sm:$0xff]  ;;  %v7036_v42 = vld [vmem:[%s9822_s19 + $0x1ac8] sm:$0xff] }
 0x388   : > { %9008 = vmatprep.subr.bf16.mxu1 %v9007_v7  ;;  %v6990_v2 = vld [vmem:[%s9822_s19 + $0x1958] sm:$0xff]  ;;  %v9027_v7 = vpack.c.bf16 %v6988_v63, %v6980_v60  ;;  %v7003_v23 = vld [vmem:[%s9822_s19 + $0x19c0] sm:$0xff]  ;;  %v7037_v52 = vld [vmem:[%s9822_s19 + $0x1ad0] sm:$0xff] }
 0x389   : > { %v9091_v11 = vpack.c.bf16 %v6990_v2, %v6982_v62  ;;  %v7022_v30 = vld [vmem:[%s9822_s19 + $0x1a58] sm:$0xff]  ;;  %v7011_v36 = vld [vmem:[%s9822_s19 + $0x1a00] sm:$0xff]  ;;  %v7045_v60 = vld [vmem:[%s9822_s19 + $0x1b10] sm:$0xff] }
 0x38a   : > { %8946 = vmatpush1.bf16.msra.mxu0 %v8945_v13  ;;  %v6996_v13 = vld [vmem:[%s9822_s19 + $0x1988] sm:$0xff]  ;;  %v7019_v38 = vld [vmem:[%s9822_s19 + $0x1a40] sm:$0xff]  ;;  %v7030_v43 = vld [vmem:[%s9822_s19 + $0x1a98] sm:$0xff] }
 0x38b   : > { %9010 = vmatpush1.bf16.msra.mxu1 %v9009_v14  ;;  %8948 = vmatprep.subr.bf16.mxu0 %v8947_v15  ;;  %v7004_v14 = vld [vmem:[%s9822_s19 + $0x19c8] sm:$0xff]  ;;  %v7038_v44 = vld [vmem:[%s9822_s19 + $0x1ad8] sm:$0xff]  ;;  %v7027_v48 = vld [vmem:[%s9822_s19 + $0x1a80] sm:$0xff] }
 0x38c   : > { %9012 = vmatprep.subr.bf16.mxu1 %v9011_v19  ;;  %v9031_v21 = vpack.c.bf16 %v7004_v14, %v6996_v13  ;;  %v7035_v49 = vld [vmem:[%s9822_s19 + $0x1ac0] sm:$0xff]  ;;  %v9103_v18 = vpack.c.bf16 %v7038_v44, %v7030_v43  ;;  %v7053_v62 = vld [vmem:[%s9822_s19 + $0x1b50] sm:$0xff]  ;;  %v7060_v2 = vld [vmem:[%s9822_s19 + $0x1b88] sm:$0xff] }
 0x38d   : > { %v9041_v56 = vpack.c.bf16 %v7035_v49, %v7027_v48  ;;  %v7051_v59 = vld [vmem:[%s9822_s19 + $0x1b40] sm:$0xff]  ;;  %v7062_v8 = vld [vmem:[%s9822_s19 + $0x1b98] sm:$0xff]  ;;  %v7093_v48 = vld [vmem:[%s9822_s19 + $0x1c90] sm:$0xff] }
 0x38e   : > { %8950 = vmatpush1.bf16.msra.mxu0 %v8949_v25  ;;  %v9095_v25 = vpack.c.bf16 %v7006_v50, %v6998_v16  ;;  %v7070_v9 = vld [vmem:[%s9822_s19 + $0x1bd8] sm:$0xff]  ;;  %v7059_v50 = vld [vmem:[%s9822_s19 + $0x1b80] sm:$0xff]  ;;  %v7101_v49 = vld [vmem:[%s9822_s19 + $0x1cd0] sm:$0xff] }
 0x38f   : > { %9014 = vmatpush1.bf16.msra.mxu1 %v9013_v27  ;;  %8952 = vmatprep.subr.bf16.mxu0 %v8951_v28  ;;  %v7005_v27 = vld [vmem:[%s9822_s19 + $0x19d0] sm:$0xff]  ;;  %v7012_v28 = vld [vmem:[%s9822_s19 + $0x1a08] sm:$0xff]  ;;  %v7091_v43 = vld [vmem:[%s9822_s19 + $0x1c80] sm:$0xff] }
 0x390   : > { %v2923_v0 = vpop.xlane.xlu1 %2922  ;;  %9016 = vmatprep.subr.bf16.mxu1 %v9015_v35  ;;  %v9033_v35 = vpack.c.bf16 %v7003_v23, %v6995_v22  ;;  %v9097_v31 = vpack.c.bf16 %v7005_v27, %v6997_v24  ;;  %v9035_v33 = vpack.c.bf16 %v7020_v29, %v7012_v28  ;;  %v7076_v22 = vld [vmem:[%s9822_s19 + $0x1c08] sm:$0xff]  ;;  %v7078_v24 = vld [vmem:[%s9822_s19 + $0x1c18] sm:$0xff]  ;;  %v6687_v27 = vld [vmem:[%s10488_s17 + $0x40] sm:$0x77] }
 0x391   : > { %v2924_v17 = vrot.slane %v2923_v0, 4  ;;  %v7084_v23 = vld [vmem:[%s9822_s19 + $0x1c48] sm:$0xff]  ;;  %v4142_v44 = vcombine.high %v6687_v27, %v6687_v27 }
 0x392   : > { %8954 = vmatpush1.bf16.msra.mxu0 %v8953_v40  ;;  %v9099_v40 = vpack.c.bf16 %v7022_v30, %v7014_v32  ;;  %v9051_v32 = vpack.c.bf16 %v7084_v23, %v7076_v22  ;;  %v7075_v30 = vld [vmem:[%s9822_s19 + $0x1c00] sm:$0xff] }
 0x393   : > { %v2925_v54 = vadd.f32 %v2924_v17, %v2923_v0  ;;  %9018 = vmatpush1.bf16.msra.mxu1 %v9017_v46  ;;  %9020 = vmatprep.subr.bf16.mxu0 %v9019_v41  ;;  %v7021_v46 = vld [vmem:[%s9822_s19 + $0x1a50] sm:$0xff]  ;;  %v7028_v41 = vld [vmem:[%s9822_s19 + $0x1a88] sm:$0xff]  ;;  %v9037_v0 = vpack.c.bf16 %v7019_v38, %v7011_v36  ;;  %v7123_v22 = vld [vmem:[%s9822_s19 + $0x1d80] sm:$0xff] }
 0x394   : > { %9084 = vmatprep.subr.bf16.mxu1 %v9083_v45  ;;  %v9101_v45 = vpack.c.bf16 %v7021_v46, %v7013_v39  ;;  %v9039_v47 = vpack.c.bf16 %v7036_v42, %v7028_v41  ;;  %v7029_v17 = vld [vmem:[%s9822_s19 + $0x1a90] sm:$0xff]  ;;  %v7092_v38 = vld [vmem:[%s9822_s19 + $0x1c88] sm:$0xff]  ;;  %v7102_v46 = vld [vmem:[%s9822_s19 + $0x1cd8] sm:$0xff] }
 0x395   : > { %v2926_v61 = vrot.slane %v2925_v54, 2  ;;  %4659 = vmatmul.mubr.f32.vlgmr.msra.gmra.mrb[26].mxu0 %v11629_v6  ;;  %v9105_v57 = vpack.c.bf16 %v7037_v52, %v7029_v17  ;;  %v7085_v36 = vld [vmem:[%s9822_s19 + $0x1c50] sm:$0xff]  ;;  %v7100_v39 = vld [vmem:[%s9822_s19 + $0x1cc8] sm:$0xff]  ;;  %v7131_v23 = vld [vmem:[%s9822_s19 + $0x1dc0] sm:$0xff] }
 0x396   : > { %4730 = vmatmul.mubr.f32.vlgmr.msra.gmra.mrb[26].mxu1 %v11629_v6  ;;  %9022 = vmatpush1.bf16.msra.mxu0 %v9021_v53  ;;  %v7044_v53 = vld [vmem:[%s9822_s19 + $0x1b08] sm:$0xff] }
 0x397   : > { %9086 = vmatpush1.bf16.msra.mxu1 %v9085_v37  ;;  %9024 = vmatprep.subr.bf16.mxu0 %v9023_v55  ;;  %v2927_v5 = vadd.f32 %v2926_v61, %v2925_v54  ;;  %v7052_v54 = vld [vmem:[%s9822_s19 + $0x1b48] sm:$0xff]  ;;  %v7046_v37 = vld [vmem:[%s9822_s19 + $0x1b18] sm:$0xff] }
 0x398   : > { %9088 = vmatprep.subr.bf16.mxu1 %v9087_v58  ;;  %5065 = vmatprep.mubr.f32.mxu0 %v9545_v1  ;;  %v7054_v55 = vld [vmem:[%s9822_s19 + $0x1b58] sm:$0xff]  ;;  %v9043_v26 = vpack.c.bf16 %v7052_v54, %v7044_v53  ;;  %v7043_v58 = vld [vmem:[%s9822_s19 + $0x1b00] sm:$0xff]  ;;  %v6688_v41 = vld [vmem:[%s10488_s17 + $0x48] sm:$0x77] }
 0x399   : > { %v2928_v15 = vrot.slane %v2927_v5, 1  ;;  %5136 = vmatprep.mubr.f32.mxu1 %v9545_v1  ;;  %v9107_v61 = vpack.c.bf16 %v7054_v55, %v7046_v37  ;;  %v9045_v13 = vpack.c.bf16 %v7051_v59, %v7043_v58  ;;  %v7116_v52 = vld [vmem:[%s9822_s19 + $0x1d48] sm:$0xff]  ;;  %v4143_v54 = vcombine.high %v6688_v41, %v6688_v41  ;;  %v7110_v37 = vld [vmem:[%s9822_s19 + $0x1d18] sm:$0xff] }
 0x39a   : > { %9026 = vmatpush1.bf16.msra.mxu0 %v9025_v3  ;;  %v7068_v3 = vld [vmem:[%s9822_s19 + $0x1bc8] sm:$0xff]  ;;  %v7118_v55 = vld [vmem:[%s9822_s19 + $0x1d58] sm:$0xff]  ;;  %v9121_v58 = vpack.c.bf16 %v7101_v49, %v7093_v48 }
 0x39b   : > { %9090 = vmatpush1.bf16.msra.mxu1 %v9089_v4  ;;  %v2929_v19 = vadd.f32 %v2928_v15, %v2927_v5  ;;  %9028 = vmatprep.subr.bf16.mxu0 %v9027_v7  ;;  %v9109_v15 = vpack.c.bf16 %v7053_v62, %v7045_v60  ;;  %v9047_v16 = vpack.c.bf16 %v7068_v3, %v7060_v2  ;;  %v7107_v62 = vld [vmem:[%s9822_s19 + $0x1d00] sm:$0xff]  ;;  %v7109_v3 = vld [vmem:[%s9822_s19 + $0x1d10] sm:$0xff]  ;;  %v7164_v48 = vld [vmem:[%s9822_s19 + $0x1ec8] sm:$0xff] }
 0x39c   : > { %9092 = vmatprep.subr.bf16.mxu1 %v9091_v11  ;;  %v7115_v2 = vld [vmem:[%s9822_s19 + $0x1d40] sm:$0xff] }
 0x39d   : > { %9281 = vpush %v2929_v19  ;;  %v7061_v19 = vld [vmem:[%s9822_s19 + $0x1b90] sm:$0xff] }
 0x39e   : > { %9030 = vmatpush1.bf16.msra.mxu0 %v9029_v51  ;;  %v7067_v51 = vld [vmem:[%s9822_s19 + $0x1bc0] sm:$0xff] }
 0x39f   : > { %9094 = vmatpush1.bf16.msra.mxu1 %v9093_v20  ;;  %9032 = vmatprep.subr.bf16.mxu0 %v9031_v21  ;;  %v9111_v20 = vpack.c.bf16 %v7070_v9, %v7062_v8  ;;  %v7069_v21 = vld [vmem:[%s9822_s19 + $0x1bd0] sm:$0xff]  ;;  %v9049_v28 = vpack.c.bf16 %v7067_v51, %v7059_v50  ;;  %v9123_v8 = vpack.c.bf16 %v7118_v55, %v7110_v37  ;;  %v7155_v37 = vld [vmem:[%s9822_s19 + $0x1e80] sm:$0xff] }
 0x3a0   : > { %9096 = vmatprep.subr.bf16.mxu1 %v9095_v25  ;;  %v7086_v25 = vld [vmem:[%s9822_s19 + $0x1c58] sm:$0xff]  ;;  %v9113_v29 = vpack.c.bf16 %v7069_v21, %v7061_v19  ;;  %v7117_v9 = vld [vmem:[%s9822_s19 + $0x1d50] sm:$0xff]  ;;  %v9061_v51 = vpack.c.bf16 %v7115_v2, %v7107_v62  ;;  %v7163_v55 = vld [vmem:[%s9822_s19 + $0x1ec0] sm:$0xff] }
 0x3a2   : > { %9034 = vmatpush1.bf16.msra.mxu0 %v9033_v35  ;;  %v7083_v35 = vld [vmem:[%s9822_s19 + $0x1c40] sm:$0xff] }
 0x3a3   : > { %9098 = vmatpush1.bf16.msra.mxu1 %v9097_v31  ;;  %9036 = vmatprep.subr.bf16.mxu0 %v9035_v33  ;;  %v7077_v31 = vld [vmem:[%s9822_s19 + $0x1c10] sm:$0xff]  ;;  %v9115_v33 = vpack.c.bf16 %v7086_v25, %v7078_v24  ;;  %v9053_v42 = vpack.c.bf16 %v7083_v35, %v7075_v30  ;;  %v7148_v30 = vld [vmem:[%s9822_s19 + $0x1e48] sm:$0xff] }
 0x3a4   : > { %9100 = vmatprep.subr.bf16.mxu1 %v9099_v40  ;;  %v7094_v40 = vld [vmem:[%s9822_s19 + $0x1c98] sm:$0xff]  ;;  %v7125_v24 = vld [vmem:[%s9822_s19 + $0x1d90] sm:$0xff] }
 0x3a5   : > { %v9119_v17 = vpack.c.bf16 %v7102_v46, %v7094_v40 }
 0x3a6   : > { %9038 = vmatpush1.bf16.msra.mxu0 %v9037_v0  ;;  %v9117_v0 = vpack.c.bf16 %v7085_v36, %v7077_v31  ;;  %v7150_v36 = vld [vmem:[%s9822_s19 + $0x1e58] sm:$0xff] }
 0x3a7   : > { %9102 = vmatpush1.bf16.msra.mxu1 %v9101_v45  ;;  %9040 = vmatprep.subr.bf16.mxu0 %v9039_v47  ;;  %v9055_v45 = vpack.c.bf16 %v7100_v39, %v7092_v38  ;;  %v7099_v47 = vld [vmem:[%s9822_s19 + $0x1cc0] sm:$0xff]  ;;  %v9065_v39 = vpack.c.bf16 %v7131_v23, %v7123_v22  ;;  %v6960_v22 = vld [vmem:[%s9822_s19 + $0x1868] sm:$0xff]  ;;  %v6954_v23 = vld [vmem:[%s9822_s19 + $0x1838] sm:$0xff] }
 0x3a8   : > { %v3808_v63 = vpop.f32.mrb[20].mxu0  ;;  %9104 = vmatprep.subr.bf16.mxu1 %v9103_v18  ;;  %v7108_v18 = vld [vmem:[%s9822_s19 + $0x1d08] sm:$0xff] }
 0x3a9   : > { %v3809_v4 = vadd.f32 %v3808_v63, %v10160_v34  ;;  %v3810_v5 = vpop.f32.mrb[21].mxu0  ;;  %v3879_v7 = vpop.f32.mrb[20].mxu1 }
 0x3aa   : > { %v3811_v10 = vadd.f32 %v3810_v5, %v10160_v34  ;;  %9042 = vmatpush1.bf16.msra.mxu0 %v9041_v56  ;;  %v3880_v11 = vadd.f32 %v3879_v7, %v10160_v34  ;;  %v3881_v12 = vpop.f32.mrb[21].mxu1 }
 0x3ab   : > { %9414 = vtanh.f32 %v3809_v4  ;;  %9106 = vmatpush1.bf16.msra.mxu1 %v9105_v57  ;;  %v3882_v14 = vadd.f32 %v3881_v12, %v10160_v34  ;;  %9044 = vmatprep.subr.bf16.mxu0 %v9043_v26  ;;  %v9057_v26 = vpack.c.bf16 %v7099_v47, %v7091_v43  ;;  %v7147_v43 = vld [vmem:[%s9822_s19 + $0x1e40] sm:$0xff]  ;;  %v7156_v47 = vld [vmem:[%s9822_s19 + $0x1e88] sm:$0xff] }
 0x3ac   : > { %9416 = vtanh.f32 %v3811_v10  ;;  %9108 = vmatprep.subr.bf16.mxu1 %v9107_v61  ;;  %v9059_v61 = vpack.c.bf16 %v7116_v52, %v7108_v18  ;;  %v7124_v10 = vld [vmem:[%s9822_s19 + $0x1d88] sm:$0xff]  ;;  %v7166_v18 = vld [vmem:[%s9822_s19 + $0x1ed8] sm:$0xff] }
 0x3ad   : > { %9418 = vtanh.f32 %v3880_v11  ;;  %v7132_v11 = vld [vmem:[%s9822_s19 + $0x1dc8] sm:$0xff] }
 0x3ae   : > { %9420 = vtanh.f32 %v3882_v14  ;;  %9046 = vmatpush1.bf16.msra.mxu0 %v9045_v13  ;;  %v9063_v21 = vpack.c.bf16 %v7132_v11, %v7124_v10  ;;  %v7196_v10 = vld [vmem:[%s9822_s19 + $0x1fc8] sm:$0xff]  ;;  %v7190_v11 = vld [vmem:[%s9822_s19 + $0x1f98] sm:$0xff] }
 0x3af   : > { %9110 = vmatpush1.bf16.msra.mxu1 %v9109_v15  ;;  %9048 = vmatprep.subr.bf16.mxu0 %v9047_v16  ;;  %v7126_v15 = vld [vmem:[%s9822_s19 + $0x1d98] sm:$0xff] }
 0x3b0   : > { %9112 = vmatprep.subr.bf16.mxu1 %v9111_v20  ;;  %v7134_v16 = vld [vmem:[%s9822_s19 + $0x1dd8] sm:$0xff]  ;;  %v9125_v20 = vpack.c.bf16 %v7117_v9, %v7109_v3  ;;  %v7171_v3 = vld [vmem:[%s9822_s19 + $0x1f00] sm:$0xff]  ;;  %v7188_v9 = vld [vmem:[%s9822_s19 + $0x1f88] sm:$0xff] }
 0x3b2   : > { %9050 = vmatpush1.bf16.msra.mxu0 %v9049_v28  ;;  %v9127_v28 = vpack.c.bf16 %v7134_v16, %v7126_v15  ;;  %v9079_v15 = vpack.c.bf16 %v7196_v10, %v7188_v9  ;;  %v7187_v16 = vld [vmem:[%s9822_s19 + $0x1f80] sm:$0xff]  ;;  %v7018_v9 = vld [vmem:[%s9822_s19 + $0x1a38] sm:$0xff] }
 0x3b3   : > { %9114 = vmatpush1.bf16.msra.mxu1 %v9113_v29  ;;  %9052 = vmatprep.subr.bf16.mxu0 %v9051_v32  ;;  %v7133_v29 = vld [vmem:[%s9822_s19 + $0x1dd0] sm:$0xff]  ;;  %v7140_v32 = vld [vmem:[%s9822_s19 + $0x1e08] sm:$0xff]  ;;  %v7026_v10 = vld [vmem:[%s9822_s19 + $0x1a78] sm:$0xff] }
 0x3b4   : > { %9116 = vmatprep.subr.bf16.mxu1 %v9115_v33  ;;  %v7142_v33 = vld [vmem:[%s9822_s19 + $0x1e18] sm:$0xff]  ;;  %v9129_v46 = vpack.c.bf16 %v7133_v29, %v7125_v24  ;;  %v6951_v29 = vld [vmem:[%s9822_s19 + $0x1820] sm:$0xff] }
 0x3b5   : > { %v9415_v53 = vpop.eup %9414  ;;  %v6962_v24 = vld [vmem:[%s9822_s19 + $0x1878] sm:$0xff] }
 0x3b6   : > { %v9417_v56 = vpop.eup %9416  ;;  %v4150_v57 = vsub.f32 %v9415_v53, %v6687_v27  ;;  %9054 = vmatpush1.bf16.msra.mxu0 %v9053_v42  ;;  %v7139_v42 = vld [vmem:[%s9822_s19 + $0x1e00] sm:$0xff] }
 0x3b7   : > { %v9419_v59 = vpop.eup %9418  ;;  %v4063_v60 = vcombine.low %v9415_v53, %v9417_v56  ;;  %v4151_v63 = vsub.f32 %v9417_v56, %v4142_v44  ;;  %9118 = vmatpush1.bf16.msra.mxu1 %v9117_v0  ;;  %9056 = vmatprep.subr.bf16.mxu0 %v9055_v45  ;;  %v7141_v44 = vld [vmem:[%s9822_s19 + $0x1e10] sm:$0xff]  ;;  %v9131_v0 = vpack.c.bf16 %v7150_v36, %v7142_v33  ;;  %v6968_v33 = vld [vmem:[%s9822_s19 + $0x18a8] sm:$0xff] }
 0x3b8   : > { %v9421_v4 = vpop.eup %9420  ;;  %v4158_v5 = vand.u32 2147483647, %v4150_v57  ;;  %v4152_v7 = vsub.f32 %v9419_v59, %v6688_v41  ;;  %9120 = vmatprep.subr.bf16.mxu1 %v9119_v17  ;;  %v9067_v41 = vpack.c.bf16 %v7148_v30, %v7140_v32  ;;  %v7149_v45 = vld [vmem:[%s9822_s19 + $0x1e50] sm:$0xff]  ;;  %v7158_v17 = vld [vmem:[%s9822_s19 + $0x1e98] sm:$0xff]  ;;  %v9069_v52 = vpack.c.bf16 %v7147_v43, %v7139_v42  ;;  %v6959_v32 = vld [vmem:[%s9822_s19 + $0x1860] sm:$0xff] }
 0x3b9   : > { %6679 = vst [vmem:[%s10521_s21 + $0x40] sm:$0x77] %v4063_v60  ;;  %v4159_v12 = vand.u32 2147483647, %v4151_v63  ;;  %v4064_v13 = vcombine.low %v9419_v59, %v9421_v4  ;;  %v4153_v14 = vsub.f32 %v9421_v4, %v4143_v54  ;;  %v9133_v53 = vpack.c.bf16 %v7149_v45, %v7141_v44  ;;  %v7157_v56 = vld [vmem:[%s9822_s19 + $0x1e90] sm:$0xff]  ;;  %v7180_v59 = vld [vmem:[%s9822_s19 + $0x1f48] sm:$0xff] }
 0x3ba   : > { %v4160_v50 = vand.u32 2147483647, %v4152_v7  ;;  %9058 = vmatpush1.bf16.msra.mxu0 %v9057_v26  ;;  %v4166_v19 = vsel %vm1591_vm0, %v4158_v5, 0.0  ;;  %v9071_v54 = vpack.c.bf16 %v7164_v48, %v7156_v47  ;;  %v9135_v57 = vpack.c.bf16 %v7166_v18, %v7158_v17  ;;  %v7165_v26 = vld [vmem:[%s9822_s19 + $0x1ed0] sm:$0xff]  ;;  %v7174_v60 = vld [vmem:[%s9822_s19 + $0x1f18] sm:$0xff]  ;;  %v7179_v4 = vld [vmem:[%s9822_s19 + $0x1f40] sm:$0xff] }
 0x3bb   : > { %6680 = vst [vmem:[%s10521_s21 + $0x48] sm:$0x77] %v4064_v13  ;;  %9122 = vmatpush1.bf16.msra.mxu1 %v9121_v58  ;;  %9060 = vmatprep.subr.bf16.mxu0 %v9059_v61  ;;  %v4161_v25 = vand.u32 2147483647, %v4153_v14  ;;  %v4167_v27 = vsel %vm1591_vm0, %v4159_v12, 0.0  ;;  %v7172_v58 = vld [vmem:[%s9822_s19 + $0x1f08] sm:$0xff]  ;;  %v9073_v61 = vpack.c.bf16 %v7163_v55, %v7155_v37  ;;  %v9137_v62 = vpack.c.bf16 %v7165_v26, %v7157_v56 }
 0x3bc   : > { %9124 = vmatprep.subr.bf16.mxu1 %v9123_v8  ;;  %v4168_v35 = vadd.f32 %v4167_v27, %v4166_v19  ;;  %v4169_v31 = vsel %vm1591_vm0, %v4160_v50, 0.0  ;;  %v7182_v63 = vld [vmem:[%s9822_s19 + $0x1f58] sm:$0xff]  ;;  %v9075_v2 = vpack.c.bf16 %v7180_v59, %v7172_v58  ;;  %v7173_v5 = vld [vmem:[%s9822_s19 + $0x1f10] sm:$0xff]  ;;  %v9077_v13 = vpack.c.bf16 %v7179_v4, %v7171_v3  ;;  %v7195_v50 = vld [vmem:[%s9822_s19 + $0x1fc0] sm:$0xff] }
 0x3bd   : > { %v4171_v38 = vsel %vm1591_vm0, %v4161_v25, 0.0  ;;  %v9139_v7 = vpack.c.bf16 %v7182_v63, %v7174_v60  ;;  %v7181_v8 = vld [vmem:[%s9822_s19 + $0x1f50] sm:$0xff]  ;;  %v7198_v12 = vld [vmem:[%s9822_s19 + $0x1fd8] sm:$0xff]  ;;  %v9081_v25 = vpack.c.bf16 %v7195_v50, %v7187_v16  ;;  %v6976_v36 = vld [vmem:[%s9822_s19 + $0x18e8] sm:$0xff]  ;;  %v9227_v50 = vpack.c.bf16 %v7026_v10, %v7018_v9 }
 0x3be   : > { %9062 = vmatpush1.bf16.msra.mxu0 %v9061_v51  ;;  %v4170_v40 = vadd.f32 %v4169_v31, %v4168_v35  ;;  %v9141_v14 = vpack.c.bf16 %v7181_v8, %v7173_v5  ;;  %v7189_v51 = vld [vmem:[%s9822_s19 + $0x1f90] sm:$0xff]  ;;  %v9143_v19 = vpack.c.bf16 %v7198_v12, %v7190_v11  ;;  %v9211_v35 = vpack.c.bf16 %v6962_v24, %v6954_v23  ;;  %v6967_v42 = vld [vmem:[%s9822_s19 + $0x18a0] sm:$0xff]  ;;  %v6984_v47 = vld [vmem:[%s9822_s19 + $0x1928] sm:$0xff] }
 0x3bf   : > { %9126 = vmatpush1.bf16.msra.mxu1 %v9125_v20  ;;  %9064 = vmatprep.subr.bf16.mxu0 %v9063_v21  ;;  %v7197_v20 = vld [vmem:[%s9822_s19 + $0x1fd0] sm:$0xff]  ;;  %v6952_v21 = vld [vmem:[%s9822_s19 + $0x1828] sm:$0xff]  ;;  %v6975_v43 = vld [vmem:[%s9822_s19 + $0x18e0] sm:$0xff] }
 0x3c0   : > { %9128 = vmatprep.subr.bf16.mxu1 %v9127_v28  ;;  %v11735_v49 = vadd.f32 %v4171_v38, %v4170_v40  ;;  %v9145_v27 = vpack.c.bf16 %v7197_v20, %v7189_v51  ;;  %v9147_v28 = vpack.c.bf16 %v6960_v22, %v6952_v21  ;;  %v6953_v30 = vld [vmem:[%s9822_s19 + $0x1830] sm:$0xff]  ;;  %v6970_v38 = vld [vmem:[%s9822_s19 + $0x18b8] sm:$0xff]  ;;  %v9149_v40 = vpack.c.bf16 %v6959_v32, %v6951_v29  ;;  %v6992_v48 = vld [vmem:[%s9822_s19 + $0x1968] sm:$0xff] }
 0x3c1   : > { %v6961_v31 = vld [vmem:[%s9822_s19 + $0x1870] sm:$0xff]  ;;  %v6986_v17 = vld [vmem:[%s9822_s19 + $0x1938] sm:$0xff]  ;;  %v6983_v37 = vld [vmem:[%s9822_s19 + $0x1920] sm:$0xff] }
 0x3c2   : > { %9066 = vmatpush1.bf16.msra.mxu0 %v9065_v39  ;;  %v6978_v39 = vld [vmem:[%s9822_s19 + $0x18f8] sm:$0xff]  ;;  %v6969_v44 = vld [vmem:[%s9822_s19 + $0x18b0] sm:$0xff]  ;;  %v6991_v55 = vld [vmem:[%s9822_s19 + $0x1960] sm:$0xff] }
 0x3c3   : > { %9130 = vmatpush1.bf16.msra.mxu1 %v9129_v46  ;;  %9068 = vmatprep.subr.bf16.mxu0 %v9067_v41  ;;  %v9213_v46 = vpack.c.bf16 %v6961_v31, %v6953_v30  ;;  %v9151_v41 = vpack.c.bf16 %v6976_v36, %v6968_v33  ;;  %v6977_v45 = vld [vmem:[%s9822_s19 + $0x18f0] sm:$0xff]  ;;  %v6994_v18 = vld [vmem:[%s9822_s19 + $0x1978] sm:$0xff]  ;;  %v7000_v58 = vld [vmem:[%s9822_s19 + $0x19a8] sm:$0xff]  ;;  %v9157_v63 = vpack.c.bf16 %v6991_v55, %v6983_v37 }
 0x3c4   : > { %9132 = vmatprep.subr.bf16.mxu1 %v9131_v0  ;;  %v9215_v0 = vpack.c.bf16 %v6978_v39, %v6970_v38  ;;  %v6985_v56 = vld [vmem:[%s9822_s19 + $0x1930] sm:$0xff]  ;;  %v7008_v59 = vld [vmem:[%s9822_s19 + $0x19e8] sm:$0xff]  ;;  %v7010_v60 = vld [vmem:[%s9822_s19 + $0x19f8] sm:$0xff] }
 0x3c5   : > { %v6993_v26 = vld [vmem:[%s9822_s19 + $0x1970] sm:$0xff]  ;;  %v7007_v3 = vld [vmem:[%s9822_s19 + $0x19e0] sm:$0xff]  ;;  %v7016_v8 = vld [vmem:[%s9822_s19 + $0x1a28] sm:$0xff] }
 0x3c6   : > { %9070 = vmatpush1.bf16.msra.mxu0 %v9069_v52  ;;  %v9153_v52 = vpack.c.bf16 %v6975_v43, %v6967_v42  ;;  %v7001_v4 = vld [vmem:[%s9822_s19 + $0x19b0] sm:$0xff]  ;;  %v7040_v20 = vld [vmem:[%s9822_s19 + $0x1ae8] sm:$0xff]  ;;  %v7034_v21 = vld [vmem:[%s9822_s19 + $0x1ab8] sm:$0xff] }
 0x3c7   : > { %9134 = vmatpush1.bf16.msra.mxu1 %v9133_v53  ;;  %9072 = vmatprep.subr.bf16.mxu0 %v9071_v54  ;;  %v9217_v53 = vpack.c.bf16 %v6977_v45, %v6969_v44  ;;  %v9155_v54 = vpack.c.bf16 %v6992_v48, %v6984_v47  ;;  %v7017_v16 = vld [vmem:[%s9822_s19 + $0x1a30] sm:$0xff]  ;;  %v7042_v22 = vld [vmem:[%s9822_s19 + $0x1af8] sm:$0xff]  ;;  %v7056_v31 = vld [vmem:[%s9822_s19 + $0x1b68] sm:$0xff] }
 0x3c8   : > { %9136 = vmatprep.subr.bf16.mxu1 %v9135_v57  ;;  %v9219_v57 = vpack.c.bf16 %v6994_v18, %v6986_v17  ;;  %v7025_v51 = vld [vmem:[%s9822_s19 + $0x1a70] sm:$0xff]  ;;  %v9231_v32 = vpack.c.bf16 %v7042_v22, %v7034_v21  ;;  %v7050_v33 = vld [vmem:[%s9822_s19 + $0x1b38] sm:$0xff]  ;;  %v7064_v45 = vld [vmem:[%s9822_s19 + $0x1ba8] sm:$0xff] }
 0x3c9   : > { %v9229_v24 = vpack.c.bf16 %v7025_v51, %v7017_v16  ;;  %v7033_v29 = vld [vmem:[%s9822_s19 + $0x1ab0] sm:$0xff]  ;;  %v7058_v36 = vld [vmem:[%s9822_s19 + $0x1b78] sm:$0xff]  ;;  %v7072_v47 = vld [vmem:[%s9822_s19 + $0x1be8] sm:$0xff] }
 0x3ca   : > { %9074 = vmatpush1.bf16.msra.mxu0 %v9073_v61  ;;  %v9221_v61 = vpack.c.bf16 %v6993_v26, %v6985_v56  ;;  %v7041_v30 = vld [vmem:[%s9822_s19 + $0x1af0] sm:$0xff]  ;;  %v9235_v44 = vpack.c.bf16 %v7058_v36, %v7050_v33  ;;  %v7087_v9 = vld [vmem:[%s9822_s19 + $0x1c60] sm:$0xff]  ;;  %v7098_v16 = vld [vmem:[%s9822_s19 + $0x1cb8] sm:$0xff] }
 0x3cb   : > { %9138 = vmatpush1.bf16.msra.mxu1 %v9137_v62  ;;  %9076 = vmatprep.subr.bf16.mxu0 %v9075_v2  ;;  %v9159_v62 = vpack.c.bf16 %v7008_v59, %v7000_v58  ;;  %v6999_v2 = vld [vmem:[%s9822_s19 + $0x19a0] sm:$0xff]  ;;  %v9233_v39 = vpack.c.bf16 %v7041_v30, %v7033_v29  ;;  %v7049_v42 = vld [vmem:[%s9822_s19 + $0x1b30] sm:$0xff]  ;;  %v9175_v58 = vpack.c.bf16 %v7072_v47, %v7064_v45  ;;  %v7112_v29 = vld [vmem:[%s9822_s19 + $0x1d28] sm:$0xff] }
 0x3cc   : > { %9140 = vmatprep.subr.bf16.mxu1 %v9139_v7  ;;  %v7009_v7 = vld [vmem:[%s9822_s19 + $0x19f0] sm:$0xff]  ;;  %v9161_v11 = vpack.c.bf16 %v7007_v3, %v6999_v2  ;;  %v7063_v59 = vld [vmem:[%s9822_s19 + $0x1ba0] sm:$0xff]  ;;  %v7088_v2 = vld [vmem:[%s9822_s19 + $0x1c68] sm:$0xff] }
 0x3cd   : > { %v9225_v12 = vpack.c.bf16 %v7009_v7, %v7001_v4  ;;  %v7082_v3 = vld [vmem:[%s9822_s19 + $0x1c38] sm:$0xff]  ;;  %v7079_v7 = vld [vmem:[%s9822_s19 + $0x1c20] sm:$0xff]  ;;  %v7081_v10 = vld [vmem:[%s9822_s19 + $0x1c30] sm:$0xff] }
 0x3ce   : > { %9078 = vmatpush1.bf16.msra.mxu0 %v9077_v13  ;;  %v7090_v4 = vld [vmem:[%s9822_s19 + $0x1c78] sm:$0xff]  ;;  %v9181_v51 = vpack.c.bf16 %v7087_v9, %v7079_v7  ;;  %v7121_v45 = vld [vmem:[%s9822_s19 + $0x1d70] sm:$0xff]  ;;  %v7144_v9 = vld [vmem:[%s9822_s19 + $0x1e28] sm:$0xff] }
 0x3cf   : > { %9142 = vmatpush1.bf16.msra.mxu1 %v9141_v14  ;;  %9080 = vmatprep.subr.bf16.mxu0 %v9079_v15  ;;  %v7015_v14 = vld [vmem:[%s9822_s19 + $0x1a20] sm:$0xff]  ;;  %v7129_v7 = vld [vmem:[%s9822_s19 + $0x1db0] sm:$0xff] }
 0x3d0   : > { %9144 = vmatprep.subr.bf16.mxu1 %v9143_v19  ;;  %v7023_v15 = vld [vmem:[%s9822_s19 + $0x1a60] sm:$0xff]  ;;  %v7032_v19 = vld [vmem:[%s9822_s19 + $0x1aa8] sm:$0xff] }
 0x3d1   : > { %v9165_v23 = vpack.c.bf16 %v7023_v15, %v7015_v14  ;;  %v7104_v14 = vld [vmem:[%s9822_s19 + $0x1ce8] sm:$0xff]  ;;  %v6689_v15 = vld [vmem:[%s10488_s17 + $0x50] sm:$0x77] }
 0x3d2   : > { %9082 = vmatpush1.bf16.msra.mxu0 %v9081_v25  ;;  %v9167_v25 = vpack.c.bf16 %v7040_v20, %v7032_v19  ;;  %v7095_v19 = vld [vmem:[%s9822_s19 + $0x1ca0] sm:$0xff]  ;;  %v6690_v20 = vld [vmem:[%s10488_s17 + $0x58] sm:$0x77] }
 0x3d3   : > { %9146 = vmatpush1.bf16.msra.mxu1 %v9145_v27  ;;  %9148 = vmatprep.subr.bf16.mxu0 %v9147_v28  ;;  %v7031_v27 = vld [vmem:[%s9822_s19 + $0x1aa0] sm:$0xff]  ;;  %v4145_v33 = vcombine.high %v6690_v20, %v6690_v20 }
 0x3d4   : > { %9212 = vmatprep.subr.bf16.mxu1 %v9211_v35  ;;  %v7039_v28 = vld [vmem:[%s9822_s19 + $0x1ae0] sm:$0xff]  ;;  %v7048_v35 = vld [vmem:[%s9822_s19 + $0x1b28] sm:$0xff] }
 0x3d5   : > { %5066 = vmatmul.mubr.f32.vlgmr.msra.gmra.mrb[28].mxu0 %v11629_v6  ;;  %v9169_v38 = vpack.c.bf16 %v7039_v28, %v7031_v27  ;;  %v4144_v27 = vcombine.high %v6689_v15, %v6689_v15 }
 0x3d6   : > { %5137 = vmatmul.mubr.f32.vlgmr.msra.gmra.mrb[28].mxu1 %v11629_v6  ;;  %9150 = vmatpush1.bf16.msra.mxu0 %v9149_v40  ;;  %v7002_v6 = vld [vmem:[%s9822_s19 + $0x19b8] sm:$0xff]  ;;  %v9171_v40 = vpack.c.bf16 %v7056_v31, %v7048_v35 }
 0x3d7   : > { %9214 = vmatpush1.bf16.msra.mxu1 %v9213_v46  ;;  %9152 = vmatprep.subr.bf16.mxu0 %v9151_v41  ;;  %v9223_v5 = vpack.c.bf16 %v7010_v60, %v7002_v6  ;;  %v7047_v46 = vld [vmem:[%s9822_s19 + $0x1b20] sm:$0xff]  ;;  %v7065_v60 = vld [vmem:[%s9822_s19 + $0x1bb0] sm:$0xff]  ;;  %v7114_v35 = vld [vmem:[%s9822_s19 + $0x1d38] sm:$0xff] }
 0x3d8   : > { %9216 = vmatprep.subr.bf16.mxu1 %v9215_v0  ;;  %5207 = vmatprep.mubr.f32.mxu0 %v9545_v1  ;;  %v7055_v41 = vld [vmem:[%s9822_s19 + $0x1b60] sm:$0xff]  ;;  %v7057_v0 = vld [vmem:[%s9822_s19 + $0x1b70] sm:$0xff]  ;;  %v7122_v31 = vld [vmem:[%s9822_s19 + $0x1d78] sm:$0xff] }
 0x3d9   : > { %5278 = vmatprep.mubr.f32.mxu1 %v9545_v1  ;;  %v7024_v1 = vld [vmem:[%s9822_s19 + $0x1a68] sm:$0xff]  ;;  %v9173_v56 = vpack.c.bf16 %v7055_v41, %v7047_v46  ;;  %v9237_v26 = vpack.c.bf16 %v7057_v0, %v7049_v42  ;;  %v7071_v6 = vld [vmem:[%s9822_s19 + $0x1be0] sm:$0xff]  ;;  %v7113_v0 = vld [vmem:[%s9822_s19 + $0x1d30] sm:$0xff] }
 0x3da   : > { %9154 = vmatpush1.bf16.msra.mxu0 %v9153_v52  ;;  %v9163_v13 = vpack.c.bf16 %v7024_v1, %v7016_v8  ;;  %v7066_v52 = vld [vmem:[%s9822_s19 + $0x1bb8] sm:$0xff] }
 0x3db   : > { %9218 = vmatpush1.bf16.msra.mxu1 %v9217_v53  ;;  %9156 = vmatprep.subr.bf16.mxu0 %v9155_v54  ;;  %v7074_v53 = vld [vmem:[%s9822_s19 + $0x1bf8] sm:$0xff] }
 0x3dc   : > { %9220 = vmatprep.subr.bf16.mxu1 %v9219_v57 }
 0x3de   : > { %9158 = vmatpush1.bf16.msra.mxu0 %v9157_v63  ;;  %v9239_v63 = vpack.c.bf16 %v7074_v53, %v7066_v52  ;;  %v7136_v52 = vld [vmem:[%s9822_s19 + $0x1de8] sm:$0xff] }
 0x3df   : > { %9222 = vmatpush1.bf16.msra.mxu1 %v9221_v61  ;;  %9160 = vmatprep.subr.bf16.mxu0 %v9159_v62  ;;  %v7073_v61 = vld [vmem:[%s9822_s19 + $0x1bf0] sm:$0xff]  ;;  %v7080_v62 = vld [vmem:[%s9822_s19 + $0x1c28] sm:$0xff] }
 0x3e0   : > { %9224 = vmatprep.subr.bf16.mxu1 %v9223_v5  ;;  %v9177_v5 = vpack.c.bf16 %v7071_v6, %v7063_v59  ;;  %v9241_v8 = vpack.c.bf16 %v7073_v61, %v7065_v60  ;;  %v9179_v1 = vpack.c.bf16 %v7088_v2, %v7080_v62  ;;  %v9253_v59 = vpack.c.bf16 %v7121_v45, %v7113_v0  ;;  %v7127_v61 = vld [vmem:[%s9822_s19 + $0x1da0] sm:$0xff] }
 0x3e1   : > { %v7135_v62 = vld [vmem:[%s9822_s19 + $0x1de0] sm:$0xff] }
 0x3e2   : > { %9162 = vmatpush1.bf16.msra.mxu0 %v9161_v11  ;;  %v7089_v11 = vld [vmem:[%s9822_s19 + $0x1c70] sm:$0xff]  ;;  %v7175_v0 = vld [vmem:[%s9822_s19 + $0x1f20] sm:$0xff] }
 0x3e3   : > { %9226 = vmatpush1.bf16.msra.mxu1 %v9225_v12  ;;  %9164 = vmatprep.subr.bf16.mxu0 %v9163_v13  ;;  %v9243_v12 = vpack.c.bf16 %v7090_v4, %v7082_v3  ;;  %v7096_v13 = vld [vmem:[%s9822_s19 + $0x1ca8] sm:$0xff]  ;;  %v9245_v21 = vpack.c.bf16 %v7089_v11, %v7081_v10  ;;  %v7183_v45 = vld [vmem:[%s9822_s19 + $0x1f60] sm:$0xff] }
 0x3e4   : > { %9228 = vmatprep.subr.bf16.mxu1 %v9227_v50  ;;  %v7106_v50 = vld [vmem:[%s9822_s19 + $0x1cf8] sm:$0xff]  ;;  %v9183_v22 = vpack.c.bf16 %v7104_v14, %v7096_v13  ;;  %v7152_v11 = vld [vmem:[%s9822_s19 + $0x1e68] sm:$0xff] }
 0x3e5   : > { %v9247_v28 = vpack.c.bf16 %v7106_v50, %v7098_v16  ;;  %v7154_v13 = vld [vmem:[%s9822_s19 + $0x1e78] sm:$0xff]  ;;  %v7143_v50 = vld [vmem:[%s9822_s19 + $0x1e20] sm:$0xff] }
 0x3e6   : > { %9166 = vmatpush1.bf16.msra.mxu0 %v9165_v23  ;;  %v7103_v23 = vld [vmem:[%s9822_s19 + $0x1ce0] sm:$0xff] }
 0x3e7   : > { %9230 = vmatpush1.bf16.msra.mxu1 %v9229_v24  ;;  %9168 = vmatprep.subr.bf16.mxu0 %v9167_v25  ;;  %v7097_v24 = vld [vmem:[%s9822_s19 + $0x1cb0] sm:$0xff] }
 0x3e8   : > { %v3950_v43 = vpop.f32.mrb[22].mxu0  ;;  %9232 = vmatprep.subr.bf16.mxu1 %v9231_v32  ;;  %v7105_v25 = vld [vmem:[%s9822_s19 + $0x1cf0] sm:$0xff]  ;;  %v7120_v32 = vld [vmem:[%s9822_s19 + $0x1d68] sm:$0xff] }
 0x3e9   : > { %v3951_v48 = vadd.f32 %v3950_v43, %v10160_v34  ;;  %v3952_v17 = vpop.f32.mrb[23].mxu0  ;;  %v4021_v18 = vpop.f32.mrb[22].mxu1  ;;  %v9187_v43 = vpack.c.bf16 %v7120_v32, %v7112_v29 }
 0x3ea   : > { %v3953_v54 = vadd.f32 %v3952_v17, %v10160_v34  ;;  %9170 = vmatpush1.bf16.msra.mxu0 %v9169_v38  ;;  %v4022_v37 = vadd.f32 %v4021_v18, %v10160_v34  ;;  %v4023_v55 = vpop.f32.mrb[23].mxu1  ;;  %v9185_v38 = vpack.c.bf16 %v7103_v23, %v7095_v19  ;;  %v9251_v17 = vpack.c.bf16 %v7122_v31, %v7114_v35  ;;  %v7128_v18 = vld [vmem:[%s9822_s19 + $0x1da8] sm:$0xff]  ;;  %v7145_v19 = vld [vmem:[%s9822_s19 + $0x1e30] sm:$0xff]  ;;  %v7159_v35 = vld [vmem:[%s9822_s19 + $0x1ea0] sm:$0xff] }
 0x3eb   : > { %9422 = vtanh.f32 %v3951_v48  ;;  %9234 = vmatpush1.bf16.msra.mxu1 %v9233_v39  ;;  %v4024_v57 = vadd.f32 %v4023_v55, %v10160_v34  ;;  %9172 = vmatprep.subr.bf16.mxu0 %v9171_v40  ;;  %v9249_v39 = vpack.c.bf16 %v7105_v25, %v7097_v24  ;;  %v7111_v40 = vld [vmem:[%s9822_s19 + $0x1d20] sm:$0xff]  ;;  %v7130_v55 = vld [vmem:[%s9822_s19 + $0x1db8] sm:$0xff]  ;;  %v7160_v23 = vld [vmem:[%s9822_s19 + $0x1ea8] sm:$0xff] }
 0x3ec   : > { %9424 = vtanh.f32 %v3953_v54  ;;  %9236 = vmatprep.subr.bf16.mxu1 %v9235_v44  ;;  %v7119_v44 = vld [vmem:[%s9822_s19 + $0x1d60] sm:$0xff]  ;;  %v7168_v24 = vld [vmem:[%s9822_s19 + $0x1ee8] sm:$0xff] }
 0x3ed   : > { %9426 = vtanh.f32 %v4022_v37  ;;  %v7167_v31 = vld [vmem:[%s9822_s19 + $0x1ee0] sm:$0xff] }
 0x3ee   : > { %9428 = vtanh.f32 %v4024_v57  ;;  %9174 = vmatpush1.bf16.msra.mxu0 %v9173_v56  ;;  %v7138_v56 = vld [vmem:[%s9822_s19 + $0x1df8] sm:$0xff] }
 0x3ef   : > { %9238 = vmatpush1.bf16.msra.mxu1 %v9237_v26  ;;  %9176 = vmatprep.subr.bf16.mxu0 %v9175_v58  ;;  %v9189_v58 = vpack.c.bf16 %v7119_v44, %v7111_v40  ;;  %v7184_v40 = vld [vmem:[%s9822_s19 + $0x1f68] sm:$0xff] }
 0x3f0   : > { %9240 = vmatprep.subr.bf16.mxu1 %v9239_v63  ;;  %v9191_v63 = vpack.c.bf16 %v7136_v52, %v7128_v18  ;;  %v7192_v18 = vld [vmem:[%s9822_s19 + $0x1fa8] sm:$0xff] }
 0x3f1   : > { %v7200_v52 = vld [vmem:[%s9822_s19 + $0x1fe8] sm:$0xff] }
 0x3f2   : > { %9178 = vmatpush1.bf16.msra.mxu0 %v9177_v5  ;;  %v9255_v5 = vpack.c.bf16 %v7138_v56, %v7130_v55  ;;  %v9207_v56 = vpack.c.bf16 %v7200_v52, %v7192_v18  ;;  %v7213_v18 = vld [vmem:[%s10180_s30 + $0x70] sm:$0x77]  ;;  %v7214_v52 = vld [vmem:[%s10180_s30 + $0x78] sm:$0x77] }
 0x3f3   : > { %9242 = vmatpush1.bf16.msra.mxu1 %v9241_v8  ;;  %9180 = vmatprep.subr.bf16.mxu0 %v9179_v1  ;;  %v7137_v8 = vld [vmem:[%s9822_s19 + $0x1df0] sm:$0xff] }
 0x3f4   : > { %9244 = vmatprep.subr.bf16.mxu1 %v9243_v12  ;;  %v7146_v12 = vld [vmem:[%s9822_s19 + $0x1e38] sm:$0xff] }
 0x3f5   : > { %v9423_v30 = vpop.eup %9422 }
 0x3f6   : > { %v9425_v36 = vpop.eup %9424  ;;  %9182 = vmatpush1.bf16.msra.mxu0 %v9181_v51  ;;  %v4154_v46 = vsub.f32 %v9423_v30, %v6689_v15  ;;  %v9257_v15 = vpack.c.bf16 %v7137_v8, %v7129_v7  ;;  %v7151_v51 = vld [vmem:[%s9822_s19 + $0x1e60] sm:$0xff] }
 0x3f7   : > { %v9427_v41 = vpop.eup %9426  ;;  %v4065_v42 = vcombine.low %v9423_v30, %v9425_v36  ;;  %9246 = vmatpush1.bf16.msra.mxu1 %v9245_v21  ;;  %9184 = vmatprep.subr.bf16.mxu0 %v9183_v22  ;;  %v4155_v47 = vsub.f32 %v9425_v36, %v4144_v27  ;;  %v9259_v21 = vpack.c.bf16 %v7154_v13, %v7146_v12  ;;  %v7153_v22 = vld [vmem:[%s9822_s19 + $0x1e70] sm:$0xff]  ;;  %v7162_v27 = vld [vmem:[%s9822_s19 + $0x1eb8] sm:$0xff] }
 0x3f8   : > { %v9429_v48 = vpop.eup %9428  ;;  %9248 = vmatprep.subr.bf16.mxu1 %v9247_v28  ;;  %v4156_v53 = vsub.f32 %v9427_v41, %v6690_v20  ;;  %v4162_v54 = vand.u32 2147483647, %v4154_v46  ;;  %v9195_v20 = vpack.c.bf16 %v7152_v11, %v7144_v9  ;;  %v7170_v28 = vld [vmem:[%s9822_s19 + $0x1ef8] sm:$0xff]  ;;  %v9197_v29 = vpack.c.bf16 %v7151_v51, %v7143_v50 }
 0x3f9   : > { %6681 = vst [vmem:[%s10521_s21 + $0x50] sm:$0x77] %v4065_v42  ;;  %v4066_v37 = vcombine.low %v9427_v41, %v9429_v48  ;;  %v4157_v57 = vsub.f32 %v9429_v48, %v4145_v33  ;;  %v4163_v26 = vand.u32 2147483647, %v4155_v47  ;;  %v9261_v32 = vpack.c.bf16 %v7153_v22, %v7145_v19  ;;  %v7161_v33 = vld [vmem:[%s9822_s19 + $0x1eb0] sm:$0xff]  ;;  %v7178_v46 = vld [vmem:[%s9822_s19 + $0x1f38] sm:$0xff] }
 0x3fa   : > { %9186 = vmatpush1.bf16.msra.mxu0 %v9185_v38  ;;  %v4164_v6 = vand.u32 2147483647, %v4156_v53  ;;  %v4173_v60 = vsel %vm1591_vm0, %v4162_v54, 0.0  ;;  %v9199_v30 = vpack.c.bf16 %v7168_v24, %v7160_v23  ;;  %v9263_v36 = vpack.c.bf16 %v7170_v28, %v7162_v27  ;;  %v7169_v38 = vld [vmem:[%s9822_s19 + $0x1ef0] sm:$0xff]  ;;  %v7186_v41 = vld [vmem:[%s9822_s19 + $0x1f78] sm:$0xff] }
 0x3fb   : > { %6682 = vst [vmem:[%s10521_s21 + $0x58] sm:$0x77] %v4066_v37  ;;  %9250 = vmatpush1.bf16.msra.mxu1 %v9249_v39  ;;  %9188 = vmatprep.subr.bf16.mxu0 %v9187_v43  ;;  %v4165_v2 = vand.u32 2147483647, %v4157_v57  ;;  %v4174_v3 = vadd.f32 %v4173_v60, %v11735_v49  ;;  %v4175_v4 = vsel %vm1591_vm0, %v4163_v26, 0.0  ;;  %v9193_v49 = vpack.c.bf16 %v7135_v62, %v7127_v61  ;;  %v7176_v39 = vld [vmem:[%s9822_s19 + $0x1f28] sm:$0xff] }
 0x3fc   : > { %9252 = vmatprep.subr.bf16.mxu1 %v9251_v17  ;;  %v4177_v1 = vsel %vm1591_vm0, %v4164_v6, 0.0  ;;  %v9201_v42 = vpack.c.bf16 %v7167_v31, %v7159_v35  ;;  %v9265_v43 = vpack.c.bf16 %v7169_v38, %v7161_v33  ;;  %v9203_v44 = vpack.c.bf16 %v7184_v40, %v7176_v39  ;;  %v7177_v47 = vld [vmem:[%s9822_s19 + $0x1f30] sm:$0xff]  ;;  %v7194_v53 = vld [vmem:[%s9822_s19 + $0x1fb8] sm:$0xff]  ;;  %v7191_v57 = vld [vmem:[%s9822_s19 + $0x1fa0] sm:$0xff] }
 0x3fd   : > { %v4176_v10 = vadd.f32 %v4175_v4, %v4174_v3  ;;  %v4179_v14 = vsel %vm1591_vm0, %v4165_v2, 0.0  ;;  %v9267_v48 = vpack.c.bf16 %v7186_v41, %v7178_v46  ;;  %v7185_v17 = vld [vmem:[%s9822_s19 + $0x1f70] sm:$0xff]  ;;  %v7202_v54 = vld [vmem:[%s9822_s19 + $0x1ff8] sm:$0xff]  ;;  %v9205_v37 = vpack.c.bf16 %v7183_v45, %v7175_v0  ;;  %v7199_v26 = vld [vmem:[%s9822_s19 + $0x1fe0] sm:$0xff] }
 0x3fe   : > { %9190 = vmatpush1.bf16.msra.mxu0 %v9189_v58  ;;  %v9269_v55 = vpack.c.bf16 %v7185_v17, %v7177_v47  ;;  %v9271_v58 = vpack.c.bf16 %v7202_v54, %v7194_v53  ;;  %v7201_v6 = vld [vmem:[%s9822_s19 + $0x1ff0] sm:$0xff]  ;;  %v9209_v60 = vpack.c.bf16 %v7199_v26, %v7191_v57  ;;  %v9469_v4 = vld [vmem:[%s11971_s4] sm:$0x77]  ;;  %v5346_v53 = vcombine.high %v7213_v18, %v7213_v18 }
 0x3ff   : > { %9254 = vmatpush1.bf16.msra.mxu1 %v9253_v59  ;;  %9192 = vmatprep.subr.bf16.mxu0 %v9191_v63  ;;  %v4178_v16 = vadd.f32 %v4177_v1, %v4176_v10  ;;  %v7193_v59 = vld [vmem:[%s9822_s19 + $0x1fb0] sm:$0xff]  ;;  %s9276_s19 = spop %9275 }
 0x400   : > { %9256 = vmatprep.subr.bf16.mxu1 %v9255_v5  ;;  %v9273_v63 = vpack.c.bf16 %v7201_v6, %v7193_v59 }
 0x401   : > { %v4180_v25 = vadd.f32 %v4179_v14, %v4178_v16  ;;  %v7212_v16 = vld [vmem:[%s10180_s30 + $0x68] sm:$0x77] }
 0x402   : > { %9194 = vmatpush1.bf16.msra.mxu0 %v9193_v49  ;;  %v5345_v19 = vcombine.high %v7212_v16, %v7212_v16 }
 0x403   : > { %9258 = vmatpush1.bf16.msra.mxu1 %v9257_v15  ;;  %4181 = vadd.xlane.f32.xlu1 %v4180_v25  ;;  %v7211_v15 = vld [vmem:[%s10180_s30 + $0x60] sm:$0x77]  ;;  %s9278_s30 = spop %9277 }
 0x404   : > { %9196 = vmatprep.subr.bf16.mxu0 %v9195_v20  ;;  %9260 = vmatprep.subr.bf16.mxu1 %v9259_v21  ;;  %v5344_v50 = vcombine.high %v7211_v15, %v7211_v15  ;;  %s9280_s15 = spop %9279 }
 0x405   : > { %s9282_s16 = spop %9281 }
 0x406   : > { %9198 = vmatpush1.bf16.msra.mxu0 %v9197_v29  ;;  %s2931_s22 = sadd.f32 %s9282_s16, %s9280_s15 }
 0x407   : > { %9262 = vmatpush1.bf16.msra.mxu1 %v9261_v32  ;;  %9200 = vmatprep.subr.bf16.mxu0 %v9199_v30 }
 0x408   : > { %9264 = vmatprep.subr.bf16.mxu1 %v9263_v36 }
 0x40a   : > { %9202 = vmatpush1.bf16.msra.mxu0 %v9201_v42 }
 0x40b   : > { %9266 = vmatpush1.bf16.msra.mxu1 %v9265_v43  ;;  %9204 = vmatprep.subr.bf16.mxu0 %v9203_v44 }
 0x40c   : > { %9268 = vmatprep.subr.bf16.mxu1 %v9267_v48 }
 0x40e   : > { %9206 = vmatpush1.bf16.msra.mxu0 %v9205_v37  ;;  %v5347_v37 = vcombine.high %v7214_v52, %v7214_v52 }
 0x40f   : > { %9270 = vmatpush1.bf16.msra.mxu1 %v9269_v55  ;;  %9208 = vmatprep.subr.bf16.mxu0 %v9207_v56 }
 0x410   : > { %v4125_v61 = vpop.xlane.xlu1 %4124  ;;  %9272 = vmatprep.subr.bf16.mxu1 %v9271_v58 }
 0x411   : > { %v4126_v62 = vrot.slane %v4125_v61, 4 }
 0x412   : > { %9210 = vmatpush1.bf16.msra.mxu0 %v9209_v60 }
 0x413   : > { %v4127_v2 = vadd.f32 %v4126_v62, %v4125_v61  ;;  %9274 = vmatpush1.bf16.msra.mxu1 %v9273_v63 }
 0x415   : > { %v4128_v3 = vrot.slane %v4127_v2, 2  ;;  %5208 = vmatmul.mubr.f32.vlgmr.msra.gmra.mrb[30].mxu0 %v9469_v4 }
 0x416   : > { %5279 = vmatmul.mubr.f32.vlgmr.msra.gmra.mrb[30].mxu1 %v9469_v4 }
 0x417   : > { %v4129_v5 = vadd.f32 %v4128_v3, %v4127_v2 }
 0x419   : > { %v4130_v7 = vrot.slane %v4129_v5, 1 }
 0x41b   : > { %v4131_v8 = vadd.f32 %v4130_v7, %v4129_v5 }
 0x41d   : > { %9283 = vpush %v4131_v8 }
 0x428   : > { %v4518_v1 = vpop.f32.mrb[24].mxu0 }
 0x429   : > { %v4519_v9 = vadd.f32 %v4518_v1, %v10160_v34  ;;  %v4520_v10 = vpop.f32.mrb[25].mxu0  ;;  %v4589_v11 = vpop.f32.mrb[24].mxu1 }
 0x42a   : > { %v4521_v12 = vadd.f32 %v4520_v10, %v10160_v34  ;;  %v4590_v13 = vadd.f32 %v4589_v11, %v10160_v34  ;;  %v4591_v49 = vpop.f32.mrb[25].mxu1 }
 0x42b   : > { %9430 = vtanh.f32 %v4519_v9  ;;  %v4592_v14 = vadd.f32 %v4591_v49, %v10160_v34 }
 0x42c   : > { %9432 = vtanh.f32 %v4521_v12 }
 0x42d   : > { %9434 = vtanh.f32 %v4590_v13 }
 0x42e   : > { %9436 = vtanh.f32 %v4592_v14 }
 0x435   : > { %v9431_v51 = vpop.eup %9430 }
 0x436   : > { %v9433_v20 = vpop.eup %9432  ;;  %v5352_v21 = vsub.f32 %v9431_v51, %v7211_v15 }
 0x437   : > { %v9435_v22 = vpop.eup %9434  ;;  %v5301_v23 = vcombine.low %v9431_v51, %v9433_v20  ;;  %v5353_v24 = vsub.f32 %v9433_v20, %v5344_v50 }
 0x438   : > { %v9437_v25 = vpop.eup %9436  ;;  %v5360_v27 = vand.u32 2147483647, %v5352_v21  ;;  %v5354_v28 = vsub.f32 %v9435_v22, %v7212_v16 }
 0x439   : > { %7203 = vst [vmem:[%s10213_s11 + $0x60] sm:$0x77] %v5301_v23  ;;  %v5361_v29 = vand.u32 2147483647, %v5353_v24  ;;  %v5302_v32 = vcombine.low %v9435_v22, %v9437_v25  ;;  %v5355_v30 = vsub.f32 %v9437_v25, %v5345_v19 }
 0x43a   : > { %v5362_v35 = vand.u32 2147483647, %v5354_v28  ;;  %v5368_v31 = vsel %vm1591_vm0, %v5360_v27, 0.0  ;;  %v7215_v27 = vld [vmem:[%s10488_s17 + $0x60] sm:$0x77] }
 0x43b   : > { %7204 = vst [vmem:[%s10213_s11 + $0x68] sm:$0x77] %v5302_v32  ;;  %v5363_v33 = vand.u32 2147483647, %v5355_v30  ;;  %v5369_v36 = vsel %vm1591_vm0, %v5361_v29, 0.0  ;;  %v5401_v29 = vcombine.high %v7215_v27, %v7215_v27 }
 0x43c   : > { %v5370_v38 = vadd.f32 %v5369_v36, %v5368_v31  ;;  %v5371_v39 = vsel %vm1591_vm0, %v5362_v35, 0.0  ;;  %v7216_v28 = vld [vmem:[%s10488_s17 + $0x68] sm:$0x77] }
 0x43d   : > { %v5373_v40 = vsel %vm1591_vm0, %v5363_v33, 0.0  ;;  %v5402_v30 = vcombine.high %v7216_v28, %v7216_v28 }
 0x43e   : > { %v5372_v46 = vadd.f32 %v5371_v39, %v5370_v38 }
 0x440   : > { %v5374_v41 = vadd.f32 %v5373_v40, %v5372_v46 }
 0x44e   : > { %s9284_s18 = spop %9283 }
 0x468   : > { %v4660_v42 = vpop.f32.mrb[26].mxu0 }
 0x469   : > { %v4661_v43 = vadd.f32 %v4660_v42, %v10160_v34  ;;  %v4662_v44 = vpop.f32.mrb[27].mxu0  ;;  %v4731_v0 = vpop.f32.mrb[26].mxu1 }
 0x46a   : > { %v4663_v45 = vadd.f32 %v4662_v44, %v10160_v34  ;;  %v4732_v47 = vadd.f32 %v4731_v0, %v10160_v34  ;;  %v4733_v48 = vpop.f32.mrb[27].mxu1 }
 0x46b   : > { %9438 = vtanh.f32 %v4661_v43  ;;  %v4734_v17 = vadd.f32 %v4733_v48, %v10160_v34 }
 0x46c   : > { %9440 = vtanh.f32 %v4663_v45 }
 0x46d   : > { %9442 = vtanh.f32 %v4732_v47 }
 0x46e   : > { %9444 = vtanh.f32 %v4734_v17 }
 0x475   : > { %v9439_v54 = vpop.eup %9438 }
 0x476   : > { %v9441_v55 = vpop.eup %9440  ;;  %v5356_v56 = vsub.f32 %v9439_v54, %v7213_v18 }
 0x477   : > { %v9443_v57 = vpop.eup %9442  ;;  %v5303_v26 = vcombine.low %v9439_v54, %v9441_v55  ;;  %v5357_v58 = vsub.f32 %v9441_v55, %v5346_v53 }
 0x478   : > { %v9445_v59 = vpop.eup %9444  ;;  %v5358_v6 = vsub.f32 %v9443_v57, %v7214_v52  ;;  %v5364_v60 = vand.u32 2147483647, %v5356_v56 }
 0x479   : > { %7205 = vst [vmem:[%s10213_s11 + $0x70] sm:$0x77] %v5303_v26  ;;  %v5304_v63 = vcombine.low %v9443_v57, %v9445_v59  ;;  %v5359_v61 = vsub.f32 %v9445_v59, %v5347_v37  ;;  %v5365_v62 = vand.u32 2147483647, %v5357_v58 }
 0x47a   : > { %v5366_v2 = vand.u32 2147483647, %v5358_v6  ;;  %v5375_v3 = vsel %vm1591_vm0, %v5364_v60, 0.0  ;;  %v7217_v6 = vld [vmem:[%s10488_s17 + $0x70] sm:$0x77] }
 0x47b   : > { %7206 = vst [vmem:[%s10213_s11 + $0x78] sm:$0x77] %v5304_v63  ;;  %v5367_v4 = vand.u32 2147483647, %v5359_v61  ;;  %v5376_v5 = vadd.f32 %v5375_v3, %v5374_v41  ;;  %v5377_v7 = vsel %vm1591_vm0, %v5365_v62, 0.0  ;;  %v5403_v63 = vcombine.high %v7217_v6, %v7217_v6  ;;  %s1672_s11 = sadd.f32 %s9278_s30, %s9276_s19  ;;  %s412_s19 = scalar_lea.vmem %s11975_s8, %s11983_s28 }
 0x47c   : > { %v5379_v8 = vsel %vm1591_vm0, %v5366_v2, 0.0  ;;  %v7218_v60 = vld [vmem:[%s10488_s17 + $0x78] sm:$0x77]  ;;  %s2932_s17 = sadd.s32 1, %s9535_s29 }
 0x47d   : > { %v5378_v1 = vadd.f32 %v5377_v7, %v5376_v5  ;;  %v5381_v9 = vsel %vm1591_vm0, %v5367_v4, 0.0  ;;  %v5404_v62 = vcombine.high %v7218_v60, %v7218_v60  ;;  %p2933_p5 = scmp.lt.s32.totalorder %s2932_s17, 8  ;;  %s11977_s11 = smov (!%p1674_p4, %s1672_s11), 0.0 }
 0x47f   : > { %v5380_v10 = vadd.f32 %v5379_v8, %v5378_v1  ;;  %s11979_s22 = smov (!%p2933_p5, %s2931_s22), 0.0 }
 0x480   : > { %s2935_s26 = sadd.f32 %s11979_s22, %s11977_s11 }
 0x481   : > { %v5382_v11 = vadd.f32 %v5381_v9, %v5380_v10 }
 0x483   : > { %5383 = vadd.xlane.f32.xlu1 %v5382_v11 }
 0x490   : > { %v4182_v12 = vpop.xlane.xlu1 %4181 }
 0x491   : > { %v4183_v13 = vrot.slane %v4182_v12, 4 }
 0x493   : > { %v4184_v49 = vadd.f32 %v4183_v13, %v4182_v12 }
 0x495   : > { %v4185_v14 = vrot.slane %v4184_v49, 2 }
 0x497   : > { %v4186_v15 = vadd.f32 %v4185_v14, %v4184_v49 }
 0x499   : > { %v4187_v16 = vrot.slane %v4186_v15, 1 }
 0x49b   : > { %v4188_v50 = vadd.f32 %v4187_v16, %v4186_v15 }
 0x49d   : > { %9285 = vpush %v4188_v50 }
 0x4a8   : > { %v5067_v51 = vpop.f32.mrb[28].mxu0 }
 0x4a9   : > { %v5068_v19 = vadd.f32 %v5067_v51, %v10160_v34  ;;  %v5069_v20 = vpop.f32.mrb[29].mxu0  ;;  %v5138_v21 = vpop.f32.mrb[28].mxu1 }
 0x4aa   : > { %v5070_v22 = vadd.f32 %v5069_v20, %v10160_v34  ;;  %v5139_v23 = vadd.f32 %v5138_v21, %v10160_v34  ;;  %v5140_v24 = vpop.f32.mrb[29].mxu1 }
 0x4ab   : > { %9446 = vtanh.f32 %v5068_v19  ;;  %v5141_v25 = vadd.f32 %v5140_v24, %v10160_v34 }
 0x4ac   : > { %9448 = vtanh.f32 %v5070_v22 }
 0x4ad   : > { %9450 = vtanh.f32 %v5139_v23 }
 0x4ae   : > { %9452 = vtanh.f32 %v5141_v25 }
 0x4b5   : > { %v9447_v32 = vpop.eup %9446 }
 0x4b6   : > { %v9449_v35 = vpop.eup %9448  ;;  %v5409_v31 = vsub.f32 %v9447_v32, %v7215_v27 }
 0x4b7   : > { %v9451_v33 = vpop.eup %9450  ;;  %v5322_v36 = vcombine.low %v9447_v32, %v9449_v35  ;;  %v5410_v38 = vsub.f32 %v9449_v35, %v5401_v29 }
 0x4b8   : > { %v9453_v39 = vpop.eup %9452  ;;  %v5417_v40 = vand.u32 2147483647, %v5409_v31  ;;  %v5411_v46 = vsub.f32 %v9451_v33, %v7216_v28 }
 0x4b9   : > { %7207 = vst [vmem:[%s10521_s21 + $0x60] sm:$0x77] %v5322_v36  ;;  %v5418_v41 = vand.u32 2147483647, %v5410_v38  ;;  %v5323_v42 = vcombine.low %v9451_v33, %v9453_v39  ;;  %v5412_v43 = vsub.f32 %v9453_v39, %v5402_v30 }
 0x4ba   : > { %v5419_v44 = vand.u32 2147483647, %v5411_v46  ;;  %v5425_v0 = vsel %vm1591_vm0, %v5417_v40, 0.0 }
 0x4bb   : > { %7208 = vst [vmem:[%s10521_s21 + $0x68] sm:$0x77] %v5323_v42  ;;  %v5420_v45 = vand.u32 2147483647, %v5412_v43  ;;  %v5426_v47 = vsel %vm1591_vm0, %v5418_v41, 0.0 }
 0x4bc   : > { %v5427_v48 = vadd.f32 %v5426_v47, %v5425_v0  ;;  %v5428_v17 = vsel %vm1591_vm0, %v5419_v44, 0.0 }
 0x4bd   : > { %v5430_v18 = vsel %vm1591_vm0, %v5420_v45, 0.0 }
 0x4be   : > { %v5429_v52 = vadd.f32 %v5428_v17, %v5427_v48 }
 0x4c0   : > { %v5431_v53 = vadd.f32 %v5430_v18, %v5429_v52 }
 0x4ce   : > { %s9286_s20 = spop %9285 }
 0x4cf   : > { %s4190_s23 = sadd.f32 %s9286_s20, %s9284_s18 }
 0x4e8   : > { %v5209_v54 = vpop.f32.mrb[30].mxu0 }
 0x4e9   : > { %v5210_v37 = vadd.f32 %v5209_v54, %v10160_v34  ;;  %v5280_v55 = vpop.f32.mrb[30].mxu1  ;;  %v5211_v56 = vpop.f32.mrb[31].mxu0 }
 0x4ea   : > { %v5281_v57 = vadd.f32 %v5280_v55, %v10160_v34  ;;  %v5212_v26 = vadd.f32 %v5211_v56, %v10160_v34  ;;  %v5282_v58 = vpop.f32.mrb[31].mxu1 }
 0x4eb   : > { %9454 = vtanh.f32 %v5210_v37  ;;  %v5283_v59 = vadd.f32 %v5282_v58, %v10160_v34 }
 0x4ec   : > { %9456 = vtanh.f32 %v5281_v57 }
 0x4ed   : > { %9458 = vtanh.f32 %v5212_v26 }
 0x4ee   : > { %9460 = vtanh.f32 %v5283_v59 }
 0x4f5   : > { %v9455_v61 = vpop.eup %9454 }
 0x4f6   : > { %v9457_v2 = vpop.eup %9456  ;;  %v5413_v3 = vsub.f32 %v9455_v61, %v7217_v6 }
 0x4f7   : > { %v9459_v4 = vpop.eup %9458  ;;  %v5415_v5 = vsub.f32 %v9457_v2, %v7218_v60 }
 0x4f8   : > { %v9461_v7 = vpop.eup %9460  ;;  %v5324_v8 = vcombine.low %v9455_v61, %v9459_v4  ;;  %v5414_v1 = vsub.f32 %v9459_v4, %v5403_v63  ;;  %v5421_v9 = vand.u32 2147483647, %v5413_v3 }
 0x4f9   : > { %v5325_v10 = vcombine.low %v9457_v2, %v9461_v7  ;;  %v5416_v34 = vsub.f32 %v9461_v7, %v5404_v62  ;;  %v5423_v12 = vand.u32 2147483647, %v5415_v5 }
 0x4fa   : > { %7209 = vst [vmem:[%s10521_s21 + $0x70] sm:$0x77] %v5324_v8  ;;  %v5422_v11 = vand.u32 2147483647, %v5414_v1  ;;  %v5432_v13 = vsel %vm1591_vm0, %v5421_v9, 0.0 }
 0x4fb   : > { %7210 = vst [vmem:[%s10521_s21 + $0x78] sm:$0x77] %v5325_v10  ;;  %v5433_v49 = vadd.f32 %v5432_v13, %v5431_v53  ;;  %v5424_v14 = vand.u32 2147483647, %v5416_v34  ;;  %v5436_v50 = vsel %vm1591_vm0, %v5423_v12, 0.0  ;;  %s4191_s21 = sadd.s32 2, %s9535_s29 }
 0x4fc   : > { %v5434_v15 = vsel %vm1591_vm0, %v5422_v11, 0.0  ;;  %p4192_p6 = scmp.lt.s32.totalorder %s4191_s21, 8 }
 0x4fd   : > { %v5435_v16 = vadd.f32 %v5434_v15, %v5433_v49  ;;  %v5438_v19 = vsel %vm1591_vm0, %v5424_v14, 0.0 }
 0x4fe   : > { %s11981_s23 = smov (!%p4192_p6, %s4190_s23), 0.0 }
 0x4ff   : > { %v5437_v51 = vadd.f32 %v5436_v50, %v5435_v16  ;;  %s4194_s10 = sadd.f32 %s11981_s23, %s2935_s26 }
 0x501   : > { %v5439_v20 = vadd.f32 %v5438_v19, %v5437_v51 }
 0x503   : > { %5440 = vadd.xlane.f32.xlu1 %v5439_v20 }
 0x510   : > { %v5384_v21 = vpop.xlane.xlu1 %5383 }
 0x511   : > { %v5385_v22 = vrot.slane %v5384_v21, 4 }
 0x513   : > { %v5386_v23 = vadd.f32 %v5385_v22, %v5384_v21 }
 0x515   : > { %v5387_v24 = vrot.slane %v5386_v23, 2 }
 0x517   : > { %v5388_v25 = vadd.f32 %v5387_v24, %v5386_v23 }
 0x519   : > { %v5389_v27 = vrot.slane %v5388_v25, 1 }
 0x51b   : > { %v5390_v28 = vadd.f32 %v5389_v27, %v5388_v25 }
 0x51d   : > { %9287 = vpush %v5390_v28 }
 0x54e   : > { %s9288_s25 = spop %9287 }
 0x590   : > { %v5441_v29 = vpop.xlane.xlu1 %5440 }
 0x591   : > { %v5442_v32 = vrot.slane %v5441_v29, 4 }
 0x593   : > { %v5443_v30 = vadd.f32 %v5442_v32, %v5441_v29 }
 0x595   : > { %v5444_v35 = vrot.slane %v5443_v30, 2 }
 0x597   : > { %v5445_v31 = vadd.f32 %v5444_v35, %v5443_v30 }
 0x599   : > { %v5446_v33 = vrot.slane %v5445_v31, 1 }
 0x59b   : > { %v5447_v36 = vadd.f32 %v5446_v33, %v5445_v31 }
 0x59d   : > { %9289 = vpush %v5447_v36 }
 0x5ce   : > { %s9290_s9 = spop %9289 }
 0x5cf   : > { %s5449_s14 = sadd.f32 %s9290_s9, %s9288_s25 }
 0x5d1   : > { %s11985_s14 = smov (!%p5451_p8, %s5449_s14), 0.0 }
 0x5d2   : > { %s5453_s30 = sadd.f32 %s11985_s14, %s4194_s10 }
 0x5d4   : > { %v5454_v38 = vstv %s5453_s30 }
 0x5d5   : > { %5455 = vst [vmem:[%s412_s19] sm:$0x1] %v5454_v38 }
 0x5d6 PF: > { %s19_s27 = sadd.s32 1, %s9476_s27  }
 0x5d7   : > { %p16_p9 = scmp.ge.s32.totalorder %s19_s27, 4  }
 0x5d9   :  { %18 = sbr.rel (!%p16_p9) target bundleno = 1 (0x1), region = 125 }

</bundles_post_ra>
